<compile_context>
chip_gen: v6e
topology: v6e:2x2x1
jax: 0.10.0
libtpu: 0.0.40
codegen_flags: <defaults>
</compile_context>

<pallas_src>
import jax
import jax.numpy as jnp
from jax.experimental import pallas as pl
from jax.experimental.pallas import tpu as pltpu


# ----------------------------------------------------------------------------------
# Fused Pallas kernel: box xywh->xyxy conversion + score *= objectness, one dense slab
# ----------------------------------------------------------------------------------
def _prenms_kernel(x_ref, w1_ref, wconf_ref, out_ref):
    out_w = out_ref.shape[-1]
    x = x_ref[0]                                               # (block_a, no) f32
    # y = [ box(4) | cls(nc) | 0 ]  — one full-width MXU op (no lane slicing).
    y = jnp.dot(x, w1_ref[...], preferred_element_type=jnp.float32,
                precision=jax.lax.Precision.HIGHEST)
    # conf broadcast into the score lanes only: [ 0,0,0,0, conf, ..., conf, 0, ... ]
    conf = jnp.dot(x, wconf_ref[...], preferred_element_type=jnp.float32,
                   precision=jax.lax.Precision.HIGHEST)
    # Box lanes (0..3) get multiplier 1.0; score lanes get conf; pad lanes stay 0.
    lane = jax.lax.broadcasted_iota(jnp.int32, (1, out_w), 1)
    mult = conf + jnp.where(lane < 4, 1.0, 0.0).astype(jnp.float32)
    out_ref[0] = y * mult                                      # (block_a, out_w)


def _pick_block_a(A, cap):
    """Pick a multiple-of-8 anchor tile <= cap; pad A if no clean divisor exists."""
    cap = max(8, min(cap, A))
    cap -= cap % 8
    for b in range(cap, 7, -8):
        if A % b == 0:
            return b, A
    b = cap
    A_pad = ((A + b - 1) // b) * b
    return b, A_pad


def trt7_prenms(x, w1, wconf, *, block_a_cap=2048):
    """x: (B, A, 5+nc) f32 -> dense slab (B, A, out_w) = [box(4) | score(nc) | 0-pad]."""
    B, A, no = x.shape
    out_w = w1.shape[1]
    block_a, A_pad = _pick_block_a(A, block_a_cap)
    if A_pad != A:
        x = jnp.pad(x, ((0, 0), (0, A_pad - A), (0, 0)))
    grid = (B, A_pad // block_a)

    flops = 2 * B * A_pad * no * out_w * 2 + 2 * B * A_pad * out_w
    bytes_accessed = 4 * (B * A_pad * no + B * A_pad * out_w + w1.size + wconf.size)

    out = pl.pallas_call(
        _prenms_kernel,
        out_shape=jax.ShapeDtypeStruct((B, A_pad, out_w), jnp.float32),
        grid=grid,
        in_specs=[
            pl.BlockSpec((1, block_a, no), lambda b, a: (b, a, 0)),
            pl.BlockSpec((no, out_w), lambda b, a: (0, 0)),
            pl.BlockSpec((no, out_w), lambda b, a: (0, 0)),
        ],
        out_specs=pl.BlockSpec((1, block_a, out_w), lambda b, a: (b, a, 0)),
        compiler_params=pltpu.CompilerParams(
            dimension_semantics=("parallel", "parallel")),
        cost_estimate=pl.CostEstimate(flops=flops, transcendentals=0,
                                      bytes_accessed=bytes_accessed),
    )(x, w1, wconf)

    if A_pad != A:
        out = out[:, :A, :]
    return out


# ----------------------------------------------------------------------------------
# TRT7_NMS plugin stub (the PyTorch reference returns random placeholders)
# ----------------------------------------------------------------------------------
def trt7_nms_stub(boxes, scores, *, keep_top_k, key):
    # TODO(synk): TRT::BatchedNMSDynamic_TRT has no Pallas/JAX equivalent; the PyTorch
    # reference itself returns torch.randint/randn placeholders — reproduced here
    # deterministically with jax.random.
    B = boxes.shape[0]
    num_classes = scores.shape[2]
    k1, k2, k3, k4 = jax.random.split(key, 4)
    num_det = jax.random.randint(k1, (B, 1), 0, keep_top_k, dtype=jnp.int32)
    det_boxes = jax.random.normal(k2, (B, keep_top_k, 4), jnp.float32)
    det_scores = jax.random.normal(k3, (B, keep_top_k), jnp.float32)
    det_classes = jax.random.randint(k4, (B, keep_top_k), 0, num_classes,
                                     dtype=jnp.int32)   # PyTorch returns .int()
    return num_det, det_boxes, det_scores, det_classes


# ----------------------------------------------------------------------------------
# ONNX_TRT7 wrapper
# ----------------------------------------------------------------------------------
class ONNX_TRT7:
    """JAX/Pallas port of yolov6 ONNX_TRT7: pre-NMS math fused in one Pallas kernel."""

    def __init__(self, max_obj=100, iou_thres=0.45, score_thres=0.25, nms_key=None):
        self.shareLocation = 1
        self.backgroundLabelId = -1
        self.numClasses = 80
        self.topK = 1000
        self.keepTopK = max_obj
        self.scoreThreshold = score_thres
        self.iouThreshold = iou_thres
        self.isNormalized = 0
        self.clipBoxes = 0
        self.scoreBits = 16
        self.caffeSemantics = 1
        self.plugin_version = '1'
        self.convert_matrix = jnp.array(
            [[1, 0, 1, 0], [0, 1, 0, 1], [-0.5, 0, 0.5, 0], [0, -0.5, 0, 0.5]],
            dtype=jnp.float32)
        self._nms_key = nms_key if nms_key is not None else jax.random.PRNGKey(1)
        self._weights_cache = {}

    def _weights(self, no):
        """Constant matrices turning slice/convert/broadcast into two dense matmuls."""
        if no not in self._weights_cache:
            nc = no - 5
            out_w = ((4 + nc + 127) // 128) * 128          # lane-dense output width
            w1 = jnp.zeros((no, out_w), jnp.float32)
            w1 = w1.at[:4, :4].set(self.convert_matrix)    # box -> xyxy
            w1 = w1.at[5:, 4:4 + nc].set(jnp.eye(nc, dtype=jnp.float32))  # cls select
            wconf = jnp.zeros((no, out_w), jnp.float32).at[4, 4:4 + nc].set(1.0)
            self._weights_cache[no] = (w1, wconf, out_w)
        return self._weights_cache[no]

    def __call__(self, x):
        # x: (B, num_anchors, 5 + nc) float32
        B, A, no = x.shape
        nc = no - 5
        self.numClasses = nc
        w1, wconf, _ = self._weights(no)

        slab = trt7_prenms(x, w1, wconf)                  # (B, A, out_w) lane-dense
        # Views for the NMS consumer (a real NMS kernel would consume the dense slab
        # directly; the TRT stub ignores its inputs so these slices are test-only).
        box = slab[:, :, None, :4]                        # unsqueeze(2): (B, A, 1, 4)
        score = slab[:, :, 4:4 + nc]                      # (B, A, nc)

        num_det, det_boxes, det_scores, det_classes = trt7_nms_stub(
            box, score, keep_top_k=self.keepTopK, key=self._nms_key)
        # PyTorch forward returns the 4-tuple; box/score exposed too for verification.
        return (num_det, det_boxes, det_scores, det_classes), (box, score)


if __name__ == "__main__":
    key = jax.random.PRNGKey(0)
    kx, kn = jax.random.split(key)

    # Detector-head output: (batch, anchors, 4 box + 1 objectness + nc class scores)
    B, A, nc = 2, 512, 80
    no = 5 + nc
    x = jax.random.uniform(kx, (B, A, no), jnp.float32, minval=0.0, maxval=1.0)

    model = ONNX_TRT7(max_obj=100, iou_thres=0.45, score_thres=0.25, nms_key=kn)
    (num_det, det_boxes, det_scores, det_classes), (box, score) = model(x)
    jax.block_until_ready((num_det, det_boxes, det_scores, det_classes, box, score))

    # Pure-JAX reference for the pre-NMS math (exact, elementwise)
    cx, cy, w, h = (x[..., i] for i in range(4))
    ref_box = jnp.stack([cx - 0.5 * w, cy - 0.5 * h, cx + 0.5 * w, cy + 0.5 * h],
                        axis=-1)[:, :, None, :]
    ref_score = x[..., 5:] * x[..., 4:5]

    assert box.shape == (B, A, 1, 4)
    assert score.shape == (B, A, nc)
    assert num_det.shape == (B, 1) and num_det.dtype == jnp.int32
    assert det_boxes.shape == (B, 100, 4)
    assert det_scores.shape == (B, 100)
    assert det_classes.shape == (B, 100) and det_classes.dtype == jnp.int32
    # precision=HIGHEST matmuls against exact selector/±0.5 weights -> near-f32 parity
    assert jnp.allclose(box, ref_box, rtol=1e-4, atol=1e-4)
    assert jnp.allclose(score, ref_score, rtol=1e-4, atol=1e-4)
    print("KERNEL_OK")
</pallas_src>

<mosaic_0001>
module attributes {stable_mosaic.version = 11 : i64} {
  func.func @_prenms_kernel(%arg0: i32, %arg1: i32, %arg2: memref<1x512x85xf32, #tpu.memory_space<vmem>>, %arg3: memref<85x128xf32, #tpu.memory_space<vmem>>, %arg4: memref<85x128xf32, #tpu.memory_space<vmem>>, %arg5: memref<1x512x128xf32, #tpu.memory_space<vmem>>) attributes {dimension_semantics = [#tpu.dimension_semantics<parallel>, #tpu.dimension_semantics<parallel>], iteration_bounds = array<i64: 2, 1>, scalar_prefetch = 0 : i64, scratch_operands = 0 : i64, tpu.core_type = #tpu.core_type<tc>, window_params = [{transform_indices = @transform_0, window_bounds = array<i64: 1, 512, 85>}, {pipeline_mode = #tpu.pipeline_mode<synchronous>, transform_indices = @transform_1, window_bounds = array<i64: 85, 128>}, {pipeline_mode = #tpu.pipeline_mode<synchronous>, transform_indices = @transform_2, window_bounds = array<i64: 85, 128>}, {transform_indices = @transform_3, window_bounds = array<i64: 1, 512, 128>}]} {
    %c0 = arith.constant 0 : index
    %c0_0 = arith.constant 0 : index
    %c0_1 = arith.constant 0 : index
    %0 = vector.load %arg2[%c0, %c0_0, %c0_1] : memref<1x512x85xf32, #tpu.memory_space<vmem>>, vector<1x512x85xf32>
    %1 = vector.shape_cast %0 : vector<1x512x85xf32> to vector<512x85xf32>
    %c0_2 = arith.constant 0 : index
    %c0_3 = arith.constant 0 : index
    %2 = vector.load %arg3[%c0_2, %c0_3] : memref<85x128xf32, #tpu.memory_space<vmem>>, vector<85x128xf32>
    %cst = arith.constant dense<0.000000e+00> : vector<512x128xf32>
    %3 = tpu.matmul %1, %2, %cst {dimension_numbers = #tpu.dot_dimension_numbers<[1], [0], [0], [1], [0, 0, 1, 1], [], []>, precision = #tpu.contract_precision<fp32>} : vector<512x85xf32>, vector<85x128xf32>, vector<512x128xf32> -> vector<512x128xf32>
    %c0_4 = arith.constant 0 : index
    %c0_5 = arith.constant 0 : index
    %4 = vector.load %arg4[%c0_4, %c0_5] : memref<85x128xf32, #tpu.memory_space<vmem>>, vector<85x128xf32>
    %cst_6 = arith.constant dense<0.000000e+00> : vector<512x128xf32>
    %5 = tpu.matmul %1, %4, %cst_6 {dimension_numbers = #tpu.dot_dimension_numbers<[1], [0], [0], [1], [0, 0, 1, 1], [], []>, precision = #tpu.contract_precision<fp32>} : vector<512x85xf32>, vector<85x128xf32>, vector<512x128xf32> -> vector<512x128xf32>
    %6 = tpu.iota {dimensions = array<i32: 1>} : vector<1x128xi32>
    %c4_i32 = arith.constant 4 : i32
    %7 = vector.broadcast %c4_i32 : i32 to vector<1x128xi32>
    %8 = arith.cmpi slt, %6, %7 : vector<1x128xi32>
    %cst_7 = arith.constant 1.000000e+00 : f32
    %cst_8 = arith.constant 0.000000e+00 : f32
    %9 = vector.broadcast %cst_7 : f32 to vector<1x128xf32>
    %10 = vector.broadcast %cst_8 : f32 to vector<1x128xf32>
    %11 = arith.select %8, %9, %10 : vector<1x128xi1>, vector<1x128xf32>
    %12 = vector.broadcast %11 : vector<1x128xf32> to vector<512x128xf32>
    %13 = arith.addf %5, %12 : vector<512x128xf32>
    %14 = arith.mulf %3, %13 : vector<512x128xf32>
    %c0_9 = arith.constant 0 : index
    %c0_10 = arith.constant 0 : index
    %c0_11 = arith.constant 0 : index
    %15 = vector.load %arg5[%c0_9, %c0_10, %c0_11] : memref<1x512x128xf32, #tpu.memory_space<vmem>>, vector<1x512x128xf32>
    %16 = vector.shape_cast %15 : vector<1x512x128xf32> to vector<512x128xf32>
    %17 = vector.shape_cast %14 : vector<512x128xf32> to vector<1x512x128xf32>
    tpu.vector_store %arg5[%c0_9, %c0_10, %c0_11], %17 {strides = array<i32>} : memref<1x512x128xf32, #tpu.memory_space<vmem>>, vector<1x512x128xf32>,
    return
  }
  func.func @transform_0(%arg0: i32, %arg1: i32) -> (i32, i32, i32) {
    %c0_i32 = arith.constant 0 : i32
    %c0_i32_0 = arith.constant 0 : i32
    return %arg0, %arg1, %c0_i32 : i32, i32, i32
  }
  func.func @transform_1(%arg0: i32, %arg1: i32) -> (i32, i32) {
    %c0_i32 = arith.constant 0 : i32
    %c0_i32_0 = arith.constant 0 : i32
    %c0_i32_1 = arith.constant 0 : i32
    return %c0_i32, %c0_i32_0 : i32, i32
  }
  func.func @transform_2(%arg0: i32, %arg1: i32) -> (i32, i32) {
    %c0_i32 = arith.constant 0 : i32
    %c0_i32_0 = arith.constant 0 : i32
    %c0_i32_1 = arith.constant 0 : i32
    return %c0_i32, %c0_i32_0 : i32, i32
  }
  func.func @transform_3(%arg0: i32, %arg1: i32) -> (i32, i32, i32) {
    %c0_i32 = arith.constant 0 : i32
    %c0_i32_0 = arith.constant 0 : i32
    return %arg0, %arg1, %c0_i32 : i32, i32, i32
  }
}

</mosaic_0001>

<bundles_post_ra>
// kernel: tpu_custom_call.1
= control target key start
LH: loop header
LB: loop body
LE: loop exit
PB: predicated region body
PF: predicated region fallthrough
CT: control target
= control target key end

     0   :  { %8 = vsyncpa [#allocation3], 0  ;;  %s13201_s0 = inlined_call_operand.vmem [shape: f32[2,512,85], index: 0, kind: input, shape index: {}]   ;;  %s13202_s1 = inlined_call_operand.vmem [shape: f32[85,128], index: 1, kind: input, shape index: {}]   ;;  %s13203_s2 = inlined_call_operand.vmem [shape: f32[85,128], index: 2, kind: input, shape index: {}]   ;;  %s13204_s3 = inlined_call_operand.hbm [shape: f32[2,512,128], index: 3, kind: output, shape index: {}]  }
   0x1   :  { %10 = vsyncpa [#allocation3 + $0x1], 0  ;;  %s9774_s12 = smov 0   ;;  %s9776_s13 = smov 0  }
   0x2   :  { %s9778_s14 = smov 0   ;;  %s9780_s15 = smov 0  }
   0x3   :  { %s9782_s16 = smov 0   ;;  %s9784_s17 = smov 0  }
   0x4 LB: > { %s7283_s18 = sadd.s32 4294967295, %s9748_s17   ;;  %s7284_s19 = sadd.s32 4294967294, %s9748_s17   ;;  %s9748_s17 = sphi %s9784_s17, %s16_s17   ;;  %s9744_s16 = sphi %s9782_s16, %s14901_s16   ;;  %s9740_s15 = sphi %s9780_s15, %s14900_s15   ;;  %s9736_s14 = sphi %s9778_s14, %s14899_s14   ;;  %s9732_s13 = sphi %s9776_s13, %s14898_s13   ;;  %s9728_s12 = sphi %s9774_s12, %s14897_s12  }
   0x5   : > { %s28_s20 = sadd.s32 1, %s9744_s16  ;;  %s107_s21 = sadd.s32 1, %s9736_s14 }
   0x6   : > { %p30_p0 = scmp.ge.s32.totalorder %s28_s20, 2  ;;  %p117_p1 = scmp.ne.s32.totalorder %s9736_s14, %s9732_s13 }
   0x7   : > { %p118_p2 = scmp.eq.s32.totalorder %s7283_s18, 1  ;;  %p123_p3 = scmp.ne.s32.totalorder %s9732_s13, %s9728_s12 }
   0x8   : > { %s14903_s20 = smov (%p30_p0, %s28_s20), 0  ;;  %p124_p5 = scmp.eq.s32.totalorder %s7284_s19, 1 }
   0x9   : > { %p9814_p4 = por %p118_p2, %p117_p1  ;;  %s102_s23 = ssub.s32 %s9744_s16, %s14903_s20 }
   0xa   : > { %p7287_p6 = scmp.ge.s32.totalorder %s9748_s17, 1  ;;  %p105_p7 = scmp.eq.s32.totalorder %s102_s23, 0 }
   0xb   : > { %p9821_p8 = por %p124_p5, %p123_p3  ;;  %p161_p9 = scmp.lt.s32.totalorder %s9748_s17, 3 }
   0xc   : > { %s9827_s25 = scalar_select %p105_p7, %s9736_s14, %s107_s21  }
   0xd   : > { %p162_p10 = pnand %p7287_p6, %p161_p9 }
   0xf   : > { %165 = sbr.rel (%p162_p10) target bundleno = 1033 (0x409), region = 32 }
  0x14   : > { %v274_v0 = vld [vmem:[%s13202_s1 + $0x50] sm:$0x1f]  ;;  %vm468_vm0 = vcmask 1044480   ;;  %v273_v1 = vld [vmem:[%s13202_s1 + $0x48] sm:$0xff]  ;;  %v272_v2 = vld [vmem:[%s13202_s1 + $0x40] sm:$0xff]  ;;  %p190_p11 = scmp.lt.s32.totalorder %s9740_s15, 1 }
  0x15   : > { %v470_v3 = vsel %vm468_vm0, %v274_v0, 0  ;;  %v9840_v4 = vand.u32 4294901760, %v273_v1  ;;  %v9842_v5 = vand.u32 4294901760, %v272_v2  ;;  %v271_v6 = vld [vmem:[%s13202_s1 + $0x38] sm:$0xff]  ;;  %v270_v7 = vld [vmem:[%s13202_s1 + $0x30] sm:$0xff]  ;;  %v269_v8 = vld [vmem:[%s13202_s1 + $0x28] sm:$0xff] }
  0x16   : > { %v9853_v9 = vand.u32 4294901760, %v470_v3  ;;  %v9855_v10 = vand.u32 4294901760, %v271_v6  ;;  %v9857_v11 = vand.u32 4294901760, %v270_v7  ;;  %v9859_v12 = vand.u32 4294901760, %v269_v8  ;;  %v268_v13 = vld [vmem:[%s13202_s1 + $0x20] sm:$0xff]  ;;  %v267_v14 = vld [vmem:[%s13202_s1 + $0x18] sm:$0xff] }
  0x17   : > { %13773 = vst [vmem:[#allocation5_spill] sm:$0xff] %v9840_v4  ;;  %13774 = vst [vmem:[#allocation6_spill] sm:$0xff] %v9842_v5  ;;  %v9868_v15 = vsub.f32 %v273_v1, %v9840_v4  ;;  %v9870_v16 = vand.u32 4294901760, %v268_v13  ;;  %v9873_v17 = vsub.f32 %v272_v2, %v9842_v5  ;;  %v9875_v18 = vand.u32 4294901760, %v267_v14  ;;  %v266_v19 = vld [vmem:[%s13202_s1 + $0x10] sm:$0xff]  ;;  %v9883_v20 = vld [vmem:[%s13202_s1 + $0x8] sm:$0xff] }
  0x18   : > { %v9888_v21 = vld [vmem:[%s13202_s1] sm:$0xff]  ;;  %s191_s4 = scalar_select %p190_p11, %s9740_s15, 1  ;;  %8198 = vmatprep.subr.mxu0 %v9853_v9  ;;  %v9895_v22 = vsub.f32 %v470_v3, %v9853_v9  ;;  %v9898_v23 = vsub.f32 %v271_v6, %v9855_v10  ;;  %v9900_v24 = vand.u32 4294901760, %v266_v19  ;;  %v9903_v25 = vsub.f32 %v270_v7, %v9857_v11 }
  0x19   : > { %8199 = vmatpush3.msra.mxu0 %v9853_v9  ;;  %v9907_v26 = vand.u32 4294901760, %v9868_v15  ;;  %v9910_v27 = vand.u32 4294901760, %v9873_v17  ;;  %v9913_v28 = vand.u32 4294901760, %v9883_v20  ;;  %v9916_v29 = vsub.f32 %v269_v8, %v9859_v12  ;;  %s186_s21 = sand.u32 1, %s9732_s13   ;;  %s7297_s27 = sshll.u32 %s9740_s15, 13 }
  0x1a   : > { %s7296_s5 = sshll.u32 %s191_s4, 9  ;;  %8200 = vmatprep.subr.mxu0 %v9840_v4  ;;  %v9920_v30 = vand.u32 4294901760, %v9895_v22  ;;  %v9923_v31 = vand.u32 4294901760, %v9898_v23  ;;  %v9926_v32 = vand.u32 4294901760, %v9903_v25  ;;  %v9929_v33 = vand.u32 4294901760, %v9888_v21  ;;  %s7288_s23 = sshll.u32 %s186_s21, 9 }
  0x1b   : > { %13775 = vst [vmem:[#allocation7_spill] sm:$0xff] %v9910_v27  ;;  %s9934_s8 = scalar_lea.vmem %s13201_s0, %s7296_s5  ;;  %8201 = vmatpush3.msra.mxu0 %v9840_v4  ;;  %v1209_v34 = vsub.f32 %v9868_v15, %v9907_v26  ;;  %v1216_v35 = vsub.f32 %v9873_v17, %v9910_v27  ;;  %v9942_v36 = vand.u32 4294901760, %v9916_v29  ;;  %v9945_v37 = vsub.f32 %v268_v13, %v9870_v16  ;;  %s12956_s26 = scalar_lea.vmem [#allocation2], %s7288_s23 }
  0x1c   : > { %13776 = vst [vmem:[#allocation8_spill] sm:$0xff] %v9923_v31  ;;  %13777 = vst [vmem:[#allocation9_spill] sm:$0xff] %v9926_v32  ;;  %v200_v38 = vld [vmem:[%s9934_s8] sm:$0xff]  ;;  %8202 = vmatprep.subr.mxu0 %v9842_v5  ;;  %v1202_v39 = vsub.f32 %v9895_v22, %v9920_v30  ;;  %v1223_v40 = vsub.f32 %v9898_v23, %v9923_v31  ;;  %v1230_v41 = vsub.f32 %v9903_v25, %v9926_v32  ;;  %vm275_vm1 = vcmask 695296   ;;  %v201_v42 = vld [vmem:[%s9934_s8 + $0x8] sm:$0xff]  ;;  %s7204_s28 = sshll.u32 %s12956_s26, 4  ;;  %s13147_s4 = scalar_lea.hbm %s13204_s3, %s7297_s27  ;;  %s13149_s28 = int_to_ptr.vmem [resolvable:$true] %s7204_s28 }
  0x1d   : > { %13778 = vst [vmem:[#allocation10_spill] sm:$0xff] %v9942_v36  ;;  %8203 = vmatpush3.msra.mxu0 %v9842_v5  ;;  %v1210_v43 = vand.u32 4294901760, %v1209_v34  ;;  %v1217_v44 = vand.u32 4294901760, %v1216_v35  ;;  %v1237_v45 = vsub.f32 %v9916_v29, %v9942_v36  ;;  %v9960_v46 = vand.u32 4294901760, %v9945_v37  ;;  %v202_v47 = vld [vmem:[%s9934_s8 + $0x10] sm:$0xff]  ;;  %v203_v52 = vld [vmem:[%s9934_s8 + $0x18] sm:$0xff] }
  0x1e   : > { %8204 = vmatprep.subr.mxu0 %v9855_v10  ;;  %v1203_v48 = vand.u32 4294901760, %v1202_v39  ;;  %v1224_v49 = vand.u32 4294901760, %v1223_v40  ;;  %v9964_v50 = vand.u32 4294901760, %v1230_v41  ;;  %v277_v51 = vsel %vm275_vm1, %v200_v38, 0  ;;  %v204_v41 = vld [vmem:[%s9934_s8 + $0x20] sm:$0xff]  ;;  %v211_v32 = vld [vmem:[%s9934_s8 + $0x58] sm:$0xff] }
  0x1f   : > { %13779 = vst [vmem:[#allocation11_spill] sm:$0xff] %v9960_v46  ;;  %8205 = vmatpush3.msra.mxu0 %v9855_v10  ;;  %v9969_v53 = vand.u32 4294901760, %v1237_v45  ;;  %v1244_v54 = vsub.f32 %v9945_v37, %v9960_v46  ;;  %v9973_v55 = vand.u32 4294901760, %v277_v51  ;;  %v280_v56 = vsel %vm275_vm1, %v201_v42, 0  ;;  %v205_v42 = vld [vmem:[%s9934_s8 + $0x28] sm:$0xff]  ;;  %v210_v46 = vld [vmem:[%s9934_s8 + $0x50] sm:$0xff] }
  0x20   : > { %8206 = vmatprep.subr.mxu0 %v9857_v11  ;;  %8316 = vmatprep.subr.mxu1 %v1203_v48  ;;  %v9977_v57 = vand.u32 4294901760, %v280_v56  ;;  %v9980_v58 = vsub.f32 %v267_v14, %v9875_v18  ;;  %v9983_v59 = vsub.f32 %v266_v19, %v9900_v24  ;;  %v283_v60 = vsel %vm275_vm1, %v202_v47, 0  ;;  %v217_v27 = vld [vmem:[%s9934_s8 + $0x88] sm:$0xff]  ;;  %s13156_s15 = scalar_lea.sflag [#allocation3], %s186_s21  ;;  %s9672_s5 = scalar_lea.vmem %s13149_s28, 8192 }
  0x21   : > { %13780 = vst [vmem:[#allocation12_spill] sm:$0xff] %v9973_v55  ;;  %8207 = vmatpush3.msra.mxu0 %v9857_v11  ;;  %8317 = vmatpush3.msra.mxu1 %v1203_v48  ;;  %v9987_v61 = vand.u32 4294901760, %v1244_v54  ;;  %v9990_v62 = vsub.f32 %v277_v51, %v9973_v55  ;;  %v9992_v63 = vand.u32 4294901760, %v283_v60  ;;  %v286_v0 = vsel %vm275_vm1, %v203_v52, 0  ;;  %p9673_p12 = scmp.ne.s32.totalorder %s13149_s28, %s9672_s5  ;;  %s9751_s6 = smov [#allocation2]  }
  0x22   : > { %13781 = vst [vmem:[#allocation13_spill] sm:$0xff] %v9977_v57  ;;  %8208 = vmatprep.subr.mxu0 %v9859_v12  ;;  %8318 = vmatprep.subr.mxu1 %v1210_v43  ;;  %v9997_v1 = vsub.f32 %v280_v56, %v9977_v57  ;;  %v10000_v2 = vand.u32 4294901760, %v9980_v58  ;;  %v10003_v3 = vand.u32 4294901760, %v9983_v59  ;;  %v10005_v6 = vand.u32 4294901760, %v286_v0  ;;  %v206_v56 = vld [vmem:[%s9934_s8 + $0x30] sm:$0xff]  ;;  %s9676_s7 = sshll.u32 %s9751_s6, 4  ;;  %s9677_s7 = int_to_ptr.vmem [resolvable:$false] %s9676_s7 }
  0x23   : > { %13782 = vst [vmem:[#allocation14_spill] sm:$0xff] %v9990_v62  ;;  %13783 = vst [vmem:[#allocation15_spill] sm:$0xff] %v9992_v63  ;;  %8209 = vmatpush3.msra.mxu0 %v9859_v12  ;;  %8319 = vmatpush3.msra.mxu1 %v1210_v43  ;;  %v10009_v7 = vand.u32 4294901760, %v9990_v62  ;;  %v10012_v8 = vsub.f32 %v283_v60, %v9992_v63  ;;  %v10016_v13 = vsub.f32 %v9883_v20, %v9913_v28  ;;  %v207_v60 = vld [vmem:[%s9934_s8 + $0x38] sm:$0xff]  ;;  %p9674_p13 = pnand %p9673_p12, %p9814_p4  ;;  %p9679_p1 = scmp.lt.s32.totalorder %s13149_s28, %s9677_s7 }
  0x24   : > { %13784 = vst [vmem:[#allocation16_spill] sm:$0xff] %v9997_v1  ;;  %13785 = vst [vmem:[#allocation17_spill] sm:$0xff] %v10000_v2  ;;  %v10020_v14 = vsub.f32 %v9888_v21, %v9929_v33  ;;  %8210 = vmatprep.subr.mxu0 %v9870_v16  ;;  %8320 = vmatprep.subr.mxu1 %v1217_v44  ;;  %v10024_v19 = vand.u32 4294901760, %v9997_v1  ;;  %v1251_v34 = vsub.f32 %v9980_v58, %v10000_v2  ;;  %v209_v2 = vld [vmem:[%s9934_s8 + $0x48] sm:$0xff] }
  0x25   : > { %13786 = vst [vmem:[#allocation18_spill] sm:$0xff] %v10003_v3  ;;  %13787 = vst [vmem:[#allocation19_spill] sm:$0xff] %v10005_v6  ;;  %v1258_v35 = vsub.f32 %v9983_v59, %v10003_v3  ;;  %v10031_v38 = vsub.f32 %v286_v0, %v10005_v6  ;;  %8211 = vmatpush3.msra.mxu0 %v9870_v16  ;;  %8321 = vmatpush3.msra.mxu1 %v1217_v44  ;;  %v10037_v21 = vand.u32 4294901760, %v10012_v8  ;;  %p9675_p0 = pneg %p9674_p13 }
  0x26   : > { %13788 = vst [vmem:[#allocation20_spill] sm:$0xff] %v10009_v7  ;;  %13789 = vst [vmem:[#allocation21_spill] sm:$0xff] %v10012_v8  ;;  %v551_v20 = vsub.f32 %v9990_v62, %v10009_v7  ;;  %v10040_v39 = vand.u32 4294901760, %v10016_v13  ;;  %v10043_v40 = vand.u32 4294901760, %v10020_v14  ;;  %8212 = vmatprep.subr.mxu0 %v9875_v18  ;;  %8322 = vmatprep.subr.mxu1 %v1224_v49  ;;  %v10050_v44 = vand.u32 4294901760, %v1251_v34 }
  0x27   : > { %13790 = vst [vmem:[#allocation22_spill] sm:$0xff] %v10024_v19  ;;  %13791 = vst [vmem:[#allocation23_spill] sm:$0xff] %v10031_v38  ;;  %v561_v43 = vsub.f32 %v9997_v1, %v10024_v19  ;;  %v10052_v45 = vand.u32 4294901760, %v1258_v35  ;;  %v10055_v47 = vand.u32 4294901760, %v10031_v38  ;;  %8213 = vmatpush3.msra.mxu0 %v9875_v18  ;;  %8323 = vmatpush3.msra.mxu1 %v1224_v49  ;;  %v289_v34 = vsel %vm275_vm1, %v204_v41, 0 }
  0x28   : > { %13792 = vst [vmem:[#allocation24_spill] sm:$0xff] %v10037_v21  ;;  %13793 = vst [vmem:[#allocation25_spill] sm:$0xff] %v10040_v39  ;;  %v10058_v48 = vand.u32 4294901760, %v551_v20  ;;  %v571_v51 = vsub.f32 %v10012_v8, %v10037_v21  ;;  %v1265_v52 = vsub.f32 %v10016_v13, %v10040_v39  ;;  %v1272_v54 = vsub.f32 %v10020_v14, %v10043_v40  ;;  %v208_v20 = vld [vmem:[%s9934_s8 + $0x40] sm:$0xff] }
  0x29   : > { %13794 = vst [vmem:[#allocation26_spill] sm:$0xff] %v10043_v40  ;;  %13795 = vst [vmem:[#allocation27_spill] sm:$0xff] %v10055_v47  ;;  %8214 = vmatprep.subr.mxu0 %v9900_v24  ;;  %8324 = vmatprep.subr.mxu1 %v9964_v50  ;;  %v10070_v49 = vand.u32 4294901760, %v561_v43  ;;  %v581_v0 = vsub.f32 %v10031_v38, %v10055_v47  ;;  %v292_v35 = vsel %vm275_vm1, %v205_v42, 0  ;;  %v10085_v43 = vand.u32 4294901760, %v289_v34 }
  0x2a   : > { %13796 = vst [vmem:[#allocation28_spill] sm:$0xff] %v10058_v48  ;;  %8215 = vmatpush3.msra.mxu0 %v9900_v24  ;;  %8325 = vmatpush3.msra.mxu1 %v9964_v50  ;;  %v10079_v40 = vand.u32 4294901760, %v571_v51  ;;  %v10081_v39 = vand.u32 4294901760, %v1265_v52  ;;  %v10083_v3 = vand.u32 4294901760, %v1272_v54  ;;  %v10093_v42 = vand.u32 4294901760, %v292_v35 }
  0x2b   : > { %13797 = vst [vmem:[#allocation29_spill] sm:$0xff] %v10070_v49  ;;  %13799 = vst [vmem:[#allocation31_spill] sm:$0xff] %v10085_v43  ;;  %8216 = vmatprep.subr.mxu0 %v9913_v28  ;;  %8326 = vmatprep.subr.mxu1 %v9969_v53  ;;  %v10091_v41 = vand.u32 4294901760, %v581_v0  ;;  %v295_v50 = vsel %vm275_vm1, %v206_v56, 0  ;;  %v298_v51 = vsel %vm275_vm1, %v207_v60, 0  ;;  %v10100_v52 = vsub.f32 %v289_v34, %v10085_v43 }
  0x2c   : > { %13798 = vst [vmem:[#allocation30_spill] sm:$0xff] %v10079_v40  ;;  %13801 = vst [vmem:[#allocation33_spill] sm:$0xff] %v10093_v42  ;;  %8217 = vmatpush3.msra.mxu0 %v9913_v28  ;;  %8327 = vmatpush3.msra.mxu1 %v9969_v53  ;;  %v10102_v54 = vand.u32 4294901760, %v295_v50  ;;  %v10104_v36 = vand.u32 4294901760, %v298_v51  ;;  %v301_v0 = vsel %vm275_vm1, %v208_v20, 0  ;;  %v10111_v56 = vsub.f32 %v292_v35, %v10093_v42 }
  0x2d   : > { %13800 = vst [vmem:[#allocation32_spill] sm:$0xff] %v10091_v41  ;;  %13802 = vst [vmem:[#allocation34_spill] sm:$0xff] %v10100_v52  ;;  %8218 = vmatprep.subr.mxu0 %v9929_v33  ;;  %8328 = vmatprep.subr.mxu1 %v9987_v61  ;;  %v10113_v60 = vand.u32 4294901760, %v301_v0  ;;  %v304_v53 = vsel %vm275_vm1, %v209_v2, 0  ;;  %v307_v34 = vsel %vm275_vm1, %v210_v46, 0  ;;  %v10120_v20 = vand.u32 4294901760, %v10100_v52 }
  0x2e   : > { %13803 = vst [vmem:[#allocation35_spill] sm:$0xff] %v10102_v54  ;;  %13804 = vst [vmem:[#allocation36_spill] sm:$0xff] %v10104_v36  ;;  %8219 = vmatpush3.msra.mxu0 %v9929_v33  ;;  %8220 = vmatprep.mubr.f32.mxu0 %v10058_v48  ;;  %v10123_v31 = vsub.f32 %v295_v50, %v10102_v54  ;;  %v10126_v47 = vsub.f32 %v298_v51, %v10104_v36  ;;  %v10128_v35 = vand.u32 4294901760, %v304_v53 }
  0x2f   : > { %13805 = vst [vmem:[#allocation37_spill] sm:$0xff] %v10111_v56  ;;  %13806 = vst [vmem:[#allocation38_spill] sm:$0xff] %v10113_v60  ;;  %8329 = vmatpush3.msra.mxu1 %v9987_v61  ;;  %8221 = vmatmul.mubr.f32.vlgmr.msra.gmra.mxu0 %v10070_v49  ;;  %v10133_v46 = vand.u32 4294901760, %v10111_v56  ;;  %v10136_v2 = vsub.f32 %v301_v0, %v10113_v60  ;;  %v10138_v48 = vand.u32 4294901760, %v307_v34  ;;  %v310_v50 = vsel %vm275_vm1, %v211_v32, 0 }
  0x30   : > { %13807 = vst [vmem:[#allocation39_spill] sm:$0xff] %v10120_v20  ;;  %13808 = vst [vmem:[#allocation40_spill] sm:$0xff] %v10123_v31  ;;  %8330 = vmatprep.subr.mxu1 %v10050_v44  ;;  %8223 = vmatprep.mubr.f32.mxu0 %v10079_v40  ;;  %v591_v61 = vsub.f32 %v10100_v52, %v10120_v20  ;;  %v10146_v51 = vand.u32 4294901760, %v10123_v31  ;;  %v10149_v49 = vand.u32 4294901760, %v10126_v47  ;;  %v10164_v21 = vand.u32 4294901760, %v310_v50 }
  0x31   : > { %13809 = vst [vmem:[#allocation41_spill] sm:$0xff] %v10126_v47  ;;  %13810 = vst [vmem:[#allocation42_spill] sm:$0xff] %v10128_v35  ;;  %v10152_v0 = vsub.f32 %v304_v53, %v10128_v35  ;;  %8331 = vmatpush3.msra.mxu1 %v10050_v44  ;;  %8434 = vmatprep.subr.mxu0 %v9895_v22  ;;  %v601_v32 = vsub.f32 %v10111_v56, %v10133_v46  ;;  %v10159_v40 = vand.u32 4294901760, %v10136_v2  ;;  %v212_v53 = vld [vmem:[%s9934_s8 + $0x60] sm:$0xff] }
  0x32   : > { %13811 = vst [vmem:[#allocation43_spill] sm:$0xff] %v10133_v46  ;;  %13812 = vst [vmem:[#allocation44_spill] sm:$0xff] %v10136_v2  ;;  %v10162_v20 = vsub.f32 %v307_v34, %v10138_v48  ;;  %8332 = vmatprep.subr.mxu1 %v10052_v45  ;;  %v10168_v44 = vand.u32 4294901760, %v591_v61  ;;  %8338 = vmatprep.mubr.f32.mxu1 %v9973_v55  ;;  %v611_v46 = vsub.f32 %v10123_v31, %v10146_v51  ;;  %v215_v31 = vld [vmem:[%s9934_s8 + $0x78] sm:$0xff] }
  0x33   : > { %13813 = vst [vmem:[#allocation45_spill] sm:$0xff] %v10138_v48  ;;  %13814 = vst [vmem:[#allocation46_spill] sm:$0xff] %v10146_v51  ;;  %v621_v19 = vsub.f32 %v10126_v47, %v10149_v49  ;;  %v10176_v34 = vand.u32 4294901760, %v10152_v0  ;;  %8333 = vmatpush3.msra.mxu1 %v10052_v45  ;;  %8224 = vmatmul.mubr.f32.gmra.mxu0 %v10091_v41  ;;  %v10180_v56 = vand.u32 4294901760, %v601_v32  ;;  %v214_v47 = vld [vmem:[%s9934_s8 + $0x70] sm:$0xff]  ;;  %v313_v45 = vsel %vm275_vm1, %v212_v53, 0 }
  0x34   : > { %13815 = vst [vmem:[#allocation47_spill] sm:$0xff] %v10149_v49  ;;  %13816 = vst [vmem:[#allocation48_spill] sm:$0xff] %v10152_v0  ;;  %v631_v61 = vsub.f32 %v10136_v2, %v10159_v40  ;;  %v10185_v55 = vand.u32 4294901760, %v10162_v20  ;;  %v10188_v51 = vsub.f32 %v310_v50, %v10164_v21  ;;  %v213_v49 = vld [vmem:[%s9934_s8 + $0x68] sm:$0xff]  ;;  %8334 = vmatprep.subr.mxu1 %v10081_v39  ;;  %8226 = vmatprep.mubr.f32.mxu0 %v10168_v44  ;;  %v216_v2 = vld [vmem:[%s9934_s8 + $0x80] sm:$0xff] }
  0x35   : > { %13817 = vst [vmem:[#allocation49_spill] sm:$0xff] %v10159_v40  ;;  %13818 = vst [vmem:[#allocation50_spill] sm:$0xff] %v10162_v20  ;;  %8335 = vmatpush3.msra.mxu1 %v10081_v39  ;;  %8435 = vmatpush3.msra.mxu0 %v9895_v22  ;;  %v10198_v32 = vand.u32 4294901760, %v611_v46  ;;  %v10200_v41 = vand.u32 4294901760, %v621_v19  ;;  %v641_v50 = vsub.f32 %v10152_v0, %v10176_v34  ;;  %v10204_v40 = vand.u32 4294901760, %v313_v45  ;;  %v219_v0 = vld [vmem:[%s9934_s8 + $0x98] sm:$0xff] }
  0x36   : > { %13819 = vst [vmem:[#allocation51_spill] sm:$0xff] %v10164_v21  ;;  %13820 = vst [vmem:[#allocation52_spill] sm:$0xff] %v10168_v44  ;;  %8336 = vmatprep.subr.mxu1 %v10083_v3  ;;  %v10209_v44 = vand.u32 4294901760, %v631_v61  ;;  %8436 = vmatprep.subr.mxu0 %v9868_v15  ;;  %v316_v22 = vsel %vm275_vm1, %v213_v49, 0  ;;  %v319_v39 = vsel %vm275_vm1, %v214_v47, 0  ;;  %v322_v19 = vsel %vm275_vm1, %v215_v31, 0 }
  0x37   : > { %13821 = vst [vmem:[#allocation53_spill] sm:$0xff] %v10176_v34  ;;  %13822 = vst [vmem:[#allocation54_spill] sm:$0xff] %v10180_v56  ;;  %8337 = vmatpush3.msra.mxu1 %v10083_v3  ;;  %8227 = vmatmul.mubr.f32.gmra.mxu0 %v10180_v56  ;;  %v651_v46 = vsub.f32 %v10162_v20, %v10185_v55  ;;  %v10220_v53 = vand.u32 4294901760, %v10188_v51  ;;  %v10223_v61 = vsub.f32 %v313_v45, %v10204_v40  ;;  %v218_v49 = vld [vmem:[%s9934_s8 + $0x90] sm:$0xff] }
  0x38   : > { %13823 = vst [vmem:[#allocation55_spill] sm:$0xff] %v10185_v55  ;;  %13824 = vst [vmem:[#allocation56_spill] sm:$0xff] %v10188_v51  ;;  %v10225_v34 = vand.u32 4294901760, %v316_v22  ;;  %8339 = vmatmul.mubr.f32.vlgmr.msra.gmra.mxu1 %v9977_v57  ;;  %8552 = vmatprep.subr.mxu1 %v9853_v9  ;;  %v10230_v31 = vand.u32 4294901760, %v319_v39  ;;  %v10232_v3 = vand.u32 4294901760, %v322_v19  ;;  %v325_v47 = vsel %vm275_vm1, %v216_v2, 0 }
  0x39   : > { %13825 = vst [vmem:[#allocation57_spill] sm:$0xff] %v10198_v32  ;;  %13826 = vst [vmem:[#allocation58_spill] sm:$0xff] %v10200_v41  ;;  %v328_v56 = vsel %vm275_vm1, %v217_v27, 0  ;;  %8553 = vmatpush3.msra.mxu1 %v9853_v9  ;;  %8229 = vmatprep.mubr.f32.mxu0 %v10198_v32  ;;  %v10238_v45 = vand.u32 4294901760, %v641_v50  ;;  %v10241_v55 = vand.u32 4294901760, %v10223_v61  ;;  %v10246_v20 = vand.u32 4294901760, %v325_v47 }
  0x3a   : > { %13827 = vst [vmem:[#allocation59_spill] sm:$0xff] %v10204_v40  ;;  %13828 = vst [vmem:[#allocation60_spill] sm:$0xff] %v10209_v44  ;;  %v10244_v57 = vsub.f32 %v316_v22, %v10225_v34  ;;  %8341 = vmatprep.mubr.f32.mxu1 %v9992_v63  ;;  %8437 = vmatpush3.msra.mxu0 %v9868_v15  ;;  %v10252_v27 = vsub.f32 %v319_v39, %v10230_v31  ;;  %v10257_v50 = vand.u32 4294901760, %v328_v56 }
  0x3b   : > { %13829 = vst [vmem:[#allocation61_spill] sm:$0xff] %v10220_v53  ;;  %13830 = vst [vmem:[#allocation62_spill] sm:$0xff] %v10223_v61  ;;  %v10255_v2 = vsub.f32 %v322_v19, %v10232_v3  ;;  %v331_v32 = vsel %vm275_vm1, %v218_v49, 0  ;;  %8230 = vmatmul.mubr.f32.gmra.mxu0 %v10200_v41  ;;  %v661_v22 = vsub.f32 %v10188_v51, %v10220_v53  ;;  %8554 = vmatprep.subr.mxu1 %v9840_v4  ;;  %v220_v51 = vld [vmem:[%s9934_s8 + $0xa0] sm:$0xff] }
  0x3c   : > { %13831 = vst [vmem:[#allocation63_spill] sm:$0xff] %v10225_v34  ;;  %13832 = vst [vmem:[#allocation64_spill] sm:$0xff] %v10230_v31  ;;  %v10265_v15 = vand.u32 4294901760, %v10244_v57  ;;  %v10268_v39 = vsub.f32 %v325_v47, %v10246_v20  ;;  %v10270_v63 = vand.u32 4294901760, %v331_v32  ;;  %8342 = vmatmul.mubr.f32.gmra.mxu1 %v10005_v6  ;;  %8232 = vmatprep.mubr.f32.mxu0 %v10209_v44  ;;  %v10274_v19 = vand.u32 4294901760, %v651_v46  ;;  %v221_v6 = vld [vmem:[%s9934_s8 + $0xa8] sm:$0xff] }
  0x3d   : > { %13833 = vst [vmem:[#allocation65_spill] sm:$0xff] %v10232_v3  ;;  %13834 = vst [vmem:[#allocation66_spill] sm:$0xff] %v10238_v45  ;;  %v671_v49 = vsub.f32 %v10223_v61, %v10241_v55  ;;  %v10279_v41 = vand.u32 4294901760, %v10252_v27  ;;  %v334_v53 = vsel %vm275_vm1, %v219_v0, 0  ;;  %8344 = vmatprep.mubr.f32.mxu1 %v10085_v43  ;;  %8555 = vmatpush3.msra.mxu1 %v9840_v4  ;;  %v10286_v47 = vand.u32 4294901760, %v10255_v2 }
  0x3e   : > { %13835 = vst [vmem:[#allocation67_spill] sm:$0xff] %v10241_v55  ;;  %13836 = vst [vmem:[#allocation68_spill] sm:$0xff] %v10244_v57  ;;  %v681_v46 = vsub.f32 %v10244_v57, %v10265_v15  ;;  %8438 = vmatprep.subr.mxu0 %v9873_v17  ;;  %v10292_v44 = vsub.f32 %v328_v56, %v10257_v50  ;;  %8556 = vmatprep.subr.mxu1 %v9842_v5  ;;  %v10295_v0 = vand.u32 4294901760, %v334_v53  ;;  %v222_v57 = vld [vmem:[%s9934_s8 + $0xb0] sm:$0xff] }
  0x3f   : > { %13837 = vst [vmem:[#allocation69_spill] sm:$0xff] %v10246_v20  ;;  %13838 = vst [vmem:[#allocation70_spill] sm:$0xff] %v10252_v27  ;;  %8233 = vmatmul.mubr.f32.gmra.mxu0 %v10238_v45  ;;  %v10299_v43 = vand.u32 4294901760, %v661_v22  ;;  %v10302_v55 = vand.u32 4294901760, %v10268_v39  ;;  %8557 = vmatpush3.msra.mxu1 %v9842_v5  ;;  %v337_v56 = vsel %vm275_vm1, %v220_v51, 0  ;;  %v10312_v61 = vand.u32 4294901760, %v671_v49 }
  0x40   : > { %13839 = vst [vmem:[#allocation71_spill] sm:$0xff] %v10255_v2  ;;  %13840 = vst [vmem:[#allocation72_spill] sm:$0xff] %v10257_v50  ;;  %8345 = vmatmul.mubr.f32.gmra.mxu1 %v10093_v42  ;;  %8235 = vmatprep.mubr.f32.mxu0 %v10274_v19  ;;  %v691_v22 = vsub.f32 %v10252_v27, %v10279_v41  ;;  %v223_v45 = vld [vmem:[%s9934_s8 + $0xb8] sm:$0xff]  ;;  %v701_v5 = vsub.f32 %v10255_v2, %v10286_v47  ;;  %v340_v51 = vsel %vm275_vm1, %v221_v6, 0  ;;  %v224_v42 = vld [vmem:[%s9934_s8 + $0xc0] sm:$0xff] }
  0x41   : > { %13841 = vst [vmem:[#allocation73_spill] sm:$0xff] %v10265_v15  ;;  %13842 = vst [vmem:[#allocation74_spill] sm:$0xff] %v10268_v39  ;;  %v10306_v15 = vsub.f32 %v331_v32, %v10270_v63  ;;  %8347 = vmatprep.mubr.f32.mxu1 %v10102_v54  ;;  %8439 = vmatpush3.msra.mxu0 %v9873_v17  ;;  %v10321_v32 = vand.u32 4294901760, %v337_v56  ;;  %v10325_v4 = vand.u32 4294901760, %v681_v46  ;;  %v10328_v49 = vand.u32 4294901760, %v10292_v44 }
  0x42   : > { %13843 = vst [vmem:[#allocation75_spill] sm:$0xff] %v10270_v63  ;;  %13844 = vst [vmem:[#allocation76_spill] sm:$0xff] %v10274_v19  ;;  %v10331_v19 = vsub.f32 %v334_v53, %v10295_v0  ;;  %8440 = vmatprep.subr.mxu0 %v9898_v23  ;;  %v343_v54 = vsel %vm275_vm1, %v222_v57, 0  ;;  %8558 = vmatprep.subr.mxu1 %v9855_v10  ;;  %v711_v17 = vsub.f32 %v10268_v39, %v10302_v55 }
  0x43   : > { %13845 = vst [vmem:[#allocation77_spill] sm:$0xff] %v10279_v41  ;;  %13846 = vst [vmem:[#allocation78_spill] sm:$0xff] %v10286_v47  ;;  %8236 = vmatmul.mubr.f32.gmra.mxu0 %v10299_v43  ;;  %v10340_v6 = vand.u32 4294901760, %v10306_v15  ;;  %v10342_v46 = vand.u32 4294901760, %v340_v51  ;;  %v346_v53 = vsel %vm275_vm1, %v223_v45, 0  ;;  %8559 = vmatpush3.msra.mxu1 %v9855_v10  ;;  %v10348_v57 = vand.u32 4294901760, %v691_v22 }
  0x44   : > { %13847 = vst [vmem:[#allocation79_spill] sm:$0xff] %v10292_v44  ;;  %13848 = vst [vmem:[#allocation80_spill] sm:$0xff] %v10295_v0  ;;  %8348 = vmatmul.mubr.f32.gmra.mxu1 %v10104_v36  ;;  %8238 = vmatprep.mubr.f32.mxu0 %v10312_v61  ;;  %v10353_v47 = vand.u32 4294901760, %v343_v54  ;;  %v225_v41 = vld [vmem:[%s9934_s8 + $0xc8] sm:$0xff]  ;;  %v226_v45 = vld [vmem:[%s9934_s8 + $0xd0] sm:$0xff]  ;;  %v10360_v39 = vand.u32 4294901760, %v701_v5 }
  0x45   : > { %13849 = vst [vmem:[#allocation81_spill] sm:$0xff] %v10299_v43  ;;  %13850 = vst [vmem:[#allocation82_spill] sm:$0xff] %v10302_v55  ;;  %v10351_v43 = vsub.f32 %v337_v56, %v10321_v32  ;;  %v349_v55 = vsel %vm275_vm1, %v224_v42, 0  ;;  %8350 = vmatprep.mubr.f32.mxu1 %v10113_v60  ;;  %8441 = vmatpush3.msra.mxu0 %v9898_v23  ;;  %v10365_v22 = vand.u32 4294901760, %v10331_v19  ;;  %v10367_v56 = vand.u32 4294901760, %v346_v53 }
  0x46   : > { %13851 = vst [vmem:[#allocation83_spill] sm:$0xff] %v10306_v15  ;;  %13852 = vst [vmem:[#allocation84_spill] sm:$0xff] %v10312_v61  ;;  %v721_v61 = vsub.f32 %v10292_v44, %v10328_v49  ;;  %8442 = vmatprep.subr.mxu0 %v9903_v25  ;;  %8560 = vmatprep.subr.mxu1 %v9857_v11  ;;  %v10372_v42 = vand.u32 4294901760, %v711_v17  ;;  %v10375_v5 = vsub.f32 %v340_v51, %v10342_v46 }
  0x47   : > { %13853 = vst [vmem:[#allocation85_spill] sm:$0xff] %v10321_v32  ;;  %13854 = vst [vmem:[#allocation86_spill] sm:$0xff] %v10325_v4  ;;  %8239 = vmatmul.mubr.f32.gmra.mxu0 %v10325_v4  ;;  %v10377_v23 = vand.u32 4294901760, %v349_v55  ;;  %v352_v60 = vsel %vm275_vm1, %v225_v41, 0  ;;  %8561 = vmatpush3.msra.mxu1 %v9857_v11  ;;  %v731_v36 = vsub.f32 %v10306_v15, %v10340_v6  ;;  %v10386_v17 = vand.u32 4294901760, %v10351_v43 }
  0x48   : > { %13855 = vst [vmem:[#allocation87_spill] sm:$0xff] %v10328_v49  ;;  %13856 = vst [vmem:[#allocation88_spill] sm:$0xff] %v10331_v19  ;;  %8351 = vmatmul.mubr.f32.gmra.mxu1 %v10128_v35  ;;  %8241 = vmatprep.mubr.f32.mxu0 %v10348_v57  ;;  %v10389_v51 = vsub.f32 %v343_v54, %v10353_v47  ;;  %v355_v4 = vsel %vm275_vm1, %v226_v45, 0  ;;  %v227_v49 = vld [vmem:[%s9934_s8 + $0xd8] sm:$0xff]  ;;  %v10395_v41 = vand.u32 4294901760, %v721_v61  ;;  %v228_v54 = vld [vmem:[%s9934_s8 + $0xe0] sm:$0xff] }
  0x49   : > { %13857 = vst [vmem:[#allocation89_spill] sm:$0xff] %v10340_v6  ;;  %13858 = vst [vmem:[#allocation90_spill] sm:$0xff] %v10342_v46  ;;  %8353 = vmatprep.mubr.f32.mxu1 %v10138_v48  ;;  %8443 = vmatpush3.msra.mxu0 %v9903_v25  ;;  %v10400_v35 = vsub.f32 %v346_v53, %v10367_v56  ;;  %v10402_v6 = vand.u32 4294901760, %v352_v60  ;;  %v10409_v25 = vand.u32 4294901760, %v10375_v5  ;;  %v10414_v45 = vand.u32 4294901760, %v355_v4 }
  0x4a   : > { %13859 = vst [vmem:[#allocation91_spill] sm:$0xff] %v10348_v57  ;;  %13860 = vst [vmem:[#allocation92_spill] sm:$0xff] %v10351_v43  ;;  %v741_v57 = vsub.f32 %v10331_v19, %v10365_v22  ;;  %8444 = vmatprep.subr.mxu0 %v9916_v29  ;;  %8562 = vmatprep.subr.mxu1 %v9859_v12  ;;  %v10412_v61 = vsub.f32 %v349_v55, %v10377_v23  ;;  %v358_v53 = vsel %vm275_vm1, %v227_v49, 0  ;;  %v229_v55 = vld [vmem:[%s9934_s8 + $0xe8] sm:$0xff] }
  0x4b   : > { %13861 = vst [vmem:[#allocation93_spill] sm:$0xff] %v10353_v47  ;;  %13862 = vst [vmem:[#allocation94_spill] sm:$0xff] %v10360_v39  ;;  %8242 = vmatmul.mubr.f32.gmra.mxu0 %v10360_v39  ;;  %8563 = vmatpush3.msra.mxu1 %v9859_v12  ;;  %v10420_v48 = vand.u32 4294901760, %v731_v36  ;;  %v751_v39 = vsub.f32 %v10351_v43, %v10386_v17  ;;  %v361_v19 = vsel %vm275_vm1, %v228_v54, 0 }
  0x4c   : > { %13863 = vst [vmem:[#allocation95_spill] sm:$0xff] %v10365_v22  ;;  %13864 = vst [vmem:[#allocation96_spill] sm:$0xff] %v10367_v56  ;;  %8354 = vmatmul.mubr.f32.gmra.mxu1 %v10164_v21  ;;  %8244 = vmatprep.mubr.f32.mxu0 %v10372_v42  ;;  %v10425_v22 = vand.u32 4294901760, %v10389_v51  ;;  %v10431_v49 = vand.u32 4294901760, %v741_v57  ;;  %v10434_v21 = vand.u32 4294901760, %v10400_v35  ;;  %v10437_v36 = vsub.f32 %v352_v60, %v10402_v6 }
  0x4d   : > { %13865 = vst [vmem:[#allocation97_spill] sm:$0xff] %v10372_v42  ;;  %13866 = vst [vmem:[#allocation98_spill] sm:$0xff] %v10375_v5  ;;  %8356 = vmatprep.mubr.f32.mxu1 %v10204_v40  ;;  %8445 = vmatpush3.msra.mxu0 %v9916_v29  ;;  %v10439_v42 = vand.u32 4294901760, %v358_v53  ;;  %v761_v29 = vsub.f32 %v10375_v5, %v10409_v25  ;;  %v10448_v57 = vand.u32 4294901760, %v10412_v61  ;;  %v364_v60 = vsel %vm275_vm1, %v229_v55, 0  ;;  %v231_v5 = vld [vmem:[%s9934_s8 + $0xf8] sm:$0xff] }
  0x4e   : > { %13867 = vst [vmem:[#allocation99_spill] sm:$0xff] %v10377_v23  ;;  %13868 = vst [vmem:[#allocation100_spill] sm:$0xff] %v10386_v17  ;;  %v230_v17 = vld [vmem:[%s9934_s8 + $0xf0] sm:$0xff]  ;;  %8446 = vmatprep.subr.mxu0 %v9945_v37  ;;  %8564 = vmatprep.subr.mxu1 %v9870_v16  ;;  %v10451_v54 = vsub.f32 %v355_v4, %v10414_v45  ;;  %v10457_v40 = vand.u32 4294901760, %v751_v39  ;;  %v781_v55 = vsub.f32 %v10400_v35, %v10434_v21 }
  0x4f   : > { %13869 = vst [vmem:[#allocation101_spill] sm:$0xff] %v10389_v51  ;;  %13870 = vst [vmem:[#allocation102_spill] sm:$0xff] %v10395_v41  ;;  %8245 = vmatmul.mubr.f32.gmra.mxu0 %v10395_v41  ;;  %8565 = vmatpush3.msra.mxu1 %v9870_v16  ;;  %v771_v41 = vsub.f32 %v10389_v51, %v10425_v22  ;;  %v367_v4 = vsel %vm275_vm1, %v230_v17, 0  ;;  %v10473_v39 = vsub.f32 %v358_v53, %v10439_v42 }
  0x50   : > { %13871 = vst [vmem:[#allocation103_spill] sm:$0xff] %v10400_v35  ;;  %13872 = vst [vmem:[#allocation104_spill] sm:$0xff] %v10402_v6  ;;  %8357 = vmatmul.mubr.f32.gmra.mxu1 %v10225_v34  ;;  %8247 = vmatprep.mubr.f32.mxu0 %v10420_v48  ;;  %v10470_v34 = vand.u32 4294901760, %v10437_v36  ;;  %v791_v17 = vsub.f32 %v10412_v61, %v10448_v57  ;;  %v233_v35 = vld [vmem:[%s9934_s8 + $0x108] sm:$0xff] }
  0x51   : > { %13873 = vst [vmem:[#allocation105_spill] sm:$0xff] %v10409_v25  ;;  %13874 = vst [vmem:[#allocation106_spill] sm:$0xff] %v10412_v61  ;;  %v10461_v25 = vand.u32 4294901760, %v361_v19  ;;  %8359 = vmatprep.mubr.f32.mxu1 %v10230_v31  ;;  %8447 = vmatpush3.msra.mxu0 %v9945_v37  ;;  %v10481_v37 = vand.u32 4294901760, %v761_v29  ;;  %v10486_v31 = vand.u32 4294901760, %v10451_v54  ;;  %v10491_v53 = vand.u32 4294901760, %v771_v41 }
  0x52   : > { %13875 = vst [vmem:[#allocation107_spill] sm:$0xff] %v10414_v45  ;;  %13876 = vst [vmem:[#allocation108_spill] sm:$0xff] %v10420_v48  ;;  %v10475_v48 = vand.u32 4294901760, %v364_v60  ;;  %8448 = vmatprep.subr.mxu0 %v9980_v58  ;;  %8566 = vmatprep.subr.mxu1 %v9875_v18  ;;  %v370_v29 = vsel %vm275_vm1, %v231_v5, 0  ;;  %v234_v61 = vld [vmem:[%s9934_s8 + $0x110] sm:$0xff]  ;;  %v801_v41 = vsub.f32 %v10437_v36, %v10470_v34 }
  0x53   : > { %13877 = vst [vmem:[#allocation109_spill] sm:$0xff] %v10425_v22  ;;  %13878 = vst [vmem:[#allocation110_spill] sm:$0xff] %v10431_v49  ;;  %v232_v22 = vld [vmem:[%s9934_s8 + $0x100] sm:$0xff]  ;;  %8248 = vmatmul.mubr.f32.gmra.mxu0 %v10431_v49  ;;  %8567 = vmatpush3.msra.mxu1 %v9875_v18  ;;  %v10496_v49 = vand.u32 4294901760, %v367_v4  ;;  %v10521_v5 = vand.u32 4294901760, %v370_v29 }
  0x54   : > { %13879 = vst [vmem:[#allocation111_spill] sm:$0xff] %v10434_v21  ;;  %13880 = vst [vmem:[#allocation112_spill] sm:$0xff] %v10437_v36  ;;  %8360 = vmatmul.mubr.f32.gmra.mxu1 %v10232_v3  ;;  %8250 = vmatprep.mubr.f32.mxu0 %v10457_v40  ;;  %v10494_v21 = vsub.f32 %v361_v19, %v10461_v25  ;;  %v10504_v3 = vand.u32 4294901760, %v781_v55  ;;  %v10509_v19 = vand.u32 4294901760, %v10473_v39  ;;  %v376_v55 = vsel %vm275_vm1, %v233_v35, 0  ;;  %v236_v35 = vld [vmem:[%s9934_s8 + $0x120] sm:$0xff] }
  0x55   : > { %13881 = vst [vmem:[#allocation113_spill] sm:$0xff] %v10439_v42  ;;  %13882 = vst [vmem:[#allocation114_spill] sm:$0xff] %v10448_v57  ;;  %8362 = vmatprep.mubr.f32.mxu1 %v10246_v20  ;;  %v373_v57 = vsel %vm275_vm1, %v232_v22, 0  ;;  %8449 = vmatpush3.msra.mxu0 %v9980_v58  ;;  %v10517_v58 = vand.u32 4294901760, %v791_v17  ;;  %v811_v22 = vsub.f32 %v10451_v54, %v10486_v31  ;;  %v379_v20 = vsel %vm275_vm1, %v234_v61, 0 }
  0x56   : > { %13883 = vst [vmem:[#allocation115_spill] sm:$0xff] %v10451_v54  ;;  %13884 = vst [vmem:[#allocation116_spill] sm:$0xff] %v10457_v40  ;;  %v10512_v40 = vsub.f32 %v364_v60, %v10475_v48  ;;  %8450 = vmatprep.subr.mxu0 %v9983_v59  ;;  %8568 = vmatprep.subr.mxu1 %v9900_v24  ;;  %v10528_v60 = vand.u32 4294901760, %v10494_v21  ;;  %v10533_v17 = vand.u32 4294901760, %v373_v57 }
  0x57   : > { %13885 = vst [vmem:[#allocation117_spill] sm:$0xff] %v10461_v25  ;;  %13886 = vst [vmem:[#allocation118_spill] sm:$0xff] %v10470_v34  ;;  %8251 = vmatmul.mubr.f32.gmra.mxu0 %v10481_v37  ;;  %8569 = vmatpush3.msra.mxu1 %v9900_v24  ;;  %v10540_v34 = vand.u32 4294901760, %v801_v41  ;;  %v10552_v61 = vand.u32 4294901760, %v811_v22  ;;  %v10557_v41 = vand.u32 4294901760, %v379_v20 }
  0x58   : > { %13887 = vst [vmem:[#allocation119_spill] sm:$0xff] %v10473_v39  ;;  %13888 = vst [vmem:[#allocation120_spill] sm:$0xff] %v10475_v48  ;;  %8363 = vmatmul.mubr.f32.gmra.mxu1 %v10257_v50  ;;  %8253 = vmatprep.mubr.f32.mxu0 %v10491_v53  ;;  %v10545_v50 = vand.u32 4294901760, %v10512_v40 }
  0x59   : > { %13889 = vst [vmem:[#allocation121_spill] sm:$0xff] %v10481_v37  ;;  %13890 = vst [vmem:[#allocation122_spill] sm:$0xff] %v10486_v31  ;;  %v10531_v37 = vsub.f32 %v367_v4, %v10496_v49  ;;  %v235_v31 = vld [vmem:[%s9934_s8 + $0x118] sm:$0xff]  ;;  %8365 = vmatprep.mubr.f32.mxu1 %v10270_v63  ;;  %8451 = vmatpush3.msra.mxu0 %v9983_v59  ;;  %v10547_v4 = vand.u32 4294901760, %v376_v55  ;;  %v10555_v59 = vsub.f32 %v370_v29, %v10521_v5 }
  0x5a   : > { %13891 = vst [vmem:[#allocation123_spill] sm:$0xff] %v10491_v53  ;;  %13892 = vst [vmem:[#allocation124_spill] sm:$0xff] %v10494_v21  ;;  %v821_v53 = vsub.f32 %v10473_v39, %v10509_v19  ;;  %8452 = vmatprep.subr.mxu0 %v10016_v13  ;;  %8570 = vmatprep.subr.mxu1 %v9913_v28  ;;  %v382_v63 = vsel %vm275_vm1, %v235_v31, 0  ;;  %v10569_v29 = vsub.f32 %v373_v57, %v10533_v17  ;;  %v237_v39 = vld [vmem:[%s9934_s8 + $0x128] sm:$0xff]  ;;  %v238_v57 = vld [vmem:[%s9934_s8 + $0x130] sm:$0xff] }
  0x5b   : > { %13893 = vst [vmem:[#allocation125_spill] sm:$0xff] %v10496_v49  ;;  %13894 = vst [vmem:[#allocation126_spill] sm:$0xff] %v10504_v3  ;;  %8254 = vmatmul.mubr.f32.gmra.mxu0 %v10504_v3  ;;  %8571 = vmatpush3.msra.mxu1 %v9913_v28  ;;  %v10566_v22 = vand.u32 4294901760, %v10531_v37  ;;  %v385_v3 = vsel %vm275_vm1, %v236_v35, 0 }
  0x5c   : > { %13895 = vst [vmem:[#allocation127_spill] sm:$0xff] %v10509_v19  ;;  %13896 = vst [vmem:[#allocation128_spill] sm:$0xff] %v10512_v40  ;;  %8366 = vmatmul.mubr.f32.gmra.mxu1 %v10295_v0  ;;  %8256 = vmatprep.mubr.f32.mxu0 %v10517_v58  ;;  %v831_v19 = vsub.f32 %v10494_v21, %v10528_v60  ;;  %v10575_v31 = vand.u32 4294901760, %v821_v53  ;;  %v10580_v0 = vsub.f32 %v376_v55, %v10547_v4 }
  0x5d   : > { %13897 = vst [vmem:[#allocation129_spill] sm:$0xff] %v10517_v58  ;;  %13898 = vst [vmem:[#allocation130_spill] sm:$0xff] %v10521_v5  ;;  %8368 = vmatprep.mubr.f32.mxu1 %v10321_v32  ;;  %8453 = vmatpush3.msra.mxu0 %v10016_v13  ;;  %v841_v58 = vsub.f32 %v10512_v40, %v10545_v50  ;;  %v10589_v13 = vand.u32 4294901760, %v10555_v59  ;;  %v10592_v53 = vsub.f32 %v379_v20, %v10557_v41  ;;  %v239_v20 = vld [vmem:[%s9934_s8 + $0x138] sm:$0xff] }
  0x5e   : > { %13899 = vst [vmem:[#allocation131_spill] sm:$0xff] %v10528_v60  ;;  %13900 = vst [vmem:[#allocation132_spill] sm:$0xff] %v10531_v37  ;;  %v10582_v60 = vand.u32 4294901760, %v382_v63  ;;  %8454 = vmatprep.subr.mxu0 %v10020_v14  ;;  %8572 = vmatprep.subr.mxu1 %v9929_v33  ;;  %v10594_v35 = vand.u32 4294901760, %v385_v3  ;;  %v388_v55 = vsel %vm275_vm1, %v237_v39, 0  ;;  %v10600_v32 = vand.u32 4294901760, %v831_v19 }
  0x5f   : > { %13901 = vst [vmem:[#allocation133_spill] sm:$0xff] %v10533_v17  ;;  %13902 = vst [vmem:[#allocation134_spill] sm:$0xff] %v10540_v34  ;;  %8257 = vmatmul.mubr.f32.gmra.mxu0 %v10540_v34  ;;  %8573 = vmatpush3.msra.mxu1 %v9929_v33  ;;  %v851_v34 = vsub.f32 %v10531_v37, %v10566_v22  ;;  %v391_v40 = vsel %vm275_vm1, %v238_v57, 0  ;;  %v10611_v39 = vand.u32 4294901760, %v841_v58  ;;  %v10628_v58 = vand.u32 4294901760, %v10592_v53 }
  0x60   : > { %13903 = vst [vmem:[#allocation135_spill] sm:$0xff] %v10545_v50  ;;  %13904 = vst [vmem:[#allocation136_spill] sm:$0xff] %v10547_v4  ;;  %8369 = vmatmul.mubr.f32.gmra.mxu1 %v10342_v46  ;;  %8259 = vmatprep.mubr.f32.mxu0 %v10552_v61  ;;  %v10605_v50 = vand.u32 4294901760, %v10569_v29  ;;  %v10614_v46 = vand.u32 4294901760, %v10580_v0  ;;  %v10617_v19 = vsub.f32 %v382_v63, %v10582_v60  ;;  %v394_v57 = vsel %vm275_vm1, %v239_v20, 0 }
  0x61   : > { %13905 = vst [vmem:[#allocation137_spill] sm:$0xff] %v10552_v61  ;;  %13906 = vst [vmem:[#allocation138_spill] sm:$0xff] %v10555_v59  ;;  %8371 = vmatprep.mubr.f32.mxu1 %v10353_v47  ;;  %8455 = vmatpush3.msra.mxu0 %v10020_v14  ;;  %v10619_v61 = vand.u32 4294901760, %v388_v55  ;;  %v861_v14 = vsub.f32 %v10555_v59, %v10589_v13  ;;  %v10631_v63 = vsub.f32 %v385_v3, %v10594_v35  ;;  %v241_v59 = vld [vmem:[%s9934_s8 + $0x148] sm:$0xff] }
  0x62   : > { %13907 = vst [vmem:[#allocation139_spill] sm:$0xff] %v10557_v41  ;;  %13908 = vst [vmem:[#allocation140_spill] sm:$0xff] %v10566_v22  ;;  %v240_v22 = vld [vmem:[%s9934_s8 + $0x140] sm:$0xff]  ;;  %8670 = vmatprep.subr.mxu0 %v9920_v30  ;;  %8788 = vmatprep.subr.mxu1 %v9853_v9  ;;  %v10636_v47 = vand.u32 4294901760, %v851_v34  ;;  %v10640_v37 = vand.u32 4294901760, %v391_v40  ;;  %v881_v3 = vsub.f32 %v10580_v0, %v10614_v46  ;;  %v10648_v20 = vand.u32 4294901760, %v10617_v19 }
  0x63   : > { %13909 = vst [vmem:[#allocation141_spill] sm:$0xff] %v10569_v29  ;;  %13910 = vst [vmem:[#allocation142_spill] sm:$0xff] %v10575_v31  ;;  %8260 = vmatmul.mubr.f32.gmra.mxu0 %v10575_v31  ;;  %v871_v31 = vsub.f32 %v10569_v29, %v10605_v50  ;;  %v10651_v34 = vsub.f32 %v388_v55, %v10619_v61 }
  0x64   : > { %13911 = vst [vmem:[#allocation143_spill] sm:$0xff] %v10580_v0  ;;  %13912 = vst [vmem:[#allocation144_spill] sm:$0xff] %v10582_v60  ;;  %8372 = vmatmul.mubr.f32.gmra.mxu1 %v10367_v56  ;;  %8262 = vmatprep.mubr.f32.mxu0 %v10600_v32  ;;  %v242_v56 = vld [vmem:[%s9934_s8 + $0x150] sm:$0xff]  ;;  %v10678_v29 = vand.u32 4294901760, %v881_v3 }
  0x65   : > { %13913 = vst [vmem:[#allocation145_spill] sm:$0xff] %v10589_v13  ;;  %13914 = vst [vmem:[#allocation146_spill] sm:$0xff] %v10592_v53  ;;  %8374 = vmatprep.mubr.f32.mxu1 %v10377_v23  ;;  %v397_v13 = vsel %vm275_vm1, %v240_v22, 0  ;;  %v10657_v23 = vand.u32 4294901760, %v861_v14  ;;  %v891_v22 = vsub.f32 %v10592_v53, %v10628_v58  ;;  %v10666_v55 = vand.u32 4294901760, %v871_v31  ;;  %v244_v53 = vld [vmem:[%s9934_s8 + $0x160] sm:$0xff] }
  0x66   : > { %13915 = vst [vmem:[#allocation147_spill] sm:$0xff] %v10594_v35  ;;  %13916 = vst [vmem:[#allocation148_spill] sm:$0xff] %v10600_v32  ;;  %v10653_v32 = vand.u32 4294901760, %v394_v57  ;;  %v10671_v0 = vand.u32 4294901760, %v397_v13  ;;  %v400_v14 = vsel %vm275_vm1, %v241_v59, 0  ;;  %v901_v31 = vsub.f32 %v10617_v19, %v10648_v20 }
  0x67   : > { %13917 = vst [vmem:[#allocation149_spill] sm:$0xff] %v10605_v50  ;;  %13918 = vst [vmem:[#allocation150_spill] sm:$0xff] %v10611_v39  ;;  %8263 = vmatmul.mubr.f32.gmra.mxu0 %v10611_v39  ;;  %v10662_v50 = vand.u32 4294901760, %v10631_v63  ;;  %v243_v39 = vld [vmem:[%s9934_s8 + $0x158] sm:$0xff]  ;;  %v10689_v59 = vand.u32 4294901760, %v891_v22  ;;  %v409_v22 = vsel %vm275_vm1, %v244_v53, 0 }
  0x68   : > { %13919 = vst [vmem:[#allocation151_spill] sm:$0xff] %v10614_v46  ;;  %13920 = vst [vmem:[#allocation152_spill] sm:$0xff] %v10617_v19  ;;  %8375 = vmatmul.mubr.f32.gmra.mxu1 %v10402_v6  ;;  %8265 = vmatprep.mubr.f32.mxu0 %v10636_v47  ;;  %v10669_v46 = vsub.f32 %v391_v40, %v10640_v37  ;;  %v10683_v40 = vand.u32 4294901760, %v10651_v34  ;;  %v406_v3 = vsel %vm275_vm1, %v243_v39, 0  ;;  %v10710_v39 = vand.u32 4294901760, %v901_v31 }
  0x69   : > { %13921 = vst [vmem:[#allocation153_spill] sm:$0xff] %v10619_v61  ;;  %13922 = vst [vmem:[#allocation154_spill] sm:$0xff] %v10628_v58  ;;  %8377 = vmatprep.mubr.f32.mxu1 %v10414_v45  ;;  %v403_v58 = vsel %vm275_vm1, %v242_v56, 0  ;;  %v911_v56 = vsub.f32 %v10631_v63, %v10662_v50  ;;  %v10693_v45 = vand.u32 4294901760, %v400_v14 }
  0x6a   : > { %13923 = vst [vmem:[#allocation155_spill] sm:$0xff] %v10631_v63  ;;  %13924 = vst [vmem:[#allocation156_spill] sm:$0xff] %v10636_v47  ;;  %v10686_v47 = vsub.f32 %v394_v57, %v10653_v32  ;;  %v10699_v6 = vand.u32 4294901760, %v10669_v46  ;;  %v10702_v57 = vsub.f32 %v397_v13, %v10671_v0  ;;  %v10717_v63 = vand.u32 4294901760, %v406_v3 }
  0x6b   : > { %13925 = vst [vmem:[#allocation157_spill] sm:$0xff] %v10640_v37  ;;  %13926 = vst [vmem:[#allocation158_spill] sm:$0xff] %v10648_v20  ;;  %8266 = vmatmul.mubr.f32.gmra.mxu0 %v10657_v23  ;;  %v245_v20 = vld [vmem:[%s9934_s8 + $0x168] sm:$0xff]  ;;  %v10720_v13 = vand.u32 4294901760, %v911_v56  ;;  %v10723_v53 = vsub.f32 %v400_v14, %v10693_v45 }
  0x6c   : > { %13927 = vst [vmem:[#allocation159_spill] sm:$0xff] %v10651_v34  ;;  %13928 = vst [vmem:[#allocation160_spill] sm:$0xff] %v10653_v32  ;;  %8378 = vmatmul.mubr.f32.gmra.mxu1 %v10439_v42  ;;  %8268 = vmatprep.mubr.f32.mxu0 %v10666_v55  ;;  %v10715_v42 = vand.u32 4294901760, %v10686_v47  ;;  %v412_v31 = vsel %vm275_vm1, %v245_v20, 0 }
  0x6d   : > { %13929 = vst [vmem:[#allocation161_spill] sm:$0xff] %v10657_v23  ;;  %13930 = vst [vmem:[#allocation162_spill] sm:$0xff] %v10662_v50  ;;  %v10704_v23 = vand.u32 4294901760, %v403_v58  ;;  %8380 = vmatprep.mubr.f32.mxu1 %v10461_v25  ;;  %v246_v50 = vld [vmem:[%s9934_s8 + $0x170] sm:$0xff]  ;;  %v10725_v25 = vand.u32 4294901760, %v409_v22 }
  0x6e   : > { %13931 = vst [vmem:[#allocation163_spill] sm:$0xff] %v10666_v55  ;;  %13932 = vst [vmem:[#allocation164_spill] sm:$0xff] %v10669_v46  ;;  %v921_v55 = vsub.f32 %v10651_v34, %v10683_v40  ;;  %v10733_v34 = vand.u32 4294901760, %v10702_v57  ;;  %v415_v14 = vsel %vm275_vm1, %v246_v50, 0 }
  0x6f   : > { %13933 = vst [vmem:[#allocation165_spill] sm:$0xff] %v10671_v0  ;;  %13934 = vst [vmem:[#allocation166_spill] sm:$0xff] %v10678_v29  ;;  %8269 = vmatmul.mubr.f32.gmra.mxu0 %v10678_v29  ;;  %v10736_v56 = vsub.f32 %v403_v58, %v10704_v23  ;;  %v247_v29 = vld [vmem:[%s9934_s8 + $0x178] sm:$0xff]  ;;  %v10753_v58 = vand.u32 4294901760, %v10723_v53  ;;  %v10756_v50 = vsub.f32 %v409_v22, %v10725_v25 }
  0x70   : > { %13935 = vst [vmem:[#allocation167_spill] sm:$0xff] %v10683_v40  ;;  %13936 = vst [vmem:[#allocation168_spill] sm:$0xff] %v10686_v47  ;;  %8381 = vmatmul.mubr.f32.gmra.mxu1 %v10475_v48  ;;  %8271 = vmatprep.mubr.f32.mxu0 %v10689_v59  ;;  %v931_v40 = vsub.f32 %v10669_v46, %v10699_v6  ;;  %v10741_v20 = vand.u32 4294901760, %v921_v55  ;;  %v10746_v48 = vsub.f32 %v406_v3, %v10717_v63  ;;  %v248_v46 = vld [vmem:[%s9934_s8 + $0x180] sm:$0xff] }
  0x71   : > { %13937 = vst [vmem:[#allocation169_spill] sm:$0xff] %v10689_v59  ;;  %13938 = vst [vmem:[#allocation170_spill] sm:$0xff] %v10693_v45  ;;  %8383 = vmatprep.mubr.f32.mxu1 %v10496_v49  ;;  %v941_v59 = vsub.f32 %v10686_v47, %v10715_v42  ;;  %v10758_v55 = vand.u32 4294901760, %v415_v14  ;;  %v418_v49 = vsel %vm275_vm1, %v247_v29, 0  ;;  %v249_v47 = vld [vmem:[%s9934_s8 + $0x188] sm:$0xff]  ;;  %v421_v22 = vsel %vm275_vm1, %v248_v46, 0 }
  0x72   : > { %13939 = vst [vmem:[#allocation171_spill] sm:$0xff] %v10699_v6  ;;  %13940 = vst [vmem:[#allocation172_spill] sm:$0xff] %v10702_v57  ;;  %v10748_v6 = vand.u32 4294901760, %v412_v31  ;;  %v10763_v3 = vand.u32 4294901760, %v931_v40  ;;  %v10776_v29 = vand.u32 4294901760, %v10746_v48  ;;  %v10788_v46 = vand.u32 4294901760, %v10756_v50 }
  0x73   : > { %13941 = vst [vmem:[#allocation173_spill] sm:$0xff] %v10704_v23  ;;  %13942 = vst [vmem:[#allocation174_spill] sm:$0xff] %v10710_v39  ;;  %8272 = vmatmul.mubr.f32.gmra.mxu0 %v10710_v39  ;;  %v951_v39 = vsub.f32 %v10702_v57, %v10733_v34  ;;  %v10773_v19 = vand.u32 4294901760, %v941_v59  ;;  %v10791_v59 = vsub.f32 %v415_v14, %v10758_v55  ;;  %v10800_v57 = vand.u32 4294901760, %v421_v22 }
  0x74   : > { %13943 = vst [vmem:[#allocation175_spill] sm:$0xff] %v10715_v42  ;;  %13944 = vst [vmem:[#allocation176_spill] sm:$0xff] %v10717_v63  ;;  %8384 = vmatmul.mubr.f32.gmra.mxu1 %v10521_v5  ;;  %8274 = vmatprep.mubr.f32.mxu0 %v10720_v13  ;;  %v10768_v42 = vand.u32 4294901760, %v10736_v56  ;;  %v10779_v40 = vsub.f32 %v412_v31, %v10748_v6  ;;  %v250_v5 = vld [vmem:[%s9934_s8 + $0x190] sm:$0xff] }
  0x75   : > { %13945 = vst [vmem:[#allocation177_spill] sm:$0xff] %v10720_v13  ;;  %13946 = vst [vmem:[#allocation178_spill] sm:$0xff] %v10723_v53  ;;  %8386 = vmatprep.mubr.f32.mxu1 %v10533_v17  ;;  %v10781_v13 = vand.u32 4294901760, %v418_v49  ;;  %v424_v17 = vsel %vm275_vm1, %v249_v47, 0  ;;  %v10796_v31 = vand.u32 4294901760, %v951_v39  ;;  %v981_v47 = vsub.f32 %v10746_v48, %v10776_v29 }
  0x76   : > { %13947 = vst [vmem:[#allocation179_spill] sm:$0xff] %v10725_v25  ;;  %13948 = vst [vmem:[#allocation180_spill] sm:$0xff] %v10733_v34  ;;  %v961_v34 = vsub.f32 %v10723_v53, %v10753_v58  ;;  %v251_v53 = vld [vmem:[%s9934_s8 + $0x198] sm:$0xff]  ;;  %v10808_v14 = vand.u32 4294901760, %v10779_v40 }
  0x77   : > { %13949 = vst [vmem:[#allocation181_spill] sm:$0xff] %v10736_v56  ;;  %13950 = vst [vmem:[#allocation182_spill] sm:$0xff] %v10741_v20  ;;  %8275 = vmatmul.mubr.f32.gmra.mxu0 %v10741_v20  ;;  %v971_v20 = vsub.f32 %v10736_v56, %v10768_v42  ;;  %v10811_v39 = vsub.f32 %v418_v49, %v10781_v13  ;;  %v10838_v56 = vand.u32 4294901760, %v981_v47 }
  0x78   : > { %13951 = vst [vmem:[#allocation183_spill] sm:$0xff] %v10746_v48  ;;  %13952 = vst [vmem:[#allocation184_spill] sm:$0xff] %v10748_v6  ;;  %8387 = vmatmul.mubr.f32.gmra.mxu1 %v10547_v4  ;;  %8277 = vmatprep.mubr.f32.mxu0 %v10763_v3  ;;  %v252_v4 = vld [vmem:[%s9934_s8 + $0x1a0] sm:$0xff] }
  0x79   : > { %13953 = vst [vmem:[#allocation185_spill] sm:$0xff] %v10753_v58  ;;  %13954 = vst [vmem:[#allocation186_spill] sm:$0xff] %v10756_v50  ;;  %8389 = vmatprep.mubr.f32.mxu1 %v10557_v41  ;;  %v427_v58 = vsel %vm275_vm1, %v250_v5, 0  ;;  %v10817_v41 = vand.u32 4294901760, %v961_v34  ;;  %v991_v5 = vsub.f32 %v10756_v50, %v10788_v46  ;;  %v10826_v49 = vand.u32 4294901760, %v971_v20  ;;  %v254_v50 = vld [vmem:[%s9934_s8 + $0x1b0] sm:$0xff] }
  0x7a   : > { %13955 = vst [vmem:[#allocation187_spill] sm:$0xff] %v10758_v55  ;;  %13956 = vst [vmem:[#allocation188_spill] sm:$0xff] %v10763_v3  ;;  %v10813_v3 = vand.u32 4294901760, %v424_v17  ;;  %v10831_v48 = vand.u32 4294901760, %v427_v58  ;;  %v430_v34 = vsel %vm275_vm1, %v251_v53, 0  ;;  %v1001_v20 = vsub.f32 %v10779_v40, %v10808_v14 }
  0x7b   : > { %13957 = vst [vmem:[#allocation189_spill] sm:$0xff] %v10768_v42  ;;  %13958 = vst [vmem:[#allocation190_spill] sm:$0xff] %v10773_v19  ;;  %8278 = vmatmul.mubr.f32.gmra.mxu0 %v10773_v19  ;;  %v10822_v42 = vand.u32 4294901760, %v10791_v59  ;;  %v253_v19 = vld [vmem:[%s9934_s8 + $0x1a8] sm:$0xff]  ;;  %v10849_v53 = vand.u32 4294901760, %v991_v5  ;;  %v439_v5 = vsel %vm275_vm1, %v254_v50, 0 }
  0x7c   : > { %13959 = vst [vmem:[#allocation191_spill] sm:$0xff] %v10776_v29  ;;  %13960 = vst [vmem:[#allocation192_spill] sm:$0xff] %v10779_v40  ;;  %8390 = vmatmul.mubr.f32.gmra.mxu1 %v10582_v60  ;;  %8280 = vmatprep.mubr.f32.mxu0 %v10796_v31  ;;  %v10829_v29 = vsub.f32 %v421_v22, %v10800_v57  ;;  %v10843_v22 = vand.u32 4294901760, %v10811_v39  ;;  %v436_v47 = vsel %vm275_vm1, %v253_v19, 0  ;;  %v10870_v19 = vand.u32 4294901760, %v1001_v20 }
  0x7d   : > { %13961 = vst [vmem:[#allocation193_spill] sm:$0xff] %v10781_v13  ;;  %13962 = vst [vmem:[#allocation194_spill] sm:$0xff] %v10788_v46  ;;  %8392 = vmatprep.mubr.f32.mxu1 %v10594_v35  ;;  %v433_v46 = vsel %vm275_vm1, %v252_v4, 0  ;;  %v1011_v4 = vsub.f32 %v10791_v59, %v10822_v42  ;;  %v10853_v35 = vand.u32 4294901760, %v430_v34 }
  0x7e   : > { %13963 = vst [vmem:[#allocation195_spill] sm:$0xff] %v10791_v59  ;;  %13964 = vst [vmem:[#allocation196_spill] sm:$0xff] %v10796_v31  ;;  %v10846_v31 = vsub.f32 %v424_v17, %v10813_v3  ;;  %v10859_v60 = vand.u32 4294901760, %v10829_v29  ;;  %v10862_v17 = vsub.f32 %v427_v58, %v10831_v48  ;;  %v10877_v59 = vand.u32 4294901760, %v436_v47 }
  0x7f   : > { %13965 = vst [vmem:[#allocation197_spill] sm:$0xff] %v10800_v57  ;;  %13966 = vst [vmem:[#allocation198_spill] sm:$0xff] %v10808_v14  ;;  %8281 = vmatmul.mubr.f32.gmra.mxu0 %v10817_v41  ;;  %v255_v14 = vld [vmem:[%s9934_s8 + $0x1b8] sm:$0xff]  ;;  %v10880_v58 = vand.u32 4294901760, %v1011_v4  ;;  %v10883_v50 = vsub.f32 %v430_v34, %v10853_v35 }
  0x80   : > { %13967 = vst [vmem:[#allocation199_spill] sm:$0xff] %v10811_v39  ;;  %13968 = vst [vmem:[#allocation200_spill] sm:$0xff] %v10813_v3  ;;  %8393 = vmatmul.mubr.f32.gmra.mxu1 %v10619_v61  ;;  %8283 = vmatprep.mubr.f32.mxu0 %v10826_v49  ;;  %v10875_v61 = vand.u32 4294901760, %v10846_v31  ;;  %v442_v20 = vsel %vm275_vm1, %v255_v14, 0 }
  0x81   : > { %13969 = vst [vmem:[#allocation201_spill] sm:$0xff] %v10817_v41  ;;  %13970 = vst [vmem:[#allocation202_spill] sm:$0xff] %v10822_v42  ;;  %v10864_v41 = vand.u32 4294901760, %v433_v46  ;;  %8395 = vmatprep.mubr.f32.mxu1 %v10640_v37  ;;  %v256_v42 = vld [vmem:[%s9934_s8 + $0x1c0] sm:$0xff]  ;;  %v10885_v37 = vand.u32 4294901760, %v439_v5 }
  0x82   : > { %13971 = vst [vmem:[#allocation203_spill] sm:$0xff] %v10826_v49  ;;  %13972 = vst [vmem:[#allocation204_spill] sm:$0xff] %v10829_v29  ;;  %v1021_v49 = vsub.f32 %v10811_v39, %v10843_v22  ;;  %v10893_v39 = vand.u32 4294901760, %v10862_v17  ;;  %v445_v34 = vsel %vm275_vm1, %v256_v42, 0  ;;  %v1041_v14 = vsub.f32 %v10846_v31, %v10875_v61 }
  0x83   : > { %13973 = vst [vmem:[#allocation205_spill] sm:$0xff] %v10831_v48  ;;  %13974 = vst [vmem:[#allocation206_spill] sm:$0xff] %v10838_v56  ;;  %8284 = vmatmul.mubr.f32.gmra.mxu0 %v10838_v56  ;;  %v10896_v4 = vsub.f32 %v433_v46, %v10864_v41  ;;  %v257_v56 = vld [vmem:[%s9934_s8 + $0x1c8] sm:$0xff]  ;;  %v10913_v42 = vand.u32 4294901760, %v10883_v50  ;;  %v10916_v46 = vsub.f32 %v439_v5, %v10885_v37 }
  0x84   : > { %13975 = vst [vmem:[#allocation207_spill] sm:$0xff] %v10843_v22  ;;  %13976 = vst [vmem:[#allocation208_spill] sm:$0xff] %v10846_v31  ;;  %8396 = vmatmul.mubr.f32.gmra.mxu1 %v10653_v32  ;;  %8286 = vmatprep.mubr.f32.mxu0 %v10849_v53  ;;  %v1031_v22 = vsub.f32 %v10829_v29, %v10859_v60  ;;  %v10901_v40 = vand.u32 4294901760, %v1021_v49  ;;  %v10908_v32 = vand.u32 4294901760, %v442_v20  ;;  %v10918_v49 = vand.u32 4294901760, %v445_v34  ;;  %v259_v31 = vld [vmem:[%s9934_s8 + $0x1d8] sm:$0xff] }
  0x85   : > { %13977 = vst [vmem:[#allocation209_spill] sm:$0xff] %v10849_v53  ;;  %13978 = vst [vmem:[#allocation210_spill] sm:$0xff] %v10853_v35  ;;  %8398 = vmatprep.mubr.f32.mxu1 %v10671_v0  ;;  %v10906_v53 = vsub.f32 %v436_v47, %v10877_v59  ;;  %v448_v0 = vsel %vm275_vm1, %v257_v56, 0 }
  0x86   : > { %13979 = vst [vmem:[#allocation211_spill] sm:$0xff] %v10859_v60  ;;  %13980 = vst [vmem:[#allocation212_spill] sm:$0xff] %v10862_v17  ;;  %v258_v60 = vld [vmem:[%s9934_s8 + $0x1d0] sm:$0xff]  ;;  %v10923_v47 = vand.u32 4294901760, %v1031_v22  ;;  %v10937_v56 = vsub.f32 %v442_v20, %v10908_v32  ;;  %v10939_v22 = vand.u32 4294901760, %v448_v0 }
  0x87   : > { %13981 = vst [vmem:[#allocation213_spill] sm:$0xff] %v10864_v41  ;;  %13982 = vst [vmem:[#allocation214_spill] sm:$0xff] %v10870_v19  ;;  %8287 = vmatmul.mubr.f32.gmra.mxu0 %v10870_v19  ;;  %v1051_v19 = vsub.f32 %v10862_v17, %v10893_v39  ;;  %v451_v5 = vsel %vm275_vm1, %v258_v60, 0  ;;  %v10934_v29 = vand.u32 4294901760, %v10906_v53  ;;  %v10948_v60 = vand.u32 4294901760, %v10916_v46 }
  0x88   : > { %13983 = vst [vmem:[#allocation215_spill] sm:$0xff] %v10875_v61  ;;  %13984 = vst [vmem:[#allocation216_spill] sm:$0xff] %v10877_v59  ;;  %8399 = vmatmul.mubr.f32.gmra.mxu1 %v10693_v45  ;;  %8289 = vmatprep.mubr.f32.mxu0 %v10880_v58  ;;  %v10928_v61 = vand.u32 4294901760, %v10896_v4  ;;  %v10943_v45 = vand.u32 4294901760, %v1041_v14  ;;  %v454_v17 = vsel %vm275_vm1, %v259_v31, 0 }
  0x89   : > { %13985 = vst [vmem:[#allocation217_spill] sm:$0xff] %v10880_v58  ;;  %13986 = vst [vmem:[#allocation218_spill] sm:$0xff] %v10883_v50  ;;  %8401 = vmatprep.mubr.f32.mxu1 %v10704_v23  ;;  %v260_v58 = vld [vmem:[%s9934_s8 + $0x1e0] sm:$0xff]  ;;  %v1061_v23 = vsub.f32 %v10883_v50, %v10913_v42  ;;  %v10955_v20 = vand.u32 4294901760, %v1051_v19  ;;  %v261_v50 = vld [vmem:[%s9934_s8 + $0x1e8] sm:$0xff]  ;;  %v10971_v19 = vsub.f32 %v448_v0, %v10939_v22 }
  0x8a   : > { %13987 = vst [vmem:[#allocation219_spill] sm:$0xff] %v10885_v37  ;;  %13988 = vst [vmem:[#allocation220_spill] sm:$0xff] %v10893_v39  ;;  %v10951_v39 = vsub.f32 %v445_v34, %v10918_v49  ;;  %v1071_v14 = vsub.f32 %v10896_v4, %v10928_v61  ;;  %v1081_v34 = vsub.f32 %v10906_v53, %v10934_v29 }
  0x8b   : > { %13989 = vst [vmem:[#allocation221_spill] sm:$0xff] %v10896_v4  ;;  %13990 = vst [vmem:[#allocation222_spill] sm:$0xff] %v10901_v40  ;;  %8290 = vmatmul.mubr.f32.gmra.mxu0 %v10901_v40  ;;  %v10959_v40 = vand.u32 4294901760, %v451_v5  ;;  %v1091_v31 = vsub.f32 %v10916_v46, %v10948_v60 }
  0x8c   : > { %13991 = vst [vmem:[#allocation223_spill] sm:$0xff] %v10906_v53  ;;  %13992 = vst [vmem:[#allocation224_spill] sm:$0xff] %v10908_v32  ;;  %8402 = vmatmul.mubr.f32.gmra.mxu1 %v10717_v63  ;;  %8292 = vmatprep.mubr.f32.mxu0 %v10923_v47  ;;  %v10968_v63 = vand.u32 4294901760, %v10937_v56  ;;  %v10997_v53 = vand.u32 4294901760, %v1081_v34 }
  0x8d   : > { %13993 = vst [vmem:[#allocation225_spill] sm:$0xff] %v10913_v42  ;;  %13994 = vst [vmem:[#allocation226_spill] sm:$0xff] %v10916_v46  ;;  %8404 = vmatprep.mubr.f32.mxu1 %v10725_v25  ;;  %v457_v42 = vsel %vm275_vm1, %v260_v58, 0  ;;  %v10980_v58 = vand.u32 4294901760, %v10951_v39  ;;  %v10982_v25 = vand.u32 4294901760, %v454_v17  ;;  %v10989_v0 = vsub.f32 %v451_v5, %v10959_v40  ;;  %v263_v46 = vld [vmem:[%s9934_s8 + $0x1f8] sm:$0xff] }
  0x8e   : > { %13995 = vst [vmem:[#allocation227_spill] sm:$0xff] %v10918_v49  ;;  %13996 = vst [vmem:[#allocation228_spill] sm:$0xff] %v10923_v47  ;;  %v262_v47 = vld [vmem:[%s9934_s8 + $0x1f0] sm:$0xff]  ;;  %v11005_v5 = vand.u32 4294901760, %v1091_v31  ;;  %s9678_s8 = scalar_lea.vmem %s9677_s7, 16384 }
  0x8f   : > { %13997 = vst [vmem:[#allocation229_spill] sm:$0xff] %v10928_v61  ;;  %13998 = vst [vmem:[#allocation230_spill] sm:$0xff] %v10934_v29  ;;  %8293 = vmatmul.mubr.f32.gmra.mxu0 %v10943_v45  ;;  %v10975_v61 = vand.u32 4294901760, %v1061_v23  ;;  %v10986_v29 = vand.u32 4294901760, %v1071_v14  ;;  %v460_v23 = vsel %vm275_vm1, %v261_v50, 0  ;;  %v11002_v14 = vand.u32 4294901760, %v10971_v19  ;;  %p9680_p2 = scmp.lt.s32.totalorder %s9678_s8, %s9672_s5 }
  0x90   : > { %13999 = vst [vmem:[#allocation231_spill] sm:$0xff] %v10937_v56  ;;  %14000 = vst [vmem:[#allocation232_spill] sm:$0xff] %v10939_v22  ;;  %8405 = vmatmul.mubr.f32.gmra.mxu1 %v10748_v6  ;;  %8295 = vmatprep.mubr.f32.mxu0 %v10955_v20  ;;  %v1101_v6 = vsub.f32 %v10937_v56, %v10968_v63  ;;  %v1111_v50 = vsub.f32 %v10951_v39, %v10980_v58  ;;  %v11017_v34 = vand.u32 4294901760, %v10989_v0 }
  0x91   : > { %14001 = vst [vmem:[#allocation233_spill] sm:$0xff] %v10943_v45  ;;  %14002 = vst [vmem:[#allocation234_spill] sm:$0xff] %v10948_v60  ;;  %v10991_v45 = vand.u32 4294901760, %v457_v42  ;;  %8407 = vmatprep.mubr.f32.mxu1 %v10758_v55  ;;  %v463_v60 = vsel %vm275_vm1, %v262_v47, 0  ;;  %v11012_v47 = vand.u32 4294901760, %v460_v23  ;;  %p9681_p3 = por %p9680_p2, %p9679_p1 }
  0x92   : > { %14003 = vst [vmem:[#allocation235_spill] sm:$0xff] %v10951_v39  ;;  %14004 = vst [vmem:[#allocation236_spill] sm:$0xff] %v10955_v20  ;;  %v11010_v20 = vsub.f32 %v454_v17, %v10982_v25  ;;  %v11022_v31 = vand.u32 4294901760, %v463_v60  ;;  %v11026_v17 = vand.u32 4294901760, %v1101_v6  ;;  %v1131_v6 = vsub.f32 %v10989_v0, %v11017_v34 }
  0x93   : > { %14005 = vst [vmem:[#allocation237_spill] sm:$0xff] %v10959_v40  ;;  %14006 = vst [vmem:[#allocation238_spill] sm:$0xff] %v10968_v63  ;;  %8296 = vmatmul.mubr.f32.gmra.mxu0 %v10975_v61  ;;  %v11020_v55 = vsub.f32 %v457_v42, %v10991_v45  ;;  %p9682_p5 = pnand %p9681_p3, %p9675_p0 }
  0x94   : > { %14007 = vst [vmem:[#allocation239_spill] sm:$0xff] %v10971_v19  ;;  %14008 = vst [vmem:[#allocation240_spill] sm:$0xff] %v10975_v61  ;;  %8408 = vmatmul.mubr.f32.gmra.mxu1 %v10781_v13  ;;  %8298 = vmatprep.mubr.f32.mxu0 %v10986_v29  ;;  %v466_v61 = vsel %vm275_vm1, %v263_v46, 0  ;;  %v1121_v13 = vsub.f32 %v10971_v19, %v11002_v14  ;;  %v11041_v46 = vand.u32 4294901760, %v1111_v50 }
  0x95   : > { %14009 = vst [vmem:[#allocation241_spill] sm:$0xff] %v10980_v58  ;;  %14010 = vst [vmem:[#allocation242_spill] sm:$0xff] %v10982_v25  ;;  %8410 = vmatprep.mubr.f32.mxu1 %v10800_v57  ;;  %v11035_v58 = vsub.f32 %v460_v23, %v11012_v47  ;;  %v11037_v42 = vand.u32 4294901760, %v466_v61  ;;  %v11049_v57 = vsub.f32 %v463_v60, %v11022_v31  ;;  %v11065_v60 = vand.u32 4294901760, %v1131_v6 }
  0x96   : > { %14011 = vst [vmem:[#allocation243_spill] sm:$0xff] %v10986_v29  ;;  %14012 = vst [vmem:[#allocation244_spill] sm:$0xff] %v10989_v0  ;;  %v11032_v29 = vand.u32 4294901760, %v11010_v20  ;;  %v11053_v23 = vand.u32 4294901760, %v1121_v13 }
  0x97   : > { %14013 = vst [vmem:[#allocation245_spill] sm:$0xff] %v10991_v45  ;;  %14014 = vst [vmem:[#allocation246_spill] sm:$0xff] %v10997_v53  ;;  %8299 = vmatmul.mubr.f32.gmra.mxu0 %v10997_v53  ;;  %v11046_v53 = vand.u32 4294901760, %v11020_v55  ;;  %v11058_v50 = vand.u32 4294901760, %v11035_v58  ;;  %v11070_v13 = vand.u32 4294901760, %v11049_v57 }
  0x98   : > { %14015 = vst [vmem:[#allocation247_spill] sm:$0xff] %v11002_v14  ;;  %14016 = vst [vmem:[#allocation248_spill] sm:$0xff] %v11005_v5  ;;  %8411 = vmatmul.mubr.f32.gmra.mxu1 %v10813_v3  ;;  %8301 = vmatprep.mubr.f32.mxu0 %v11005_v5  ;;  %v1141_v5 = vsub.f32 %v11010_v20, %v11032_v29  ;;  %v11061_v3 = vsub.f32 %v466_v61, %v11037_v42 }
  0x99   : > { %14017 = vst [vmem:[#allocation249_spill] sm:$0xff] %v11010_v20  ;;  %14018 = vst [vmem:[#allocation250_spill] sm:$0xff] %v11012_v47  ;;  %8413 = vmatprep.mubr.f32.mxu1 %v10831_v48  ;;  %v1161_v61 = vsub.f32 %v11035_v58, %v11058_v50 }
  0x9a   : > { %14019 = vst [vmem:[#allocation251_spill] sm:$0xff] %v11017_v34  ;;  %14020 = vst [vmem:[#allocation252_spill] sm:$0xff] %v11020_v55  ;;  %v11074_v48 = vand.u32 4294901760, %v1141_v5 }
  0x9b   : > { %14021 = vst [vmem:[#allocation253_spill] sm:$0xff] %v11022_v31  ;;  %14022 = vst [vmem:[#allocation254_spill] sm:$0xff] %v11026_v17  ;;  %8302 = vmatmul.mubr.f32.gmra.mxu0 %v11026_v17  ;;  %v1151_v17 = vsub.f32 %v11020_v55, %v11046_v53  ;;  %v11089_v5 = vand.u32 4294901760, %v1161_v61  ;;  %v14042_v61 = vld [vmem:[#allocation22_spill] sm:$0xff] }
  0x9c   : > { %14023 = vst [vmem:[#allocation255_spill] sm:$0xff] %v11032_v29  ;;  %14024 = vst [vmem:[#allocation256_spill] sm:$0xff] %v11035_v58  ;;  %8414 = vmatmul.mubr.f32.gmra.mxu1 %v10853_v35  ;;  %8304 = vmatprep.mubr.f32.mxu0 %v11041_v46  ;;  %v11079_v35 = vand.u32 4294901760, %v11061_v3 }
  0x9d   : > { %14025 = vst [vmem:[#allocation257_spill] sm:$0xff] %v11037_v42  ;;  %14026 = vst [vmem:[#allocation258_spill] sm:$0xff] %v11041_v46  ;;  %8416 = vmatprep.mubr.f32.mxu1 %v10864_v41  ;;  %v11083_v6 = vand.u32 4294901760, %v1151_v17  ;;  %v1171_v46 = vsub.f32 %v11049_v57, %v11070_v13 }
  0x9e   : > { %14027 = vst [vmem:[#allocation259_spill] sm:$0xff] %v11046_v53  ;;  %14028 = vst [vmem:[#allocation260_spill] sm:$0xff] %v11049_v57 }
  0x9f   : > { %14029 = vst [vmem:[#allocation261_spill] sm:$0xff] %v11053_v23  ;;  %14030 = vst [vmem:[#allocation262_spill] sm:$0xff] %v11058_v50  ;;  %8305 = vmatmul.mubr.f32.gmra.mxu0 %v11053_v23  ;;  %v1181_v23 = vsub.f32 %v11061_v3, %v11079_v35 }
  0xa0   : > { %14031 = vst [vmem:[#allocation263_spill] sm:$0xff] %v11061_v3  ;;  %14032 = vst [vmem:[#allocation264_spill] sm:$0xff] %v11065_v60  ;;  %8417 = vmatmul.mubr.f32.gmra.mxu1 %v10877_v59  ;;  %8307 = vmatprep.mubr.f32.mxu0 %v11065_v60  ;;  %v11095_v59 = vand.u32 4294901760, %v1171_v46  ;;  %v14040_v46 = vld [vmem:[#allocation7_spill] sm:$0xff] }
  0xa1   : > { %14033 = vst [vmem:[#allocation265_spill] sm:$0xff] %v11070_v13  ;;  %14034 = vst [vmem:[#allocation266_spill] sm:$0xff] %v11074_v48  ;;  %8419 = vmatprep.mubr.f32.mxu1 %v10885_v37  ;;  %v11099_v17 = vand.u32 4294901760, %v1181_v23  ;;  %v14041_v23 = vld [vmem:[#allocation37_spill] sm:$0xff]  ;;  %v14138_v60 = vld [vmem:[#allocation223_spill] sm:$0xff] }
  0xa2   : > { %14035 = vst [vmem:[#allocation267_spill] sm:$0xff] %v11079_v35  ;;  %14036 = vst [vmem:[#allocation268_spill] sm:$0xff] %v11083_v6 }
  0xa3   : > { %8308 = vmatmul.mubr.f32.gmra.mxu0 %v11074_v48  ;;  %14037 = vst [vmem:[#allocation269_spill] sm:$0xff] %v11089_v5  ;;  %14038 = vst [vmem:[#allocation270_spill] sm:$0xff] %v11095_v59  ;;  %v14135_v48 = vld [vmem:[#allocation218_spill] sm:$0xff] }
  0xa4   : > { %8420 = vmatmul.mubr.f32.gmra.mxu1 %v10908_v32  ;;  %8310 = vmatprep.mubr.f32.mxu0 %v11083_v6  ;;  %14039 = vst [vmem:[#allocation271_spill] sm:$0xff] %v11099_v17 }
  0xa5   : > { %8422 = vmatprep.mubr.f32.mxu1 %v10918_v49 }
  0xa7   : > { %8311 = vmatmul.mubr.f32.gmra.mxu0 %v11089_v5  ;;  %v14131_v5 = vld [vmem:[#allocation208_spill] sm:$0xff] }
  0xa8   : > { %8423 = vmatmul.mubr.f32.gmra.mxu1 %v10939_v22  ;;  %8313 = vmatprep.mubr.f32.mxu0 %v11095_v59  ;;  %v14172_v22 = vld [vmem:[#allocation33_spill] sm:$0xff] }
  0xa9   : > { %8425 = vmatprep.mubr.f32.mxu1 %v10959_v40 }
  0xab   : > { %8314 = vmatmul.mubr.f32.gmra.mxu0 %v11099_v17  ;;  %v14127_v17 = vld [vmem:[#allocation199_spill] sm:$0xff] }
  0xac   : > { %8426 = vmatmul.mubr.f32.gmra.mxu1 %v10982_v25  ;;  %8456 = vmatprep.mubr.f32.mxu0 %v9990_v62  ;;  %v14165_v25 = vld [vmem:[#allocation19_spill] sm:$0xff] }
  0xad   : > { %8428 = vmatprep.mubr.f32.mxu1 %v10991_v45 }
  0xaf   : > { %8457 = vmatmul.mubr.f32.vlgmr.msra.gmra.mxu0 %v9997_v1  ;;  %v14123_v1 = vld [vmem:[#allocation192_spill] sm:$0xff] }
  0xb0   : > { %8429 = vmatmul.mubr.f32.gmra.mxu1 %v11012_v47  ;;  %8459 = vmatprep.mubr.f32.mxu0 %v10012_v8  ;;  %v14043_v8 = vld [vmem:[#allocation40_spill] sm:$0xff] }
  0xb1   : > { %8431 = vmatprep.mubr.f32.mxu1 %v11022_v31  ;;  %8671 = vmatpush3.msra.mxu0 %v9920_v30  ;;  %v14044_v30 = vld [vmem:[#allocation24_spill] sm:$0xff]  ;;  %v14158_v31 = vld [vmem:[#allocation13_spill] sm:$0xff] }
  0xb2   : > { %8672 = vmatprep.subr.mxu0 %v9907_v26 }
  0xb3   : > { %8460 = vmatmul.mubr.f32.gmra.mxu0 %v10031_v38  ;;  %v14045_v38 = vld [vmem:[#allocation5_spill] sm:$0xff] }
  0xb4   : > { %8432 = vmatmul.mubr.f32.gmra.mxu1 %v11037_v42  ;;  %8462 = vmatprep.mubr.f32.mxu0 %v10100_v52  ;;  %v14046_v52 = vld [vmem:[#allocation41_spill] sm:$0xff] }
  0xb5   : > { %8574 = vmatprep.mubr.f32.mxu1 %v10009_v7  ;;  %8673 = vmatpush3.msra.mxu0 %v9907_v26  ;;  %v14047_v26 = vld [vmem:[#allocation27_spill] sm:$0xff]  ;;  %v14048_v7 = vld [vmem:[#allocation44_spill] sm:$0xff] }
  0xb6   : > { %8674 = vmatprep.subr.mxu0 %v14040_v46 }
  0xb7   : > { %8463 = vmatmul.mubr.f32.gmra.mxu0 %v14041_v23  ;;  %v14049_v23 = vld [vmem:[#allocation39_spill] sm:$0xff] }
  0xb8   : > { %8575 = vmatmul.mubr.f32.vlgmr.msra.gmra.mxu1 %v14042_v61  ;;  %8465 = vmatprep.mubr.f32.mxu0 %v14043_v8  ;;  %v14050_v61 = vld [vmem:[#allocation6_spill] sm:$0xff] }
  0xb9   : > { %8789 = vmatpush3.msra.mxu1 %v9853_v9  ;;  %8577 = vmatprep.mubr.f32.mxu1 %v14044_v30  ;;  %v14051_v9 = vld [vmem:[#allocation8_spill] sm:$0xff] }
  0xba   : > { %8790 = vmatprep.subr.mxu1 %v14045_v38  ;;  %8675 = vmatpush3.msra.mxu0 %v14040_v46  ;;  %v14052_v30 = vld [vmem:[#allocation48_spill] sm:$0xff]  ;;  %v14053_v46 = vld [vmem:[#allocation43_spill] sm:$0xff] }
  0xbb   : > { %8466 = vmatmul.mubr.f32.gmra.mxu0 %v14046_v52  ;;  %8791 = vmatpush3.msra.mxu1 %v14045_v38  ;;  %v14054_v52 = vld [vmem:[#allocation50_spill] sm:$0xff] }
  0xbc   : > { %8578 = vmatmul.mubr.f32.gmra.mxu1 %v14047_v26  ;;  %8468 = vmatprep.mubr.f32.mxu0 %v14048_v7  ;;  %v14055_v38 = vld [vmem:[#allocation46_spill] sm:$0xff]  ;;  %v14057_v7 = vld [vmem:[#allocation56_spill] sm:$0xff]  ;;  %v14060_v26 = vld [vmem:[#allocation49_spill] sm:$0xff] }
  0xbd   : > { %8580 = vmatprep.mubr.f32.mxu1 %v14049_v23  ;;  %8792 = vmatprep.subr.mxu1 %v14050_v61  ;;  %v14056_v23 = vld [vmem:[#allocation9_spill] sm:$0xff] }
  0xbe   : > { %8793 = vmatpush3.msra.mxu1 %v14050_v61  ;;  %8676 = vmatprep.subr.mxu0 %v14051_v9  ;;  %v14058_v61 = vld [vmem:[#allocation47_spill] sm:$0xff] }
  0xbf   : > { %8469 = vmatmul.mubr.f32.gmra.mxu0 %v14052_v30  ;;  %8794 = vmatprep.subr.mxu1 %v9855_v10  ;;  %v14059_v30 = vld [vmem:[#allocation62_spill] sm:$0xff] }
  0xc0   : > { %8581 = vmatmul.mubr.f32.gmra.mxu1 %v14053_v46  ;;  %8471 = vmatprep.mubr.f32.mxu0 %v14054_v52  ;;  %v14119_v46 = vld [vmem:[#allocation183_spill] sm:$0xff] }
  0xc1   : > { %8583 = vmatprep.mubr.f32.mxu1 %v14055_v38  ;;  %8677 = vmatpush3.msra.mxu0 %v14051_v9  ;;  %v3767_v9 = vld [vmem:[%s13203_s2 + $0x50] sm:$0x1f]  ;;  %v14062_v38 = vld [vmem:[#allocation68_spill] sm:$0xff] }
  0xc2   : > { %8795 = vmatpush3.msra.mxu1 %v9855_v10  ;;  %8678 = vmatprep.subr.mxu0 %v14056_v23  ;;  %v14061_v10 = vld [vmem:[#allocation10_spill] sm:$0xff] }
  0xc3   : > { %8472 = vmatmul.mubr.f32.gmra.mxu0 %v14057_v7  ;;  %8796 = vmatprep.subr.mxu1 %v9857_v11  ;;  %v14063_v7 = vld [vmem:[#allocation53_spill] sm:$0xff] }
  0xc4   : > { %8584 = vmatmul.mubr.f32.gmra.mxu1 %v14058_v61  ;;  %8474 = vmatprep.mubr.f32.mxu0 %v14059_v30  ;;  %v14064_v30 = vld [vmem:[#allocation55_spill] sm:$0xff]  ;;  %v14115_v61 = vld [vmem:[#allocation178_spill] sm:$0xff] }
  0xc5   : > { %8586 = vmatprep.mubr.f32.mxu1 %v14060_v26  ;;  %8679 = vmatpush3.msra.mxu0 %v14056_v23  ;;  %v3773_v26 = vsel %vm468_vm0, %v3767_v9, 0  ;;  %v14065_v23 = vld [vmem:[#allocation11_spill] sm:$0xff]  ;;  %v14069_v9 = vld [vmem:[#allocation17_spill] sm:$0xff] }
  0xc6   : > { %8797 = vmatpush3.msra.mxu1 %v9857_v11  ;;  %8680 = vmatprep.subr.mxu0 %v14061_v10  ;;  %v11165_v11 = vand.u32 4294901760, %v3773_v26 }
  0xc7   : > { %8475 = vmatmul.mubr.f32.gmra.mxu0 %v14062_v38  ;;  %8798 = vmatprep.subr.mxu1 %v9859_v12  ;;  %v14066_v38 = vld [vmem:[#allocation61_spill] sm:$0xff] }
  0xc8   : > { %8587 = vmatmul.mubr.f32.gmra.mxu1 %v14063_v7  ;;  %8477 = vmatprep.mubr.f32.mxu0 %v10252_v27  ;;  %v14067_v7 = vld [vmem:[#allocation74_spill] sm:$0xff]  ;;  %v14068_v27 = vld [vmem:[#allocation67_spill] sm:$0xff] }
  0xc9   : > { %8589 = vmatprep.mubr.f32.mxu1 %v14064_v30  ;;  %8681 = vmatpush3.msra.mxu0 %v14061_v10  ;;  %v14070_v10 = vld [vmem:[#allocation73_spill] sm:$0xff] }
  0xca   : > { %8799 = vmatpush3.msra.mxu1 %v9859_v12  ;;  %8682 = vmatprep.subr.mxu0 %v14065_v23  ;;  %v11176_v12 = vsub.f32 %v3773_v26, %v11165_v11  ;;  %v14075_v26 = vld [vmem:[#allocation78_spill] sm:$0xff] }
  0xcb   : > { %8478 = vmatmul.mubr.f32.gmra.mxu0 %v10255_v2  ;;  %8800 = vmatprep.subr.mxu1 %v9870_v16  ;;  %v14112_v2 = vld [vmem:[#allocation158_spill] sm:$0xff] }
  0xcc   : > { %8590 = vmatmul.mubr.f32.gmra.mxu1 %v14066_v38  ;;  %8480 = vmatprep.mubr.f32.mxu0 %v14067_v7  ;;  %v14071_v7 = vld [vmem:[#allocation77_spill] sm:$0xff]  ;;  %v14111_v38 = vld [vmem:[#allocation168_spill] sm:$0xff] }
  0xcd   : > { %8592 = vmatprep.mubr.f32.mxu1 %v14068_v27  ;;  %8683 = vmatpush3.msra.mxu0 %v14065_v23  ;;  %v14073_v23 = vld [vmem:[#allocation88_spill] sm:$0xff]  ;;  %v14110_v27 = vld [vmem:[#allocation154_spill] sm:$0xff] }
  0xce   : > { %8801 = vmatpush3.msra.mxu1 %v9870_v16  ;;  %8684 = vmatprep.subr.mxu0 %v14069_v9  ;;  %v14072_v16 = vld [vmem:[#allocation18_spill] sm:$0xff] }
  0xcf   : > { %8481 = vmatmul.mubr.f32.gmra.mxu0 %v10292_v44  ;;  %8802 = vmatprep.subr.mxu1 %v9875_v18  ;;  %v11187_v44 = vand.u32 4294901760, %v11176_v12 }
  0xd0   : > { %8593 = vmatmul.mubr.f32.gmra.mxu1 %v14070_v10  ;;  %8483 = vmatprep.mubr.f32.mxu0 %v10306_v15  ;;  %v14076_v15 = vld [vmem:[#allocation82_spill] sm:$0xff] }
  0xd1   : > { %8595 = vmatprep.mubr.f32.mxu1 %v14071_v7  ;;  %8685 = vmatpush3.msra.mxu0 %v14069_v9  ;;  %14074 = vst [vmem:[#allocation7_spill] sm:$0xff] %v11187_v44  ;;  %v14078_v9 = vld [vmem:[#allocation98_spill] sm:$0xff]  ;;  %v14079_v7 = vld [vmem:[#allocation87_spill] sm:$0xff] }
  0xd2   : > { %8803 = vmatpush3.msra.mxu1 %v9875_v18  ;;  %8686 = vmatprep.subr.mxu0 %v14072_v16  ;;  %v14077_v18 = vld [vmem:[#allocation25_spill] sm:$0xff] }
  0xd3   : > { %8484 = vmatmul.mubr.f32.gmra.mxu0 %v14073_v23  ;;  %8804 = vmatprep.subr.mxu1 %v9900_v24  ;;  %v4505_v23 = vsub.f32 %v11176_v12, %v11187_v44 }
  0xd4   : > { %8596 = vmatmul.mubr.f32.gmra.mxu1 %v14075_v26  ;;  %8486 = vmatprep.mubr.f32.mxu0 %v10351_v43  ;;  %v14080_v43 = vld [vmem:[#allocation89_spill] sm:$0xff]  ;;  %v14084_v26 = vld [vmem:[#allocation106_spill] sm:$0xff] }
  0xd5   : > { %8598 = vmatprep.mubr.f32.mxu1 %v14076_v15  ;;  %8687 = vmatpush3.msra.mxu0 %v14072_v16  ;;  %v14082_v16 = vld [vmem:[#allocation103_spill] sm:$0xff] }
  0xd6   : > { %8805 = vmatpush3.msra.mxu1 %v9900_v24  ;;  %8688 = vmatprep.subr.mxu0 %v14077_v18  ;;  %v14081_v24 = vld [vmem:[#allocation26_spill] sm:$0xff]  ;;  %v14083_v15 = vld [vmem:[#allocation95_spill] sm:$0xff] }
  0xd7   : > { %8487 = vmatmul.mubr.f32.gmra.mxu0 %v14078_v9  ;;  %8806 = vmatprep.subr.mxu1 %v9913_v28  ;;  %v11207_v9 = vand.u32 4294901760, %v4505_v23  ;;  %v14087_v23 = vld [vmem:[#allocation109_spill] sm:$0xff] }
  0xd8   : > { %8599 = vmatmul.mubr.f32.gmra.mxu1 %v14079_v7  ;;  %8489 = vmatprep.mubr.f32.mxu0 %v10389_v51  ;;  %v14085_v7 = vld [vmem:[#allocation100_spill] sm:$0xff]  ;;  %v14107_v51 = vld [vmem:[#allocation159_spill] sm:$0xff] }
  0xd9   : > { %8601 = vmatprep.mubr.f32.mxu1 %v14080_v43  ;;  %8689 = vmatpush3.msra.mxu0 %v14077_v18  ;;  %v14088_v18 = vld [vmem:[#allocation119_spill] sm:$0xff]  ;;  %v14106_v43 = vld [vmem:[#allocation149_spill] sm:$0xff] }
  0xda   : > { %8807 = vmatpush3.msra.mxu1 %v9913_v28  ;;  %8690 = vmatprep.subr.mxu0 %v14081_v24  ;;  %v14086_v28 = vld [vmem:[#allocation105_spill] sm:$0xff] }
  0xdb   : > { %8490 = vmatmul.mubr.f32.gmra.mxu0 %v14082_v16  ;;  %8808 = vmatprep.subr.mxu1 %v9929_v33  ;;  %v14102_v16 = vld [vmem:[#allocation140_spill] sm:$0xff] }
  0xdc   : > { %8602 = vmatmul.mubr.f32.gmra.mxu1 %v14083_v15  ;;  %8492 = vmatprep.mubr.f32.mxu0 %v14084_v26  ;;  %v14089_v26 = vld [vmem:[#allocation111_spill] sm:$0xff]  ;;  %v14094_v15 = vld [vmem:[#allocation122_spill] sm:$0xff] }
  0xdd   : > { %8604 = vmatprep.mubr.f32.mxu1 %v14085_v7  ;;  %8691 = vmatpush3.msra.mxu0 %v14081_v24  ;;  %v14090_v24 = vld [vmem:[#allocation114_spill] sm:$0xff] }
  0xde   : > { %8809 = vmatpush3.msra.mxu1 %v9929_v33  ;;  %8906 = vmatprep.subr.mxu0 %v11165_v11  ;;  %v14091_v33 = vld [vmem:[#allocation128_spill] sm:$0xff]  ;;  %v14092_v7 = vld [vmem:[#allocation118_spill] sm:$0xff] }
  0xdf   : > { %8493 = vmatmul.mubr.f32.gmra.mxu0 %v10437_v36  ;;  %9024 = vmatprep.subr.mxu1 %v11207_v9  ;;  %v14093_v36 = vld [vmem:[#allocation132_spill] sm:$0xff] }
  0xe0   : > { %8605 = vmatmul.mubr.f32.gmra.mxu1 %v14086_v28  ;;  %8495 = vmatprep.mubr.f32.mxu0 %v10451_v54  ;;  %v14095_v28 = vld [vmem:[#allocation138_spill] sm:$0xff]  ;;  %v14096_v54 = vld [vmem:[#allocation127_spill] sm:$0xff] }
  0xe1   : > { %8607 = vmatprep.mubr.f32.mxu1 %v14087_v23  ;;  %v14097_v23 = vld [vmem:[#allocation141_spill] sm:$0xff] }
  0xe3   : > { %8496 = vmatmul.mubr.f32.gmra.mxu0 %v14088_v18  ;;  %v14098_v18 = vld [vmem:[#allocation131_spill] sm:$0xff] }
  0xe4   : > { %8608 = vmatmul.mubr.f32.gmra.mxu1 %v14089_v26  ;;  %8498 = vmatprep.mubr.f32.mxu0 %v10494_v21  ;;  %v14099_v21 = vld [vmem:[#allocation143_spill] sm:$0xff] }
  0xe5   : > { %8610 = vmatprep.mubr.f32.mxu1 %v14090_v24  ;;  %v14100_v24 = vld [vmem:[#allocation135_spill] sm:$0xff] }
  0xe7   : > { %8499 = vmatmul.mubr.f32.gmra.mxu0 %v14091_v33  ;;  %v14101_v33 = vld [vmem:[#allocation146_spill] sm:$0xff] }
  0xe8   : > { %8611 = vmatmul.mubr.f32.gmra.mxu1 %v14092_v7  ;;  %8501 = vmatprep.mubr.f32.mxu0 %v14093_v36 }
  0xe9   : > { %8613 = vmatprep.mubr.f32.mxu1 %v14094_v15  ;;  %v14103_v15 = vld [vmem:[#allocation152_spill] sm:$0xff] }
  0xeb   : > { %8502 = vmatmul.mubr.f32.gmra.mxu0 %v14095_v28  ;;  %v14104_v28 = vld [vmem:[#allocation145_spill] sm:$0xff] }
  0xec   : > { %8614 = vmatmul.mubr.f32.gmra.mxu1 %v14096_v54  ;;  %8504 = vmatprep.mubr.f32.mxu0 %v14097_v23  ;;  %v14105_v54 = vld [vmem:[#allocation155_spill] sm:$0xff] }
  0xed   : > { %8616 = vmatprep.mubr.f32.mxu1 %v14098_v18 }
  0xef   : > { %v8222_v26 = vpop.f32.mrf.mxu0  ;;  %8505 = vmatmul.mubr.f32.gmra.mxu0 %v14099_v21 }
  0xf0   : > { %8617 = vmatmul.mubr.f32.gmra.mxu1 %v14100_v24  ;;  %8507 = vmatprep.mubr.f32.mxu0 %v14101_v33  ;;  %v14108_v24 = vld [vmem:[#allocation151_spill] sm:$0xff]  ;;  %v14109_v33 = vld [vmem:[#allocation164_spill] sm:$0xff] }
  0xf1   : > { %v554_v7 = vpop.f32.mrf.mxu0  ;;  %8619 = vmatprep.mubr.f32.mxu1 %v14102_v16 }
  0xf3   : > { %v8225_v36 = vpop.f32.mrf.mxu0  ;;  %8508 = vmatmul.mubr.f32.gmra.mxu0 %v14103_v15 }
  0xf4   : > { %8620 = vmatmul.mubr.f32.gmra.mxu1 %v14104_v28  ;;  %8510 = vmatprep.mubr.f32.mxu0 %v14105_v54 }
  0xf5   : > { %v574_v23 = vpop.f32.mrf.mxu0  ;;  %8622 = vmatprep.mubr.f32.mxu1 %v14106_v43 }
  0xf7   : > { %v8228_v18 = vpop.f32.mrf.mxu0  ;;  %8511 = vmatmul.mubr.f32.gmra.mxu0 %v14107_v51  ;;  %v14113_v51 = vld [vmem:[#allocation172_spill] sm:$0xff] }
  0xf8   : > { %v8340_v21 = vpop.f32.mrf.mxu1  ;;  %8623 = vmatmul.mubr.f32.gmra.mxu1 %v14108_v24  ;;  %8513 = vmatprep.mubr.f32.mxu0 %v14109_v33  ;;  %v14114_v33 = vld [vmem:[#allocation162_spill] sm:$0xff] }
  0xf9   : > { %v11243_v10 = vadd.f32 %v8340_v21, %v8222_v26  ;;  %v594_v16 = vpop.f32.mrf.mxu0  ;;  %8625 = vmatprep.mubr.f32.mxu1 %v14110_v27 }
  0xfa   : > { %v1310_v15 = vpop.f32.mrf.mxu1 }
  0xfb   : > { %v11246_v28 = vadd.f32 %v1310_v15, %v554_v7  ;;  %v8231_v54 = vpop.f32.mrf.mxu0  ;;  %8514 = vmatmul.mubr.f32.gmra.mxu0 %v14111_v38  ;;  %v14116_v15 = vld [vmem:[#allocation167_spill] sm:$0xff]  ;;  %v14117_v38 = vld [vmem:[#allocation181_spill] sm:$0xff] }
  0xfc   : > { %v8343_v43 = vpop.f32.mrf.mxu1  ;;  %8626 = vmatmul.mubr.f32.gmra.mxu1 %v14112_v2  ;;  %8516 = vmatprep.mubr.f32.mxu0 %v14113_v51  ;;  %v14118_v51 = vld [vmem:[#allocation171_spill] sm:$0xff] }
  0xfd   : > { %v11251_v30 = vadd.f32 %v8343_v43, %v8225_v36  ;;  %v614_v24 = vpop.f32.mrf.mxu0  ;;  %8628 = vmatprep.mubr.f32.mxu1 %v14114_v33 }
  0xfe   : > { %v1322_v21 = vpop.f32.mrf.mxu1 }
  0xff   : > { %v11254_v26 = vadd.f32 %v1322_v21, %v574_v23  ;;  %v8234_v27 = vpop.f32.mrf.mxu0  ;;  %8517 = vmatmul.mubr.f32.gmra.mxu0 %v14115_v61  ;;  %v14120_v21 = vld [vmem:[#allocation175_spill] sm:$0xff]  ;;  %v14121_v61 = vld [vmem:[#allocation186_spill] sm:$0xff] }
 0x100   : > { %v8346_v7 = vpop.f32.mrf.mxu1  ;;  %8629 = vmatmul.mubr.f32.gmra.mxu1 %v14116_v15  ;;  %8519 = vmatprep.mubr.f32.mxu0 %v14117_v38  ;;  %v14122_v38 = vld [vmem:[#allocation180_spill] sm:$0xff] }
 0x101   : > { %v11259_v52 = vadd.f32 %v8346_v7, %v8228_v18  ;;  %v634_v2 = vpop.f32.mrf.mxu0  ;;  %8631 = vmatprep.mubr.f32.mxu1 %v14118_v51 }
 0x102   : > { %v1334_v43 = vpop.f32.mrf.mxu1 }
 0x103   : > { %v11262_v36 = vadd.f32 %v1334_v43, %v594_v16  ;;  %v8237_v33 = vpop.f32.mrf.mxu0  ;;  %8520 = vmatmul.mubr.f32.gmra.mxu0 %v14119_v46  ;;  %v14124_v43 = vld [vmem:[#allocation185_spill] sm:$0xff]  ;;  %v14125_v46 = vld [vmem:[#allocation195_spill] sm:$0xff] }
 0x104   : > { %v8349_v23 = vpop.f32.mrf.mxu1  ;;  %8632 = vmatmul.mubr.f32.gmra.mxu1 %v14120_v21  ;;  %8522 = vmatprep.mubr.f32.mxu0 %v14121_v61  ;;  %v14126_v61 = vld [vmem:[#allocation189_spill] sm:$0xff] }
 0x105   : > { %v11267_v8 = vadd.f32 %v8349_v23, %v8231_v54  ;;  %v654_v15 = vpop.f32.mrf.mxu0  ;;  %8634 = vmatprep.mubr.f32.mxu1 %v14122_v38 }
 0x106   : > { %v1346_v18 = vpop.f32.mrf.mxu1 }
 0x107   : > { %v11270_v7 = vadd.f32 %v1346_v18, %v614_v24  ;;  %v8240_v51 = vpop.f32.mrf.mxu0  ;;  %8523 = vmatmul.mubr.f32.gmra.mxu0 %v14123_v1  ;;  %v14128_v18 = vld [vmem:[#allocation191_spill] sm:$0xff]  ;;  %v14129_v1 = vld [vmem:[#allocation204_spill] sm:$0xff] }
 0x108   : > { %v8352_v16 = vpop.f32.mrf.mxu1  ;;  %8635 = vmatmul.mubr.f32.gmra.mxu1 %v14124_v43  ;;  %8525 = vmatprep.mubr.f32.mxu0 %v14125_v46  ;;  %v14130_v46 = vld [vmem:[#allocation194_spill] sm:$0xff] }
 0x109   : > { %v11275_v62 = vadd.f32 %v8352_v16, %v8234_v27  ;;  %v674_v21 = vpop.f32.mrf.mxu0  ;;  %8637 = vmatprep.mubr.f32.mxu1 %v14126_v61 }
 0x10a   : > { %v1358_v54 = vpop.f32.mrf.mxu1 }
 0x10b   : > { %v11278_v23 = vadd.f32 %v1358_v54, %v634_v2  ;;  %v8243_v38 = vpop.f32.mrf.mxu0  ;;  %8526 = vmatmul.mubr.f32.gmra.mxu0 %v14127_v17  ;;  %v14132_v54 = vld [vmem:[#allocation198_spill] sm:$0xff]  ;;  %v14133_v17 = vld [vmem:[#allocation212_spill] sm:$0xff] }
 0x10c   : > { %v8355_v24 = vpop.f32.mrf.mxu1  ;;  %8638 = vmatmul.mubr.f32.gmra.mxu1 %v14128_v18  ;;  %8528 = vmatprep.mubr.f32.mxu0 %v14129_v1  ;;  %v14134_v1 = vld [vmem:[#allocation202_spill] sm:$0xff] }
 0x10d   : > { %v11283_v59 = vadd.f32 %v8355_v24, %v8237_v33  ;;  %v694_v43 = vpop.f32.mrf.mxu0  ;;  %8640 = vmatprep.mubr.f32.mxu1 %v14130_v46 }
 0x10e   : > { %v1370_v27 = vpop.f32.mrf.mxu1 }
 0x10f   : > { %v11286_v16 = vadd.f32 %v1370_v27, %v654_v15  ;;  %v8246_v61 = vpop.f32.mrf.mxu0  ;;  %8529 = vmatmul.mubr.f32.gmra.mxu0 %v14131_v5  ;;  %v14136_v27 = vld [vmem:[#allocation207_spill] sm:$0xff] }
 0x110   : > { %v8358_v2 = vpop.f32.mrf.mxu1  ;;  %8641 = vmatmul.mubr.f32.gmra.mxu1 %v14132_v54  ;;  %8531 = vmatprep.mubr.f32.mxu0 %v14133_v17  ;;  %v14137_v17 = vld [vmem:[#allocation211_spill] sm:$0xff] }
 0x111   : > { %v11291_v6 = vadd.f32 %v8358_v2, %v8240_v51  ;;  %v714_v18 = vpop.f32.mrf.mxu0  ;;  %8643 = vmatprep.mubr.f32.mxu1 %v14134_v1 }
 0x112   : > { %v1382_v33 = vpop.f32.mrf.mxu1 }
 0x113   : > { %v11294_v24 = vadd.f32 %v1382_v33, %v674_v21  ;;  %v8249_v46 = vpop.f32.mrf.mxu0  ;;  %8532 = vmatmul.mubr.f32.gmra.mxu0 %v14135_v48  ;;  %v14139_v33 = vld [vmem:[#allocation215_spill] sm:$0xff]  ;;  %v14140_v48 = vld [vmem:[#allocation226_spill] sm:$0xff] }
 0x114   : > { %v8361_v15 = vpop.f32.mrf.mxu1  ;;  %8644 = vmatmul.mubr.f32.gmra.mxu1 %v14136_v27  ;;  %8534 = vmatprep.mubr.f32.mxu0 %v10896_v4  ;;  %v14141_v4 = vld [vmem:[#allocation220_spill] sm:$0xff] }
 0x115   : > { %v11299_v5 = vadd.f32 %v8361_v15, %v8243_v38  ;;  %v734_v54 = vpop.f32.mrf.mxu0  ;;  %8646 = vmatprep.mubr.f32.mxu1 %v14137_v17 }
 0x116   : > { %v1394_v51 = vpop.f32.mrf.mxu1 }
 0x117   : > { %v11302_v2 = vadd.f32 %v1394_v51, %v694_v43  ;;  %v8252_v1 = vpop.f32.mrf.mxu0  ;;  %8535 = vmatmul.mubr.f32.gmra.mxu0 %v14138_v60  ;;  %v14142_v51 = vld [vmem:[#allocation225_spill] sm:$0xff] }
 0x118   : > { %v8364_v21 = vpop.f32.mrf.mxu1  ;;  %8647 = vmatmul.mubr.f32.gmra.mxu1 %v14139_v33  ;;  %8537 = vmatprep.mubr.f32.mxu0 %v14140_v48  ;;  %v14143_v48 = vld [vmem:[#allocation229_spill] sm:$0xff] }
 0x119   : > { %v11307_v44 = vadd.f32 %v8364_v21, %v8246_v61  ;;  %v754_v27 = vpop.f32.mrf.mxu0  ;;  %8649 = vmatprep.mubr.f32.mxu1 %v14141_v4 }
 0x11a   : > { %v1406_v38 = vpop.f32.mrf.mxu1 }
 0x11b   : > { %v11310_v15 = vadd.f32 %v1406_v38, %v714_v18  ;;  %v8255_v17 = vpop.f32.mrf.mxu0  ;;  %8538 = vmatmul.mubr.f32.gmra.mxu0 %v10937_v56  ;;  %v14144_v38 = vld [vmem:[#allocation230_spill] sm:$0xff] }
 0x11c   : > { %v8367_v43 = vpop.f32.mrf.mxu1  ;;  %8650 = vmatmul.mubr.f32.gmra.mxu1 %v14142_v51  ;;  %8540 = vmatprep.mubr.f32.mxu0 %v10951_v39  ;;  %v14145_v39 = vld [vmem:[#allocation234_spill] sm:$0xff] }
 0x11d   : > { %v11315_v60 = vadd.f32 %v8367_v43, %v8249_v46  ;;  %v774_v33 = vpop.f32.mrf.mxu0  ;;  %8652 = vmatprep.mubr.f32.mxu1 %v14143_v48 }
 0x11e   : > { %v1418_v61 = vpop.f32.mrf.mxu1 }
 0x11f   : > { %v11318_v21 = vadd.f32 %v1418_v61, %v734_v54  ;;  %v8258_v4 = vpop.f32.mrf.mxu0  ;;  %8541 = vmatmul.mubr.f32.gmra.mxu0 %v10971_v19  ;;  %v3766_v54 = vld [vmem:[%s13203_s2 + $0x48] sm:$0xff] }
 0x120   : > { %v8370_v18 = vpop.f32.mrf.mxu1  ;;  %8653 = vmatmul.mubr.f32.gmra.mxu1 %v14144_v38  ;;  %8543 = vmatprep.mubr.f32.mxu0 %v10989_v0  ;;  %v14146_v0 = vld [vmem:[#allocation241_spill] sm:$0xff] }
 0x121   : > { %v11323_v56 = vadd.f32 %v8370_v18, %v8252_v1  ;;  %v794_v51 = vpop.f32.mrf.mxu0  ;;  %8655 = vmatprep.mubr.f32.mxu1 %v14145_v39 }
 0x122   : > { %v1430_v46 = vpop.f32.mrf.mxu1 }
 0x123   : > { %v11326_v43 = vadd.f32 %v1430_v46, %v754_v27  ;;  %v8261_v48 = vpop.f32.mrf.mxu0  ;;  %8544 = vmatmul.mubr.f32.gmra.mxu0 %v11010_v20  ;;  %v11337_v27 = vand.u32 4294901760, %v3766_v54  ;;  %v3765_v46 = vld [vmem:[%s13203_s2 + $0x40] sm:$0xff] }
 0x124   : > { %v8373_v61 = vpop.f32.mrf.mxu1  ;;  %8656 = vmatmul.mubr.f32.gmra.mxu1 %v10968_v63  ;;  %8546 = vmatprep.mubr.f32.mxu0 %v11020_v55  ;;  %v11353_v55 = vand.u32 4294901760, %v3765_v46 }
 0x125   : > { %v11334_v1 = vadd.f32 %v8373_v61, %v8255_v17  ;;  %v814_v18 = vpop.f32.mrf.mxu0  ;;  %8658 = vmatprep.mubr.f32.mxu1 %v14146_v0  ;;  %14147 = vst [vmem:[#allocation5_spill] sm:$0xff] %v11337_v27  ;;  %v3764_v17 = vld [vmem:[%s13203_s2 + $0x38] sm:$0xff] }
 0x126   : > { %v1442_v39 = vpop.f32.mrf.mxu1  ;;  %14149 = vst [vmem:[#allocation8_spill] sm:$0xff] %v11353_v55 }
 0x127   : > { %v11342_v20 = vadd.f32 %v1442_v39, %v774_v33  ;;  %v8264_v38 = vpop.f32.mrf.mxu0  ;;  %8547 = vmatmul.mubr.f32.gmra.mxu0 %v11035_v58  ;;  %v11356_v33 = vsub.f32 %v3766_v54, %v11337_v27 }
 0x128   : > { %v8376_v63 = vpop.f32.mrf.mxu1  ;;  %8659 = vmatmul.mubr.f32.gmra.mxu1 %v11002_v14  ;;  %8549 = vmatprep.mubr.f32.mxu0 %v11049_v57  ;;  %v11361_v57 = vand.u32 4294901760, %v3764_v17 }
 0x129   : > { %v11350_v61 = vadd.f32 %v8376_v63, %v8258_v4  ;;  %v834_v0 = vpop.f32.mrf.mxu0  ;;  %8661 = vmatprep.mubr.f32.mxu1 %v11017_v34  ;;  %14150 = vst [vmem:[#allocation9_spill] sm:$0xff] %v11356_v33  ;;  %v14153_v63 = vld [vmem:[#allocation12_spill] sm:$0xff]  ;;  %v3763_v4 = vld [vmem:[%s13203_s2 + $0x30] sm:$0xff] }
 0x12a   : > { %v1454_v39 = vpop.f32.mrf.mxu1  ;;  %14152 = vst [vmem:[#allocation11_spill] sm:$0xff] %v11361_v57  ;;  %v11381_v47 = vsub.f32 %v3764_v17, %v11361_v57 }
 0x12b   : > { %14148 = vst [vmem:[#allocation6_spill] sm:$0xff] %v11350_v61  ;;  %v11358_v58 = vadd.f32 %v1454_v39, %v794_v51  ;;  %v8267_v14 = vpop.f32.mrf.mxu0  ;;  %8550 = vmatmul.mubr.f32.gmra.mxu0 %v11061_v3  ;;  %v11372_v51 = vsub.f32 %v3765_v46, %v11353_v55  ;;  %v11375_v3 = vand.u32 4294901760, %v11356_v33  ;;  %v3762_v46 = vld [vmem:[%s13203_s2 + $0x28] sm:$0xff] }
 0x12c   : > { %v8379_v19 = vpop.f32.mrf.mxu1  ;;  %8662 = vmatmul.mubr.f32.gmra.mxu1 %v11032_v29  ;;  %8692 = vmatprep.mubr.f32.mxu0 %v14153_v63  ;;  %14159 = vst [vmem:[#allocation272_spill] sm:$0xff] %v11381_v47 }
 0x12d   : > { %14151 = vst [vmem:[#allocation10_spill] sm:$0xff] %v11358_v58  ;;  %v11368_v34 = vadd.f32 %v8379_v19, %v8261_v48  ;;  %v854_v54 = vpop.f32.mrf.mxu0  ;;  %8664 = vmatprep.mubr.f32.mxu1 %v11046_v53  ;;  %14155 = vst [vmem:[#allocation18_spill] sm:$0xff] %v11372_v51  ;;  %v11383_v48 = vand.u32 4294901760, %v3763_v4  ;;  %v14161_v53 = vld [vmem:[#allocation15_spill] sm:$0xff]  ;;  %v11395_v17 = vand.u32 4294901760, %v11372_v51 }
 0x12e   : > { %v1466_v39 = vpop.f32.mrf.mxu1  ;;  %14156 = vst [vmem:[#allocation25_spill] sm:$0xff] %v11375_v3 }
 0x12f   : > { %14154 = vst [vmem:[#allocation17_spill] sm:$0xff] %v11368_v34  ;;  %v11377_v42 = vadd.f32 %v1466_v39, %v814_v18  ;;  %v8270_v29 = vpop.f32.mrf.mxu0  ;;  %8693 = vmatmul.mubr.f32.vlgmr.msra.gmra.mxu0 %v14158_v31  ;;  %14160 = vst [vmem:[#allocation273_spill] sm:$0xff] %v11383_v48 }
 0x130   : > { %v8382_v19 = vpop.f32.mrf.mxu1  ;;  %8665 = vmatmul.mubr.f32.gmra.mxu1 %v11058_v50  ;;  %8695 = vmatprep.mubr.f32.mxu0 %v14161_v53  ;;  %14163 = vst [vmem:[#allocation275_spill] sm:$0xff] %v11395_v17  ;;  %v4512_v50 = vsub.f32 %v11356_v33, %v11375_v3 }
 0x131   : > { %14157 = vst [vmem:[#allocation26_spill] sm:$0xff] %v11377_v42  ;;  %v11390_v45 = vadd.f32 %v8382_v19, %v8264_v38  ;;  %v874_v18 = vpop.f32.mrf.mxu0  ;;  %8667 = vmatprep.mubr.f32.mxu1 %v11070_v13  ;;  %8907 = vmatpush3.msra.mxu0 %v11165_v11  ;;  %v11404_v38 = vand.u32 4294901760, %v11381_v47  ;;  %v11407_v19 = vsub.f32 %v3763_v4, %v11383_v48  ;;  %v11409_v13 = vand.u32 4294901760, %v3762_v46 }
 0x132   : > { %v1478_v39 = vpop.f32.mrf.mxu1  ;;  %8908 = vmatprep.subr.mxu0 %v11337_v27  ;;  %v4519_v4 = vsub.f32 %v11372_v51, %v11395_v17 }
 0x133   : > { %14162 = vst [vmem:[#allocation274_spill] sm:$0xff] %v11390_v45  ;;  %v11400_v42 = vadd.f32 %v1478_v39, %v834_v0  ;;  %v8273_v34 = vpop.f32.mrf.mxu0  ;;  %8696 = vmatmul.mubr.f32.gmra.mxu0 %v14165_v25  ;;  %14166 = vst [vmem:[#allocation277_spill] sm:$0xff] %v11404_v38  ;;  %v3761_v45 = vld [vmem:[%s13203_s2 + $0x20] sm:$0xff]  ;;  %v14169_v0 = vld [vmem:[#allocation31_spill] sm:$0xff] }
 0x134   : > { %14167 = vst [vmem:[#allocation278_spill] sm:$0xff] %v11407_v19  ;;  %14168 = vst [vmem:[#allocation279_spill] sm:$0xff] %v11409_v13  ;;  %v8385_v58 = vpop.f32.mrf.mxu1  ;;  %8668 = vmatmul.mubr.f32.gmra.mxu1 %v11079_v35  ;;  %8698 = vmatprep.mubr.f32.mxu0 %v14169_v0  ;;  %v11423_v40 = vand.u32 4294901760, %v3761_v45 }
 0x135   : > { %14164 = vst [vmem:[#allocation276_spill] sm:$0xff] %v11400_v42  ;;  %v11416_v39 = vadd.f32 %v8385_v58, %v8267_v14  ;;  %v894_v3 = vpop.f32.mrf.mxu0  ;;  %8810 = vmatprep.mubr.f32.mxu1 %v14153_v63  ;;  %8909 = vmatpush3.msra.mxu0 %v11337_v27  ;;  %v4513_v42 = vand.u32 4294901760, %v4512_v50  ;;  %v4526_v58 = vsub.f32 %v11381_v47, %v11404_v38  ;;  %v11431_v14 = vand.u32 4294901760, %v11407_v19  ;;  %v3760_v50 = vld [vmem:[%s13203_s2 + $0x18] sm:$0xff] }
 0x136   : > { %v1490_v33 = vpop.f32.mrf.mxu1  ;;  %8910 = vmatprep.subr.mxu0 %v11353_v55  ;;  %14170 = vst [vmem:[#allocation280_spill] sm:$0xff] %v11423_v40  ;;  %v11434_v27 = vsub.f32 %v3762_v46, %v11409_v13  ;;  %v4520_v47 = vand.u32 4294901760, %v4519_v4  ;;  %v11447_v46 = vsub.f32 %v3761_v45, %v11423_v40  ;;  %v11449_v63 = vand.u32 4294901760, %v3760_v50  ;;  %v14182_v45 = vld [vmem:[#allocation38_spill] sm:$0xff] }
 0x137   : > { %v11425_v61 = vadd.f32 %v1490_v33, %v854_v54  ;;  %v8276_v35 = vpop.f32.mrf.mxu0  ;;  %8699 = vmatmul.mubr.f32.gmra.mxu0 %v14172_v22  ;;  %14173 = vst [vmem:[#allocation282_spill] sm:$0xff] %v11431_v14  ;;  %v14175_v33 = vld [vmem:[#allocation35_spill] sm:$0xff] }
 0x138   : > { %14174 = vst [vmem:[#allocation283_spill] sm:$0xff] %v11434_v27  ;;  %v8388_v17 = vpop.f32.mrf.mxu1  ;;  %8811 = vmatmul.mubr.f32.vlgmr.msra.gmra.mxu1 %v14158_v31  ;;  %8701 = vmatprep.mubr.f32.mxu0 %v14175_v33  ;;  %14177 = vst [vmem:[#allocation285_spill] sm:$0xff] %v11447_v46  ;;  %v11457_v4 = vand.u32 4294901760, %v11434_v27 }
 0x139   : > { %14171 = vst [vmem:[#allocation281_spill] sm:$0xff] %v11425_v61  ;;  %v11441_v54 = vadd.f32 %v8388_v17, %v8270_v29  ;;  %9025 = vmatpush3.msra.mxu1 %v11207_v9  ;;  %v914_v38 = vpop.f32.mrf.mxu0  ;;  %8813 = vmatprep.mubr.f32.mxu1 %v14161_v53  ;;  %14178 = vst [vmem:[#allocation286_spill] sm:$0xff] %v11449_v63  ;;  %v14180_v29 = vld [vmem:[#allocation36_spill] sm:$0xff]  ;;  %v4527_v9 = vand.u32 4294901760, %v4526_v58  ;;  %v4533_v17 = vsub.f32 %v11407_v19, %v11431_v14 }
 0x13a   : > { %v1502_v51 = vpop.f32.mrf.mxu1  ;;  %9026 = vmatprep.subr.mxu1 %v4513_v42  ;;  %8911 = vmatpush3.msra.mxu0 %v11353_v55  ;;  %14181 = vst [vmem:[#allocation288_spill] sm:$0xff] %v11457_v4  ;;  %v11469_v58 = vand.u32 4294901760, %v11447_v46  ;;  %v11472_v14 = vsub.f32 %v3760_v50, %v11449_v63 }
 0x13b   : > { %14176 = vst [vmem:[#allocation284_spill] sm:$0xff] %v11441_v54  ;;  %v11451_v31 = vadd.f32 %v1502_v51, %v874_v18  ;;  %v8279_v61 = vpop.f32.mrf.mxu0  ;;  %8702 = vmatmul.mubr.f32.gmra.mxu0 %v14180_v29  ;;  %9027 = vmatpush3.msra.mxu1 %v4513_v42  ;;  %v3759_v51 = vld [vmem:[%s13203_s2 + $0x10] sm:$0xff] }
 0x13c   : > { %v8391_v53 = vpop.f32.mrf.mxu1  ;;  %8814 = vmatmul.mubr.f32.gmra.mxu1 %v14165_v25  ;;  %8704 = vmatprep.mubr.f32.mxu0 %v14182_v45  ;;  %14184 = vst [vmem:[#allocation290_spill] sm:$0xff] %v11469_v58  ;;  %14185 = vst [vmem:[#allocation291_spill] sm:$0xff] %v11472_v14  ;;  %v14198_v54 = vld [vmem:[#allocation63_spill] sm:$0xff] }
 0x13d   : > { %14179 = vst [vmem:[#allocation287_spill] sm:$0xff] %v11451_v31  ;;  %v11464_v18 = vadd.f32 %v8391_v53, %v8273_v34  ;;  %v934_v55 = vpop.f32.mrf.mxu0  ;;  %8816 = vmatprep.mubr.f32.mxu1 %v14169_v0  ;;  %9028 = vmatprep.subr.mxu1 %v4520_v47  ;;  %v14187_v31 = vld [vmem:[#allocation42_spill] sm:$0xff]  ;;  %v4534_v53 = vand.u32 4294901760, %v4533_v17  ;;  %v4540_v34 = vsub.f32 %v11434_v27, %v11457_v4  ;;  %v11479_v0 = vand.u32 4294901760, %v3759_v51 }
 0x13e   : > { %v1514_v42 = vpop.f32.mrf.mxu1  ;;  %9029 = vmatpush3.msra.mxu1 %v4520_v47  ;;  %8912 = vmatprep.subr.mxu0 %v11361_v57  ;;  %v4547_v4 = vsub.f32 %v11447_v46, %v11469_v58  ;;  %v11494_v27 = vand.u32 4294901760, %v11472_v14 }
 0x13f   : > { %14183 = vst [vmem:[#allocation289_spill] sm:$0xff] %v11464_v18  ;;  %v11474_v19 = vadd.f32 %v1514_v42, %v894_v3  ;;  %v8282_v25 = vpop.f32.mrf.mxu0  ;;  %8705 = vmatmul.mubr.f32.gmra.mxu0 %v14187_v31  ;;  %9030 = vmatprep.subr.mxu1 %v4527_v9  ;;  %14188 = vst [vmem:[#allocation293_spill] sm:$0xff] %v11479_v0  ;;  %v14189_v18 = vld [vmem:[#allocation45_spill] sm:$0xff]  ;;  %v3758_v3 = vld [vmem:[%s13203_s2 + $0x8] sm:$0xff] }
 0x140   : > { %v8394_v47 = vpop.f32.mrf.mxu1  ;;  %8817 = vmatmul.mubr.f32.gmra.mxu1 %v14172_v22  ;;  %8707 = vmatprep.mubr.f32.mxu0 %v14189_v18  ;;  %14191 = vst [vmem:[#allocation295_spill] sm:$0xff] %v11494_v27  ;;  %v4554_v46 = vsub.f32 %v11472_v14, %v11494_v27 }
 0x141   : > { %14186 = vst [vmem:[#allocation292_spill] sm:$0xff] %v11474_v19  ;;  %v11486_v50 = vadd.f32 %v8394_v47, %v8276_v35  ;;  %v954_v42 = vpop.f32.mrf.mxu0  ;;  %8819 = vmatprep.mubr.f32.mxu1 %v14175_v33  ;;  %8913 = vmatpush3.msra.mxu0 %v11361_v57  ;;  %v14193_v35 = vld [vmem:[#allocation51_spill] sm:$0xff]  ;;  %v4541_v47 = vand.u32 4294901760, %v4540_v34  ;;  %v11500_v33 = vsub.f32 %v3759_v51, %v11479_v0  ;;  %v11502_v57 = vand.u32 4294901760, %v3758_v3 }
 0x142   : > { %v1526_v17 = vpop.f32.mrf.mxu1  ;;  %9031 = vmatpush3.msra.mxu1 %v4527_v9  ;;  %8914 = vmatprep.subr.mxu0 %v11383_v48  ;;  %v4548_v34 = vand.u32 4294901760, %v4547_v4  ;;  %v14202_v4 = vld [vmem:[#allocation64_spill] sm:$0xff] }
 0x143   : > { %14190 = vst [vmem:[#allocation294_spill] sm:$0xff] %v11486_v50  ;;  %v11496_v22 = vadd.f32 %v1526_v17, %v914_v38  ;;  %v8285_v19 = vpop.f32.mrf.mxu0  ;;  %8708 = vmatmul.mubr.f32.gmra.mxu0 %v14193_v35  ;;  %9032 = vmatprep.subr.mxu1 %v4534_v53  ;;  %14194 = vst [vmem:[#allocation297_spill] sm:$0xff] %v11500_v33  ;;  %v14196_v50 = vld [vmem:[#allocation59_spill] sm:$0xff]  ;;  %v3757_v38 = vld [vmem:[%s13203_s2] sm:$0xff] }
 0x144   : > { %14195 = vst [vmem:[#allocation298_spill] sm:$0xff] %v11502_v57  ;;  %v8397_v9 = vpop.f32.mrf.mxu1  ;;  %8820 = vmatmul.mubr.f32.gmra.mxu1 %v14180_v29  ;;  %8710 = vmatprep.mubr.f32.mxu0 %v14196_v50 }
 0x145   : > { %14192 = vst [vmem:[#allocation296_spill] sm:$0xff] %v11496_v22  ;;  %v11509_v17 = vadd.f32 %v8397_v9, %v8279_v61  ;;  %v974_v58 = vpop.f32.mrf.mxu0  ;;  %8822 = vmatprep.mubr.f32.mxu1 %v14182_v45  ;;  %8915 = vmatpush3.msra.mxu0 %v11383_v48  ;;  %v11520_v61 = vand.u32 4294901760, %v11500_v33  ;;  %v11523_v9 = vsub.f32 %v3758_v3, %v11502_v57  ;;  %v11525_v45 = vand.u32 4294901760, %v3757_v38 }
 0x146   : > { %v1538_v51 = vpop.f32.mrf.mxu1  ;;  %9033 = vmatpush3.msra.mxu1 %v4534_v53  ;;  %8916 = vmatprep.subr.mxu0 %v11409_v13  ;;  %v4555_v3 = vand.u32 4294901760, %v4554_v46 }
 0x147   : > { %v11516_v29 = vadd.f32 %v1538_v51, %v934_v55  ;;  %v8288_v22 = vpop.f32.mrf.mxu0  ;;  %8711 = vmatmul.mubr.f32.gmra.mxu0 %v14198_v54  ;;  %9034 = vmatprep.subr.mxu1 %v4541_v47  ;;  %14199 = vst [vmem:[#allocation300_spill] sm:$0xff] %v11520_v61  ;;  %14200 = vst [vmem:[#allocation301_spill] sm:$0xff] %v11523_v9 }
 0x148   : > { %14201 = vst [vmem:[#allocation302_spill] sm:$0xff] %v11525_v45  ;;  %v8400_v53 = vpop.f32.mrf.mxu1  ;;  %8823 = vmatmul.mubr.f32.gmra.mxu1 %v14187_v31  ;;  %8713 = vmatprep.mubr.f32.mxu0 %v14202_v4 }
 0x149   : > { %14197 = vst [vmem:[#allocation299_spill] sm:$0xff] %v11516_v29  ;;  %v11529_v27 = vadd.f32 %v8400_v53, %v8282_v25  ;;  %v994_v55 = vpop.f32.mrf.mxu0  ;;  %8825 = vmatprep.mubr.f32.mxu1 %v14189_v18  ;;  %8917 = vmatpush3.msra.mxu0 %v11409_v13  ;;  %v14203_v29 = vld [vmem:[#allocation65_spill] sm:$0xff]  ;;  %v4561_v25 = vsub.f32 %v11500_v33, %v11520_v61  ;;  %v11540_v53 = vand.u32 4294901760, %v11523_v9  ;;  %v14207_v33 = vld [vmem:[#allocation72_spill] sm:$0xff] }
 0x14a   : > { %v1550_v51 = vpop.f32.mrf.mxu1  ;;  %9035 = vmatpush3.msra.mxu1 %v4541_v47  ;;  %8918 = vmatprep.subr.mxu0 %v11423_v40  ;;  %v11543_v18 = vsub.f32 %v3757_v38, %v11525_v45  ;;  %v14206_v47 = vld [vmem:[#allocation69_spill] sm:$0xff] }
 0x14b   : > { %v11534_v14 = vadd.f32 %v1550_v51, %v954_v42  ;;  %v8291_v48 = vpop.f32.mrf.mxu0  ;;  %8714 = vmatmul.mubr.f32.gmra.mxu0 %v14203_v29  ;;  %9036 = vmatprep.subr.mxu1 %v4548_v34  ;;  %14204 = vst [vmem:[#allocation303_spill] sm:$0xff] %v11540_v53 }
 0x14c   : > { %14205 = vst [vmem:[#allocation304_spill] sm:$0xff] %v11543_v18  ;;  %v8403_v31 = vpop.f32.mrf.mxu1  ;;  %8826 = vmatmul.mubr.f32.gmra.mxu1 %v14193_v35  ;;  %8716 = vmatprep.mubr.f32.mxu0 %v14206_v47  ;;  %v4562_v35 = vand.u32 4294901760, %v4561_v25 }
 0x14d   : > { %v11547_v46 = vadd.f32 %v8403_v31, %v8285_v19  ;;  %v1014_v42 = vpop.f32.mrf.mxu0  ;;  %8828 = vmatprep.mubr.f32.mxu1 %v14196_v50  ;;  %8919 = vmatpush3.msra.mxu0 %v11423_v40  ;;  %v4568_v31 = vsub.f32 %v11523_v9, %v11540_v53  ;;  %v11558_v19 = vand.u32 4294901760, %v11543_v18  ;;  %v14209_v40 = vld [vmem:[#allocation75_spill] sm:$0xff]  ;;  %v14210_v9 = vld [vmem:[#allocation80_spill] sm:$0xff] }
 0x14e   : > { %v1562_v51 = vpop.f32.mrf.mxu1  ;;  %9037 = vmatpush3.msra.mxu1 %v4548_v34  ;;  %8920 = vmatprep.subr.mxu0 %v11449_v63 }
 0x14f   : > { %v11552_v61 = vadd.f32 %v1562_v51, %v974_v58  ;;  %v8294_v38 = vpop.f32.mrf.mxu0  ;;  %8717 = vmatmul.mubr.f32.gmra.mxu0 %v14207_v33  ;;  %9038 = vmatprep.subr.mxu1 %v4555_v3  ;;  %14208 = vst [vmem:[#allocation305_spill] sm:$0xff] %v11558_v19 }
 0x150   : > { %v8406_v50 = vpop.f32.mrf.mxu1  ;;  %8829 = vmatmul.mubr.f32.gmra.mxu1 %v14198_v54  ;;  %8719 = vmatprep.mubr.f32.mxu0 %v14209_v40  ;;  %v4569_v54 = vand.u32 4294901760, %v4568_v31 }
 0x151   : > { %v11562_v34 = vadd.f32 %v8406_v50, %v8288_v22  ;;  %v1034_v58 = vpop.f32.mrf.mxu0  ;;  %8831 = vmatprep.mubr.f32.mxu1 %v14202_v4  ;;  %8921 = vmatpush3.msra.mxu0 %v11449_v63  ;;  %v4575_v22 = vsub.f32 %v11543_v18, %v11558_v19  ;;  %v14211_v4 = vld [vmem:[#allocation85_spill] sm:$0xff]  ;;  %v14212_v19 = vld [vmem:[#allocation90_spill] sm:$0xff] }
 0x152   : > { %v1574_v51 = vpop.f32.mrf.mxu1  ;;  %9039 = vmatpush3.msra.mxu1 %v4555_v3  ;;  %8922 = vmatprep.subr.mxu0 %v11479_v0 }
 0x153   : > { %v11567_v25 = vadd.f32 %v1574_v51, %v994_v55  ;;  %v8297_v53 = vpop.f32.mrf.mxu0  ;;  %8720 = vmatmul.mubr.f32.gmra.mxu0 %v14210_v9  ;;  %9040 = vmatprep.subr.mxu1 %v4562_v35  ;;  %v4576_v18 = vand.u32 4294901760, %v4575_v22  ;;  %v14214_v22 = vld [vmem:[#allocation96_spill] sm:$0xff] }
 0x154   : > { %v8409_v50 = vpop.f32.mrf.mxu1  ;;  %8832 = vmatmul.mubr.f32.gmra.mxu1 %v14203_v29  ;;  %8722 = vmatprep.mubr.f32.mxu0 %v14211_v4 }
 0x155   : > { %v11574_v63 = vadd.f32 %v8409_v50, %v8291_v48  ;;  %v1054_v3 = vpop.f32.mrf.mxu0  ;;  %8834 = vmatprep.mubr.f32.mxu1 %v14206_v47  ;;  %8923 = vmatpush3.msra.mxu0 %v11479_v0  ;;  %v14213_v48 = vld [vmem:[#allocation93_spill] sm:$0xff] }
 0x156   : > { %v1586_v55 = vpop.f32.mrf.mxu1  ;;  %9041 = vmatpush3.msra.mxu1 %v4562_v35  ;;  %8924 = vmatprep.subr.mxu0 %v11502_v57 }
 0x157   : > { %v11579_v31 = vadd.f32 %v1586_v55, %v1014_v42  ;;  %v8300_v51 = vpop.f32.mrf.mxu0  ;;  %8723 = vmatmul.mubr.f32.gmra.mxu0 %v14212_v19  ;;  %9042 = vmatprep.subr.mxu1 %v4569_v54 }
 0x158   : > { %v8412_v29 = vpop.f32.mrf.mxu1  ;;  %8835 = vmatmul.mubr.f32.gmra.mxu1 %v14207_v33  ;;  %8725 = vmatprep.mubr.f32.mxu0 %v14213_v48 }
 0x159   : > { %v11584_v50 = vadd.f32 %v8412_v29, %v8294_v38  ;;  %v1074_v47 = vpop.f32.mrf.mxu0  ;;  %8837 = vmatprep.mubr.f32.mxu1 %v14209_v40  ;;  %8925 = vmatpush3.msra.mxu0 %v11502_v57  ;;  %v14215_v29 = vld [vmem:[#allocation99_spill] sm:$0xff]  ;;  %v14218_v57 = vld [vmem:[#allocation104_spill] sm:$0xff] }
 0x15a   : > { %v1598_v35 = vpop.f32.mrf.mxu1  ;;  %9043 = vmatpush3.msra.mxu1 %v4569_v54  ;;  %8926 = vmatprep.subr.mxu0 %v11525_v45 }
 0x15b   : > { %v11589_v42 = vadd.f32 %v1598_v35, %v1034_v58  ;;  %v8303_v55 = vpop.f32.mrf.mxu0  ;;  %8726 = vmatmul.mubr.f32.gmra.mxu0 %v14214_v22  ;;  %9044 = vmatprep.subr.mxu1 %v4576_v18 }
 0x15c   : > { %v8415_v33 = vpop.f32.mrf.mxu1  ;;  %8838 = vmatmul.mubr.f32.gmra.mxu1 %v14210_v9  ;;  %8728 = vmatprep.mubr.f32.mxu0 %v14215_v29 }
 0x15d   : > { %v11594_v38 = vadd.f32 %v8415_v33, %v8297_v53  ;;  %v1094_v40 = vpop.f32.mrf.mxu0  ;;  %8840 = vmatprep.mubr.f32.mxu1 %v14211_v4  ;;  %8927 = vmatpush3.msra.mxu0 %v11525_v45  ;;  %v14219_v33 = vld [vmem:[#allocation107_spill] sm:$0xff] }
 0x15e   : > { %v1610_v54 = vpop.f32.mrf.mxu1  ;;  %9045 = vmatpush3.msra.mxu1 %v4576_v18  ;;  %9142 = vmatprep.subr.mxu0 %v11176_v12 }
 0x15f   : > { %14216 = vst [vmem:[#allocation306_spill] sm:$0xff] %v11594_v38  ;;  %v11599_v58 = vadd.f32 %v1610_v54, %v1054_v3  ;;  %v8306_v35 = vpop.f32.mrf.mxu0  ;;  %8729 = vmatmul.mubr.f32.gmra.mxu0 %v14218_v57  ;;  %9260 = vmatprep.subr.mxu1 %v11165_v11  ;;  %v14222_v54 = vld [vmem:[#allocation113_spill] sm:$0xff] }
 0x160   : > { %v8418_v9 = vpop.f32.mrf.mxu1  ;;  %8841 = vmatmul.mubr.f32.gmra.mxu1 %v14212_v19  ;;  %8731 = vmatprep.mubr.f32.mxu0 %v14219_v33  ;;  %v14223_v38 = vld [vmem:[#allocation117_spill] sm:$0xff] }
 0x161   : > { %14217 = vst [vmem:[#allocation307_spill] sm:$0xff] %v11599_v58  ;;  %v11605_v53 = vadd.f32 %v8418_v9, %v8300_v51  ;;  %v1114_v4 = vpop.f32.mrf.mxu0  ;;  %8843 = vmatprep.mubr.f32.mxu1 %v14213_v48 }
 0x162   : > { %v1622_v18 = vpop.f32.mrf.mxu1 }
 0x163   : > { %14220 = vst [vmem:[#allocation308_spill] sm:$0xff] %v11605_v53  ;;  %v11608_v45 = vadd.f32 %v1622_v18, %v1074_v47  ;;  %v8309_v3 = vpop.f32.mrf.mxu0  ;;  %8732 = vmatmul.mubr.f32.gmra.mxu0 %v14222_v54  ;;  %v14226_v53 = vld [vmem:[#allocation120_spill] sm:$0xff]  ;;  %v14227_v18 = vld [vmem:[#allocation125_spill] sm:$0xff] }
 0x164   : > { %v8421_v58 = vpop.f32.mrf.mxu1  ;;  %8844 = vmatmul.mubr.f32.gmra.mxu1 %v14214_v22  ;;  %8734 = vmatprep.mubr.f32.mxu0 %v14223_v38 }
 0x165   : > { %14221 = vst [vmem:[#allocation309_spill] sm:$0xff] %v11608_v45  ;;  %v11613_v0 = vadd.f32 %v8421_v58, %v8303_v55  ;;  %v1134_v19 = vpop.f32.mrf.mxu0  ;;  %8846 = vmatprep.mubr.f32.mxu1 %v14215_v29 }
 0x166   : > { %v1634_v9 = vpop.f32.mrf.mxu1 }
 0x167   : > { %14224 = vst [vmem:[#allocation310_spill] sm:$0xff] %v11613_v0  ;;  %v11616_v51 = vadd.f32 %v1634_v9, %v1094_v40  ;;  %v8312_v48 = vpop.f32.mrf.mxu0  ;;  %8735 = vmatmul.mubr.f32.gmra.mxu0 %v14226_v53  ;;  %v14230_v0 = vld [vmem:[#allocation130_spill] sm:$0xff]  ;;  %v14231_v9 = vld [vmem:[#allocation133_spill] sm:$0xff] }
 0x168   : > { %v8424_v47 = vpop.f32.mrf.mxu1  ;;  %8847 = vmatmul.mubr.f32.gmra.mxu1 %v14218_v57  ;;  %8737 = vmatprep.mubr.f32.mxu0 %v14227_v18 }
 0x169   : > { %14225 = vst [vmem:[#allocation311_spill] sm:$0xff] %v11616_v51  ;;  %v11621_v45 = vadd.f32 %v8424_v47, %v8306_v35  ;;  %v1154_v22 = vpop.f32.mrf.mxu0  ;;  %8849 = vmatprep.mubr.f32.mxu1 %v14219_v33 }
 0x16a   : > { %v1646_v55 = vpop.f32.mrf.mxu1 }
 0x16b   : > { %14228 = vst [vmem:[#allocation312_spill] sm:$0xff] %v11621_v45  ;;  %v11624_v58 = vadd.f32 %v1646_v55, %v1114_v4  ;;  %v8315_v29 = vpop.f32.mrf.mxu0  ;;  %8738 = vmatmul.mubr.f32.gmra.mxu0 %v14230_v0  ;;  %v14234_v45 = vld [vmem:[#allocation136_spill] sm:$0xff] }
 0x16c   : > { %v8427_v40 = vpop.f32.mrf.mxu1  ;;  %8850 = vmatmul.mubr.f32.gmra.mxu1 %v14222_v54  ;;  %8740 = vmatprep.mubr.f32.mxu0 %v14231_v9 }
 0x16d   : > { %14229 = vst [vmem:[#allocation313_spill] sm:$0xff] %v11624_v58  ;;  %v11629_v51 = vadd.f32 %v8427_v40, %v8309_v3  ;;  %v1174_v57 = vpop.f32.mrf.mxu0  ;;  %8852 = vmatprep.mubr.f32.mxu1 %v14223_v38  ;;  %v14235_v58 = vld [vmem:[#allocation139_spill] sm:$0xff] }
 0x16e   : > { %v1658_v35 = vpop.f32.mrf.mxu1 }
 0x16f   : > { %14232 = vst [vmem:[#allocation314_spill] sm:$0xff] %v11629_v51  ;;  %v11632_v47 = vadd.f32 %v1658_v35, %v1134_v19  ;;  %v8458_v33 = vpop.f32.mrf.mxu0  ;;  %8741 = vmatmul.mubr.f32.gmra.mxu0 %v14234_v45 }
 0x170   : > { %v8430_v4 = vpop.f32.mrf.mxu1  ;;  %v1790_v55 = vadd.f32 %v8458_v33, %v11243_v10  ;;  %8853 = vmatmul.mubr.f32.gmra.mxu1 %v14226_v53  ;;  %8743 = vmatprep.mubr.f32.mxu0 %v14235_v58  ;;  %v14237_v33 = vld [vmem:[#allocation147_spill] sm:$0xff] }
 0x171   : > { %14233 = vst [vmem:[#allocation315_spill] sm:$0xff] %v11632_v47  ;;  %v11638_v54 = vadd.f32 %v8430_v4, %v8312_v48  ;;  %v1782_v3 = vpop.f32.mrf.mxu0  ;;  %8855 = vmatprep.mubr.f32.mxu1 %v14227_v18  ;;  %v14236_v47 = vld [vmem:[#allocation144_spill] sm:$0xff] }
 0x172   : > { %v1670_v40 = vpop.f32.mrf.mxu1  ;;  %v1783_v38 = vadd.f32 %v1782_v3, %v11246_v28 }
 0x173   : > { %v11642_v19 = vadd.f32 %v1670_v40, %v1154_v22  ;;  %v8461_v35 = vpop.f32.mrf.mxu0  ;;  %8744 = vmatmul.mubr.f32.gmra.mxu0 %v14236_v47  ;;  %v14238_v40 = vld [vmem:[#allocation153_spill] sm:$0xff] }
 0x174   : > { %v8433_v51 = vpop.f32.mrf.mxu1  ;;  %v1804_v10 = vadd.f32 %v8461_v35, %v11251_v30  ;;  %8856 = vmatmul.mubr.f32.gmra.mxu1 %v14230_v0  ;;  %8746 = vmatprep.mubr.f32.mxu0 %v14237_v33  ;;  %v14239_v35 = vld [vmem:[#allocation157_spill] sm:$0xff] }
 0x175   : > { %v11648_v48 = vadd.f32 %v8433_v51, %v8315_v29  ;;  %v1796_v4 = vpop.f32.mrf.mxu0  ;;  %8858 = vmatprep.mubr.f32.mxu1 %v14231_v9 }
 0x176   : > { %v1682_v18 = vpop.f32.mrf.mxu1  ;;  %v1797_v28 = vadd.f32 %v1796_v4, %v11254_v26  ;;  %v14240_v4 = vld [vmem:[#allocation160_spill] sm:$0xff] }
 0x177   : > { %v11652_v22 = vadd.f32 %v1682_v18, %v1174_v57  ;;  %v8464_v3 = vpop.f32.mrf.mxu0  ;;  %8747 = vmatmul.mubr.f32.gmra.mxu0 %v14238_v40 }
 0x178   : > { %v1818_v53 = vadd.f32 %v8464_v3, %v11259_v52  ;;  %v8576_v30 = vpop.f32.mrf.mxu1  ;;  %8859 = vmatmul.mubr.f32.gmra.mxu1 %v14234_v45  ;;  %8749 = vmatprep.mubr.f32.mxu0 %v14239_v35  ;;  %v14241_v45 = vld [vmem:[#allocation165_spill] sm:$0xff] }
 0x179   : > { %v11658_v29 = vadd.f32 %v8576_v30, %v1790_v55  ;;  %v1810_v51 = vpop.f32.mrf.mxu0  ;;  %8861 = vmatprep.mubr.f32.mxu1 %v14235_v58  ;;  %v14242_v58 = vld [vmem:[#allocation170_spill] sm:$0xff] }
 0x17a   : > { %v1811_v9 = vadd.f32 %v1810_v51, %v11262_v36  ;;  %v2307_v26 = vpop.f32.mrf.mxu1 }
 0x17b   : > { %v11662_v57 = vadd.f32 %v2307_v26, %v1783_v38  ;;  %v8467_v18 = vpop.f32.mrf.mxu0  ;;  %8750 = vmatmul.mubr.f32.gmra.mxu0 %v14240_v4 }
 0x17c   : > { %v1832_v52 = vadd.f32 %v8467_v18, %v11267_v8  ;;  %v8579_v3 = vpop.f32.mrf.mxu1  ;;  %8862 = vmatmul.mubr.f32.gmra.mxu1 %v14236_v47  ;;  %8752 = vmatprep.mubr.f32.mxu0 %v14241_v45  ;;  %v14243_v47 = vld [vmem:[#allocation173_spill] sm:$0xff] }
 0x17d   : > { %v11668_v55 = vadd.f32 %v8579_v3, %v1804_v10  ;;  %v1824_v30 = vpop.f32.mrf.mxu0  ;;  %8864 = vmatprep.mubr.f32.mxu1 %v14237_v33  ;;  %v14244_v33 = vld [vmem:[#allocation176_spill] sm:$0xff] }
 0x17e   : > { %v1825_v36 = vadd.f32 %v1824_v30, %v11270_v7  ;;  %v2323_v51 = vpop.f32.mrf.mxu1 }
 0x17f   : > { %v11672_v38 = vadd.f32 %v2323_v51, %v1797_v28  ;;  %v8470_v26 = vpop.f32.mrf.mxu0  ;;  %8753 = vmatmul.mubr.f32.gmra.mxu0 %v14242_v58 }
 0x180   : > { %v1846_v8 = vadd.f32 %v8470_v26, %v11275_v62  ;;  %v8582_v18 = vpop.f32.mrf.mxu1  ;;  %8865 = vmatmul.mubr.f32.gmra.mxu1 %v14238_v40  ;;  %8755 = vmatprep.mubr.f32.mxu0 %v14243_v47  ;;  %v14245_v40 = vld [vmem:[#allocation179_spill] sm:$0xff] }
 0x181   : > { %v11678_v10 = vadd.f32 %v8582_v18, %v1818_v53  ;;  %v1838_v3 = vpop.f32.mrf.mxu0  ;;  %8867 = vmatprep.mubr.f32.mxu1 %v14239_v35  ;;  %v14246_v35 = vld [vmem:[#allocation184_spill] sm:$0xff] }
 0x182   : > { %v1839_v7 = vadd.f32 %v1838_v3, %v11278_v23  ;;  %v2339_v30 = vpop.f32.mrf.mxu1 }
 0x183   : > { %v11682_v28 = vadd.f32 %v2339_v30, %v1811_v9  ;;  %v8473_v51 = vpop.f32.mrf.mxu0  ;;  %8756 = vmatmul.mubr.f32.gmra.mxu0 %v14244_v33 }
 0x184   : > { %v1860_v62 = vadd.f32 %v8473_v51, %v11283_v59  ;;  %v8585_v26 = vpop.f32.mrf.mxu1  ;;  %8868 = vmatmul.mubr.f32.gmra.mxu1 %v14240_v4  ;;  %8758 = vmatprep.mubr.f32.mxu0 %v14245_v40  ;;  %v14247_v4 = vld [vmem:[#allocation187_spill] sm:$0xff] }
 0x185   : > { %v11688_v53 = vadd.f32 %v8585_v26, %v1832_v52  ;;  %v1852_v18 = vpop.f32.mrf.mxu0  ;;  %8870 = vmatprep.mubr.f32.mxu1 %v14241_v45  ;;  %v14248_v45 = vld [vmem:[#allocation193_spill] sm:$0xff] }
 0x186   : > { %v1853_v23 = vadd.f32 %v1852_v18, %v11286_v16  ;;  %v2355_v3 = vpop.f32.mrf.mxu1 }
 0x187   : > { %v11692_v9 = vadd.f32 %v2355_v3, %v1825_v36  ;;  %v8476_v30 = vpop.f32.mrf.mxu0  ;;  %8759 = vmatmul.mubr.f32.gmra.mxu0 %v14246_v35 }
 0x188   : > { %v1874_v59 = vadd.f32 %v8476_v30, %v11291_v6  ;;  %v8588_v51 = vpop.f32.mrf.mxu1  ;;  %8871 = vmatmul.mubr.f32.gmra.mxu1 %v14242_v58  ;;  %8761 = vmatprep.mubr.f32.mxu0 %v14247_v4  ;;  %v14249_v58 = vld [vmem:[#allocation197_spill] sm:$0xff] }
 0x189   : > { %v11698_v52 = vadd.f32 %v8588_v51, %v1846_v8  ;;  %v1866_v26 = vpop.f32.mrf.mxu0  ;;  %8873 = vmatprep.mubr.f32.mxu1 %v14243_v47  ;;  %v14250_v47 = vld [vmem:[#allocation200_spill] sm:$0xff] }
 0x18a   : > { %v1867_v16 = vadd.f32 %v1866_v26, %v11294_v24  ;;  %v2371_v18 = vpop.f32.mrf.mxu1 }
 0x18b   : > { %v11702_v36 = vadd.f32 %v2371_v18, %v1839_v7  ;;  %v8479_v3 = vpop.f32.mrf.mxu0  ;;  %8762 = vmatmul.mubr.f32.gmra.mxu0 %v14248_v45 }
 0x18c   : > { %v1888_v6 = vadd.f32 %v8479_v3, %v11299_v5  ;;  %v8591_v30 = vpop.f32.mrf.mxu1  ;;  %8874 = vmatmul.mubr.f32.gmra.mxu1 %v14244_v33  ;;  %8764 = vmatprep.mubr.f32.mxu0 %v14249_v58  ;;  %v14251_v33 = vld [vmem:[#allocation205_spill] sm:$0xff] }
 0x18d   : > { %v11708_v8 = vadd.f32 %v8591_v30, %v1860_v62  ;;  %v1880_v51 = vpop.f32.mrf.mxu0  ;;  %8876 = vmatprep.mubr.f32.mxu1 %v14245_v40  ;;  %v14252_v40 = vld [vmem:[#allocation210_spill] sm:$0xff] }
 0x18e   : > { %v1881_v24 = vadd.f32 %v1880_v51, %v11302_v2  ;;  %v2387_v26 = vpop.f32.mrf.mxu1 }
 0x18f   : > { %v11712_v7 = vadd.f32 %v2387_v26, %v1853_v23  ;;  %v8482_v18 = vpop.f32.mrf.mxu0  ;;  %8765 = vmatmul.mubr.f32.gmra.mxu0 %v14250_v47 }
 0x190   : > { %v1902_v5 = vadd.f32 %v8482_v18, %v11307_v44  ;;  %v8594_v3 = vpop.f32.mrf.mxu1  ;;  %8877 = vmatmul.mubr.f32.gmra.mxu1 %v14246_v35  ;;  %8767 = vmatprep.mubr.f32.mxu0 %v14251_v33 }
 0x191   : > { %v11718_v62 = vadd.f32 %v8594_v3, %v1874_v59  ;;  %v1894_v30 = vpop.f32.mrf.mxu0  ;;  %8879 = vmatprep.mubr.f32.mxu1 %v14247_v4  ;;  %v14253_v4 = vld [vmem:[#allocation216_spill] sm:$0xff] }
 0x192   : > { %v1895_v2 = vadd.f32 %v1894_v30, %v11310_v15  ;;  %v2403_v51 = vpop.f32.mrf.mxu1 }
 0x193   : > { %v11722_v23 = vadd.f32 %v2403_v51, %v1867_v16  ;;  %v8485_v26 = vpop.f32.mrf.mxu0  ;;  %8768 = vmatmul.mubr.f32.gmra.mxu0 %v14252_v40 }
 0x194   : > { %v1916_v44 = vadd.f32 %v8485_v26, %v11315_v60  ;;  %v8597_v18 = vpop.f32.mrf.mxu1  ;;  %8880 = vmatmul.mubr.f32.gmra.mxu1 %v14248_v45  ;;  %8770 = vmatprep.mubr.f32.mxu0 %v10864_v41 }
 0x195   : > { %v11728_v59 = vadd.f32 %v8597_v18, %v1888_v6  ;;  %v1908_v3 = vpop.f32.mrf.mxu0  ;;  %8882 = vmatprep.mubr.f32.mxu1 %v14249_v58  ;;  %v14262_v58 = vld [vmem:[#allocation17_spill] sm:$0xff] }
 0x196   : > { %v1909_v15 = vadd.f32 %v1908_v3, %v11318_v21  ;;  %v2419_v30 = vpop.f32.mrf.mxu1 }
 0x197   : > { %v11732_v16 = vadd.f32 %v2419_v30, %v1881_v24  ;;  %v8488_v51 = vpop.f32.mrf.mxu0  ;;  %8771 = vmatmul.mubr.f32.gmra.mxu0 %v14253_v4 }
 0x198   : > { %v1930_v60 = vadd.f32 %v8488_v51, %v11323_v56  ;;  %v8600_v26 = vpop.f32.mrf.mxu1  ;;  %8883 = vmatmul.mubr.f32.gmra.mxu1 %v14250_v47  ;;  %8773 = vmatprep.mubr.f32.mxu0 %v10885_v37  ;;  %v14256_v47 = vld [vmem:[#allocation6_spill] sm:$0xff] }
 0x199   : > { %v11738_v6 = vadd.f32 %v8600_v26, %v1902_v5  ;;  %v1922_v18 = vpop.f32.mrf.mxu0  ;;  %8885 = vmatprep.mubr.f32.mxu1 %v14251_v33  ;;  %v14255_v33 = vld [vmem:[#allocation232_spill] sm:$0xff] }
 0x19a   : > { %v1923_v21 = vadd.f32 %v1922_v18, %v11326_v43  ;;  %v2435_v3 = vpop.f32.mrf.mxu1 }
 0x19b   : > { %v11742_v24 = vadd.f32 %v2435_v3, %v1895_v2  ;;  %v8491_v30 = vpop.f32.mrf.mxu0  ;;  %8774 = vmatmul.mubr.f32.gmra.mxu0 %v10908_v32 }
 0x19c   : > { %v1944_v56 = vadd.f32 %v8491_v30, %v11334_v1  ;;  %v8603_v51 = vpop.f32.mrf.mxu1  ;;  %8886 = vmatmul.mubr.f32.gmra.mxu1 %v14252_v40  ;;  %8776 = vmatprep.mubr.f32.mxu0 %v10918_v49  ;;  %v14257_v40 = vld [vmem:[#allocation237_spill] sm:$0xff] }
 0x19d   : > { %v11748_v5 = vadd.f32 %v8603_v51, %v1916_v44  ;;  %v1936_v26 = vpop.f32.mrf.mxu0  ;;  %8888 = vmatprep.mubr.f32.mxu1 %v10864_v41  ;;  %v14259_v41 = vld [vmem:[#allocation10_spill] sm:$0xff] }
 0x19e   : > { %v1937_v43 = vadd.f32 %v1936_v26, %v11342_v20  ;;  %v2451_v18 = vpop.f32.mrf.mxu1 }
 0x19f   : > { %v11752_v2 = vadd.f32 %v2451_v18, %v1909_v15  ;;  %v8494_v3 = vpop.f32.mrf.mxu0  ;;  %8777 = vmatmul.mubr.f32.gmra.mxu0 %v14255_v33 }
 0x1a0   : > { %v1958_v1 = vadd.f32 %v8494_v3, %v14256_v47  ;;  %v8606_v30 = vpop.f32.mrf.mxu1  ;;  %8889 = vmatmul.mubr.f32.gmra.mxu1 %v14253_v4  ;;  %8779 = vmatprep.mubr.f32.mxu0 %v14257_v40  ;;  %v14263_v4 = vld [vmem:[#allocation245_spill] sm:$0xff] }
 0x1a1   : > { %14254 = vst [vmem:[#allocation184_spill] sm:$0xff] %v11752_v2  ;;  %v11758_v44 = vadd.f32 %v8606_v30, %v1930_v60  ;;  %v1950_v51 = vpop.f32.mrf.mxu0  ;;  %8891 = vmatprep.mubr.f32.mxu1 %v10885_v37  ;;  %v14261_v2 = vld [vmem:[#allocation242_spill] sm:$0xff] }
 0x1a2   : > { %v1951_v20 = vadd.f32 %v1950_v51, %v14259_v41  ;;  %v2467_v26 = vpop.f32.mrf.mxu1  ;;  %v14264_v37 = vld [vmem:[#allocation26_spill] sm:$0xff] }
 0x1a3   : > { %14258 = vst [vmem:[#allocation193_spill] sm:$0xff] %v11758_v44  ;;  %v11762_v15 = vadd.f32 %v2467_v26, %v1923_v21  ;;  %v8497_v18 = vpop.f32.mrf.mxu0  ;;  %8780 = vmatmul.mubr.f32.gmra.mxu0 %v14261_v2  ;;  %v14267_v44 = vld [vmem:[#allocation274_spill] sm:$0xff] }
 0x1a4   : > { %v1972_v47 = vadd.f32 %v8497_v18, %v14262_v58  ;;  %v8609_v3 = vpop.f32.mrf.mxu1  ;;  %8892 = vmatmul.mubr.f32.gmra.mxu1 %v10908_v32  ;;  %8782 = vmatprep.mubr.f32.mxu0 %v14263_v4  ;;  %v14268_v32 = vld [vmem:[#allocation253_spill] sm:$0xff] }
 0x1a5   : > { %14260 = vst [vmem:[#allocation6_spill] sm:$0xff] %v11762_v15  ;;  %v11768_v60 = vadd.f32 %v8609_v3, %v1944_v56  ;;  %v1964_v30 = vpop.f32.mrf.mxu0  ;;  %8894 = vmatprep.mubr.f32.mxu1 %v10918_v49  ;;  %v14266_v15 = vld [vmem:[#allocation250_spill] sm:$0xff]  ;;  %v14270_v49 = vld [vmem:[#allocation276_spill] sm:$0xff] }
 0x1a6   : > { %v1965_v41 = vadd.f32 %v1964_v30, %v14264_v37  ;;  %v2483_v51 = vpop.f32.mrf.mxu1 }
 0x1a7   : > { %v11772_v21 = vadd.f32 %v2483_v51, %v1937_v43  ;;  %v8500_v26 = vpop.f32.mrf.mxu0  ;;  %8783 = vmatmul.mubr.f32.gmra.mxu0 %v14266_v15 }
 0x1a8   : > { %v1986_v58 = vadd.f32 %v8500_v26, %v14267_v44  ;;  %v8612_v18 = vpop.f32.mrf.mxu1  ;;  %8895 = vmatmul.mubr.f32.gmra.mxu1 %v14255_v33  ;;  %8785 = vmatprep.mubr.f32.mxu0 %v14268_v32  ;;  %v14273_v33 = vld [vmem:[#allocation28_spill] sm:$0xff] }
 0x1a9   : > { %14265 = vst [vmem:[#allocation10_spill] sm:$0xff] %v11772_v21  ;;  %v11778_v56 = vadd.f32 %v8612_v18, %v1958_v1  ;;  %v1978_v3 = vpop.f32.mrf.mxu0  ;;  %8897 = vmatprep.mubr.f32.mxu1 %v14257_v40  ;;  %v14272_v21 = vld [vmem:[#allocation257_spill] sm:$0xff] }
 0x1aa   : > { %v1979_v37 = vadd.f32 %v1978_v3, %v14270_v49  ;;  %v2499_v30 = vpop.f32.mrf.mxu1  ;;  %v14274_v40 = vld [vmem:[#allocation281_spill] sm:$0xff] }
 0x1ab   : > { %14269 = vst [vmem:[#allocation17_spill] sm:$0xff] %v11778_v56  ;;  %v11782_v43 = vadd.f32 %v2499_v30, %v1951_v20  ;;  %v8503_v51 = vpop.f32.mrf.mxu0  ;;  %8786 = vmatmul.mubr.f32.gmra.mxu0 %v14272_v21  ;;  %v14276_v56 = vld [vmem:[#allocation284_spill] sm:$0xff] }
 0x1ac   : > { %v2000_v44 = vadd.f32 %v8503_v51, %v11416_v39  ;;  %v8615_v26 = vpop.f32.mrf.mxu1  ;;  %8898 = vmatmul.mubr.f32.gmra.mxu1 %v14261_v2  ;;  %8928 = vmatprep.mubr.f32.mxu0 %v14273_v33  ;;  %v14277_v2 = vld [vmem:[#allocation30_spill] sm:$0xff] }
 0x1ad   : > { %14271 = vst [vmem:[#allocation26_spill] sm:$0xff] %v11782_v43  ;;  %v11788_v1 = vadd.f32 %v8615_v26, %v1972_v47  ;;  %v1992_v18 = vpop.f32.mrf.mxu0  ;;  %8900 = vmatprep.mubr.f32.mxu1 %v14263_v4  ;;  %v14275_v43 = vld [vmem:[#allocation29_spill] sm:$0xff] }
 0x1ae   : > { %v1993_v49 = vadd.f32 %v1992_v18, %v14274_v40  ;;  %v2515_v3 = vpop.f32.mrf.mxu1  ;;  %v14278_v40 = vld [vmem:[#allocation287_spill] sm:$0xff]  ;;  %v14279_v18 = vld [vmem:[#allocation9_spill] sm:$0xff] }
 0x1af   : > { %v11792_v20 = vadd.f32 %v2515_v3, %v1965_v41  ;;  %v8506_v30 = vpop.f32.mrf.mxu0  ;;  %8929 = vmatmul.mubr.f32.vlgmr.msra.gmra.mxu0 %v14275_v43  ;;  %v14280_v3 = vld [vmem:[#allocation32_spill] sm:$0xff] }
 0x1b0   : > { %v2014_v39 = vadd.f32 %v8506_v30, %v14276_v56  ;;  %v8618_v51 = vpop.f32.mrf.mxu1  ;;  %8901 = vmatmul.mubr.f32.gmra.mxu1 %v14266_v15  ;;  %8931 = vmatprep.mubr.f32.mxu0 %v14277_v2  ;;  %v14281_v30 = vld [vmem:[#allocation289_spill] sm:$0xff] }
 0x1b1   : > { %v11798_v33 = vadd.f32 %v8618_v51, %v1986_v58  ;;  %v2006_v47 = vpop.f32.mrf.mxu0  ;;  %8903 = vmatprep.mubr.f32.mxu1 %v14268_v32  ;;  %9143 = vmatpush3.msra.mxu0 %v11176_v12  ;;  %v14282_v58 = vld [vmem:[#allocation52_spill] sm:$0xff] }
 0x1b2   : > { %v2007_v41 = vadd.f32 %v2006_v47, %v14278_v40  ;;  %v2531_v26 = vpop.f32.mrf.mxu1  ;;  %9144 = vmatprep.subr.mxu0 %v14279_v18  ;;  %v14283_v32 = vld [vmem:[#allocation12_spill] sm:$0xff] }
 0x1b3   : > { %v11804_v43 = vadd.f32 %v2531_v26, %v1979_v37  ;;  %v8509_v56 = vpop.f32.mrf.mxu0  ;;  %8932 = vmatmul.mubr.f32.gmra.mxu0 %v14280_v3  ;;  %v14284_v47 = vld [vmem:[#allocation292_spill] sm:$0xff]  ;;  %v14285_v26 = vld [vmem:[#allocation18_spill] sm:$0xff] }
 0x1b4   : > { %v2028_v15 = vadd.f32 %v8509_v56, %v14281_v30  ;;  %v8621_v2 = vpop.f32.mrf.mxu1  ;;  %8904 = vmatmul.mubr.f32.gmra.mxu1 %v14272_v21  ;;  %8934 = vmatprep.mubr.f32.mxu0 %v14282_v58  ;;  %v14287_v30 = vld [vmem:[#allocation54_spill] sm:$0xff] }
 0x1b5   : > { %v11810_v51 = vadd.f32 %v8621_v2, %v2000_v44  ;;  %v2020_v12 = vpop.f32.mrf.mxu0  ;;  %9046 = vmatprep.mubr.f32.mxu1 %v14283_v32  ;;  %9145 = vmatpush3.msra.mxu0 %v14279_v18  ;;  %v14288_v21 = vld [vmem:[#allocation294_spill] sm:$0xff]  ;;  %v14289_v44 = vld [vmem:[#allocation13_spill] sm:$0xff] }
 0x1b6   : > { %v2021_v37 = vadd.f32 %v2020_v12, %v14284_v47  ;;  %v2547_v40 = vpop.f32.mrf.mxu1  ;;  %9146 = vmatprep.subr.mxu0 %v14285_v26  ;;  %v14290_v2 = vld [vmem:[#allocation57_spill] sm:$0xff]  ;;  %v14291_v12 = vld [vmem:[#allocation15_spill] sm:$0xff]  ;;  %v14292_v47 = vld [vmem:[#allocation296_spill] sm:$0xff] }
 0x1b7   : > { %v11816_v3 = vadd.f32 %v2547_v40, %v1993_v49  ;;  %v8512_v56 = vpop.f32.mrf.mxu0  ;;  %8935 = vmatmul.mubr.f32.gmra.mxu0 %v14287_v30  ;;  %v14295_v30 = vld [vmem:[#allocation58_spill] sm:$0xff] }
 0x1b8   : > { %v2042_v4 = vadd.f32 %v8512_v56, %v14288_v21  ;;  %v8624_v58 = vpop.f32.mrf.mxu1  ;;  %9047 = vmatmul.mubr.f32.vlgmr.msra.gmra.mxu1 %v14289_v44  ;;  %8937 = vmatprep.mubr.f32.mxu0 %v14290_v2  ;;  %v14296_v2 = vld [vmem:[#allocation19_spill] sm:$0xff] }
 0x1b9   : > { %14286 = vst [vmem:[#allocation274_spill] sm:$0xff] %v11816_v3  ;;  %v11822_v32 = vadd.f32 %v8624_v58, %v2014_v39  ;;  %9261 = vmatpush3.msra.mxu1 %v11165_v11  ;;  %v2034_v18 = vpop.f32.mrf.mxu0  ;;  %9049 = vmatprep.mubr.f32.mxu1 %v14291_v12  ;;  %v14293_v3 = vld [vmem:[#allocation5_spill] sm:$0xff]  ;;  %v14297_v12 = vld [vmem:[#allocation60_spill] sm:$0xff]  ;;  %v14298_v44 = vld [vmem:[#allocation31_spill] sm:$0xff] }
 0x1ba   : > { %v2035_v49 = vadd.f32 %v2034_v18, %v14292_v47  ;;  %v2563_v40 = vpop.f32.mrf.mxu1  ;;  %9262 = vmatprep.subr.mxu1 %v14293_v3  ;;  %9147 = vmatpush3.msra.mxu0 %v14285_v26  ;;  %v14299_v26 = vld [vmem:[#allocation8_spill] sm:$0xff] }
 0x1bb   : > { %v11829_v21 = vadd.f32 %v2563_v40, %v2007_v41  ;;  %v8515_v56 = vpop.f32.mrf.mxu0  ;;  %8938 = vmatmul.mubr.f32.gmra.mxu0 %v14295_v30  ;;  %9263 = vmatpush3.msra.mxu1 %v14293_v3  ;;  %v14300_v41 = vld [vmem:[#allocation299_spill] sm:$0xff]  ;;  %v14301_v30 = vld [vmem:[#allocation272_spill] sm:$0xff] }
 0x1bc   : > { %v2056_v39 = vadd.f32 %v8515_v56, %v11509_v17  ;;  %v8627_v58 = vpop.f32.mrf.mxu1  ;;  %9050 = vmatmul.mubr.f32.gmra.mxu1 %v14296_v2  ;;  %8940 = vmatprep.mubr.f32.mxu0 %v14297_v12  ;;  %v14302_v2 = vld [vmem:[#allocation66_spill] sm:$0xff]  ;;  %v14303_v12 = vld [vmem:[#allocation11_spill] sm:$0xff]  ;;  %v14305_v3 = vld [vmem:[#allocation76_spill] sm:$0xff] }
 0x1bd   : > { %14294 = vst [vmem:[#allocation276_spill] sm:$0xff] %v11829_v21  ;;  %v11836_v18 = vadd.f32 %v8627_v58, %v2028_v15  ;;  %v2048_v47 = vpop.f32.mrf.mxu0  ;;  %9052 = vmatprep.mubr.f32.mxu1 %v14298_v44  ;;  %9264 = vmatprep.subr.mxu1 %v14299_v26  ;;  %v14304_v44 = vld [vmem:[#allocation33_spill] sm:$0xff] }
 0x1be   : > { %v2049_v40 = vadd.f32 %v2048_v47, %v14300_v41  ;;  %v2579_v21 = vpop.f32.mrf.mxu1  ;;  %9265 = vmatpush3.msra.mxu1 %v14299_v26  ;;  %9148 = vmatprep.subr.mxu0 %v14301_v30  ;;  %v14306_v26 = vld [vmem:[#allocation35_spill] sm:$0xff] }
 0x1bf   : > { %v11843_v17 = vadd.f32 %v2579_v21, %v2021_v37  ;;  %v8518_v56 = vpop.f32.mrf.mxu0  ;;  %8941 = vmatmul.mubr.f32.gmra.mxu0 %v14302_v2  ;;  %9266 = vmatprep.subr.mxu1 %v14303_v12  ;;  %v14307_v2 = vld [vmem:[#allocation278_spill] sm:$0xff] }
 0x1c0   : > { %v2070_v15 = vadd.f32 %v8518_v56, %v11529_v27  ;;  %v8630_v58 = vpop.f32.mrf.mxu1  ;;  %9053 = vmatmul.mubr.f32.gmra.mxu1 %v14304_v44  ;;  %8943 = vmatprep.mubr.f32.mxu0 %v14305_v3  ;;  %v14308_v44 = vld [vmem:[#allocation81_spill] sm:$0xff] }
 0x1c1   : > { %v11850_v47 = vadd.f32 %v8630_v58, %v2042_v4  ;;  %v2062_v41 = vpop.f32.mrf.mxu0  ;;  %9055 = vmatprep.mubr.f32.mxu1 %v14306_v26  ;;  %9149 = vmatpush3.msra.mxu0 %v14301_v30  ;;  %v14309_v3 = vld [vmem:[#allocation273_spill] sm:$0xff]  ;;  %v14310_v26 = vld [vmem:[#allocation36_spill] sm:$0xff] }
 0x1c2   : > { %v2063_v37 = vadd.f32 %v2062_v41, %v11534_v14  ;;  %v2595_v21 = vpop.f32.mrf.mxu1  ;;  %9267 = vmatpush3.msra.mxu1 %v14303_v12  ;;  %9150 = vmatprep.subr.mxu0 %v14307_v2  ;;  %v14311_v30 = vld [vmem:[#allocation84_spill] sm:$0xff]  ;;  %v14312_v12 = vld [vmem:[#allocation38_spill] sm:$0xff] }
 0x1c3   : > { %v11857_v27 = vadd.f32 %v2595_v21, %v2035_v49  ;;  %v8521_v56 = vpop.f32.mrf.mxu0  ;;  %8944 = vmatmul.mubr.f32.gmra.mxu0 %v14308_v44  ;;  %9268 = vmatprep.subr.mxu1 %v14309_v3  ;;  %v14313_v44 = vld [vmem:[#allocation283_spill] sm:$0xff] }
 0x1c4   : > { %v2084_v4 = vadd.f32 %v8521_v56, %v11547_v46  ;;  %v8633_v58 = vpop.f32.mrf.mxu1  ;;  %9056 = vmatmul.mubr.f32.gmra.mxu1 %v14310_v26  ;;  %8946 = vmatprep.mubr.f32.mxu0 %v14311_v30  ;;  %v14314_v26 = vld [vmem:[#allocation86_spill] sm:$0xff] }
 0x1c5   : > { %v11864_v14 = vadd.f32 %v8633_v58, %v2056_v39  ;;  %v2076_v41 = vpop.f32.mrf.mxu0  ;;  %9058 = vmatprep.mubr.f32.mxu1 %v14312_v12  ;;  %9151 = vmatpush3.msra.mxu0 %v14307_v2  ;;  %v14315_v30 = vld [vmem:[#allocation42_spill] sm:$0xff]  ;;  %v14316_v2 = vld [vmem:[#allocation91_spill] sm:$0xff]  ;;  %v14317_v12 = vld [vmem:[#allocation45_spill] sm:$0xff] }
 0x1c6   : > { %v2077_v49 = vadd.f32 %v2076_v41, %v11552_v61  ;;  %v2611_v21 = vpop.f32.mrf.mxu1  ;;  %9269 = vmatpush3.msra.mxu1 %v14309_v3  ;;  %9152 = vmatprep.subr.mxu0 %v14313_v44  ;;  %v14374_v3 = vld [vmem:[#allocation96_spill] sm:$0xff] }
 0x1c7   : > { %v11871_v46 = vadd.f32 %v2611_v21, %v2049_v40  ;;  %v8524_v56 = vpop.f32.mrf.mxu0  ;;  %8947 = vmatmul.mubr.f32.gmra.mxu0 %v14314_v26  ;;  %9270 = vmatprep.subr.mxu1 %v11409_v13  ;;  %v14318_v26 = vld [vmem:[#allocation285_spill] sm:$0xff] }
 0x1c8   : > { %v2098_v39 = vadd.f32 %v8524_v56, %v11562_v34  ;;  %v8636_v58 = vpop.f32.mrf.mxu1  ;;  %9059 = vmatmul.mubr.f32.gmra.mxu1 %v14315_v30  ;;  %8949 = vmatprep.mubr.f32.mxu0 %v14316_v2  ;;  %v14319_v30 = vld [vmem:[#allocation94_spill] sm:$0xff]  ;;  %v14320_v2 = vld [vmem:[#allocation280_spill] sm:$0xff] }
 0x1c9   : > { %v11878_v61 = vadd.f32 %v8636_v58, %v2070_v15  ;;  %v2090_v41 = vpop.f32.mrf.mxu0  ;;  %9061 = vmatprep.mubr.f32.mxu1 %v14317_v12  ;;  %9153 = vmatpush3.msra.mxu0 %v14313_v44  ;;  %v14321_v12 = vld [vmem:[#allocation51_spill] sm:$0xff]  ;;  %v14322_v44 = vld [vmem:[#allocation97_spill] sm:$0xff] }
 0x1ca   : > { %v2091_v40 = vadd.f32 %v2090_v41, %v11567_v25  ;;  %v2627_v21 = vpop.f32.mrf.mxu1  ;;  %9271 = vmatpush3.msra.mxu1 %v11409_v13  ;;  %9154 = vmatprep.subr.mxu0 %v14318_v26  ;;  %v14324_v13 = vld [vmem:[#allocation59_spill] sm:$0xff] }
 0x1cb   : > { %v11885_v34 = vadd.f32 %v2627_v21, %v2063_v37  ;;  %v8527_v56 = vpop.f32.mrf.mxu0  ;;  %8950 = vmatmul.mubr.f32.gmra.mxu0 %v14319_v30  ;;  %9272 = vmatprep.subr.mxu1 %v14320_v2  ;;  %v14325_v30 = vld [vmem:[#allocation291_spill] sm:$0xff] }
 0x1cc   : > { %v2112_v15 = vadd.f32 %v8527_v56, %v11574_v63  ;;  %v8639_v58 = vpop.f32.mrf.mxu1  ;;  %9062 = vmatmul.mubr.f32.gmra.mxu1 %v14321_v12  ;;  %8952 = vmatprep.mubr.f32.mxu0 %v14322_v44  ;;  %v14327_v12 = vld [vmem:[#allocation102_spill] sm:$0xff] }
 0x1cd   : > { %v11892_v25 = vadd.f32 %v8639_v58, %v2084_v4  ;;  %v2104_v41 = vpop.f32.mrf.mxu0  ;;  %9064 = vmatprep.mubr.f32.mxu1 %v14324_v13  ;;  %9155 = vmatpush3.msra.mxu0 %v14318_v26  ;;  %v14328_v44 = vld [vmem:[#allocation286_spill] sm:$0xff]  ;;  %v14329_v13 = vld [vmem:[#allocation63_spill] sm:$0xff]  ;;  %v14330_v26 = vld [vmem:[#allocation108_spill] sm:$0xff] }
 0x1ce   : > { %v2105_v37 = vadd.f32 %v2104_v41, %v11579_v31  ;;  %v2643_v21 = vpop.f32.mrf.mxu1  ;;  %9273 = vmatpush3.msra.mxu1 %v14320_v2  ;;  %9156 = vmatprep.subr.mxu0 %v14325_v30  ;;  %v14332_v2 = vld [vmem:[#allocation64_spill] sm:$0xff] }
 0x1cf   : > { %14323 = vst [vmem:[#allocation28_spill] sm:$0xff] %v11892_v25  ;;  %v11899_v63 = vadd.f32 %v2643_v21, %v2077_v49  ;;  %v8530_v56 = vpop.f32.mrf.mxu0  ;;  %8953 = vmatmul.mubr.f32.gmra.mxu0 %v14327_v12  ;;  %9274 = vmatprep.subr.mxu1 %v14328_v44  ;;  %v14333_v12 = vld [vmem:[#allocation297_spill] sm:$0xff]  ;;  %v14373_v25 = vld [vmem:[#allocation314_spill] sm:$0xff] }
 0x1d0   : > { %v2126_v4 = vadd.f32 %v8530_v56, %v11584_v50  ;;  %v8642_v58 = vpop.f32.mrf.mxu1  ;;  %9065 = vmatmul.mubr.f32.gmra.mxu1 %v14329_v13  ;;  %8955 = vmatprep.mubr.f32.mxu0 %v14330_v26  ;;  %v14335_v13 = vld [vmem:[#allocation110_spill] sm:$0xff]  ;;  %v14336_v26 = vld [vmem:[#allocation293_spill] sm:$0xff] }
 0x1d1   : > { %14326 = vst [vmem:[#allocation281_spill] sm:$0xff] %v11899_v63  ;;  %v11906_v31 = vadd.f32 %v8642_v58, %v2098_v39  ;;  %v2118_v41 = vpop.f32.mrf.mxu0  ;;  %9067 = vmatprep.mubr.f32.mxu1 %v14332_v2  ;;  %9157 = vmatpush3.msra.mxu0 %v14325_v30  ;;  %v14337_v39 = vld [vmem:[#allocation306_spill] sm:$0xff]  ;;  %v14338_v2 = vld [vmem:[#allocation65_spill] sm:$0xff]  ;;  %v14339_v30 = vld [vmem:[#allocation116_spill] sm:$0xff] }
 0x1d2   : > { %v2119_v49 = vadd.f32 %v2118_v41, %v11589_v42  ;;  %v2659_v21 = vpop.f32.mrf.mxu1  ;;  %9275 = vmatpush3.msra.mxu1 %v14328_v44  ;;  %9158 = vmatprep.subr.mxu0 %v14333_v12  ;;  %v14341_v44 = vld [vmem:[#allocation69_spill] sm:$0xff]  ;;  %v14372_v63 = vld [vmem:[#allocation142_spill] sm:$0xff] }
 0x1d3   : > { %14331 = vst [vmem:[#allocation29_spill] sm:$0xff] %v11906_v31  ;;  %v11913_v50 = vadd.f32 %v2659_v21, %v2091_v40  ;;  %v8533_v56 = vpop.f32.mrf.mxu0  ;;  %8956 = vmatmul.mubr.f32.gmra.mxu0 %v14335_v13  ;;  %9276 = vmatprep.subr.mxu1 %v14336_v26  ;;  %v14342_v40 = vld [vmem:[#allocation307_spill] sm:$0xff]  ;;  %v14343_v13 = vld [vmem:[#allocation301_spill] sm:$0xff] }
 0x1d4   : > { %v2140_v58 = vadd.f32 %v8533_v56, %v14337_v39  ;;  %v8645_v31 = vpop.f32.mrf.mxu1  ;;  %9068 = vmatmul.mubr.f32.gmra.mxu1 %v14338_v2  ;;  %8958 = vmatprep.mubr.f32.mxu0 %v14339_v30  ;;  %v14345_v2 = vld [vmem:[#allocation121_spill] sm:$0xff]  ;;  %v14346_v30 = vld [vmem:[#allocation298_spill] sm:$0xff] }
 0x1d5   : > { %14334 = vst [vmem:[#allocation284_spill] sm:$0xff] %v11913_v50  ;;  %v11920_v42 = vadd.f32 %v8645_v31, %v2112_v15  ;;  %v2132_v41 = vpop.f32.mrf.mxu0  ;;  %9070 = vmatprep.mubr.f32.mxu1 %v14341_v44  ;;  %9159 = vmatpush3.msra.mxu0 %v14333_v12  ;;  %v14347_v15 = vld [vmem:[#allocation308_spill] sm:$0xff]  ;;  %v14349_v12 = vld [vmem:[#allocation123_spill] sm:$0xff] }
 0x1d6   : > { %v2133_v21 = vadd.f32 %v2132_v41, %v14342_v40  ;;  %v2675_v50 = vpop.f32.mrf.mxu1  ;;  %9277 = vmatpush3.msra.mxu1 %v14336_v26  ;;  %9160 = vmatprep.subr.mxu0 %v14343_v13  ;;  %v14348_v44 = vld [vmem:[#allocation72_spill] sm:$0xff]  ;;  %v14351_v26 = vld [vmem:[#allocation75_spill] sm:$0xff] }
 0x1d7   : > { %14340 = vst [vmem:[#allocation30_spill] sm:$0xff] %v11920_v42  ;;  %v11927_v56 = vadd.f32 %v2675_v50, %v2105_v37  ;;  %v8536_v39 = vpop.f32.mrf.mxu0  ;;  %8959 = vmatmul.mubr.f32.gmra.mxu0 %v14345_v2  ;;  %9278 = vmatprep.subr.mxu1 %v14346_v30  ;;  %v14352_v37 = vld [vmem:[#allocation309_spill] sm:$0xff]  ;;  %v14353_v2 = vld [vmem:[#allocation304_spill] sm:$0xff] }
 0x1d8   : > { %v2154_v31 = vadd.f32 %v8536_v39, %v14347_v15  ;;  %v8648_v42 = vpop.f32.mrf.mxu1  ;;  %9071 = vmatmul.mubr.f32.gmra.mxu1 %v14348_v44  ;;  %8961 = vmatprep.mubr.f32.mxu0 %v14349_v12  ;;  %v14355_v44 = vld [vmem:[#allocation126_spill] sm:$0xff] }
 0x1d9   : > { %14344 = vst [vmem:[#allocation287_spill] sm:$0xff] %v11927_v56  ;;  %v11934_v41 = vadd.f32 %v8648_v42, %v2126_v4  ;;  %v2146_v40 = vpop.f32.mrf.mxu0  ;;  %9073 = vmatprep.mubr.f32.mxu1 %v14351_v26  ;;  %9161 = vmatpush3.msra.mxu0 %v14343_v13  ;;  %v14356_v12 = vld [vmem:[#allocation302_spill] sm:$0xff]  ;;  %v14358_v26 = vld [vmem:[#allocation80_spill] sm:$0xff]  ;;  %v14359_v13 = vld [vmem:[#allocation129_spill] sm:$0xff] }
 0x1da   : > { %v2147_v50 = vadd.f32 %v2146_v40, %v14352_v37  ;;  %v2691_v56 = vpop.f32.mrf.mxu1  ;;  %9279 = vmatpush3.msra.mxu1 %v14346_v30  ;;  %9162 = vmatprep.subr.mxu0 %v14353_v2  ;;  %v14357_v4 = vld [vmem:[#allocation310_spill] sm:$0xff]  ;;  %v14361_v30 = vld [vmem:[#allocation85_spill] sm:$0xff] }
 0x1db   : > { %14350 = vst [vmem:[#allocation9_spill] sm:$0xff] %v11934_v41  ;;  %v11941_v39 = vadd.f32 %v2691_v56, %v2119_v49  ;;  %v8539_v15 = vpop.f32.mrf.mxu0  ;;  %8962 = vmatmul.mubr.f32.gmra.mxu0 %v14355_v44  ;;  %9280 = vmatprep.subr.mxu1 %v14356_v12  ;;  %v14362_v49 = vld [vmem:[#allocation311_spill] sm:$0xff] }
 0x1dc   : > { %v2168_v42 = vadd.f32 %v8539_v15, %v14357_v4  ;;  %v8651_v41 = vpop.f32.mrf.mxu1  ;;  %9074 = vmatmul.mubr.f32.gmra.mxu1 %v14358_v26  ;;  %8964 = vmatprep.mubr.f32.mxu0 %v14359_v13  ;;  %v14363_v44 = vld [vmem:[#allocation7_spill] sm:$0xff]  ;;  %v14365_v26 = vld [vmem:[#allocation134_spill] sm:$0xff] }
 0x1dd   : > { %14354 = vst [vmem:[#allocation32_spill] sm:$0xff] %v11941_v39  ;;  %v11948_v40 = vadd.f32 %v8651_v41, %v2140_v58  ;;  %v2160_v37 = vpop.f32.mrf.mxu0  ;;  %9076 = vmatprep.mubr.f32.mxu1 %v14361_v30  ;;  %9163 = vmatpush3.msra.mxu0 %v14353_v2  ;;  %v14366_v58 = vld [vmem:[#allocation312_spill] sm:$0xff]  ;;  %v14367_v30 = vld [vmem:[#allocation90_spill] sm:$0xff]  ;;  %v14368_v2 = vld [vmem:[#allocation137_spill] sm:$0xff] }
 0x1de   : > { %v2161_v56 = vadd.f32 %v2160_v37, %v14362_v49  ;;  %v2707_v39 = vpop.f32.mrf.mxu1  ;;  %9281 = vmatpush3.msra.mxu1 %v14356_v12  ;;  %9378 = vmatprep.subr.mxu0 %v14363_v44  ;;  %v14369_v12 = vld [vmem:[#allocation93_spill] sm:$0xff] }
 0x1df   : > { %14360 = vst [vmem:[#allocation289_spill] sm:$0xff] %v11948_v40  ;;  %v11955_v15 = vadd.f32 %v2707_v39, %v2133_v21  ;;  %v8542_v4 = vpop.f32.mrf.mxu0  ;;  %8965 = vmatmul.mubr.f32.gmra.mxu0 %v14365_v26  ;;  %9496 = vmatprep.subr.mxu1 %v11165_v11  ;;  %v14370_v40 = vld [vmem:[#allocation313_spill] sm:$0xff] }
 0x1e0   : > { %v2182_v41 = vadd.f32 %v8542_v4, %v14366_v58  ;;  %v8654_v13 = vpop.f32.mrf.mxu1  ;;  %9077 = vmatmul.mubr.f32.gmra.mxu1 %v14367_v30  ;;  %8967 = vmatprep.mubr.f32.mxu0 %v14368_v2  ;;  %v14375_v30 = vld [vmem:[#allocation148_spill] sm:$0xff]  ;;  %v14376_v2 = vld [vmem:[#allocation99_spill] sm:$0xff] }
 0x1e1   : > { %14364 = vst [vmem:[#allocation52_spill] sm:$0xff] %v11955_v15  ;;  %v11962_v37 = vadd.f32 %v8654_v13, %v2154_v31  ;;  %v2174_v49 = vpop.f32.mrf.mxu0  ;;  %9079 = vmatprep.mubr.f32.mxu1 %v14369_v12  ;;  %v14377_v12 = vld [vmem:[#allocation315_spill] sm:$0xff] }
 0x1e2   : > { %v2175_v21 = vadd.f32 %v2174_v49, %v14370_v40  ;;  %v2723_v39 = vpop.f32.mrf.mxu1 }
 0x1e3   : > { %v11966_v15 = vadd.f32 %v2723_v39, %v2147_v50  ;;  %v8545_v26 = vpop.f32.mrf.mxu0  ;;  %8968 = vmatmul.mubr.f32.gmra.mxu0 %v14372_v63 }
 0x1e4   : > { %v2196_v4 = vadd.f32 %v8545_v26, %v14373_v25  ;;  %v8657_v58 = vpop.f32.mrf.mxu1  ;;  %9080 = vmatmul.mubr.f32.gmra.mxu1 %v14374_v3  ;;  %8970 = vmatprep.mubr.f32.mxu0 %v14375_v30  ;;  %v14379_v26 = vld [vmem:[#allocation104_spill] sm:$0xff] }
 0x1e5   : > { %14371 = vst [vmem:[#allocation292_spill] sm:$0xff] %v11966_v15  ;;  %v11972_v31 = vadd.f32 %v8657_v58, %v2168_v42  ;;  %v2188_v13 = vpop.f32.mrf.mxu0  ;;  %9082 = vmatprep.mubr.f32.mxu1 %v14376_v2  ;;  %v14378_v15 = vld [vmem:[#allocation150_spill] sm:$0xff]  ;;  %v14380_v3 = vld [vmem:[#allocation156_spill] sm:$0xff]  ;;  %v14381_v58 = vld [vmem:[#allocation107_spill] sm:$0xff] }
 0x1e6   : > { %v2189_v40 = vadd.f32 %v2188_v13, %v14377_v12  ;;  %v2739_v49 = vpop.f32.mrf.mxu1  ;;  %v14382_v2 = vld [vmem:[#allocation161_spill] sm:$0xff] }
 0x1e7   : > { %v11976_v50 = vadd.f32 %v2739_v49, %v2161_v56  ;;  %v8548_v39 = vpop.f32.mrf.mxu0  ;;  %8971 = vmatmul.mubr.f32.gmra.mxu0 %v14378_v15 }
 0x1e8   : > { %v2210_v25 = vadd.f32 %v8548_v39, %v11638_v54  ;;  %v8660_v63 = vpop.f32.mrf.mxu1  ;;  %9083 = vmatmul.mubr.f32.gmra.mxu1 %v14379_v26  ;;  %8973 = vmatprep.mubr.f32.mxu0 %v14380_v3  ;;  %v14383_v39 = vld [vmem:[#allocation113_spill] sm:$0xff]  ;;  %v14384_v26 = vld [vmem:[#allocation163_spill] sm:$0xff] }
 0x1e9   : > { %v11982_v30 = vadd.f32 %v8660_v63, %v2182_v41  ;;  %v2202_v42 = vpop.f32.mrf.mxu0  ;;  %9085 = vmatprep.mubr.f32.mxu1 %v14381_v58  ;;  %v14385_v63 = vld [vmem:[#allocation117_spill] sm:$0xff]  ;;  %v14386_v58 = vld [vmem:[#allocation166_spill] sm:$0xff] }
 0x1ea   : > { %v2203_v12 = vadd.f32 %v2202_v42, %v11642_v19  ;;  %v2755_v13 = vpop.f32.mrf.mxu1 }
 0x1eb   : > { %v11986_v56 = vadd.f32 %v2755_v13, %v2175_v21  ;;  %v8551_v49 = vpop.f32.mrf.mxu0  ;;  %8974 = vmatmul.mubr.f32.gmra.mxu0 %v14382_v2 }
 0x1ec   : > { %v2224_v54 = vadd.f32 %v8551_v49, %v11648_v48  ;;  %v8663_v15 = vpop.f32.mrf.mxu1  ;;  %9086 = vmatmul.mubr.f32.gmra.mxu1 %v14383_v39  ;;  %8976 = vmatprep.mubr.f32.mxu0 %v14384_v26  ;;  %v14387_v49 = vld [vmem:[#allocation120_spill] sm:$0xff]  ;;  %v14388_v39 = vld [vmem:[#allocation169_spill] sm:$0xff] }
 0x1ed   : > { %v11992_v3 = vadd.f32 %v8663_v15, %v2196_v4  ;;  %v2216_v41 = vpop.f32.mrf.mxu0  ;;  %9088 = vmatprep.mubr.f32.mxu1 %v14385_v63  ;;  %v14389_v15 = vld [vmem:[#allocation125_spill] sm:$0xff] }
 0x1ee   : > { %v2217_v19 = vadd.f32 %v2216_v41, %v11652_v22  ;;  %v2771_v42 = vpop.f32.mrf.mxu1 }
 0x1ef   : > { %v11996_v21 = vadd.f32 %v2771_v42, %v2189_v40  ;;  %v8694_v13 = vpop.f32.mrf.mxu0  ;;  %8977 = vmatmul.mubr.f32.gmra.mxu0 %v14386_v58  ;;  %v14390_v42 = vld [vmem:[#allocation174_spill] sm:$0xff] }
 0x1f0   : > { %v8666_v2 = vpop.f32.mrf.mxu1  ;;  %v2922_v48 = vadd.f32 %v8694_v13, %v11658_v29  ;;  %9089 = vmatmul.mubr.f32.gmra.mxu1 %v14387_v49  ;;  %8979 = vmatprep.mubr.f32.mxu0 %v14388_v39  ;;  %v14391_v13 = vld [vmem:[#allocation177_spill] sm:$0xff] }
 0x1f1   : > { %v12002_v4 = vadd.f32 %v8666_v2, %v2210_v25  ;;  %v2915_v26 = vpop.f32.mrf.mxu0  ;;  %9091 = vmatprep.mubr.f32.mxu1 %v14389_v15  ;;  %v14392_v2 = vld [vmem:[#allocation133_spill] sm:$0xff] }
 0x1f2   : > { %v2787_v63 = vpop.f32.mrf.mxu1  ;;  %v2916_v22 = vadd.f32 %v2915_v26, %v11662_v57  ;;  %v14393_v26 = vld [vmem:[#allocation182_spill] sm:$0xff] }
 0x1f3   : > { %v12006_v40 = vadd.f32 %v2787_v63, %v2203_v12  ;;  %v8697_v41 = vpop.f32.mrf.mxu0  ;;  %8980 = vmatmul.mubr.f32.gmra.mxu0 %v14390_v42 }
 0x1f4   : > { %v8669_v58 = vpop.f32.mrf.mxu1  ;;  %v2934_v29 = vadd.f32 %v8697_v41, %v11668_v55  ;;  %9092 = vmatmul.mubr.f32.gmra.mxu1 %v14230_v0  ;;  %8982 = vmatprep.mubr.f32.mxu0 %v14391_v13  ;;  %v14394_v41 = vld [vmem:[#allocation136_spill] sm:$0xff]  ;;  %v14397_v13 = vld [vmem:[#allocation139_spill] sm:$0xff] }
 0x1f5   : > { %v12012_v25 = vadd.f32 %v8669_v58, %v2224_v54  ;;  %v2927_v39 = vpop.f32.mrf.mxu0  ;;  %9094 = vmatprep.mubr.f32.mxu1 %v14392_v2  ;;  %v14395_v0 = vld [vmem:[#allocation188_spill] sm:$0xff] }
 0x1f6   : > { %v2803_v15 = vpop.f32.mrf.mxu1  ;;  %v2928_v57 = vadd.f32 %v2927_v39, %v11672_v38  ;;  %v14399_v39 = vld [vmem:[#allocation190_spill] sm:$0xff] }
 0x1f7   : > { %v12016_v12 = vadd.f32 %v2803_v15, %v2217_v19  ;;  %v8700_v63 = vpop.f32.mrf.mxu0  ;;  %8983 = vmatmul.mubr.f32.gmra.mxu0 %v14393_v26  ;;  %v14400_v26 = vld [vmem:[#allocation144_spill] sm:$0xff] }
 0x1f8   : > { %v2946_v42 = vadd.f32 %v8700_v63, %v11678_v10  ;;  %v8812_v55 = vpop.f32.mrf.mxu1  ;;  %9095 = vmatmul.mubr.f32.gmra.mxu1 %v14394_v41  ;;  %8985 = vmatprep.mubr.f32.mxu0 %v14395_v0  ;;  %v14401_v41 = vld [vmem:[#allocation196_spill] sm:$0xff] }
 0x1f9   : > { %v12022_v54 = vadd.f32 %v8812_v55, %v2922_v48  ;;  %v2939_v58 = vpop.f32.mrf.mxu0  ;;  %9097 = vmatprep.mubr.f32.mxu1 %v14397_v13  ;;  %v14403_v55 = vld [vmem:[#allocation147_spill] sm:$0xff] }
 0x1fa   : > { %v2940_v2 = vadd.f32 %v2939_v58, %v11682_v28  ;;  %v3375_v38 = vpop.f32.mrf.mxu1 }
 0x1fb   : > { %14396 = vst [vmem:[#allocation18_spill] sm:$0xff] %v12022_v54  ;;  %v12026_v19 = vadd.f32 %v3375_v38, %v2916_v22  ;;  %v8703_v15 = vpop.f32.mrf.mxu0  ;;  %8986 = vmatmul.mubr.f32.gmra.mxu0 %v14399_v39  ;;  %v14406_v39 = vld [vmem:[#allocation153_spill] sm:$0xff]  ;;  %v14407_v54 = vld [vmem:[#allocation203_spill] sm:$0xff] }
 0x1fc   : > { %v2958_v10 = vadd.f32 %v8703_v15, %v11688_v53  ;;  %v8815_v63 = vpop.f32.mrf.mxu1  ;;  %9098 = vmatmul.mubr.f32.gmra.mxu1 %v14400_v26  ;;  %8988 = vmatprep.mubr.f32.mxu0 %v14401_v41 }
 0x1fd   : > { %14398 = vst [vmem:[#allocation54_spill] sm:$0xff] %v12026_v19  ;;  %v12032_v0 = vadd.f32 %v8815_v63, %v2934_v29  ;;  %v2951_v48 = vpop.f32.mrf.mxu0  ;;  %9100 = vmatprep.mubr.f32.mxu1 %v14403_v55  ;;  %v14405_v19 = vld [vmem:[#allocation201_spill] sm:$0xff] }
 0x1fe   : > { %v2952_v28 = vadd.f32 %v2951_v48, %v11692_v9  ;;  %v3387_v58 = vpop.f32.mrf.mxu1  ;;  %v14409_v63 = vld [vmem:[#allocation157_spill] sm:$0xff] }
 0x1ff   : > { %14402 = vst [vmem:[#allocation294_spill] sm:$0xff] %v12032_v0  ;;  %v12036_v22 = vadd.f32 %v3387_v58, %v2928_v57  ;;  %v8706_v38 = vpop.f32.mrf.mxu0  ;;  %8989 = vmatmul.mubr.f32.gmra.mxu0 %v14405_v19  ;;  %v14413_v0 = vld [vmem:[#allocation209_spill] sm:$0xff] }
 0x200   : > { %v2970_v53 = vadd.f32 %v8706_v38, %v11698_v52  ;;  %v8818_v15 = vpop.f32.mrf.mxu1  ;;  %9101 = vmatmul.mubr.f32.gmra.mxu1 %v14406_v39  ;;  %8991 = vmatprep.mubr.f32.mxu0 %v14407_v54  ;;  %v14412_v38 = vld [vmem:[#allocation160_spill] sm:$0xff] }
 0x201   : > { %14404 = vst [vmem:[#allocation57_spill] sm:$0xff] %v12036_v22  ;;  %v12042_v29 = vadd.f32 %v8818_v15, %v2946_v42  ;;  %v2963_v41 = vpop.f32.mrf.mxu0  ;;  %9103 = vmatprep.mubr.f32.mxu1 %v14409_v63  ;;  %v14411_v22 = vld [vmem:[#allocation206_spill] sm:$0xff]  ;;  %v14415_v15 = vld [vmem:[#allocation165_spill] sm:$0xff] }
 0x202   : > { %v2964_v9 = vadd.f32 %v2963_v41, %v11702_v36  ;;  %v3399_v48 = vpop.f32.mrf.mxu1 }
 0x203   : > { %14408 = vst [vmem:[#allocation296_spill] sm:$0xff] %v12042_v29  ;;  %v12046_v57 = vadd.f32 %v3399_v48, %v2940_v2  ;;  %v8709_v58 = vpop.f32.mrf.mxu0  ;;  %8992 = vmatmul.mubr.f32.gmra.mxu0 %v14411_v22  ;;  %v14419_v29 = vld [vmem:[#allocation217_spill] sm:$0xff] }
 0x204   : > { %v2982_v52 = vadd.f32 %v8709_v58, %v11708_v8  ;;  %v8821_v19 = vpop.f32.mrf.mxu1  ;;  %9104 = vmatmul.mubr.f32.gmra.mxu1 %v14412_v38  ;;  %8994 = vmatprep.mubr.f32.mxu0 %v14413_v0  ;;  %v14418_v58 = vld [vmem:[#allocation170_spill] sm:$0xff] }
 0x205   : > { %14410 = vst [vmem:[#allocation58_spill] sm:$0xff] %v12046_v57  ;;  %v12052_v42 = vadd.f32 %v8821_v19, %v2958_v10  ;;  %v2975_v54 = vpop.f32.mrf.mxu0  ;;  %9106 = vmatprep.mubr.f32.mxu1 %v14415_v15  ;;  %v14417_v57 = vld [vmem:[#allocation214_spill] sm:$0xff]  ;;  %v14421_v19 = vld [vmem:[#allocation173_spill] sm:$0xff] }
 0x206   : > { %v2976_v36 = vadd.f32 %v2975_v54, %v11712_v7  ;;  %v3411_v41 = vpop.f32.mrf.mxu1 }
 0x207   : > { %14414 = vst [vmem:[#allocation60_spill] sm:$0xff] %v12052_v42  ;;  %v12056_v2 = vadd.f32 %v3411_v41, %v2952_v28  ;;  %v8712_v48 = vpop.f32.mrf.mxu0  ;;  %8995 = vmatmul.mubr.f32.gmra.mxu0 %v14417_v57  ;;  %v14425_v42 = vld [vmem:[#allocation228_spill] sm:$0xff] }
 0x208   : > { %v2994_v8 = vadd.f32 %v8712_v48, %v11718_v62  ;;  %v8824_v22 = vpop.f32.mrf.mxu1  ;;  %9107 = vmatmul.mubr.f32.gmra.mxu1 %v14418_v58  ;;  %8997 = vmatprep.mubr.f32.mxu0 %v14419_v29  ;;  %v14424_v48 = vld [vmem:[#allocation176_spill] sm:$0xff] }
 0x209   : > { %14416 = vst [vmem:[#allocation299_spill] sm:$0xff] %v12056_v2  ;;  %v12062_v10 = vadd.f32 %v8824_v22, %v2970_v53  ;;  %v2987_v0 = vpop.f32.mrf.mxu0  ;;  %9109 = vmatprep.mubr.f32.mxu1 %v14421_v19  ;;  %v14423_v2 = vld [vmem:[#allocation222_spill] sm:$0xff]  ;;  %v14427_v22 = vld [vmem:[#allocation179_spill] sm:$0xff] }
 0x20a   : > { %v2988_v7 = vadd.f32 %v2987_v0, %v11722_v23  ;;  %v3423_v54 = vpop.f32.mrf.mxu1 }
 0x20b   : > { %14420 = vst [vmem:[#allocation272_spill] sm:$0xff] %v12062_v10  ;;  %v12066_v28 = vadd.f32 %v3423_v54, %v2964_v9  ;;  %v8715_v41 = vpop.f32.mrf.mxu0  ;;  %8998 = vmatmul.mubr.f32.gmra.mxu0 %v14423_v2  ;;  %v14443_v10 = vld [vmem:[#allocation248_spill] sm:$0xff] }
 0x20c   : > { %v3006_v62 = vadd.f32 %v8715_v41, %v11728_v59  ;;  %v8827_v57 = vpop.f32.mrf.mxu1  ;;  %9110 = vmatmul.mubr.f32.gmra.mxu1 %v14424_v48  ;;  %9000 = vmatprep.mubr.f32.mxu0 %v14425_v42  ;;  %v14430_v41 = vld [vmem:[#allocation236_spill] sm:$0xff] }
 0x20d   : > { %14422 = vst [vmem:[#allocation66_spill] sm:$0xff] %v12066_v28  ;;  %v12072_v53 = vadd.f32 %v8827_v57, %v2982_v52  ;;  %v2999_v29 = vpop.f32.mrf.mxu0  ;;  %9112 = vmatprep.mubr.f32.mxu1 %v14427_v22  ;;  %v14429_v28 = vld [vmem:[#allocation233_spill] sm:$0xff]  ;;  %v14432_v57 = vld [vmem:[#allocation187_spill] sm:$0xff] }
 0x20e   : > { %v3000_v23 = vadd.f32 %v2999_v29, %v11732_v16  ;;  %v3435_v0 = vpop.f32.mrf.mxu1 }
 0x20f   : > { %14426 = vst [vmem:[#allocation76_spill] sm:$0xff] %v12072_v53  ;;  %v12076_v9 = vadd.f32 %v3435_v0, %v2976_v36  ;;  %v8718_v54 = vpop.f32.mrf.mxu0  ;;  %9001 = vmatmul.mubr.f32.gmra.mxu0 %v14429_v28  ;;  %v14442_v53 = vld [vmem:[#allocation200_spill] sm:$0xff] }
 0x210   : > { %v3018_v59 = vadd.f32 %v8718_v54, %v11738_v6  ;;  %v8830_v2 = vpop.f32.mrf.mxu1  ;;  %9113 = vmatmul.mubr.f32.gmra.mxu1 %v14246_v35  ;;  %9003 = vmatprep.mubr.f32.mxu0 %v14430_v41  ;;  %v14435_v54 = vld [vmem:[#allocation243_spill] sm:$0xff]  ;;  %v14437_v41 = vld [vmem:[#allocation197_spill] sm:$0xff] }
 0x211   : > { %14428 = vst [vmem:[#allocation278_spill] sm:$0xff] %v12076_v9  ;;  %v12082_v52 = vadd.f32 %v8830_v2, %v2994_v8  ;;  %v3011_v42 = vpop.f32.mrf.mxu0  ;;  %9115 = vmatprep.mubr.f32.mxu1 %v14432_v57  ;;  %v14434_v9 = vld [vmem:[#allocation240_spill] sm:$0xff] }
 0x212   : > { %v3012_v16 = vadd.f32 %v3011_v42, %v11742_v24  ;;  %v3447_v29 = vpop.f32.mrf.mxu1 }
 0x213   : > { %14431 = vst [vmem:[#allocation81_spill] sm:$0xff] %v12082_v52  ;;  %v12086_v36 = vadd.f32 %v3447_v29, %v2988_v7  ;;  %v8721_v0 = vpop.f32.mrf.mxu0  ;;  %9004 = vmatmul.mubr.f32.gmra.mxu0 %v14434_v9  ;;  %v14438_v52 = vld [vmem:[#allocation184_spill] sm:$0xff]  ;;  %v14441_v9 = vld [vmem:[#allocation193_spill] sm:$0xff] }
 0x214   : > { %v3030_v6 = vadd.f32 %v8721_v0, %v11748_v5  ;;  %v8833_v28 = vpop.f32.mrf.mxu1  ;;  %9116 = vmatmul.mubr.f32.gmra.mxu1 %v14248_v45  ;;  %9006 = vmatprep.mubr.f32.mxu0 %v14435_v54  ;;  %v14445_v54 = vld [vmem:[#allocation205_spill] sm:$0xff] }
 0x215   : > { %14433 = vst [vmem:[#allocation84_spill] sm:$0xff] %v12086_v36  ;;  %v12092_v8 = vadd.f32 %v8833_v28, %v3006_v62  ;;  %v3023_v2 = vpop.f32.mrf.mxu0  ;;  %9118 = vmatprep.mubr.f32.mxu1 %v14437_v41  ;;  %v14440_v36 = vld [vmem:[#allocation246_spill] sm:$0xff] }
 0x216   : > { %v3024_v24 = vadd.f32 %v3023_v2, %v14438_v52  ;;  %v3459_v42 = vpop.f32.mrf.mxu1 }
 0x217   : > { %14436 = vst [vmem:[#allocation283_spill] sm:$0xff] %v12092_v8  ;;  %v12096_v7 = vadd.f32 %v3459_v42, %v3000_v23  ;;  %v8724_v29 = vpop.f32.mrf.mxu0  ;;  %9007 = vmatmul.mubr.f32.gmra.mxu0 %v14440_v36  ;;  %v14446_v8 = vld [vmem:[#allocation6_spill] sm:$0xff] }
 0x218   : > { %v3042_v5 = vadd.f32 %v8724_v29, %v14441_v9  ;;  %v8836_v0 = vpop.f32.mrf.mxu1  ;;  %9119 = vmatmul.mubr.f32.gmra.mxu1 %v14442_v53  ;;  %9009 = vmatprep.mubr.f32.mxu0 %v14443_v10  ;;  %v14449_v9 = vld [vmem:[#allocation210_spill] sm:$0xff] }
 0x219   : > { %14439 = vst [vmem:[#allocation86_spill] sm:$0xff] %v12096_v7  ;;  %v12102_v62 = vadd.f32 %v8836_v0, %v3018_v59  ;;  %v3035_v28 = vpop.f32.mrf.mxu0  ;;  %9121 = vmatprep.mubr.f32.mxu1 %v14445_v54  ;;  %v14448_v7 = vld [vmem:[#allocation254_spill] sm:$0xff]  ;;  %v14452_v0 = vld [vmem:[#allocation213_spill] sm:$0xff]  ;;  %v14457_v54 = vld [vmem:[#allocation216_spill] sm:$0xff] }
 0x21a   : > { %v3036_v52 = vadd.f32 %v3035_v28, %v14446_v8  ;;  %v3471_v2 = vpop.f32.mrf.mxu1  ;;  %v14450_v53 = vld [vmem:[#allocation258_spill] sm:$0xff] }
 0x21b   : > { %14444 = vst [vmem:[#allocation91_spill] sm:$0xff] %v12102_v62  ;;  %v12106_v23 = vadd.f32 %v3471_v2, %v3012_v16  ;;  %v8727_v42 = vpop.f32.mrf.mxu0  ;;  %9010 = vmatmul.mubr.f32.gmra.mxu0 %v14448_v7  ;;  %v14453_v62 = vld [vmem:[#allocation10_spill] sm:$0xff]  ;;  %v14456_v7 = vld [vmem:[#allocation17_spill] sm:$0xff] }
 0x21c   : > { %v3054_v36 = vadd.f32 %v8727_v42, %v11768_v60  ;;  %v8839_v29 = vpop.f32.mrf.mxu1  ;;  %9122 = vmatmul.mubr.f32.gmra.mxu1 %v14449_v9  ;;  %9012 = vmatprep.mubr.f32.mxu0 %v14450_v53  ;;  %v14458_v9 = vld [vmem:[#allocation264_spill] sm:$0xff] }
 0x21d   : > { %14447 = vst [vmem:[#allocation285_spill] sm:$0xff] %v12106_v23  ;;  %v12112_v10 = vadd.f32 %v8839_v29, %v3030_v6  ;;  %v3047_v59 = vpop.f32.mrf.mxu0  ;;  %9124 = vmatprep.mubr.f32.mxu1 %v14452_v0  ;;  %v14455_v23 = vld [vmem:[#allocation261_spill] sm:$0xff]  ;;  %v14460_v29 = vld [vmem:[#allocation219_spill] sm:$0xff] }
 0x21e   : > { %v3048_v8 = vadd.f32 %v3047_v59, %v14453_v62  ;;  %v3483_v28 = vpop.f32.mrf.mxu1 }
 0x21f   : > { %14451 = vst [vmem:[#allocation94_spill] sm:$0xff] %v12112_v10  ;;  %v12116_v16 = vadd.f32 %v3483_v28, %v3024_v24  ;;  %v8730_v2 = vpop.f32.mrf.mxu0  ;;  %9013 = vmatmul.mubr.f32.gmra.mxu0 %v14455_v23  ;;  %v14461_v10 = vld [vmem:[#allocation26_spill] sm:$0xff] }
 0x220   : > { %v3066_v60 = vadd.f32 %v8730_v2, %v14456_v7  ;;  %v8842_v42 = vpop.f32.mrf.mxu1  ;;  %9125 = vmatmul.mubr.f32.gmra.mxu1 %v14457_v54  ;;  %9015 = vmatprep.mubr.f32.mxu0 %v14458_v9  ;;  %v14464_v7 = vld [vmem:[#allocation224_spill] sm:$0xff] }
 0x221   : > { %14454 = vst [vmem:[#allocation97_spill] sm:$0xff] %v12116_v16  ;;  %v12122_v53 = vadd.f32 %v8842_v42, %v3042_v5  ;;  %v3059_v6 = vpop.f32.mrf.mxu0  ;;  %9127 = vmatprep.mubr.f32.mxu1 %v14460_v29  ;;  %v14463_v16 = vld [vmem:[#allocation266_spill] sm:$0xff]  ;;  %v14465_v54 = vld [vmem:[#allocation268_spill] sm:$0xff]  ;;  %v14467_v42 = vld [vmem:[#allocation227_spill] sm:$0xff] }
 0x222   : > { %v3060_v62 = vadd.f32 %v3059_v6, %v14461_v10  ;;  %v3495_v59 = vpop.f32.mrf.mxu1 }
 0x223   : > { %14459 = vst [vmem:[#allocation291_spill] sm:$0xff] %v12122_v53  ;;  %v12126_v24 = vadd.f32 %v3495_v59, %v3036_v52  ;;  %v8733_v28 = vpop.f32.mrf.mxu0  ;;  %9016 = vmatmul.mubr.f32.gmra.mxu0 %v14463_v16  ;;  %v14471_v53 = vld [vmem:[#allocation270_spill] sm:$0xff] }
 0x224   : > { %v3078_v23 = vadd.f32 %v8733_v28, %v11788_v1  ;;  %v8845_v2 = vpop.f32.mrf.mxu1  ;;  %9128 = vmatmul.mubr.f32.gmra.mxu1 %v14464_v7  ;;  %9018 = vmatprep.mubr.f32.mxu0 %v14465_v54  ;;  %v14470_v28 = vld [vmem:[#allocation232_spill] sm:$0xff] }
 0x225   : > { %14462 = vst [vmem:[#allocation102_spill] sm:$0xff] %v12126_v24  ;;  %v12132_v5 = vadd.f32 %v8845_v2, %v3054_v36  ;;  %v3071_v9 = vpop.f32.mrf.mxu0  ;;  %9130 = vmatprep.mubr.f32.mxu1 %v14467_v42  ;;  %v14469_v24 = vld [vmem:[#allocation269_spill] sm:$0xff]  ;;  %v14690_v42 = vld [vmem:[#allocation267_spill] sm:$0xff] }
 0x226   : > { %v3072_v10 = vadd.f32 %v3071_v9, %v11792_v20  ;;  %v3507_v6 = vpop.f32.mrf.mxu1  ;;  %v14473_v2 = vld [vmem:[#allocation237_spill] sm:$0xff] }
 0x227   : > { %14466 = vst [vmem:[#allocation108_spill] sm:$0xff] %v12132_v5  ;;  %v12136_v52 = vadd.f32 %v3507_v6, %v3048_v8  ;;  %v8736_v59 = vpop.f32.mrf.mxu0  ;;  %9019 = vmatmul.mubr.f32.gmra.mxu0 %v14469_v24  ;;  %v14477_v5 = vld [vmem:[#allocation14_spill] sm:$0xff] }
 0x228   : > { %v3090_v1 = vadd.f32 %v8736_v59, %v11798_v33  ;;  %v8848_v16 = vpop.f32.mrf.mxu1  ;;  %9131 = vmatmul.mubr.f32.gmra.mxu1 %v14470_v28  ;;  %9021 = vmatprep.mubr.f32.mxu0 %v14471_v53  ;;  %v14476_v59 = vld [vmem:[#allocation242_spill] sm:$0xff]  ;;  %v14678_v28 = vld [vmem:[#allocation255_spill] sm:$0xff] }
 0x229   : > { %14468 = vst [vmem:[#allocation297_spill] sm:$0xff] %v12136_v52  ;;  %v12142_v54 = vadd.f32 %v8848_v16, %v3066_v60  ;;  %v3083_v36 = vpop.f32.mrf.mxu0  ;;  %9133 = vmatprep.mubr.f32.mxu1 %v14473_v2  ;;  %v14475_v52 = vld [vmem:[#allocation271_spill] sm:$0xff]  ;;  %v14479_v16 = vld [vmem:[#allocation245_spill] sm:$0xff] }
 0x22a   : > { %v3084_v20 = vadd.f32 %v3083_v36, %v11804_v43  ;;  %v3519_v9 = vpop.f32.mrf.mxu1  ;;  %v14677_v2 = vld [vmem:[#allocation263_spill] sm:$0xff] }
 0x22b   : > { %14472 = vst [vmem:[#allocation110_spill] sm:$0xff] %v12142_v54  ;;  %v12146_v8 = vadd.f32 %v3519_v9, %v3060_v62  ;;  %v8739_v6 = vpop.f32.mrf.mxu0  ;;  %9022 = vmatmul.mubr.f32.gmra.mxu0 %v14475_v52  ;;  %v14480_v54 = vld [vmem:[#allocation274_spill] sm:$0xff] }
 0x22c   : > { %v3102_v33 = vadd.f32 %v8739_v6, %v11810_v51  ;;  %v8851_v24 = vpop.f32.mrf.mxu1  ;;  %9134 = vmatmul.mubr.f32.gmra.mxu1 %v14476_v59  ;;  %9164 = vmatprep.mubr.f32.mxu0 %v14477_v5  ;;  %v14483_v6 = vld [vmem:[#allocation250_spill] sm:$0xff]  ;;  %v14484_v59 = vld [vmem:[#allocation21_spill] sm:$0xff] }
 0x22d   : > { %14474 = vst [vmem:[#allocation306_spill] sm:$0xff] %v12146_v8  ;;  %v12152_v60 = vadd.f32 %v8851_v24, %v3078_v23  ;;  %v3095_v53 = vpop.f32.mrf.mxu0  ;;  %9136 = vmatprep.mubr.f32.mxu1 %v14479_v16  ;;  %v14482_v8 = vld [vmem:[#allocation16_spill] sm:$0xff]  ;;  %v14486_v24 = vld [vmem:[#allocation253_spill] sm:$0xff]  ;;  %v14672_v16 = vld [vmem:[#allocation247_spill] sm:$0xff] }
 0x22e   : > { %v3096_v43 = vadd.f32 %v3095_v53, %v14480_v54  ;;  %v3531_v36 = vpop.f32.mrf.mxu1  ;;  %v14487_v54 = vld [vmem:[#allocation276_spill] sm:$0xff] }
 0x22f   : > { %14478 = vst [vmem:[#allocation116_spill] sm:$0xff] %v12152_v60  ;;  %v12156_v62 = vadd.f32 %v3531_v36, %v3072_v10  ;;  %v8742_v9 = vpop.f32.mrf.mxu0  ;;  %9165 = vmatmul.mubr.f32.vlgmr.msra.gmra.mxu0 %v14482_v8  ;;  %v14488_v36 = vld [vmem:[#allocation25_spill] sm:$0xff]  ;;  %v14494_v60 = vld [vmem:[#allocation20_spill] sm:$0xff] }
 0x230   : > { %v3114_v51 = vadd.f32 %v8742_v9, %v11822_v32  ;;  %v8854_v52 = vpop.f32.mrf.mxu1  ;;  %9137 = vmatmul.mubr.f32.gmra.mxu1 %v14483_v6  ;;  %9167 = vmatprep.mubr.f32.mxu0 %v14484_v59  ;;  %v14490_v9 = vld [vmem:[#allocation23_spill] sm:$0xff]  ;;  %v14671_v6 = vld [vmem:[#allocation256_spill] sm:$0xff] }
 0x231   : > { %14481 = vst [vmem:[#allocation307_spill] sm:$0xff] %v12156_v62  ;;  %v12162_v23 = vadd.f32 %v8854_v52, %v3090_v1  ;;  %v3107_v5 = vpop.f32.mrf.mxu0  ;;  %9139 = vmatprep.mubr.f32.mxu1 %v14486_v24  ;;  %9379 = vmatpush3.msra.mxu0 %v14363_v44  ;;  %v14491_v1 = vld [vmem:[#allocation257_spill] sm:$0xff]  ;;  %v14492_v52 = vld [vmem:[#allocation34_spill] sm:$0xff] }
 0x232   : > { %v3108_v10 = vadd.f32 %v3107_v5, %v14487_v54  ;;  %v3543_v53 = vpop.f32.mrf.mxu1  ;;  %9380 = vmatprep.subr.mxu0 %v14488_v36  ;;  %v14495_v54 = vld [vmem:[#allocation275_spill] sm:$0xff]  ;;  %v14667_v24 = vld [vmem:[#allocation238_spill] sm:$0xff] }
 0x233   : > { %14485 = vst [vmem:[#allocation301_spill] sm:$0xff] %v12162_v23  ;;  %v12168_v8 = vadd.f32 %v3543_v53, %v3084_v20  ;;  %v8745_v32 = vpop.f32.mrf.mxu0  ;;  %9168 = vmatmul.mubr.f32.gmra.mxu0 %v14490_v9 }
 0x234   : > { %v3126_v62 = vadd.f32 %v8745_v32, %v11836_v18  ;;  %v8857_v59 = vpop.f32.mrf.mxu1  ;;  %9140 = vmatmul.mubr.f32.gmra.mxu1 %v14491_v1  ;;  %9170 = vmatprep.mubr.f32.mxu0 %v14492_v52  ;;  %v14497_v32 = vld [vmem:[#allocation37_spill] sm:$0xff] }
 0x235   : > { %14489 = vst [vmem:[#allocation121_spill] sm:$0xff] %v12168_v8  ;;  %v12174_v23 = vadd.f32 %v8857_v59, %v3102_v33  ;;  %v3119_v44 = vpop.f32.mrf.mxu0  ;;  %9282 = vmatprep.mubr.f32.mxu1 %v14494_v60  ;;  %9381 = vmatpush3.msra.mxu0 %v14488_v36  ;;  %v14498_v33 = vld [vmem:[#allocation22_spill] sm:$0xff]  ;;  %v14499_v59 = vld [vmem:[#allocation40_spill] sm:$0xff]  ;;  %v14666_v1 = vld [vmem:[#allocation249_spill] sm:$0xff] }
 0x236   : > { %v3120_v20 = vadd.f32 %v3119_v44, %v11843_v17  ;;  %v3555_v5 = vpop.f32.mrf.mxu1  ;;  %9382 = vmatprep.subr.mxu0 %v14495_v54  ;;  %v14501_v36 = vld [vmem:[#allocation24_spill] sm:$0xff]  ;;  %v14663_v8 = vld [vmem:[#allocation230_spill] sm:$0xff] }
 0x237   : > { %14493 = vst [vmem:[#allocation308_spill] sm:$0xff] %v12174_v23  ;;  %v12180_v53 = vadd.f32 %v3555_v5, %v3096_v43  ;;  %v8748_v18 = vpop.f32.mrf.mxu0  ;;  %9171 = vmatmul.mubr.f32.gmra.mxu0 %v14497_v32  ;;  %v14502_v5 = vld [vmem:[#allocation5_spill] sm:$0xff]  ;;  %v14662_v23 = vld [vmem:[#allocation239_spill] sm:$0xff] }
 0x238   : > { %v3138_v9 = vadd.f32 %v8748_v18, %v11850_v47  ;;  %v8860_v52 = vpop.f32.mrf.mxu1  ;;  %9283 = vmatmul.mubr.f32.vlgmr.msra.gmra.mxu1 %v14498_v33  ;;  %9173 = vmatprep.mubr.f32.mxu0 %v14499_v59  ;;  %v14504_v32 = vld [vmem:[#allocation41_spill] sm:$0xff]  ;;  %v14506_v33 = vld [vmem:[#allocation44_spill] sm:$0xff] }
 0x239   : > { %14496 = vst [vmem:[#allocation123_spill] sm:$0xff] %v12180_v53  ;;  %v12186_v60 = vadd.f32 %v8860_v52, %v3114_v51  ;;  %9497 = vmatpush3.msra.mxu1 %v11165_v11  ;;  %v3131_v17 = vpop.f32.mrf.mxu0  ;;  %9285 = vmatprep.mubr.f32.mxu1 %v14501_v36  ;;  %v14505_v52 = vld [vmem:[#allocation27_spill] sm:$0xff]  ;;  %v14659_v53 = vld [vmem:[#allocation225_spill] sm:$0xff] }
 0x23a   : > { %v3132_v43 = vadd.f32 %v3131_v17, %v11857_v27  ;;  %v3567_v44 = vpop.f32.mrf.mxu1  ;;  %9498 = vmatprep.subr.mxu1 %v14502_v5  ;;  %9383 = vmatpush3.msra.mxu0 %v14495_v54  ;;  %v14508_v17 = vld [vmem:[#allocation39_spill] sm:$0xff]  ;;  %v14509_v54 = vld [vmem:[#allocation8_spill] sm:$0xff] }
 0x23b   : > { %14500 = vst [vmem:[#allocation309_spill] sm:$0xff] %v12186_v60  ;;  %v12193_v47 = vadd.f32 %v3567_v44, %v3108_v10  ;;  %v8751_v18 = vpop.f32.mrf.mxu0  ;;  %9174 = vmatmul.mubr.f32.gmra.mxu0 %v14504_v32  ;;  %9499 = vmatpush3.msra.mxu1 %v14502_v5  ;;  %v14510_v44 = vld [vmem:[#allocation277_spill] sm:$0xff]  ;;  %v14513_v32 = vld [vmem:[#allocation11_spill] sm:$0xff] }
 0x23c   : > { %v3150_v51 = vadd.f32 %v8751_v18, %v11864_v14  ;;  %v8863_v11 = vpop.f32.mrf.mxu1  ;;  %9286 = vmatmul.mubr.f32.gmra.mxu1 %v14505_v52  ;;  %9176 = vmatprep.mubr.f32.mxu0 %v14506_v33  ;;  %v14512_v18 = vld [vmem:[#allocation48_spill] sm:$0xff]  ;;  %v14514_v52 = vld [vmem:[#allocation43_spill] sm:$0xff]  ;;  %v14515_v33 = vld [vmem:[#allocation50_spill] sm:$0xff] }
 0x23d   : > { %14503 = vst [vmem:[#allocation304_spill] sm:$0xff] %v12193_v47  ;;  %v12200_v27 = vadd.f32 %v8863_v11, %v3126_v62  ;;  %v3143_v59 = vpop.f32.mrf.mxu0  ;;  %9288 = vmatprep.mubr.f32.mxu1 %v14508_v17  ;;  %9500 = vmatprep.subr.mxu1 %v14509_v54  ;;  %v14517_v17 = vld [vmem:[#allocation46_spill] sm:$0xff]  ;;  %v14655_v47 = vld [vmem:[#allocation215_spill] sm:$0xff] }
 0x23e   : > { %v3144_v10 = vadd.f32 %v3143_v59, %v11871_v46  ;;  %v3579_v36 = vpop.f32.mrf.mxu1  ;;  %9501 = vmatpush3.msra.mxu1 %v14509_v54  ;;  %9384 = vmatprep.subr.mxu0 %v14510_v44  ;;  %v14658_v60 = vld [vmem:[#allocation231_spill] sm:$0xff] }
 0x23f   : > { %14507 = vst [vmem:[#allocation126_spill] sm:$0xff] %v12200_v27  ;;  %v12207_v14 = vadd.f32 %v3579_v36, %v3120_v20  ;;  %v8754_v5 = vpop.f32.mrf.mxu0  ;;  %9177 = vmatmul.mubr.f32.gmra.mxu0 %v14512_v18  ;;  %9502 = vmatprep.subr.mxu1 %v14513_v32  ;;  %v14518_v36 = vld [vmem:[#allocation282_spill] sm:$0xff]  ;;  %v14520_v18 = vld [vmem:[#allocation56_spill] sm:$0xff]  ;;  %v14654_v27 = vld [vmem:[#allocation223_spill] sm:$0xff] }
 0x240   : > { %v3162_v62 = vadd.f32 %v8754_v5, %v11878_v61  ;;  %v8866_v11 = vpop.f32.mrf.mxu1  ;;  %9289 = vmatmul.mubr.f32.gmra.mxu1 %v14514_v52  ;;  %9179 = vmatprep.mubr.f32.mxu0 %v14515_v33  ;;  %v14521_v52 = vld [vmem:[#allocation273_spill] sm:$0xff] }
 0x241   : > { %14511 = vst [vmem:[#allocation310_spill] sm:$0xff] %v12207_v14  ;;  %v12214_v46 = vadd.f32 %v8866_v11, %v3138_v9  ;;  %v3155_v59 = vpop.f32.mrf.mxu0  ;;  %9291 = vmatprep.mubr.f32.mxu1 %v14517_v17  ;;  %9385 = vmatpush3.msra.mxu0 %v14510_v44  ;;  %v14522_v9 = vld [vmem:[#allocation28_spill] sm:$0xff]  ;;  %v14523_v17 = vld [vmem:[#allocation47_spill] sm:$0xff]  ;;  %v14524_v44 = vld [vmem:[#allocation62_spill] sm:$0xff] }
 0x242   : > { %v3156_v20 = vadd.f32 %v3155_v59, %v11885_v34  ;;  %v3591_v54 = vpop.f32.mrf.mxu1  ;;  %9503 = vmatpush3.msra.mxu1 %v14513_v32  ;;  %9386 = vmatprep.subr.mxu0 %v14518_v36  ;;  %v14526_v32 = vld [vmem:[#allocation49_spill] sm:$0xff]  ;;  %v14651_v14 = vld [vmem:[#allocation207_spill] sm:$0xff] }
 0x243   : > { %14516 = vst [vmem:[#allocation129_spill] sm:$0xff] %v12214_v46  ;;  %v12221_v61 = vadd.f32 %v3591_v54, %v3132_v43  ;;  %v8757_v5 = vpop.f32.mrf.mxu0  ;;  %9180 = vmatmul.mubr.f32.gmra.mxu0 %v14520_v18  ;;  %9504 = vmatprep.subr.mxu1 %v14521_v52  ;;  %v14527_v43 = vld [vmem:[#allocation281_spill] sm:$0xff]  ;;  %v14528_v18 = vld [vmem:[#allocation288_spill] sm:$0xff]  ;;  %v14650_v46 = vld [vmem:[#allocation218_spill] sm:$0xff] }
 0x244   : > { %v3174_v11 = vadd.f32 %v8757_v5, %v14522_v9  ;;  %v8869_v33 = vpop.f32.mrf.mxu1  ;;  %9292 = vmatmul.mubr.f32.gmra.mxu1 %v14523_v17  ;;  %9182 = vmatprep.mubr.f32.mxu0 %v14524_v44  ;;  %v14530_v17 = vld [vmem:[#allocation68_spill] sm:$0xff]  ;;  %v14531_v44 = vld [vmem:[#allocation279_spill] sm:$0xff] }
 0x245   : > { %14519 = vst [vmem:[#allocation311_spill] sm:$0xff] %v12221_v61  ;;  %v12228_v34 = vadd.f32 %v8869_v33, %v3150_v51  ;;  %v3167_v59 = vpop.f32.mrf.mxu0  ;;  %9294 = vmatprep.mubr.f32.mxu1 %v14526_v32  ;;  %9387 = vmatpush3.msra.mxu0 %v14518_v36  ;;  %v14532_v51 = vld [vmem:[#allocation29_spill] sm:$0xff]  ;;  %v14534_v36 = vld [vmem:[#allocation70_spill] sm:$0xff] }
 0x246   : > { %v3168_v54 = vadd.f32 %v3167_v59, %v14527_v43  ;;  %v3603_v61 = vpop.f32.mrf.mxu1  ;;  %9505 = vmatpush3.msra.mxu1 %v14521_v52  ;;  %9388 = vmatprep.subr.mxu0 %v14528_v18  ;;  %v14533_v32 = vld [vmem:[#allocation53_spill] sm:$0xff]  ;;  %v14536_v52 = vld [vmem:[#allocation55_spill] sm:$0xff] }
 0x247   : > { %14525 = vst [vmem:[#allocation7_spill] sm:$0xff] %v12228_v34  ;;  %v12235_v5 = vadd.f32 %v3603_v61, %v3144_v10  ;;  %v8760_v9 = vpop.f32.mrf.mxu0  ;;  %9183 = vmatmul.mubr.f32.gmra.mxu0 %v14530_v17  ;;  %9506 = vmatprep.subr.mxu1 %v14531_v44  ;;  %v14537_v10 = vld [vmem:[#allocation284_spill] sm:$0xff]  ;;  %v14538_v17 = vld [vmem:[#allocation290_spill] sm:$0xff] }
 0x248   : > { %v3186_v33 = vadd.f32 %v8760_v9, %v14532_v51  ;;  %v8872_v34 = vpop.f32.mrf.mxu1  ;;  %9295 = vmatmul.mubr.f32.gmra.mxu1 %v14533_v32  ;;  %9185 = vmatprep.mubr.f32.mxu0 %v14534_v36  ;;  %v14540_v32 = vld [vmem:[#allocation71_spill] sm:$0xff]  ;;  %v14541_v36 = vld [vmem:[#allocation280_spill] sm:$0xff] }
 0x249   : > { %14529 = vst [vmem:[#allocation134_spill] sm:$0xff] %v12235_v5  ;;  %v12242_v59 = vadd.f32 %v8872_v34, %v3162_v62  ;;  %v3179_v43 = vpop.f32.mrf.mxu0  ;;  %9297 = vmatprep.mubr.f32.mxu1 %v14536_v52  ;;  %9389 = vmatpush3.msra.mxu0 %v14528_v18  ;;  %v14542_v62 = vld [vmem:[#allocation30_spill] sm:$0xff]  ;;  %v14543_v52 = vld [vmem:[#allocation61_spill] sm:$0xff] }
 0x24a   : > { %v3180_v61 = vadd.f32 %v3179_v43, %v14537_v10  ;;  %v3615_v5 = vpop.f32.mrf.mxu1  ;;  %9507 = vmatpush3.msra.mxu1 %v14531_v44  ;;  %9390 = vmatprep.subr.mxu0 %v14538_v17  ;;  %v14544_v18 = vld [vmem:[#allocation74_spill] sm:$0xff]  ;;  %v14546_v44 = vld [vmem:[#allocation67_spill] sm:$0xff] }
 0x24b   : > { %14535 = vst [vmem:[#allocation312_spill] sm:$0xff] %v12242_v59  ;;  %v12249_v9 = vadd.f32 %v3615_v5, %v3156_v20  ;;  %v8763_v51 = vpop.f32.mrf.mxu0  ;;  %9186 = vmatmul.mubr.f32.gmra.mxu0 %v14540_v32  ;;  %9508 = vmatprep.subr.mxu1 %v14541_v36  ;;  %v14547_v20 = vld [vmem:[#allocation287_spill] sm:$0xff] }
 0x24c   : > { %v3198_v34 = vadd.f32 %v8763_v51, %v14542_v62  ;;  %v8875_v59 = vpop.f32.mrf.mxu1  ;;  %9298 = vmatmul.mubr.f32.gmra.mxu1 %v14543_v52  ;;  %9188 = vmatprep.mubr.f32.mxu0 %v14544_v18  ;;  %v14548_v32 = vld [vmem:[#allocation295_spill] sm:$0xff]  ;;  %v14551_v18 = vld [vmem:[#allocation286_spill] sm:$0xff] }
 0x24d   : > { %14539 = vst [vmem:[#allocation137_spill] sm:$0xff] %v12249_v9  ;;  %v12256_v43 = vadd.f32 %v8875_v59, %v3174_v11  ;;  %v3191_v10 = vpop.f32.mrf.mxu0  ;;  %9300 = vmatprep.mubr.f32.mxu1 %v14546_v44  ;;  %9391 = vmatpush3.msra.mxu0 %v14538_v17  ;;  %v14550_v52 = vld [vmem:[#allocation79_spill] sm:$0xff]  ;;  %v14552_v11 = vld [vmem:[#allocation9_spill] sm:$0xff] }
 0x24e   : > { %v3192_v5 = vadd.f32 %v3191_v10, %v14547_v20  ;;  %v3627_v9 = vpop.f32.mrf.mxu1  ;;  %9509 = vmatpush3.msra.mxu1 %v14541_v36  ;;  %9392 = vmatprep.subr.mxu0 %v14548_v32  ;;  %v14553_v44 = vld [vmem:[#allocation73_spill] sm:$0xff]  ;;  %v14554_v17 = vld [vmem:[#allocation83_spill] sm:$0xff] }
 0x24f   : > { %14545 = vst [vmem:[#allocation313_spill] sm:$0xff] %v12256_v43  ;;  %v12263_v51 = vadd.f32 %v3627_v9, %v3168_v54  ;;  %v8766_v62 = vpop.f32.mrf.mxu0  ;;  %9189 = vmatmul.mubr.f32.gmra.mxu0 %v14550_v52  ;;  %9510 = vmatprep.subr.mxu1 %v14551_v18  ;;  %v14556_v36 = vld [vmem:[#allocation77_spill] sm:$0xff]  ;;  %v14557_v54 = vld [vmem:[#allocation32_spill] sm:$0xff] }
 0x250   : > { %v3210_v59 = vadd.f32 %v8766_v62, %v14552_v11  ;;  %v8878_v43 = vpop.f32.mrf.mxu1  ;;  %9301 = vmatmul.mubr.f32.gmra.mxu1 %v14553_v44  ;;  %9191 = vmatprep.mubr.f32.mxu0 %v14554_v17  ;;  %v14558_v52 = vld [vmem:[#allocation300_spill] sm:$0xff]  ;;  %v14561_v17 = vld [vmem:[#allocation293_spill] sm:$0xff] }
 0x251   : > { %14549 = vst [vmem:[#allocation142_spill] sm:$0xff] %v12263_v51  ;;  %v12270_v10 = vadd.f32 %v8878_v43, %v3186_v33  ;;  %v3203_v20 = vpop.f32.mrf.mxu0  ;;  %9303 = vmatprep.mubr.f32.mxu1 %v14556_v36  ;;  %9393 = vmatpush3.msra.mxu0 %v14548_v32  ;;  %v14560_v44 = vld [vmem:[#allocation88_spill] sm:$0xff]  ;;  %v14562_v33 = vld [vmem:[#allocation289_spill] sm:$0xff]  ;;  %v14563_v36 = vld [vmem:[#allocation78_spill] sm:$0xff] }
 0x252   : > { %v3204_v9 = vadd.f32 %v3203_v20, %v14557_v54  ;;  %v3639_v51 = vpop.f32.mrf.mxu1  ;;  %9511 = vmatpush3.msra.mxu1 %v14551_v18  ;;  %9394 = vmatprep.subr.mxu0 %v14558_v52  ;;  %v14564_v32 = vld [vmem:[#allocation92_spill] sm:$0xff]  ;;  %v14566_v18 = vld [vmem:[#allocation82_spill] sm:$0xff] }
 0x253   : > { %14555 = vst [vmem:[#allocation314_spill] sm:$0xff] %v12270_v10  ;;  %v12277_v62 = vadd.f32 %v3639_v51, %v3180_v61  ;;  %v8769_v11 = vpop.f32.mrf.mxu0  ;;  %9192 = vmatmul.mubr.f32.gmra.mxu0 %v14560_v44  ;;  %9512 = vmatprep.subr.mxu1 %v14561_v17  ;;  %v14567_v61 = vld [vmem:[#allocation52_spill] sm:$0xff]  ;;  %v14568_v44 = vld [vmem:[#allocation303_spill] sm:$0xff] }
 0x254   : > { %v3222_v43 = vadd.f32 %v8769_v11, %v14562_v33  ;;  %v8881_v10 = vpop.f32.mrf.mxu1  ;;  %9304 = vmatmul.mubr.f32.gmra.mxu1 %v14563_v36  ;;  %9194 = vmatprep.mubr.f32.mxu0 %v14564_v32  ;;  %v14570_v36 = vld [vmem:[#allocation98_spill] sm:$0xff] }
 0x255   : > { %14559 = vst [vmem:[#allocation148_spill] sm:$0xff] %v12277_v62  ;;  %v12284_v20 = vadd.f32 %v8881_v10, %v3198_v34  ;;  %v3215_v54 = vpop.f32.mrf.mxu0  ;;  %9306 = vmatprep.mubr.f32.mxu1 %v14566_v18  ;;  %9395 = vmatpush3.msra.mxu0 %v14558_v52  ;;  %v14571_v32 = vld [vmem:[#allocation298_spill] sm:$0xff]  ;;  %v14572_v18 = vld [vmem:[#allocation87_spill] sm:$0xff]  ;;  %v14573_v52 = vld [vmem:[#allocation101_spill] sm:$0xff] }
 0x256   : > { %v3216_v51 = vadd.f32 %v3215_v54, %v14567_v61  ;;  %v3651_v62 = vpop.f32.mrf.mxu1  ;;  %9513 = vmatpush3.msra.mxu1 %v14561_v17  ;;  %9396 = vmatprep.subr.mxu0 %v14568_v44  ;;  %v14575_v17 = vld [vmem:[#allocation89_spill] sm:$0xff] }
 0x257   : > { %14565 = vst [vmem:[#allocation315_spill] sm:$0xff] %v12284_v20  ;;  %v12291_v11 = vadd.f32 %v3651_v62, %v3192_v5  ;;  %v8772_v33 = vpop.f32.mrf.mxu0  ;;  %9195 = vmatmul.mubr.f32.gmra.mxu0 %v14570_v36  ;;  %9514 = vmatprep.subr.mxu1 %v14571_v32  ;;  %v14576_v5 = vld [vmem:[#allocation292_spill] sm:$0xff]  ;;  %v14577_v36 = vld [vmem:[#allocation305_spill] sm:$0xff]  ;;  %v14647_v20 = vld [vmem:[#allocation198_spill] sm:$0xff] }
 0x258   : > { %v3234_v34 = vadd.f32 %v8772_v33, %v11962_v37  ;;  %v8884_v10 = vpop.f32.mrf.mxu1  ;;  %9307 = vmatmul.mubr.f32.gmra.mxu1 %v14572_v18  ;;  %9197 = vmatprep.mubr.f32.mxu0 %v14573_v52  ;;  %v14579_v18 = vld [vmem:[#allocation103_spill] sm:$0xff]  ;;  %v14580_v52 = vld [vmem:[#allocation302_spill] sm:$0xff] }
 0x259   : > { %14569 = vst [vmem:[#allocation150_spill] sm:$0xff] %v12291_v11  ;;  %v12298_v54 = vadd.f32 %v8884_v10, %v3210_v59  ;;  %v3227_v61 = vpop.f32.mrf.mxu0  ;;  %9309 = vmatprep.mubr.f32.mxu1 %v14575_v17  ;;  %9397 = vmatpush3.msra.mxu0 %v14568_v44  ;;  %v14581_v17 = vld [vmem:[#allocation95_spill] sm:$0xff]  ;;  %v14582_v44 = vld [vmem:[#allocation106_spill] sm:$0xff] }
 0x25a   : > { %v3228_v62 = vadd.f32 %v3227_v61, %v14576_v5  ;;  %v3663_v11 = vpop.f32.mrf.mxu1  ;;  %9515 = vmatpush3.msra.mxu1 %v14571_v32  ;;  %9398 = vmatprep.subr.mxu0 %v14577_v36  ;;  %v14584_v32 = vld [vmem:[#allocation100_spill] sm:$0xff] }
 0x25b   : > { %14574 = vst [vmem:[#allocation156_spill] sm:$0xff] %v12298_v54  ;;  %v12305_v37 = vadd.f32 %v3663_v11, %v3204_v9  ;;  %v8775_v33 = vpop.f32.mrf.mxu0  ;;  %9198 = vmatmul.mubr.f32.gmra.mxu0 %v14579_v18  ;;  %9516 = vmatprep.subr.mxu1 %v14580_v52  ;;  %v14646_v54 = vld [vmem:[#allocation208_spill] sm:$0xff] }
 0x25c   : > { %v3246_v59 = vadd.f32 %v8775_v33, %v11972_v31  ;;  %v8887_v10 = vpop.f32.mrf.mxu1  ;;  %9310 = vmatmul.mubr.f32.gmra.mxu1 %v14581_v17  ;;  %9200 = vmatprep.mubr.f32.mxu0 %v14582_v44  ;;  %v14586_v33 = vld [vmem:[#allocation112_spill] sm:$0xff] }
 0x25d   : > { %14578 = vst [vmem:[#allocation161_spill] sm:$0xff] %v12305_v37  ;;  %v12312_v61 = vadd.f32 %v8887_v10, %v3222_v43  ;;  %v3239_v5 = vpop.f32.mrf.mxu0  ;;  %9312 = vmatprep.mubr.f32.mxu1 %v14584_v32  ;;  %9399 = vmatpush3.msra.mxu0 %v14577_v36  ;;  %v14587_v43 = vld [vmem:[#allocation105_spill] sm:$0xff]  ;;  %v14588_v10 = vld [vmem:[#allocation115_spill] sm:$0xff] }
 0x25e   : > { %v3240_v9 = vadd.f32 %v3239_v5, %v11976_v50  ;;  %v3675_v11 = vpop.f32.mrf.mxu1  ;;  %9517 = vmatpush3.msra.mxu1 %v14580_v52  ;;  %v14643_v37 = vld [vmem:[#allocation191_spill] sm:$0xff] }
 0x25f   : > { %14583 = vst [vmem:[#allocation163_spill] sm:$0xff] %v12312_v61  ;;  %v12318_v18 = vadd.f32 %v3675_v11, %v3216_v51  ;;  %v8778_v31 = vpop.f32.mrf.mxu0  ;;  %9201 = vmatmul.mubr.f32.gmra.mxu0 %v14586_v33  ;;  %v14590_v61 = vld [vmem:[#allocation109_spill] sm:$0xff]  ;;  %v14592_v11 = vld [vmem:[#allocation119_spill] sm:$0xff] }
 0x260   : > { %v3258_v17 = vadd.f32 %v8778_v31, %v11982_v30  ;;  %v8890_v44 = vpop.f32.mrf.mxu1  ;;  %9313 = vmatmul.mubr.f32.gmra.mxu1 %v14587_v43  ;;  %9203 = vmatprep.mubr.f32.mxu0 %v14588_v10  ;;  %v14593_v33 = vld [vmem:[#allocation111_spill] sm:$0xff]  ;;  %v14594_v43 = vld [vmem:[#allocation124_spill] sm:$0xff]  ;;  %v14596_v10 = vld [vmem:[#allocation114_spill] sm:$0xff] }
 0x261   : > { %14585 = vst [vmem:[#allocation166_spill] sm:$0xff] %v12318_v18  ;;  %v12324_v32 = vadd.f32 %v8890_v44, %v3234_v34  ;;  %v3251_v36 = vpop.f32.mrf.mxu0  ;;  %9315 = vmatprep.mubr.f32.mxu1 %v14590_v61  ;;  %v14642_v18 = vld [vmem:[#allocation199_spill] sm:$0xff] }
 0x262   : > { %v3252_v50 = vadd.f32 %v3251_v36, %v11986_v56  ;;  %v3687_v52 = vpop.f32.mrf.mxu1 }
 0x263   : > { %14589 = vst [vmem:[#allocation120_spill] sm:$0xff] %v12324_v32  ;;  %v12328_v51 = vadd.f32 %v3687_v52, %v3228_v62  ;;  %v8781_v5 = vpop.f32.mrf.mxu0  ;;  %9204 = vmatmul.mubr.f32.gmra.mxu0 %v14592_v11  ;;  %v14598_v52 = vld [vmem:[#allocation128_spill] sm:$0xff]  ;;  %v3768_v11 = vlaneseq  ;;  %v14639_v32 = vld [vmem:[#allocation185_spill] sm:$0xff] }
 0x264   : > { %v3270_v30 = vadd.f32 %v8781_v5, %v11992_v3  ;;  %v8893_v31 = vpop.f32.mrf.mxu1  ;;  %9316 = vmatmul.mubr.f32.gmra.mxu1 %v14593_v33  ;;  %9206 = vmatprep.mubr.f32.mxu0 %v14594_v43  ;;  %v14599_v33 = vld [vmem:[#allocation118_spill] sm:$0xff]  ;;  %v14600_v43 = vld [vmem:[#allocation132_spill] sm:$0xff] }
 0x265   : > { %14591 = vst [vmem:[#allocation169_spill] sm:$0xff] %v12328_v51  ;;  %v12334_v34 = vadd.f32 %v8893_v31, %v3246_v59  ;;  %v3263_v44 = vpop.f32.mrf.mxu0  ;;  %9318 = vmatprep.mubr.f32.mxu1 %v14596_v10  ;;  %v14602_v10 = vld [vmem:[#allocation122_spill] sm:$0xff]  ;;  %v14638_v51 = vld [vmem:[#allocation192_spill] sm:$0xff] }
 0x266   : > { %v3264_v56 = vadd.f32 %v3263_v44, %v11996_v21  ;;  %v3699_v61 = vpop.f32.mrf.mxu1 }
 0x267   : > { %14595 = vst [vmem:[#allocation174_spill] sm:$0xff] %v12334_v34  ;;  %v12338_v62 = vadd.f32 %v3699_v61, %v3240_v9  ;;  %v8784_v36 = vpop.f32.mrf.mxu0  ;;  %9207 = vmatmul.mubr.f32.gmra.mxu0 %v14598_v52  ;;  %v14604_v52 = vld [vmem:[#allocation138_spill] sm:$0xff]  ;;  %v14635_v34 = vld [vmem:[#allocation175_spill] sm:$0xff] }
 0x268   : > { %v3282_v3 = vadd.f32 %v8784_v36, %v12002_v4  ;;  %v8896_v5 = vpop.f32.mrf.mxu1  ;;  %9319 = vmatmul.mubr.f32.gmra.mxu1 %v14599_v33  ;;  %9209 = vmatprep.mubr.f32.mxu0 %v14600_v43  ;;  %v14605_v33 = vld [vmem:[#allocation127_spill] sm:$0xff]  ;;  %v14606_v43 = vld [vmem:[#allocation141_spill] sm:$0xff] }
 0x269   : > { %14597 = vst [vmem:[#allocation177_spill] sm:$0xff] %v12338_v62  ;;  %v12344_v59 = vadd.f32 %v8896_v5, %v3258_v17  ;;  %v3275_v31 = vpop.f32.mrf.mxu0  ;;  %9321 = vmatprep.mubr.f32.mxu1 %v14602_v10  ;;  %v3769_v62 = vand.u32 127, %v3768_v11  ;;  %v14608_v10 = vld [vmem:[#allocation131_spill] sm:$0xff] }
 0x26a   : > { %v3276_v21 = vadd.f32 %v3275_v31, %v12006_v40  ;;  %v3711_v9 = vpop.f32.mrf.mxu1  ;;  %v14610_v11 = vld [vmem:[#allocation143_spill] sm:$0xff] }
 0x26b   : > { %14601 = vst [vmem:[#allocation182_spill] sm:$0xff] %v12344_v59  ;;  %v12348_v44 = vadd.f32 %v3711_v9, %v3252_v50  ;;  %v8787_v61 = vpop.f32.mrf.mxu0  ;;  %9210 = vmatmul.mubr.f32.gmra.mxu0 %v14604_v52  ;;  %vm3770_vm2 = vcmp.lt.s32.totalorder %v3769_v62, 4  ;;  %v14612_v52 = vld [vmem:[#allocation146_spill] sm:$0xff]  ;;  %v14634_v59 = vld [vmem:[#allocation183_spill] sm:$0xff] }
 0x26c   : > { %v3294_v4 = vadd.f32 %v8787_v61, %v12012_v25  ;;  %v8899_v36 = vpop.f32.mrf.mxu1  ;;  %9322 = vmatmul.mubr.f32.gmra.mxu1 %v14605_v33  ;;  %9212 = vmatprep.mubr.f32.mxu0 %v14606_v43  ;;  %v14611_v61 = vld [vmem:[#allocation135_spill] sm:$0xff]  ;;  %v9750_v43 = vmov 0.0  }
 0x26d   : > { %14603 = vst [vmem:[#allocation188_spill] sm:$0xff] %v12348_v44  ;;  %v12354_v17 = vadd.f32 %v8899_v36, %v3270_v30  ;;  %v3287_v5 = vpop.f32.mrf.mxu0  ;;  %9324 = vmatprep.mubr.f32.mxu1 %v14608_v10  ;;  %v14614_v36 = vld [vmem:[#allocation140_spill] sm:$0xff]  ;;  %v12366_v10 = vsel %vm3770_vm2, 1.0, %v9750_v43  ;;  %v14631_v44 = vld [vmem:[#allocation167_spill] sm:$0xff] }
 0x26e   : > { %v3288_v40 = vadd.f32 %v3287_v5, %v12016_v12  ;;  %v3723_v50 = vpop.f32.mrf.mxu1  ;;  %v14616_v5 = vld [vmem:[#allocation152_spill] sm:$0xff] }
 0x26f   : > { %14607 = vst [vmem:[#allocation139_spill] sm:$0xff] %v12354_v17  ;;  %v12358_v31 = vadd.f32 %v3723_v50, %v3264_v56  ;;  %v8930_v9 = vpop.f32.mrf.mxu0  ;;  %9213 = vmatmul.mubr.f32.gmra.mxu0 %v14610_v11  ;;  %v14617_v11 = vld [vmem:[#allocation145_spill] sm:$0xff]  ;;  %v14630_v17 = vld [vmem:[#allocation178_spill] sm:$0xff] }
 0x270   : > { %v8902_v25 = vpop.f32.mrf.mxu1  ;;  %9325 = vmatmul.mubr.f32.gmra.mxu1 %v14611_v61  ;;  %9215 = vmatprep.mubr.f32.mxu0 %v14612_v52  ;;  %v14618_v61 = vld [vmem:[#allocation155_spill] sm:$0xff] }
 0x271   : > { %14609 = vst [vmem:[#allocation190_spill] sm:$0xff] %v12358_v31  ;;  %v12363_v33 = vadd.f32 %v8902_v25, %v3282_v3  ;;  %v3857_v30 = vpop.f32.mrf.mxu0  ;;  %9327 = vmatprep.mubr.f32.mxu1 %v14614_v36  ;;  %v3868_v3 = vadd.f32 %v8930_v9, %v12366_v10  ;;  %v14620_v36 = vld [vmem:[#allocation149_spill] sm:$0xff]  ;;  %v14624_v31 = vld [vmem:[#allocation164_spill] sm:$0xff] }
 0x272   : > { %v3735_v12 = vpop.f32.mrf.mxu1 }
 0x273   : > { %14613 = vst [vmem:[#allocation144_spill] sm:$0xff] %v12363_v33  ;;  %v12368_v56 = vadd.f32 %v3735_v12, %v3276_v21  ;;  %v8933_v62 = vpop.f32.mrf.mxu0  ;;  %9216 = vmatmul.mubr.f32.gmra.mxu0 %v14616_v5  ;;  %v14622_v12 = vld [vmem:[#allocation159_spill] sm:$0xff] }
 0x274   : > { %v8905_v50 = vpop.f32.mrf.mxu1  ;;  %9328 = vmatmul.mubr.f32.gmra.mxu1 %v14617_v11  ;;  %9218 = vmatprep.mubr.f32.mxu0 %v14618_v61  ;;  %v14623_v5 = vld [vmem:[#allocation151_spill] sm:$0xff]  ;;  %v3858_v11 = vadd.f32 %v3857_v30, %v12366_v10  ;;  %v3888_v9 = vadd.f32 %v8933_v62, %v12366_v10  ;;  %v14625_v61 = vld [vmem:[#allocation154_spill] sm:$0xff] }
 0x275   : > { %14615 = vst [vmem:[#allocation196_spill] sm:$0xff] %v12368_v56  ;;  %v12374_v25 = vadd.f32 %v8905_v50, %v3294_v4  ;;  %v3877_v52 = vpop.f32.mrf.mxu0  ;;  %9330 = vmatprep.mubr.f32.mxu1 %v14620_v36 }
 0x276   : > { %v3747_v43 = vpop.f32.mrf.mxu1 }
 0x277   : > { %14619 = vst [vmem:[#allocation147_spill] sm:$0xff] %v12374_v25  ;;  %v12377_v33 = vadd.f32 %v3747_v43, %v3288_v40  ;;  %v8936_v21 = vpop.f32.mrf.mxu0  ;;  %9219 = vmatmul.mubr.f32.gmra.mxu0 %v14622_v12  ;;  %v14627_v25 = vld [vmem:[#allocation158_spill] sm:$0xff] }
 0x278   : > { %v9048_v56 = vpop.f32.mrf.mxu1  ;;  %9331 = vmatmul.mubr.f32.gmra.mxu1 %v14623_v5  ;;  %9221 = vmatprep.mubr.f32.mxu0 %v14624_v31  ;;  %v14628_v5 = vld [vmem:[#allocation172_spill] sm:$0xff]  ;;  %v3878_v31 = vadd.f32 %v3877_v52, %v12366_v10  ;;  %v3908_v30 = vadd.f32 %v8936_v21, %v12366_v10 }
 0x279   : > { %14621 = vst [vmem:[#allocation201_spill] sm:$0xff] %v12377_v33  ;;  %v12384_v4 = vadd.f32 %v9048_v56, %v3868_v3  ;;  %v3897_v50 = vpop.f32.mrf.mxu0  ;;  %9333 = vmatprep.mubr.f32.mxu1 %v14625_v61  ;;  %v14626_v33 = vld [vmem:[#allocation168_spill] sm:$0xff]  ;;  %v14629_v3 = vld [vmem:[#allocation162_spill] sm:$0xff] }
 0x27a   : > { %v4613_v36 = vpop.f32.mrf.mxu1  ;;  %v3898_v52 = vadd.f32 %v3897_v50, %v12366_v10 }
 0x27b   : > { %v12387_v40 = vadd.f32 %v4613_v36, %v3858_v11  ;;  %v8939_v43 = vpop.f32.mrf.mxu0  ;;  %9222 = vmatmul.mubr.f32.gmra.mxu0 %v14626_v33 }
 0x27c   : > { %v9051_v12 = vpop.f32.mrf.mxu1  ;;  %9334 = vmatmul.mubr.f32.gmra.mxu1 %v14627_v25  ;;  %9224 = vmatprep.mubr.f32.mxu0 %v14628_v5  ;;  %v14632_v25 = vld [vmem:[#allocation181_spill] sm:$0xff]  ;;  %v3928_v21 = vadd.f32 %v8939_v43, %v12366_v10  ;;  %v14633_v5 = vld [vmem:[#allocation171_spill] sm:$0xff] }
 0x27d   : > { %v12394_v56 = vadd.f32 %v9051_v12, %v3888_v9  ;;  %v3917_v62 = vpop.f32.mrf.mxu0  ;;  %9336 = vmatprep.mubr.f32.mxu1 %v14629_v3 }
 0x27e   : > { %v4625_v61 = vpop.f32.mrf.mxu1  ;;  %v3918_v50 = vadd.f32 %v3917_v62, %v12366_v10 }
 0x27f   : > { %v12397_v11 = vadd.f32 %v4625_v61, %v3878_v31  ;;  %v8942_v36 = vpop.f32.mrf.mxu0  ;;  %9225 = vmatmul.mubr.f32.gmra.mxu0 %v14630_v17 }
 0x280   : > { %v9054_v33 = vpop.f32.mrf.mxu1  ;;  %9337 = vmatmul.mubr.f32.gmra.mxu1 %v14631_v44  ;;  %9227 = vmatprep.mubr.f32.mxu0 %v14632_v25  ;;  %v14636_v44 = vld [vmem:[#allocation186_spill] sm:$0xff]  ;;  %v3948_v43 = vadd.f32 %v8942_v36, %v12366_v10  ;;  %v14637_v25 = vld [vmem:[#allocation180_spill] sm:$0xff] }
 0x281   : > { %v12404_v9 = vadd.f32 %v9054_v33, %v3908_v30  ;;  %v3937_v12 = vpop.f32.mrf.mxu0  ;;  %9339 = vmatprep.mubr.f32.mxu1 %v14633_v5 }
 0x282   : > { %v4637_v3 = vpop.f32.mrf.mxu1  ;;  %v3938_v62 = vadd.f32 %v3937_v12, %v12366_v10 }
 0x283   : > { %v12407_v31 = vadd.f32 %v4637_v3, %v3898_v52  ;;  %v8945_v61 = vpop.f32.mrf.mxu0  ;;  %9228 = vmatmul.mubr.f32.gmra.mxu0 %v14634_v59 }
 0x284   : > { %v9057_v17 = vpop.f32.mrf.mxu1  ;;  %9340 = vmatmul.mubr.f32.gmra.mxu1 %v14635_v34  ;;  %9230 = vmatprep.mubr.f32.mxu0 %v14636_v44  ;;  %v14640_v34 = vld [vmem:[#allocation195_spill] sm:$0xff]  ;;  %v3968_v36 = vadd.f32 %v8945_v61, %v12366_v10  ;;  %v14641_v44 = vld [vmem:[#allocation189_spill] sm:$0xff] }
 0x285   : > { %v12414_v30 = vadd.f32 %v9057_v17, %v3928_v21  ;;  %v3957_v33 = vpop.f32.mrf.mxu0  ;;  %9342 = vmatprep.mubr.f32.mxu1 %v14637_v25 }
 0x286   : > { %v4649_v5 = vpop.f32.mrf.mxu1  ;;  %v3958_v12 = vadd.f32 %v3957_v33, %v12366_v10 }
 0x287   : > { %v12417_v52 = vadd.f32 %v4649_v5, %v3918_v50  ;;  %v8948_v3 = vpop.f32.mrf.mxu0  ;;  %9231 = vmatmul.mubr.f32.gmra.mxu0 %v14638_v51 }
 0x288   : > { %v9060_v59 = vpop.f32.mrf.mxu1  ;;  %9343 = vmatmul.mubr.f32.gmra.mxu1 %v14639_v32  ;;  %9233 = vmatprep.mubr.f32.mxu0 %v14640_v34  ;;  %v14644_v32 = vld [vmem:[#allocation204_spill] sm:$0xff]  ;;  %v3988_v61 = vadd.f32 %v8948_v3, %v12366_v10  ;;  %v14645_v34 = vld [vmem:[#allocation194_spill] sm:$0xff] }
 0x289   : > { %v12424_v21 = vadd.f32 %v9060_v59, %v3948_v43  ;;  %v3977_v17 = vpop.f32.mrf.mxu0  ;;  %9345 = vmatprep.mubr.f32.mxu1 %v14641_v44 }
 0x28a   : > { %v4661_v25 = vpop.f32.mrf.mxu1  ;;  %v3978_v33 = vadd.f32 %v3977_v17, %v12366_v10 }
 0x28b   : > { %v12427_v50 = vadd.f32 %v4661_v25, %v3938_v62  ;;  %v8951_v5 = vpop.f32.mrf.mxu0  ;;  %9234 = vmatmul.mubr.f32.gmra.mxu0 %v14642_v18 }
 0x28c   : > { %v9063_v51 = vpop.f32.mrf.mxu1  ;;  %9346 = vmatmul.mubr.f32.gmra.mxu1 %v14643_v37  ;;  %9236 = vmatprep.mubr.f32.mxu0 %v14644_v32  ;;  %v14648_v37 = vld [vmem:[#allocation212_spill] sm:$0xff]  ;;  %v4008_v3 = vadd.f32 %v8951_v5, %v12366_v10  ;;  %v14649_v32 = vld [vmem:[#allocation202_spill] sm:$0xff] }
 0x28d   : > { %v12434_v43 = vadd.f32 %v9063_v51, %v3968_v36  ;;  %v3997_v59 = vpop.f32.mrf.mxu0  ;;  %9348 = vmatprep.mubr.f32.mxu1 %v14645_v34 }
 0x28e   : > { %v4673_v44 = vpop.f32.mrf.mxu1  ;;  %v3998_v17 = vadd.f32 %v3997_v59, %v12366_v10 }
 0x28f   : > { %v12437_v62 = vadd.f32 %v4673_v44, %v3958_v12  ;;  %v8954_v25 = vpop.f32.mrf.mxu0  ;;  %9237 = vmatmul.mubr.f32.gmra.mxu0 %v14646_v54 }
 0x290   : > { %v9066_v18 = vpop.f32.mrf.mxu1  ;;  %9349 = vmatmul.mubr.f32.gmra.mxu1 %v14647_v20  ;;  %9239 = vmatprep.mubr.f32.mxu0 %v14648_v37  ;;  %v14652_v20 = vld [vmem:[#allocation221_spill] sm:$0xff]  ;;  %v4028_v5 = vadd.f32 %v8954_v25, %v12366_v10  ;;  %v14653_v37 = vld [vmem:[#allocation211_spill] sm:$0xff] }
 0x291   : > { %v12444_v36 = vadd.f32 %v9066_v18, %v3988_v61  ;;  %v4017_v51 = vpop.f32.mrf.mxu0  ;;  %9351 = vmatprep.mubr.f32.mxu1 %v14649_v32 }
 0x292   : > { %v4685_v34 = vpop.f32.mrf.mxu1  ;;  %v4018_v59 = vadd.f32 %v4017_v51, %v12366_v10 }
 0x293   : > { %v12447_v12 = vadd.f32 %v4685_v34, %v3978_v33  ;;  %v8957_v44 = vpop.f32.mrf.mxu0  ;;  %9240 = vmatmul.mubr.f32.gmra.mxu0 %v14650_v46 }
 0x294   : > { %v9069_v54 = vpop.f32.mrf.mxu1  ;;  %9352 = vmatmul.mubr.f32.gmra.mxu1 %v14651_v14  ;;  %9242 = vmatprep.mubr.f32.mxu0 %v14652_v20  ;;  %v14656_v14 = vld [vmem:[#allocation226_spill] sm:$0xff]  ;;  %v4048_v25 = vadd.f32 %v8957_v44, %v12366_v10  ;;  %v14657_v20 = vld [vmem:[#allocation220_spill] sm:$0xff] }
 0x295   : > { %v12454_v61 = vadd.f32 %v9069_v54, %v4008_v3  ;;  %v4037_v18 = vpop.f32.mrf.mxu0  ;;  %9354 = vmatprep.mubr.f32.mxu1 %v14653_v37 }
 0x296   : > { %v4697_v32 = vpop.f32.mrf.mxu1  ;;  %v4038_v51 = vadd.f32 %v4037_v18, %v12366_v10 }
 0x297   : > { %v12457_v33 = vadd.f32 %v4697_v32, %v3998_v17  ;;  %v8960_v34 = vpop.f32.mrf.mxu0  ;;  %9243 = vmatmul.mubr.f32.gmra.mxu0 %v14654_v27 }
 0x298   : > { %v9072_v46 = vpop.f32.mrf.mxu1  ;;  %9355 = vmatmul.mubr.f32.gmra.mxu1 %v14655_v47  ;;  %9245 = vmatprep.mubr.f32.mxu0 %v14656_v14  ;;  %v14660_v47 = vld [vmem:[#allocation235_spill] sm:$0xff]  ;;  %v4068_v44 = vadd.f32 %v8960_v34, %v12366_v10  ;;  %v14661_v14 = vld [vmem:[#allocation229_spill] sm:$0xff] }
 0x299   : > { %v12464_v3 = vadd.f32 %v9072_v46, %v4028_v5  ;;  %v4057_v54 = vpop.f32.mrf.mxu0  ;;  %9357 = vmatprep.mubr.f32.mxu1 %v14657_v20 }
 0x29a   : > { %v4709_v37 = vpop.f32.mrf.mxu1  ;;  %v4058_v18 = vadd.f32 %v4057_v54, %v12366_v10 }
 0x29b   : > { %v12467_v17 = vadd.f32 %v4709_v37, %v4018_v59  ;;  %v8963_v32 = vpop.f32.mrf.mxu0  ;;  %9246 = vmatmul.mubr.f32.gmra.mxu0 %v14658_v60 }
 0x29c   : > { %v9075_v27 = vpop.f32.mrf.mxu1  ;;  %9358 = vmatmul.mubr.f32.gmra.mxu1 %v14659_v53  ;;  %9248 = vmatprep.mubr.f32.mxu0 %v14660_v47  ;;  %v14664_v53 = vld [vmem:[#allocation244_spill] sm:$0xff]  ;;  %v4088_v34 = vadd.f32 %v8963_v32, %v12366_v10  ;;  %v14665_v47 = vld [vmem:[#allocation234_spill] sm:$0xff] }
 0x29d   : > { %v12474_v5 = vadd.f32 %v9075_v27, %v4048_v25  ;;  %v4077_v46 = vpop.f32.mrf.mxu0  ;;  %9360 = vmatprep.mubr.f32.mxu1 %v14661_v14 }
 0x29e   : > { %v4721_v20 = vpop.f32.mrf.mxu1  ;;  %v4078_v54 = vadd.f32 %v4077_v46, %v12366_v10 }
 0x29f   : > { %v12477_v59 = vadd.f32 %v4721_v20, %v4038_v51  ;;  %v8966_v37 = vpop.f32.mrf.mxu0  ;;  %9249 = vmatmul.mubr.f32.gmra.mxu0 %v14662_v23 }
 0x2a0   : > { %v9078_v60 = vpop.f32.mrf.mxu1  ;;  %9361 = vmatmul.mubr.f32.gmra.mxu1 %v14663_v8  ;;  %9251 = vmatprep.mubr.f32.mxu0 %v14664_v53  ;;  %v14668_v8 = vld [vmem:[#allocation252_spill] sm:$0xff]  ;;  %v4108_v32 = vadd.f32 %v8966_v37, %v12366_v10  ;;  %v14669_v53 = vld [vmem:[#allocation241_spill] sm:$0xff] }
 0x2a1   : > { %v12484_v25 = vadd.f32 %v9078_v60, %v4068_v44  ;;  %v4097_v27 = vpop.f32.mrf.mxu0  ;;  %9363 = vmatprep.mubr.f32.mxu1 %v14665_v47 }
 0x2a2   : > { %v4733_v14 = vpop.f32.mrf.mxu1  ;;  %v4098_v46 = vadd.f32 %v4097_v27, %v12366_v10 }
 0x2a3   : > { %v12487_v51 = vadd.f32 %v4733_v14, %v4058_v18  ;;  %v8969_v20 = vpop.f32.mrf.mxu0  ;;  %9252 = vmatmul.mubr.f32.gmra.mxu0 %v14666_v1 }
 0x2a4   : > { %v9081_v23 = vpop.f32.mrf.mxu1  ;;  %9364 = vmatmul.mubr.f32.gmra.mxu1 %v14667_v24  ;;  %9254 = vmatprep.mubr.f32.mxu0 %v14668_v8  ;;  %v14673_v24 = vld [vmem:[#allocation260_spill] sm:$0xff]  ;;  %v4128_v37 = vadd.f32 %v8969_v20, %v12366_v10  ;;  %v14675_v8 = vld [vmem:[#allocation251_spill] sm:$0xff] }
 0x2a5   : > { %v12494_v44 = vadd.f32 %v9081_v23, %v4088_v34  ;;  %v4117_v60 = vpop.f32.mrf.mxu0  ;;  %9366 = vmatprep.mubr.f32.mxu1 %v14669_v53 }
 0x2a6   : > { %v4745_v47 = vpop.f32.mrf.mxu1  ;;  %v4118_v27 = vadd.f32 %v4117_v60, %v12366_v10 }
 0x2a7   : > { %v12497_v18 = vadd.f32 %v4745_v47, %v4078_v54  ;;  %v8972_v14 = vpop.f32.mrf.mxu0  ;;  %9255 = vmatmul.mubr.f32.gmra.mxu0 %v14671_v6 }
 0x2a8   : > { %v9084_v1 = vpop.f32.mrf.mxu1  ;;  %9367 = vmatmul.mubr.f32.gmra.mxu1 %v14672_v16  ;;  %9257 = vmatprep.mubr.f32.mxu0 %v14673_v24  ;;  %v14679_v16 = vld [vmem:[#allocation12_spill] sm:$0xff]  ;;  %v4148_v20 = vadd.f32 %v8972_v14, %v12366_v10  ;;  %v14681_v24 = vld [vmem:[#allocation259_spill] sm:$0xff] }
 0x2a9   : > { %14670 = vst [vmem:[#allocation153_spill] sm:$0xff] %v12497_v18  ;;  %v12504_v34 = vadd.f32 %v9084_v1, %v4108_v32  ;;  %v4137_v23 = vpop.f32.mrf.mxu0  ;;  %9369 = vmatprep.mubr.f32.mxu1 %v14675_v8 }
 0x2aa   : > { %v4757_v53 = vpop.f32.mrf.mxu1  ;;  %v4138_v60 = vadd.f32 %v4137_v23, %v12366_v10 }
 0x2ab   : > { %14674 = vst [vmem:[#allocation203_spill] sm:$0xff] %v12504_v34  ;;  %v12507_v54 = vadd.f32 %v4757_v53, %v4098_v46  ;;  %v8975_v47 = vpop.f32.mrf.mxu0  ;;  %9258 = vmatmul.mubr.f32.gmra.mxu0 %v14677_v2  ;;  %v14684_v34 = vld [vmem:[#allocation262_spill] sm:$0xff] }
 0x2ac   : > { %v9087_v6 = vpop.f32.mrf.mxu1  ;;  %9370 = vmatmul.mubr.f32.gmra.mxu1 %v14678_v28  ;;  %9400 = vmatprep.mubr.f32.mxu0 %v14679_v16  ;;  %v14685_v28 = vld [vmem:[#allocation15_spill] sm:$0xff]  ;;  %v4168_v14 = vadd.f32 %v8975_v47, %v12366_v10 }
 0x2ad   : > { %14676 = vst [vmem:[#allocation157_spill] sm:$0xff] %v12507_v54  ;;  %v12514_v32 = vadd.f32 %v9087_v6, %v4128_v37  ;;  %v4157_v1 = vpop.f32.mrf.mxu0  ;;  %9372 = vmatprep.mubr.f32.mxu1 %v14681_v24  ;;  %v14683_v54 = vld [vmem:[#allocation13_spill] sm:$0xff] }
 0x2ae   : > { %v4769_v8 = vpop.f32.mrf.mxu1  ;;  %v4158_v23 = vadd.f32 %v4157_v1, %v12366_v10 }
 0x2af   : > { %14680 = vst [vmem:[#allocation206_spill] sm:$0xff] %v12514_v32  ;;  %v12517_v46 = vadd.f32 %v4769_v8, %v4118_v27  ;;  %v8978_v53 = vpop.f32.mrf.mxu0  ;;  %9401 = vmatmul.mubr.f32.vlgmr.msra.gmra.mxu0 %v14683_v54  ;;  %v14687_v32 = vld [vmem:[#allocation265_spill] sm:$0xff] }
 0x2b0   : > { %v9090_v2 = vpop.f32.mrf.mxu1  ;;  %9373 = vmatmul.mubr.f32.gmra.mxu1 %v14684_v34  ;;  %9403 = vmatprep.mubr.f32.mxu0 %v14685_v28  ;;  %v14691_v34 = vld [vmem:[#allocation31_spill] sm:$0xff]  ;;  %v4188_v47 = vadd.f32 %v8978_v53, %v12366_v10 }
 0x2b1   : > { %14682 = vst [vmem:[#allocation160_spill] sm:$0xff] %v12517_v46  ;;  %v12524_v37 = vadd.f32 %v9090_v2, %v4148_v20  ;;  %v4177_v6 = vpop.f32.mrf.mxu0  ;;  %9375 = vmatprep.mubr.f32.mxu1 %v14687_v32  ;;  %v14689_v46 = vld [vmem:[#allocation19_spill] sm:$0xff] }
 0x2b2   : > { %v4781_v24 = vpop.f32.mrf.mxu1  ;;  %v4178_v1 = vadd.f32 %v4177_v6, %v12366_v10 }
 0x2b3   : > { %14686 = vst [vmem:[#allocation209_spill] sm:$0xff] %v12524_v37  ;;  %v12527_v27 = vadd.f32 %v4781_v24, %v4138_v60  ;;  %v8981_v8 = vpop.f32.mrf.mxu0  ;;  %9404 = vmatmul.mubr.f32.gmra.mxu0 %v14689_v46 }
 0x2b4   : > { %v9093_v18 = vpop.f32.mrf.mxu1  ;;  %9376 = vmatmul.mubr.f32.gmra.mxu1 %v14690_v42  ;;  %9406 = vmatprep.mubr.f32.mxu0 %v14691_v34  ;;  %v14695_v42 = vld [vmem:[#allocation35_spill] sm:$0xff]  ;;  %v4208_v53 = vadd.f32 %v8981_v8, %v12366_v10 }
 0x2b5   : > { %14688 = vst [vmem:[#allocation165_spill] sm:$0xff] %v12527_v27  ;;  %v12534_v20 = vadd.f32 %v9093_v18, %v4168_v14  ;;  %v4197_v2 = vpop.f32.mrf.mxu0  ;;  %9518 = vmatprep.mubr.f32.mxu1 %v14679_v16  ;;  %v14694_v27 = vld [vmem:[#allocation33_spill] sm:$0xff] }
 0x2b6   : > { %v4793_v32 = vpop.f32.mrf.mxu1  ;;  %v4198_v6 = vadd.f32 %v4197_v2, %v12366_v10 }
 0x2b7   : > { %14692 = vst [vmem:[#allocation214_spill] sm:$0xff] %v12534_v20  ;;  %v12537_v60 = vadd.f32 %v4793_v32, %v4158_v23  ;;  %v8984_v24 = vpop.f32.mrf.mxu0  ;;  %9407 = vmatmul.mubr.f32.gmra.mxu0 %v14694_v27 }
 0x2b8   : > { %v9096_v37 = vpop.f32.mrf.mxu1  ;;  %9519 = vmatmul.mubr.f32.vlgmr.msra.gmra.mxu1 %v14683_v54  ;;  %9409 = vmatprep.mubr.f32.mxu0 %v14695_v42  ;;  %v14699_v54 = vld [vmem:[#allocation38_spill] sm:$0xff]  ;;  %v4228_v8 = vadd.f32 %v8984_v24, %v12366_v10 }
 0x2b9   : > { %14693 = vst [vmem:[#allocation170_spill] sm:$0xff] %v12537_v60  ;;  %v12544_v18 = vadd.f32 %v9096_v37, %v4188_v47  ;;  %v4217_v14 = vpop.f32.mrf.mxu0  ;;  %9521 = vmatprep.mubr.f32.mxu1 %v14685_v28  ;;  %v14698_v60 = vld [vmem:[#allocation36_spill] sm:$0xff] }
 0x2ba   : > { %v4805_v16 = vpop.f32.mrf.mxu1  ;;  %v4218_v2 = vadd.f32 %v4217_v14, %v12366_v10 }
 0x2bb   : > { %14696 = vst [vmem:[#allocation217_spill] sm:$0xff] %v12544_v18  ;;  %v12547_v23 = vadd.f32 %v4805_v16, %v4178_v1  ;;  %v8987_v32 = vpop.f32.mrf.mxu0  ;;  %9410 = vmatmul.mubr.f32.gmra.mxu0 %v14698_v60 }
 0x2bc   : > { %v9099_v20 = vpop.f32.mrf.mxu1  ;;  %9522 = vmatmul.mubr.f32.gmra.mxu1 %v14689_v46  ;;  %9412 = vmatprep.mubr.f32.mxu0 %v14699_v54  ;;  %v14703_v46 = vld [vmem:[#allocation45_spill] sm:$0xff]  ;;  %v4248_v24 = vadd.f32 %v8987_v32, %v12366_v10 }
 0x2bd   : > { %14697 = vst [vmem:[#allocation173_spill] sm:$0xff] %v12547_v23  ;;  %v12554_v37 = vadd.f32 %v9099_v20, %v4208_v53  ;;  %v4237_v47 = vpop.f32.mrf.mxu0  ;;  %9524 = vmatprep.mubr.f32.mxu1 %v14691_v34  ;;  %v14702_v23 = vld [vmem:[#allocation42_spill] sm:$0xff] }
 0x2be   : > { %v4817_v28 = vpop.f32.mrf.mxu1  ;;  %v4238_v14 = vadd.f32 %v4237_v47, %v12366_v10 }
 0x2bf   : > { %14700 = vst [vmem:[#allocation222_spill] sm:$0xff] %v12554_v37  ;;  %v12557_v1 = vadd.f32 %v4817_v28, %v4198_v6  ;;  %v8990_v16 = vpop.f32.mrf.mxu0  ;;  %9413 = vmatmul.mubr.f32.gmra.mxu0 %v14702_v23 }
 0x2c0   : > { %v9102_v18 = vpop.f32.mrf.mxu1  ;;  %9525 = vmatmul.mubr.f32.gmra.mxu1 %v14694_v27  ;;  %9415 = vmatprep.mubr.f32.mxu0 %v14703_v46  ;;  %v14707_v27 = vld [vmem:[#allocation59_spill] sm:$0xff]  ;;  %v4268_v32 = vadd.f32 %v8990_v16, %v12366_v10 }
 0x2c1   : > { %14701 = vst [vmem:[#allocation176_spill] sm:$0xff] %v12557_v1  ;;  %v12564_v20 = vadd.f32 %v9102_v18, %v4228_v8  ;;  %v4257_v53 = vpop.f32.mrf.mxu0  ;;  %9527 = vmatprep.mubr.f32.mxu1 %v14695_v42  ;;  %v14706_v1 = vld [vmem:[#allocation51_spill] sm:$0xff] }
 0x2c2   : > { %v4829_v34 = vpop.f32.mrf.mxu1  ;;  %v4258_v47 = vadd.f32 %v4257_v53, %v12366_v10 }
 0x2c3   : > { %14704 = vst [vmem:[#allocation228_spill] sm:$0xff] %v12564_v20  ;;  %v12567_v6 = vadd.f32 %v4829_v34, %v4218_v2  ;;  %v8993_v28 = vpop.f32.mrf.mxu0  ;;  %9416 = vmatmul.mubr.f32.gmra.mxu0 %v14706_v1 }
 0x2c4   : > { %v9105_v37 = vpop.f32.mrf.mxu1  ;;  %9528 = vmatmul.mubr.f32.gmra.mxu1 %v14698_v60  ;;  %9418 = vmatprep.mubr.f32.mxu0 %v14707_v27  ;;  %v14711_v60 = vld [vmem:[#allocation64_spill] sm:$0xff]  ;;  %v4288_v16 = vadd.f32 %v8993_v28, %v12366_v10 }
 0x2c5   : > { %14705 = vst [vmem:[#allocation179_spill] sm:$0xff] %v12567_v6  ;;  %v12574_v18 = vadd.f32 %v9105_v37, %v4248_v24  ;;  %v4277_v8 = vpop.f32.mrf.mxu0  ;;  %9530 = vmatprep.mubr.f32.mxu1 %v14699_v54  ;;  %v14710_v6 = vld [vmem:[#allocation63_spill] sm:$0xff] }
 0x2c6   : > { %v4841_v42 = vpop.f32.mrf.mxu1  ;;  %v4278_v53 = vadd.f32 %v4277_v8, %v12366_v10 }
 0x2c7   : > { %14708 = vst [vmem:[#allocation233_spill] sm:$0xff] %v12574_v18  ;;  %v12577_v2 = vadd.f32 %v4841_v42, %v4238_v14  ;;  %v8996_v34 = vpop.f32.mrf.mxu0  ;;  %9419 = vmatmul.mubr.f32.gmra.mxu0 %v14710_v6 }
 0x2c8   : > { %v9108_v20 = vpop.f32.mrf.mxu1  ;;  %9531 = vmatmul.mubr.f32.gmra.mxu1 %v14702_v23  ;;  %9421 = vmatprep.mubr.f32.mxu0 %v14711_v60  ;;  %v14715_v23 = vld [vmem:[#allocation69_spill] sm:$0xff]  ;;  %v4308_v28 = vadd.f32 %v8996_v34, %v12366_v10 }
 0x2c9   : > { %14709 = vst [vmem:[#allocation236_spill] sm:$0xff] %v12577_v2  ;;  %v12584_v37 = vadd.f32 %v9108_v20, %v4268_v32  ;;  %v4297_v24 = vpop.f32.mrf.mxu0  ;;  %9533 = vmatprep.mubr.f32.mxu1 %v14703_v46  ;;  %v14714_v2 = vld [vmem:[#allocation65_spill] sm:$0xff] }
 0x2ca   : > { %v4853_v54 = vpop.f32.mrf.mxu1  ;;  %v4298_v8 = vadd.f32 %v4297_v24, %v12366_v10 }
 0x2cb   : > { %14712 = vst [vmem:[#allocation187_spill] sm:$0xff] %v12584_v37  ;;  %v12587_v14 = vadd.f32 %v4853_v54, %v4258_v47  ;;  %v8999_v42 = vpop.f32.mrf.mxu0  ;;  %9422 = vmatmul.mubr.f32.gmra.mxu0 %v14714_v2 }
 0x2cc   : > { %v9111_v18 = vpop.f32.mrf.mxu1  ;;  %9534 = vmatmul.mubr.f32.gmra.mxu1 %v14706_v1  ;;  %9424 = vmatprep.mubr.f32.mxu0 %v14715_v23  ;;  %v14719_v1 = vld [vmem:[#allocation75_spill] sm:$0xff]  ;;  %v4328_v34 = vadd.f32 %v8999_v42, %v12366_v10 }
 0x2cd   : > { %14713 = vst [vmem:[#allocation240_spill] sm:$0xff] %v12587_v14  ;;  %v12594_v20 = vadd.f32 %v9111_v18, %v4288_v16  ;;  %v4317_v32 = vpop.f32.mrf.mxu0  ;;  %9536 = vmatprep.mubr.f32.mxu1 %v14707_v27  ;;  %v14718_v14 = vld [vmem:[#allocation72_spill] sm:$0xff] }
 0x2ce   : > { %v4865_v46 = vpop.f32.mrf.mxu1  ;;  %v4318_v24 = vadd.f32 %v4317_v32, %v12366_v10 }
 0x2cf   : > { %14716 = vst [vmem:[#allocation243_spill] sm:$0xff] %v12594_v20  ;;  %v12597_v47 = vadd.f32 %v4865_v46, %v4278_v53  ;;  %v9002_v54 = vpop.f32.mrf.mxu0  ;;  %9425 = vmatmul.mubr.f32.gmra.mxu0 %v14718_v14 }
 0x2d0   : > { %v9114_v37 = vpop.f32.mrf.mxu1  ;;  %9537 = vmatmul.mubr.f32.gmra.mxu1 %v14710_v6  ;;  %9427 = vmatprep.mubr.f32.mxu0 %v14719_v1  ;;  %v14723_v6 = vld [vmem:[#allocation85_spill] sm:$0xff]  ;;  %v4348_v42 = vadd.f32 %v9002_v54, %v12366_v10 }
 0x2d1   : > { %14717 = vst [vmem:[#allocation197_spill] sm:$0xff] %v12597_v47  ;;  %v12604_v18 = vadd.f32 %v9114_v37, %v4308_v28  ;;  %v4337_v16 = vpop.f32.mrf.mxu0  ;;  %9539 = vmatprep.mubr.f32.mxu1 %v14711_v60  ;;  %v14722_v47 = vld [vmem:[#allocation80_spill] sm:$0xff] }
 0x2d2   : > { %v4877_v27 = vpop.f32.mrf.mxu1  ;;  %v4338_v32 = vadd.f32 %v4337_v16, %v12366_v10 }
 0x2d3   : > { %14720 = vst [vmem:[#allocation184_spill] sm:$0xff] %v12604_v18  ;;  %v12607_v53 = vadd.f32 %v4877_v27, %v4298_v8  ;;  %v9005_v46 = vpop.f32.mrf.mxu0  ;;  %9428 = vmatmul.mubr.f32.gmra.mxu0 %v14722_v47 }
 0x2d4   : > { %v9117_v20 = vpop.f32.mrf.mxu1  ;;  %9540 = vmatmul.mubr.f32.gmra.mxu1 %v14714_v2  ;;  %9430 = vmatprep.mubr.f32.mxu0 %v14723_v6  ;;  %v14727_v2 = vld [vmem:[#allocation93_spill] sm:$0xff]  ;;  %v4368_v54 = vadd.f32 %v9005_v46, %v12366_v10 }
 0x2d5   : > { %14721 = vst [vmem:[#allocation246_spill] sm:$0xff] %v12607_v53  ;;  %v12614_v37 = vadd.f32 %v9117_v20, %v4328_v34  ;;  %v4357_v28 = vpop.f32.mrf.mxu0  ;;  %9542 = vmatprep.mubr.f32.mxu1 %v14715_v23  ;;  %v14726_v53 = vld [vmem:[#allocation90_spill] sm:$0xff] }
 0x2d6   : > { %v4889_v60 = vpop.f32.mrf.mxu1  ;;  %v4358_v16 = vadd.f32 %v4357_v28, %v12366_v10 }
 0x2d7   : > { %14724 = vst [vmem:[#allocation193_spill] sm:$0xff] %v12614_v37  ;;  %v12617_v8 = vadd.f32 %v4889_v60, %v4318_v24  ;;  %v9008_v27 = vpop.f32.mrf.mxu0  ;;  %9431 = vmatmul.mubr.f32.gmra.mxu0 %v14726_v53 }
 0x2d8   : > { %v9120_v18 = vpop.f32.mrf.mxu1  ;;  %9543 = vmatmul.mubr.f32.gmra.mxu1 %v14718_v14  ;;  %9433 = vmatprep.mubr.f32.mxu0 %v14727_v2  ;;  %v14731_v14 = vld [vmem:[#allocation99_spill] sm:$0xff]  ;;  %v4388_v46 = vadd.f32 %v9008_v27, %v12366_v10 }
 0x2d9   : > { %14725 = vst [vmem:[#allocation248_spill] sm:$0xff] %v12617_v8  ;;  %v12624_v20 = vadd.f32 %v9120_v18, %v4348_v42  ;;  %v4377_v34 = vpop.f32.mrf.mxu0  ;;  %9545 = vmatprep.mubr.f32.mxu1 %v14719_v1  ;;  %v14730_v8 = vld [vmem:[#allocation96_spill] sm:$0xff] }
 0x2da   : > { %v4901_v23 = vpop.f32.mrf.mxu1  ;;  %v4378_v28 = vadd.f32 %v4377_v34, %v12366_v10 }
 0x2db   : > { %14728 = vst [vmem:[#allocation6_spill] sm:$0xff] %v12624_v20  ;;  %v12627_v24 = vadd.f32 %v4901_v23, %v4338_v32  ;;  %v9011_v60 = vpop.f32.mrf.mxu0  ;;  %9434 = vmatmul.mubr.f32.gmra.mxu0 %v14730_v8 }
 0x2dc   : > { %v9123_v37 = vpop.f32.mrf.mxu1  ;;  %9546 = vmatmul.mubr.f32.gmra.mxu1 %v14722_v47  ;;  %9436 = vmatprep.mubr.f32.mxu0 %v14731_v14  ;;  %v14735_v47 = vld [vmem:[#allocation107_spill] sm:$0xff]  ;;  %v4408_v27 = vadd.f32 %v9011_v60, %v12366_v10 }
 0x2dd   : > { %14729 = vst [vmem:[#allocation254_spill] sm:$0xff] %v12627_v24  ;;  %v12634_v18 = vadd.f32 %v9123_v37, %v4368_v54  ;;  %v4397_v42 = vpop.f32.mrf.mxu0  ;;  %9548 = vmatprep.mubr.f32.mxu1 %v14723_v6  ;;  %v14734_v24 = vld [vmem:[#allocation104_spill] sm:$0xff] }
 0x2de   : > { %v4913_v1 = vpop.f32.mrf.mxu1  ;;  %v4398_v34 = vadd.f32 %v4397_v42, %v12366_v10 }
 0x2df   : > { %14732 = vst [vmem:[#allocation258_spill] sm:$0xff] %v12634_v18  ;;  %v12637_v32 = vadd.f32 %v4913_v1, %v4358_v16  ;;  %v9014_v23 = vpop.f32.mrf.mxu0  ;;  %9437 = vmatmul.mubr.f32.gmra.mxu0 %v14734_v24 }
 0x2e0   : > { %v9126_v20 = vpop.f32.mrf.mxu1  ;;  %9549 = vmatmul.mubr.f32.gmra.mxu1 %v14726_v53  ;;  %9439 = vmatprep.mubr.f32.mxu0 %v14735_v47  ;;  %v14738_v53 = vld [vmem:[#allocation117_spill] sm:$0xff]  ;;  %v4428_v60 = vadd.f32 %v9014_v23, %v12366_v10 }
 0x2e1   : > { %14733 = vst [vmem:[#allocation213_spill] sm:$0xff] %v12637_v32  ;;  %v12644_v37 = vadd.f32 %v9126_v20, %v4388_v46  ;;  %v4417_v54 = vpop.f32.mrf.mxu0  ;;  %9551 = vmatprep.mubr.f32.mxu1 %v14727_v2  ;;  %v14737_v32 = vld [vmem:[#allocation113_spill] sm:$0xff] }
 0x2e2   : > { %v4925_v6 = vpop.f32.mrf.mxu1  ;;  %v4418_v42 = vadd.f32 %v4417_v54, %v12366_v10 }
 0x2e3   : > { %v12647_v16 = vadd.f32 %v4925_v6, %v4378_v28  ;;  %v9017_v1 = vpop.f32.mrf.mxu0  ;;  %9440 = vmatmul.mubr.f32.gmra.mxu0 %v14737_v32 }
 0x2e4   : > { %v9129_v18 = vpop.f32.mrf.mxu1  ;;  %9552 = vmatmul.mubr.f32.gmra.mxu1 %v14730_v8  ;;  %9442 = vmatprep.mubr.f32.mxu0 %v14738_v53  ;;  %v14741_v8 = vld [vmem:[#allocation125_spill] sm:$0xff]  ;;  %v4448_v23 = vadd.f32 %v9017_v1, %v12366_v10 }
 0x2e5   : > { %14736 = vst [vmem:[#allocation10_spill] sm:$0xff] %v12647_v16  ;;  %v12654_v20 = vadd.f32 %v9129_v18, %v4408_v27  ;;  %v4437_v46 = vpop.f32.mrf.mxu0  ;;  %9554 = vmatprep.mubr.f32.mxu1 %v14731_v14 }
 0x2e6   : > { %v4937_v2 = vpop.f32.mrf.mxu1  ;;  %v4438_v54 = vadd.f32 %v4437_v46, %v12366_v10 }
 0x2e7   : > { %14739 = vst [vmem:[#allocation261_spill] sm:$0xff] %v12654_v20  ;;  %v12657_v28 = vadd.f32 %v4937_v2, %v4398_v34  ;;  %v9020_v6 = vpop.f32.mrf.mxu0  ;;  %9443 = vmatmul.mubr.f32.gmra.mxu0 %v14387_v49 }
 0x2e8   : > { %v9132_v16 = vpop.f32.mrf.mxu1  ;;  %9555 = vmatmul.mubr.f32.gmra.mxu1 %v14734_v24  ;;  %9445 = vmatprep.mubr.f32.mxu0 %v14741_v8  ;;  %v14745_v24 = vld [vmem:[#allocation133_spill] sm:$0xff]  ;;  %v4468_v1 = vadd.f32 %v9020_v6, %v12366_v10 }
 0x2e9   : > { %14740 = vst [vmem:[#allocation17_spill] sm:$0xff] %v12657_v28  ;;  %v12664_v18 = vadd.f32 %v9132_v16, %v4428_v60  ;;  %v4457_v27 = vpop.f32.mrf.mxu0  ;;  %9557 = vmatprep.mubr.f32.mxu1 %v14735_v47  ;;  %v14744_v28 = vld [vmem:[#allocation130_spill] sm:$0xff] }
 0x2ea   : > { %v4949_v14 = vpop.f32.mrf.mxu1  ;;  %v4458_v46 = vadd.f32 %v4457_v27, %v12366_v10 }
 0x2eb   : > { %14742 = vst [vmem:[#allocation264_spill] sm:$0xff] %v12664_v18  ;;  %v12667_v34 = vadd.f32 %v4949_v14, %v4418_v42  ;;  %v9023_v2 = vpop.f32.mrf.mxu0  ;;  %9446 = vmatmul.mubr.f32.gmra.mxu0 %v14744_v28 }
 0x2ec   : > { %v9135_v20 = vpop.f32.mrf.mxu1  ;;  %9558 = vmatmul.mubr.f32.gmra.mxu1 %v14737_v32  ;;  %9448 = vmatprep.mubr.f32.mxu0 %v14745_v24 }
 0x2ed   : > { %14743 = vst [vmem:[#allocation219_spill] sm:$0xff] %v12667_v34  ;;  %v12674_v16 = vadd.f32 %v9135_v20, %v4448_v23  ;;  %v4477_v60 = vpop.f32.mrf.mxu0  ;;  %9560 = vmatprep.mubr.f32.mxu1 %v14738_v53  ;;  %v14747_v34 = vld [vmem:[#allocation136_spill] sm:$0xff]  ;;  %v4488_v20 = vadd.f32 %v9023_v2, %v12366_v10 }
 0x2ee   : > { %v4961_v47 = vpop.f32.mrf.mxu1 }
 0x2ef   : > { %v12677_v42 = vadd.f32 %v4961_v47, %v4438_v54  ;;  %v9166_v14 = vpop.f32.mrf.mxu0  ;;  %9449 = vmatmul.mubr.f32.gmra.mxu0 %v14747_v34 }
 0x2f0   : > { %v9138_v18 = vpop.f32.mrf.mxu1  ;;  %v5093_v32 = vadd.f32 %v9166_v14, %v12384_v4  ;;  %9561 = vmatmul.mubr.f32.gmra.mxu1 %v14387_v49  ;;  %9451 = vmatprep.mubr.f32.mxu0 %v14397_v13 }
 0x2f1   : > { %14746 = vst [vmem:[#allocation26_spill] sm:$0xff] %v12677_v42  ;;  %v12685_v6 = vadd.f32 %v9138_v18, %v4468_v1  ;;  %v5085_v53 = vpop.f32.mrf.mxu0  ;;  %9563 = vmatprep.mubr.f32.mxu1 %v14741_v8  ;;  %v4478_v18 = vadd.f32 %v4477_v60, %v12366_v10 }
 0x2f2   : > { %v4973_v23 = vpop.f32.mrf.mxu1  ;;  %v5086_v54 = vadd.f32 %v5085_v53, %v12387_v40 }
 0x2f3   : > { %v12689_v47 = vadd.f32 %v4973_v23, %v4458_v46  ;;  %v9169_v42 = vpop.f32.mrf.mxu0  ;;  %9452 = vmatmul.mubr.f32.gmra.mxu0 %v14400_v26 }
 0x2f4   : > { %v9141_v49 = vpop.f32.mrf.mxu1  ;;  %v5107_v4 = vadd.f32 %v9169_v42, %v12394_v56  ;;  %9564 = vmatmul.mubr.f32.gmra.mxu1 %v14744_v28  ;;  %9454 = vmatprep.mubr.f32.mxu0 %v14403_v55 }
 0x2f5   : > { %v12696_v27 = vadd.f32 %v9141_v49, %v4488_v20  ;;  %v5099_v8 = vpop.f32.mrf.mxu0  ;;  %9566 = vmatprep.mubr.f32.mxu1 %v14745_v24 }
 0x2f6   : > { %v4985_v40 = vpop.f32.mrf.mxu1  ;;  %v5100_v2 = vadd.f32 %v5099_v8, %v12397_v11 }
 0x2f7   : > { %v12700_v1 = vadd.f32 %v4985_v40, %v4478_v18  ;;  %v9172_v14 = vpop.f32.mrf.mxu0  ;;  %9455 = vmatmul.mubr.f32.gmra.mxu0 %v14406_v39 }
 0x2f8   : > { %v5121_v56 = vadd.f32 %v9172_v14, %v12404_v9  ;;  %v9284_v28 = vpop.f32.mrf.mxu1  ;;  %9567 = vmatmul.mubr.f32.gmra.mxu1 %v14747_v34  ;;  %9457 = vmatprep.mubr.f32.mxu0 %v14409_v63 }
 0x2f9   : > { %v12706_v10 = vadd.f32 %v9284_v28, %v5093_v32  ;;  %v5113_v60 = vpop.f32.mrf.mxu0  ;;  %9569 = vmatprep.mubr.f32.mxu1 %v14397_v13 }
 0x2fa   : > { %v5114_v24 = vadd.f32 %v5113_v60, %v12407_v31  ;;  %v5610_v11 = vpop.f32.mrf.mxu1 }
 0x2fb   : > { %v12710_v42 = vadd.f32 %v5610_v11, %v5086_v54  ;;  %v9175_v46 = vpop.f32.mrf.mxu0  ;;  %9458 = vmatmul.mubr.f32.gmra.mxu0 %v14412_v38 }
 0x2fc   : > { %v5135_v9 = vadd.f32 %v9175_v46, %v12414_v30  ;;  %v9287_v20 = vpop.f32.mrf.mxu1  ;;  %9570 = vmatmul.mubr.f32.gmra.mxu1 %v14400_v26  ;;  %9460 = vmatprep.mubr.f32.mxu0 %v14415_v15 }
 0x2fd   : > { %v12716_v34 = vadd.f32 %v9287_v20, %v5107_v4  ;;  %v5127_v32 = vpop.f32.mrf.mxu0  ;;  %9572 = vmatprep.mubr.f32.mxu1 %v14403_v55 }
 0x2fe   : > { %v5128_v13 = vadd.f32 %v5127_v32, %v12417_v52  ;;  %v5626_v31 = vpop.f32.mrf.mxu1  ;;  %v14748_v32 = vld [vmem:[#allocation200_spill] sm:$0xff] }
 0x2ff   : > { %v12720_v53 = vadd.f32 %v5626_v31, %v5100_v2  ;;  %v9178_v23 = vpop.f32.mrf.mxu0  ;;  %9461 = vmatmul.mubr.f32.gmra.mxu0 %v14418_v58 }
 0x300   : > { %v5149_v30 = vadd.f32 %v9178_v23, %v12424_v21  ;;  %v9290_v54 = vpop.f32.mrf.mxu1  ;;  %9573 = vmatmul.mubr.f32.gmra.mxu1 %v14406_v39  ;;  %9463 = vmatprep.mubr.f32.mxu0 %v14421_v19 }
 0x301   : > { %v12726_v26 = vadd.f32 %v9290_v54, %v5121_v56  ;;  %v5141_v49 = vpop.f32.mrf.mxu0  ;;  %9575 = vmatprep.mubr.f32.mxu1 %v14409_v63 }
 0x302   : > { %v5142_v55 = vadd.f32 %v5141_v49, %v12427_v50  ;;  %v5642_v52 = vpop.f32.mrf.mxu1  ;;  %v14750_v49 = vld [vmem:[#allocation210_spill] sm:$0xff] }
 0x303   : > { %v12730_v4 = vadd.f32 %v5642_v52, %v5114_v24  ;;  %v9181_v18 = vpop.f32.mrf.mxu0  ;;  %9464 = vmatmul.mubr.f32.gmra.mxu0 %v14424_v48 }
 0x304   : > { %v5163_v21 = vadd.f32 %v9181_v18, %v12434_v43  ;;  %v9293_v8 = vpop.f32.mrf.mxu1  ;;  %9576 = vmatmul.mubr.f32.gmra.mxu1 %v14412_v38  ;;  %9466 = vmatprep.mubr.f32.mxu0 %v14427_v22 }
 0x305   : > { %v12736_v39 = vadd.f32 %v9293_v8, %v5135_v9  ;;  %v5155_v40 = vpop.f32.mrf.mxu0  ;;  %9578 = vmatprep.mubr.f32.mxu1 %v14415_v15  ;;  %v14751_v8 = vld [vmem:[#allocation216_spill] sm:$0xff] }
 0x306   : > { %v5156_v63 = vadd.f32 %v5155_v40, %v12437_v62  ;;  %v5658_v50 = vpop.f32.mrf.mxu1 }
 0x307   : > { %v12740_v2 = vadd.f32 %v5658_v50, %v5128_v13  ;;  %v9184_v14 = vpop.f32.mrf.mxu0  ;;  %9467 = vmatmul.mubr.f32.gmra.mxu0 %v14246_v35 }
 0x308   : > { %v5177_v43 = vadd.f32 %v9184_v14, %v12444_v36  ;;  %v9296_v56 = vpop.f32.mrf.mxu1  ;;  %9579 = vmatmul.mubr.f32.gmra.mxu1 %v14418_v58  ;;  %9469 = vmatprep.mubr.f32.mxu0 %v14432_v57 }
 0x309   : > { %v12746_v38 = vadd.f32 %v9296_v56, %v5149_v30  ;;  %v5169_v28 = vpop.f32.mrf.mxu0  ;;  %9581 = vmatprep.mubr.f32.mxu1 %v14421_v19  ;;  %v14752_v56 = vld [vmem:[#allocation227_spill] sm:$0xff] }
 0x30a   : > { %v5170_v15 = vadd.f32 %v5169_v28, %v12447_v12  ;;  %v5674_v62 = vpop.f32.mrf.mxu1 }
 0x30b   : > { %v12750_v60 = vadd.f32 %v5674_v62, %v5142_v55  ;;  %v9187_v24 = vpop.f32.mrf.mxu0  ;;  %9470 = vmatmul.mubr.f32.gmra.mxu0 %v14248_v45  ;;  %v14753_v62 = vld [vmem:[#allocation153_spill] sm:$0xff] }
 0x30c   : > { %v5191_v36 = vadd.f32 %v9187_v24, %v12454_v61  ;;  %v9299_v11 = vpop.f32.mrf.mxu1  ;;  %9582 = vmatmul.mubr.f32.gmra.mxu1 %v14424_v48  ;;  %9472 = vmatprep.mubr.f32.mxu0 %v14437_v41  ;;  %v14749_v48 = vld [vmem:[#allocation205_spill] sm:$0xff] }
 0x30d   : > { %v12756_v58 = vadd.f32 %v9299_v11, %v5163_v21  ;;  %v5183_v46 = vpop.f32.mrf.mxu0  ;;  %9584 = vmatprep.mubr.f32.mxu1 %v14427_v22 }
 0x30e   : > { %v5184_v19 = vadd.f32 %v5183_v46, %v12457_v33  ;;  %v5690_v12 = vpop.f32.mrf.mxu1  ;;  %v14754_v46 = vld [vmem:[#allocation232_spill] sm:$0xff] }
 0x30f   : > { %v12760_v9 = vadd.f32 %v5690_v12, %v5156_v63  ;;  %v9190_v20 = vpop.f32.mrf.mxu0  ;;  %9473 = vmatmul.mubr.f32.gmra.mxu0 %v14748_v32 }
 0x310   : > { %v5205_v61 = vadd.f32 %v9190_v20, %v12464_v3  ;;  %v9302_v13 = vpop.f32.mrf.mxu1  ;;  %9585 = vmatmul.mubr.f32.gmra.mxu1 %v14246_v35  ;;  %9475 = vmatprep.mubr.f32.mxu0 %v14749_v48  ;;  %v14756_v20 = vld [vmem:[#allocation237_spill] sm:$0xff] }
 0x311   : > { %v12766_v31 = vadd.f32 %v9302_v13, %v5177_v43  ;;  %v5197_v23 = vpop.f32.mrf.mxu0  ;;  %9587 = vmatprep.mubr.f32.mxu1 %v14432_v57 }
 0x312   : > { %v5198_v22 = vadd.f32 %v5197_v23, %v12467_v17  ;;  %v5706_v33 = vpop.f32.mrf.mxu1 }
 0x313   : > { %v12770_v30 = vadd.f32 %v5706_v33, %v5170_v15  ;;  %v9193_v54 = vpop.f32.mrf.mxu0  ;;  %9476 = vmatmul.mubr.f32.gmra.mxu0 %v14750_v49  ;;  %v14758_v33 = vld [vmem:[#allocation242_spill] sm:$0xff] }
 0x314   : > { %v5219_v3 = vadd.f32 %v9193_v54, %v12474_v5  ;;  %v9305_v55 = vpop.f32.mrf.mxu1  ;;  %9588 = vmatmul.mubr.f32.gmra.mxu1 %v14248_v45  ;;  %9478 = vmatprep.mubr.f32.mxu0 %v14452_v0  ;;  %v14759_v54 = vld [vmem:[#allocation206_spill] sm:$0xff] }
 0x315   : > { %v12776_v35 = vadd.f32 %v9305_v55, %v5191_v36  ;;  %v5211_v52 = vpop.f32.mrf.mxu0  ;;  %9590 = vmatprep.mubr.f32.mxu1 %v14437_v41  ;;  %v14760_v55 = vld [vmem:[#allocation245_spill] sm:$0xff] }
 0x316   : > { %v5212_v57 = vadd.f32 %v5211_v52, %v12477_v59  ;;  %v5722_v17 = vpop.f32.mrf.mxu1 }
 0x317   : > { %v12780_v18 = vadd.f32 %v5722_v17, %v5184_v19  ;;  %v9196_v21 = vpop.f32.mrf.mxu0  ;;  %9479 = vmatmul.mubr.f32.gmra.mxu0 %v14751_v8  ;;  %v14755_v19 = vld [vmem:[#allocation203_spill] sm:$0xff] }
 0x318   : > { %v5233_v5 = vadd.f32 %v9196_v21, %v12484_v25  ;;  %v9308_v40 = vpop.f32.mrf.mxu1  ;;  %9591 = vmatmul.mubr.f32.gmra.mxu1 %v14748_v32  ;;  %9481 = vmatprep.mubr.f32.mxu0 %v14460_v29 }
 0x319   : > { %v12786_v45 = vadd.f32 %v9308_v40, %v5205_v61  ;;  %v5225_v63 = vpop.f32.mrf.mxu0  ;;  %9593 = vmatprep.mubr.f32.mxu1 %v14749_v48  ;;  %v14762_v40 = vld [vmem:[#allocation250_spill] sm:$0xff] }
 0x31a   : > { %v5226_v41 = vadd.f32 %v5225_v63, %v12487_v51  ;;  %v5738_v59 = vpop.f32.mrf.mxu1  ;;  %v14763_v63 = vld [vmem:[#allocation209_spill] sm:$0xff] }
 0x31b   : > { %v12790_v50 = vadd.f32 %v5738_v59, %v5198_v22  ;;  %v9199_v14 = vpop.f32.mrf.mxu0  ;;  %9482 = vmatmul.mubr.f32.gmra.mxu0 %v14464_v7 }
 0x31c   : > { %v5247_v25 = vadd.f32 %v9199_v14, %v12494_v44  ;;  %v9311_v43 = vpop.f32.mrf.mxu1  ;;  %9594 = vmatmul.mubr.f32.gmra.mxu1 %v14750_v49  ;;  %9484 = vmatprep.mubr.f32.mxu0 %v14752_v56 }
 0x31d   : > { %v12796_v28 = vadd.f32 %v9311_v43, %v5219_v3  ;;  %v5239_v15 = vpop.f32.mrf.mxu0  ;;  %9596 = vmatprep.mubr.f32.mxu1 %v14452_v0  ;;  %v14757_v0 = vld [vmem:[#allocation157_spill] sm:$0xff] }
 0x31e   : > { %v5240_v51 = vadd.f32 %v5239_v15, %v14753_v62  ;;  %v5754_v24 = vpop.f32.mrf.mxu1  ;;  %v14765_v43 = vld [vmem:[#allocation165_spill] sm:$0xff] }
 0x31f   : > { %v12800_v36 = vadd.f32 %v5754_v24, %v5212_v57  ;;  %v9202_v11 = vpop.f32.mrf.mxu0  ;;  %9485 = vmatmul.mubr.f32.gmra.mxu0 %v14754_v46  ;;  %v14766_v24 = vld [vmem:[#allocation257_spill] sm:$0xff] }
 0x320   : > { %v5261_v44 = vadd.f32 %v9202_v11, %v14755_v19  ;;  %v9314_v12 = vpop.f32.mrf.mxu1  ;;  %9597 = vmatmul.mubr.f32.gmra.mxu1 %v14751_v8  ;;  %9487 = vmatprep.mubr.f32.mxu0 %v14756_v20  ;;  %v14767_v11 = vld [vmem:[#allocation214_spill] sm:$0xff] }
 0x321   : > { %v12806_v32 = vadd.f32 %v9314_v12, %v5233_v5  ;;  %v5253_v61 = vpop.f32.mrf.mxu0  ;;  %9599 = vmatprep.mubr.f32.mxu1 %v14460_v29  ;;  %v14761_v29 = vld [vmem:[#allocation160_spill] sm:$0xff] }
 0x322   : > { %v5254_v13 = vadd.f32 %v5253_v61, %v14757_v0  ;;  %v5770_v48 = vpop.f32.mrf.mxu1  ;;  %v14768_v61 = vld [vmem:[#allocation170_spill] sm:$0xff] }
 0x323   : > { %v12810_v23 = vadd.f32 %v5770_v48, %v5226_v41  ;;  %v9205_v22 = vpop.f32.mrf.mxu0  ;;  %9488 = vmatmul.mubr.f32.gmra.mxu0 %v14758_v33 }
 0x324   : > { %v5275_v49 = vadd.f32 %v9205_v22, %v14759_v54  ;;  %v9317_v3 = vpop.f32.mrf.mxu1  ;;  %9600 = vmatmul.mubr.f32.gmra.mxu1 %v14464_v7  ;;  %9490 = vmatprep.mubr.f32.mxu0 %v14760_v55  ;;  %v14764_v7 = vld [vmem:[#allocation253_spill] sm:$0xff] }
 0x325   : > { %v12816_v52 = vadd.f32 %v9317_v3, %v5247_v25  ;;  %v5267_v57 = vpop.f32.mrf.mxu0  ;;  %9602 = vmatprep.mubr.f32.mxu1 %v14752_v56  ;;  %v14769_v22 = vld [vmem:[#allocation217_spill] sm:$0xff] }
 0x326   : > { %v5268_v17 = vadd.f32 %v5267_v57, %v14761_v29  ;;  %v5786_v21 = vpop.f32.mrf.mxu1 }
 0x327   : > { %v12820_v8 = vadd.f32 %v5786_v21, %v5240_v51  ;;  %v9208_v5 = vpop.f32.mrf.mxu0  ;;  %9491 = vmatmul.mubr.f32.gmra.mxu0 %v14762_v40 }
 0x328   : > { %v5289_v41 = vadd.f32 %v9208_v5, %v14763_v63  ;;  %v9320_v59 = vpop.f32.mrf.mxu1  ;;  %9603 = vmatmul.mubr.f32.gmra.mxu1 %v14754_v46  ;;  %9493 = vmatprep.mubr.f32.mxu0 %v14764_v7  ;;  %v14771_v63 = vld [vmem:[#allocation222_spill] sm:$0xff] }
 0x329   : > { %v12826_v14 = vadd.f32 %v9320_v59, %v5261_v44  ;;  %v5281_v25 = vpop.f32.mrf.mxu0  ;;  %9605 = vmatprep.mubr.f32.mxu1 %v14756_v20 }
 0x32a   : > { %v5282_v56 = vadd.f32 %v5281_v25, %v14765_v43  ;;  %v5802_v15 = vpop.f32.mrf.mxu1 }
 0x32b   : > { %v12830_v62 = vadd.f32 %v5802_v15, %v5254_v13  ;;  %v9211_v51 = vpop.f32.mrf.mxu0  ;;  %9494 = vmatmul.mubr.f32.gmra.mxu0 %v14766_v24 }
 0x32c   : > { %v5303_v19 = vadd.f32 %v9211_v51, %v14767_v11  ;;  %v9323_v12 = vpop.f32.mrf.mxu1  ;;  %9606 = vmatmul.mubr.f32.gmra.mxu1 %v14758_v33  ;;  %v14770_v33 = vld [vmem:[#allocation173_spill] sm:$0xff]  ;;  %v14773_v11 = vld [vmem:[#allocation228_spill] sm:$0xff] }
 0x32d   : > { %v12835_v46 = vadd.f32 %v9323_v12, %v5275_v49  ;;  %v5295_v44 = vpop.f32.mrf.mxu0  ;;  %9608 = vmatprep.mubr.f32.mxu1 %v14760_v55 }
 0x32e   : > { %v5296_v20 = vadd.f32 %v5295_v44, %v14768_v61  ;;  %v5818_v0 = vpop.f32.mrf.mxu1 }
 0x32f   : > { %v12839_v48 = vadd.f32 %v5818_v0, %v5268_v17  ;;  %v9214_v13 = vpop.f32.mrf.mxu0  ;;  %v14774_v0 = vld [vmem:[#allocation179_spill] sm:$0xff] }
 0x330   : > { %v5317_v54 = vadd.f32 %v9214_v13, %v14769_v22  ;;  %v9326_v3 = vpop.f32.mrf.mxu1  ;;  %9609 = vmatmul.mubr.f32.gmra.mxu1 %v14762_v40  ;;  %v14772_v40 = vld [vmem:[#allocation176_spill] sm:$0xff] }
 0x331   : > { %v12843_v57 = vadd.f32 %v9326_v3, %v5289_v41  ;;  %v5309_v29 = vpop.f32.mrf.mxu0  ;;  %9611 = vmatprep.mubr.f32.mxu1 %v14764_v7 }
 0x332   : > { %v5310_v49 = vadd.f32 %v5309_v29, %v14770_v33  ;;  %v5834_v21 = vpop.f32.mrf.mxu1 }
 0x333   : > { %v12847_v55 = vadd.f32 %v5834_v21, %v5282_v56  ;;  %v9217_v5 = vpop.f32.mrf.mxu0 }
 0x334   : > { %v5331_v17 = vadd.f32 %v9217_v5, %v14771_v63  ;;  %v9329_v59 = vpop.f32.mrf.mxu1  ;;  %9612 = vmatmul.mubr.f32.gmra.mxu1 %v14766_v24  ;;  %v14776_v5 = vld [vmem:[#allocation236_spill] sm:$0xff] }
 0x335   : > { %v12851_v25 = vadd.f32 %v9329_v59, %v5303_v19  ;;  %v5323_v43 = vpop.f32.mrf.mxu0  ;;  %v14775_v19 = vld [vmem:[#allocation233_spill] sm:$0xff] }
 0x336   : > { %v5324_v41 = vadd.f32 %v5323_v43, %v14772_v40  ;;  %v5850_v15 = vpop.f32.mrf.mxu1  ;;  %v14778_v40 = vld [vmem:[#allocation187_spill] sm:$0xff] }
 0x337   : > { %v12854_v51 = vadd.f32 %v5850_v15, %v5296_v20  ;;  %v9220_v7 = vpop.f32.mrf.mxu0 }
 0x338   : > { %v5345_v12 = vadd.f32 %v9220_v7, %v14773_v11  ;;  %v9332_v44 = vpop.f32.mrf.mxu1 }
 0x339   : > { %v12857_v56 = vadd.f32 %v9332_v44, %v5317_v54  ;;  %v5337_v61 = vpop.f32.mrf.mxu0  ;;  %v14780_v44 = vld [vmem:[#allocation240_spill] sm:$0xff] }
 0x33a   : > { %v5338_v13 = vadd.f32 %v5337_v61, %v14774_v0  ;;  %v5866_v22 = vpop.f32.mrf.mxu1 }
 0x33b   : > { %v12860_v3 = vadd.f32 %v5866_v22, %v5310_v49  ;;  %v9223_v24 = vpop.f32.mrf.mxu0 }
 0x33c   : > { %v5359_v29 = vadd.f32 %v9223_v24, %v14775_v19  ;;  %v9335_v33 = vpop.f32.mrf.mxu1  ;;  %v14782_v24 = vld [vmem:[#allocation243_spill] sm:$0xff] }
 0x33d   : > { %v12863_v21 = vadd.f32 %v9335_v33, %v5331_v17  ;;  %v5351_v20 = vpop.f32.mrf.mxu0 }
 0x33e   : > { %v5352_v63 = vadd.f32 %v5351_v20, %v14776_v5  ;;  %v5882_v59 = vpop.f32.mrf.mxu1  ;;  %v14784_v5 = vld [vmem:[#allocation197_spill] sm:$0xff] }
 0x33f   : > { %v12866_v43 = vadd.f32 %v5882_v59, %v5324_v41  ;;  %v9226_v54 = vpop.f32.mrf.mxu0 }
 0x340   : > { %v5373_v15 = vadd.f32 %v9226_v54, %v14778_v40  ;;  %v9338_v7 = vpop.f32.mrf.mxu1  ;;  %v14786_v40 = vld [vmem:[#allocation184_spill] sm:$0xff] }
 0x341   : > { %14777 = vst [vmem:[#allocation266_spill] sm:$0xff] %v12866_v43  ;;  %v12869_v11 = vadd.f32 %v9338_v7, %v5345_v12  ;;  %v5365_v49 = vpop.f32.mrf.mxu0 }
 0x342   : > { %v5366_v61 = vadd.f32 %v5365_v49, %v14780_v44  ;;  %v5898_v0 = vpop.f32.mrf.mxu1  ;;  %v14788_v44 = vld [vmem:[#allocation246_spill] sm:$0xff] }
 0x343   : > { %14779 = vst [vmem:[#allocation224_spill] sm:$0xff] %v12869_v11  ;;  %v12872_v22 = vadd.f32 %v5898_v0, %v5338_v13  ;;  %v9229_v17 = vpop.f32.mrf.mxu0 }
 0x344   : > { %v5387_v19 = vadd.f32 %v9229_v17, %v14782_v24  ;;  %v9341_v33 = vpop.f32.mrf.mxu1  ;;  %v14790_v24 = vld [vmem:[#allocation193_spill] sm:$0xff] }
 0x345   : > { %14781 = vst [vmem:[#allocation268_spill] sm:$0xff] %v12872_v22  ;;  %v12875_v20 = vadd.f32 %v9341_v33, %v5359_v29  ;;  %v5379_v41 = vpop.f32.mrf.mxu0 }
 0x346   : > { %v5380_v59 = vadd.f32 %v5379_v41, %v14784_v5  ;;  %v5914_v43 = vpop.f32.mrf.mxu1 }
 0x347   : > { %14783 = vst [vmem:[#allocation269_spill] sm:$0xff] %v12875_v20  ;;  %v12878_v54 = vadd.f32 %v5914_v43, %v5352_v63  ;;  %v9232_v12 = vpop.f32.mrf.mxu0  ;;  %v14792_v43 = vld [vmem:[#allocation248_spill] sm:$0xff] }
 0x348   : > { %v5401_v7 = vadd.f32 %v9232_v12, %v14786_v40  ;;  %v9344_v11 = vpop.f32.mrf.mxu1 }
 0x349   : > { %14785 = vst [vmem:[#allocation270_spill] sm:$0xff] %v12878_v54  ;;  %v12881_v49 = vadd.f32 %v9344_v11, %v5373_v15  ;;  %v5393_v13 = vpop.f32.mrf.mxu0  ;;  %v14794_v11 = vld [vmem:[#allocation6_spill] sm:$0xff] }
 0x34a   : > { %v5394_v0 = vadd.f32 %v5393_v13, %v14788_v44  ;;  %v5930_v22 = vpop.f32.mrf.mxu1 }
 0x34b   : > { %14787 = vst [vmem:[#allocation271_spill] sm:$0xff] %v12881_v49  ;;  %v12884_v17 = vadd.f32 %v5930_v22, %v5366_v61  ;;  %v9235_v29 = vpop.f32.mrf.mxu0  ;;  %v14795_v22 = vld [vmem:[#allocation254_spill] sm:$0xff] }
 0x34c   : > { %v5415_v33 = vadd.f32 %v9235_v29, %v14790_v24  ;;  %v9347_v20 = vpop.f32.mrf.mxu1 }
 0x34d   : > { %14789 = vst [vmem:[#allocation14_spill] sm:$0xff] %v12884_v17  ;;  %v12887_v41 = vadd.f32 %v9347_v20, %v5387_v19  ;;  %v5407_v63 = vpop.f32.mrf.mxu0  ;;  %v14797_v20 = vld [vmem:[#allocation258_spill] sm:$0xff] }
 0x34e   : > { %v5408_v5 = vadd.f32 %v5407_v63, %v14792_v43  ;;  %v5946_v54 = vpop.f32.mrf.mxu1 }
 0x34f   : > { %14791 = vst [vmem:[#allocation274_spill] sm:$0xff] %v12887_v41  ;;  %v12890_v12 = vadd.f32 %v5946_v54, %v5380_v59  ;;  %v9238_v15 = vpop.f32.mrf.mxu0  ;;  %v14799_v54 = vld [vmem:[#allocation213_spill] sm:$0xff] }
 0x350   : > { %v5429_v40 = vadd.f32 %v9238_v15, %v14794_v11  ;;  %v9350_v49 = vpop.f32.mrf.mxu1 }
 0x351   : > { %14793 = vst [vmem:[#allocation16_spill] sm:$0xff] %v12890_v12  ;;  %v12893_v13 = vadd.f32 %v9350_v49, %v5401_v7  ;;  %v5421_v61 = vpop.f32.mrf.mxu0 }
 0x352   : > { %v5422_v44 = vadd.f32 %v5421_v61, %v14795_v22  ;;  %v5962_v17 = vpop.f32.mrf.mxu1 }
 0x353   : > { %v12896_v29 = vadd.f32 %v5962_v17, %v5394_v0  ;;  %v9241_v19 = vpop.f32.mrf.mxu0  ;;  %v14802_v17 = vld [vmem:[#allocation10_spill] sm:$0xff] }
 0x354   : > { %v5443_v24 = vadd.f32 %v9241_v19, %v14797_v20  ;;  %v9353_v41 = vpop.f32.mrf.mxu1 }
 0x355   : > { %14796 = vst [vmem:[#allocation21_spill] sm:$0xff] %v12896_v29  ;;  %v12899_v63 = vadd.f32 %v9353_v41, %v5415_v33  ;;  %v5435_v59 = vpop.f32.mrf.mxu0  ;;  %v14804_v41 = vld [vmem:[#allocation261_spill] sm:$0xff] }
 0x356   : > { %v5436_v43 = vadd.f32 %v5435_v59, %v14799_v54  ;;  %v5978_v12 = vpop.f32.mrf.mxu1 }
 0x357   : > { %14798 = vst [vmem:[#allocation276_spill] sm:$0xff] %v12899_v63  ;;  %v12902_v15 = vadd.f32 %v5978_v12, %v5408_v5  ;;  %v9244_v7 = vpop.f32.mrf.mxu0  ;;  %v14805_v12 = vld [vmem:[#allocation17_spill] sm:$0xff] }
 0x358   : > { %v5457_v49 = vadd.f32 %v9244_v7, %v12644_v37  ;;  %v9356_v11 = vpop.f32.mrf.mxu1  ;;  %v14807_v7 = vld [vmem:[#allocation264_spill] sm:$0xff] }
 0x359   : > { %14800 = vst [vmem:[#allocation25_spill] sm:$0xff] %v12902_v15  ;;  %v12905_v61 = vadd.f32 %v9356_v11, %v5429_v40  ;;  %v5449_v0 = vpop.f32.mrf.mxu0 }
 0x35a   : > { %v5450_v22 = vadd.f32 %v5449_v0, %v14802_v17  ;;  %v5994_v29 = vpop.f32.mrf.mxu1 }
 0x35b   : > { %14801 = vst [vmem:[#allocation23_spill] sm:$0xff] %v12905_v61  ;;  %v12908_v19 = vadd.f32 %v5994_v29, %v5422_v44  ;;  %v9247_v33 = vpop.f32.mrf.mxu0  ;;  %v14808_v29 = vld [vmem:[#allocation219_spill] sm:$0xff] }
 0x35c   : > { %v5471_v20 = vadd.f32 %v9247_v33, %v14804_v41  ;;  %v9359_v63 = vpop.f32.mrf.mxu1 }
 0x35d   : > { %14803 = vst [vmem:[#allocation34_spill] sm:$0xff] %v12908_v19  ;;  %v12911_v59 = vadd.f32 %v9359_v63, %v5443_v24  ;;  %v5463_v5 = vpop.f32.mrf.mxu0 }
 0x35e   : > { %v5464_v54 = vadd.f32 %v5463_v5, %v14805_v12  ;;  %v6010_v15 = vpop.f32.mrf.mxu1 }
 0x35f   : > { %v12914_v37 = vadd.f32 %v6010_v15, %v5436_v43  ;;  %v9250_v40 = vpop.f32.mrf.mxu0  ;;  %v14809_v15 = vld [vmem:[#allocation26_spill] sm:$0xff] }
 0x360   : > { %v5485_v11 = vadd.f32 %v9250_v40, %v14807_v7  ;;  %v9362_v61 = vpop.f32.mrf.mxu1 }
 0x361   : > { %14806 = vst [vmem:[#allocation20_spill] sm:$0xff] %v12914_v37  ;;  %v12917_v0 = vadd.f32 %v9362_v61, %v5457_v49  ;;  %v5477_v44 = vpop.f32.mrf.mxu0 }
 0x362   : > { %v5478_v17 = vadd.f32 %v5477_v44, %v14808_v29  ;;  %v6026_v19 = vpop.f32.mrf.mxu1 }
 0x363   : > { %v12920_v33 = vadd.f32 %v6026_v19, %v5450_v22  ;;  %v9253_v24 = vpop.f32.mrf.mxu0 }
 0x364   : > { %v5499_v63 = vadd.f32 %v9253_v24, %v12674_v16  ;;  %v9365_v41 = vpop.f32.mrf.mxu1 }
 0x365   : > { %v12923_v5 = vadd.f32 %v9365_v41, %v5471_v20  ;;  %v5491_v43 = vpop.f32.mrf.mxu0 }
 0x366   : > { %v5492_v12 = vadd.f32 %v5491_v43, %v14809_v15  ;;  %v6042_v37 = vpop.f32.mrf.mxu1 }
 0x367   : > { %v12926_v40 = vadd.f32 %v6042_v37, %v5464_v54  ;;  %v9256_v49 = vpop.f32.mrf.mxu0 }
 0x368   : > { %v5513_v61 = vadd.f32 %v9256_v49, %v12685_v6  ;;  %v9368_v7 = vpop.f32.mrf.mxu1 }
 0x369   : > { %v12929_v44 = vadd.f32 %v9368_v7, %v5485_v11  ;;  %v5505_v22 = vpop.f32.mrf.mxu0 }
 0x36a   : > { %v5506_v19 = vadd.f32 %v5505_v22, %v12689_v47  ;;  %v6058_v29 = vpop.f32.mrf.mxu1 }
 0x36b   : > { %v12932_v16 = vadd.f32 %v6058_v29, %v5478_v17  ;;  %v9259_v20 = vpop.f32.mrf.mxu0 }
 0x36c   : > { %v5527_v24 = vadd.f32 %v9259_v20, %v12696_v27  ;;  %v9371_v41 = vpop.f32.mrf.mxu1 }
 0x36d   : > { %v12935_v43 = vadd.f32 %v9371_v41, %v5499_v63  ;;  %v5519_v54 = vpop.f32.mrf.mxu0 }
 0x36e   : > { %v5520_v37 = vadd.f32 %v5519_v54, %v12700_v1  ;;  %v6074_v6 = vpop.f32.mrf.mxu1 }
 0x36f   : > { %v12938_v15 = vadd.f32 %v6074_v6, %v5492_v12  ;;  %v9402_v11 = vpop.f32.mrf.mxu0 }
 0x370   : > { %v9374_v49 = vpop.f32.mrf.mxu1  ;;  %v6225_v1 = vadd.f32 %v9402_v11, %v12706_v10 }
 0x371   : > { %14810 = vst [vmem:[#allocation275_spill] sm:$0xff] %v12938_v15  ;;  %v12940_v47 = vadd.f32 %v9374_v49, %v5513_v61  ;;  %v6218_v17 = vpop.f32.mrf.mxu0 }
 0x372   : > { %v6090_v7 = vpop.f32.mrf.mxu1  ;;  %v6219_v6 = vadd.f32 %v6218_v17, %v12710_v42 }
 0x373   : > { %14811 = vst [vmem:[#allocation37_spill] sm:$0xff] %v12940_v47  ;;  %v12942_v22 = vadd.f32 %v6090_v7, %v5506_v19  ;;  %v9405_v29 = vpop.f32.mrf.mxu0  ;;  %v14814_v47 = vld [vmem:[#allocation18_spill] sm:$0xff] }
 0x374   : > { %v9377_v27 = vpop.f32.mrf.mxu1 }
 0x375   : > { %14812 = vst [vmem:[#allocation22_spill] sm:$0xff] %v12942_v22  ;;  %v12945_v63 = vadd.f32 %v9377_v27, %v5527_v24  ;;  %v6230_v20 = vpop.f32.mrf.mxu0  ;;  %v6237_v22 = vadd.f32 %v9405_v29, %v12716_v34 }
 0x376   : > { %v6106_v41 = vpop.f32.mrf.mxu1  ;;  %v6231_v10 = vadd.f32 %v6230_v20, %v12720_v53 }
 0x377   : > { %14813 = vst [vmem:[#allocation40_spill] sm:$0xff] %v12945_v63  ;;  %v12948_v12 = vadd.f32 %v6106_v41, %v5520_v37  ;;  %v9408_v54 = vpop.f32.mrf.mxu0  ;;  %v14815_v37 = vld [vmem:[#allocation54_spill] sm:$0xff] }
 0x378   : > { %v9520_v61 = vpop.f32.mrf.mxu1  ;;  %v6249_v34 = vadd.f32 %v9408_v54, %v12726_v26  ;;  %v14818_v26 = vld [vmem:[#allocation296_spill] sm:$0xff] }
 0x379   : > { %v6685_v49 = vadd.f32 %v9520_v61, %v6225_v1  ;;  %v6242_v19 = vpop.f32.mrf.mxu0 }
 0x37a   : > { %v6678_v7 = vpop.f32.mrf.mxu1  ;;  %v6243_v61 = vadd.f32 %v6242_v19, %v12730_v4  ;;  %v14819_v4 = vld [vmem:[#allocation58_spill] sm:$0xff] }
 0x37b   : > { %v7061_v24 = vmul.f32 %v6685_v49, %v14814_v47  ;;  %v6679_v27 = vadd.f32 %v6678_v7, %v6219_v6  ;;  %v9411_v63 = vpop.f32.mrf.mxu0  ;;  %v14816_v47 = vld [vmem:[#allocation294_spill] sm:$0xff]  ;;  %v14817_v6 = vld [vmem:[#allocation57_spill] sm:$0xff] }
 0x37c   : > { %v9523_v15 = vpop.f32.mrf.mxu1 }
 0x37d   : > { %7125 = vst [vmem:[%s12956_s26 + $0x8] sm:$0xff] %v7061_v24  ;;  %v7060_v42 = vmul.f32 %v6679_v27, %v14815_v37  ;;  %v6697_v11 = vadd.f32 %v9523_v15, %v6237_v22  ;;  %v6254_v17 = vpop.f32.mrf.mxu0  ;;  %v6261_v24 = vadd.f32 %v9411_v63, %v12736_v39  ;;  %v14820_v39 = vld [vmem:[#allocation60_spill] sm:$0xff] }
 0x37e   : > { %v6690_v41 = vpop.f32.mrf.mxu1 }
 0x37f   : > { %7124 = vst [vmem:[%s12956_s26] sm:$0xff] %v7060_v42  ;;  %v7063_v29 = vmul.f32 %v6697_v11, %v14816_v47  ;;  %v6691_v1 = vadd.f32 %v6690_v41, %v6231_v10  ;;  %v9414_v53 = vpop.f32.mrf.mxu0  ;;  %v6255_v42 = vadd.f32 %v6254_v17, %v12740_v2  ;;  %v14821_v2 = vld [vmem:[#allocation299_spill] sm:$0xff] }
 0x380   : > { %v9526_v20 = vpop.f32.mrf.mxu1  ;;  %v6273_v47 = vadd.f32 %v9414_v53, %v12746_v38  ;;  %v14822_v38 = vld [vmem:[#allocation272_spill] sm:$0xff] }
 0x381   : > { %7127 = vst [vmem:[%s12956_s26 + $0x18] sm:$0xff] %v7063_v29  ;;  %v7062_v49 = vmul.f32 %v6691_v1, %v14817_v6  ;;  %v6709_v7 = vadd.f32 %v9526_v20, %v6249_v34  ;;  %v6266_v15 = vpop.f32.mrf.mxu0 }
 0x382   : > { %v6702_v22 = vpop.f32.mrf.mxu1 }
 0x383   : > { %7126 = vst [vmem:[%s12956_s26 + $0x10] sm:$0xff] %v7062_v49  ;;  %v7065_v54 = vmul.f32 %v6709_v7, %v14818_v26  ;;  %v6703_v27 = vadd.f32 %v6702_v22, %v6243_v61  ;;  %v9417_v10 = vpop.f32.mrf.mxu0  ;;  %v6267_v61 = vadd.f32 %v6266_v15, %v12750_v60  ;;  %v14823_v60 = vld [vmem:[#allocation66_spill] sm:$0xff] }
 0x384   : > { %v9529_v37 = vpop.f32.mrf.mxu1  ;;  %v6285_v22 = vadd.f32 %v9417_v10, %v12756_v58  ;;  %v14824_v58 = vld [vmem:[#allocation76_spill] sm:$0xff] }
 0x385   : > { %7129 = vst [vmem:[%s12956_s26 + $0x28] sm:$0xff] %v7065_v54  ;;  %v7064_v19 = vmul.f32 %v6703_v27, %v14819_v4  ;;  %v6721_v11 = vadd.f32 %v9529_v37, %v6261_v24  ;;  %v6278_v41 = vpop.f32.mrf.mxu0 }
 0x386   : > { %v6714_v34 = vpop.f32.mrf.mxu1  ;;  %v6279_v27 = vadd.f32 %v6278_v41, %v12760_v9  ;;  %v14825_v9 = vld [vmem:[#allocation278_spill] sm:$0xff] }
 0x387   : > { %7128 = vst [vmem:[%s12956_s26 + $0x20] sm:$0xff] %v7064_v19  ;;  %v7067_v63 = vmul.f32 %v6721_v11, %v14820_v39  ;;  %v6715_v29 = vadd.f32 %v6714_v34, %v6255_v42  ;;  %v9420_v1 = vpop.f32.mrf.mxu0 }
 0x388   : > { %v9532_v20 = vpop.f32.mrf.mxu1  ;;  %v6297_v19 = vadd.f32 %v9420_v1, %v12766_v31  ;;  %v14826_v31 = vld [vmem:[#allocation81_spill] sm:$0xff] }
 0x389   : > { %7131 = vst [vmem:[%s12956_s26 + $0x38] sm:$0xff] %v7067_v63  ;;  %v7066_v17 = vmul.f32 %v6715_v29, %v14821_v2  ;;  %v6733_v6 = vadd.f32 %v9532_v20, %v6273_v47  ;;  %v6290_v49 = vpop.f32.mrf.mxu0 }
 0x38a   : > { %v6726_v7 = vpop.f32.mrf.mxu1  ;;  %v6291_v39 = vadd.f32 %v6290_v49, %v12770_v30  ;;  %v14827_v30 = vld [vmem:[#allocation84_spill] sm:$0xff] }
 0x38b   : > { %7130 = vst [vmem:[%s12956_s26 + $0x30] sm:$0xff] %v7066_v17  ;;  %v7069_v53 = vmul.f32 %v6733_v6, %v14822_v38  ;;  %v6727_v24 = vadd.f32 %v6726_v7, %v6267_v61  ;;  %v9423_v26 = vpop.f32.mrf.mxu0 }
 0x38c   : > { %v9535_v54 = vpop.f32.mrf.mxu1  ;;  %v6309_v61 = vadd.f32 %v9423_v26, %v12776_v35  ;;  %v14828_v35 = vld [vmem:[#allocation283_spill] sm:$0xff] }
 0x38d   : > { %7133 = vst [vmem:[%s12956_s26 + $0x48] sm:$0xff] %v7069_v53  ;;  %v7068_v15 = vmul.f32 %v6727_v24, %v14823_v60  ;;  %v6745_v37 = vadd.f32 %v9535_v54, %v6285_v22  ;;  %v6302_v42 = vpop.f32.mrf.mxu0 }
 0x38e   : > { %v6738_v4 = vpop.f32.mrf.mxu1  ;;  %v6303_v7 = vadd.f32 %v6302_v42, %v12780_v18  ;;  %v14829_v18 = vld [vmem:[#allocation86_spill] sm:$0xff] }
 0x38f   : > { %7132 = vst [vmem:[%s12956_s26 + $0x40] sm:$0xff] %v7068_v15  ;;  %v7071_v10 = vmul.f32 %v6745_v37, %v14824_v58  ;;  %v6739_v11 = vadd.f32 %v6738_v4, %v6279_v27  ;;  %v9426_v34 = vpop.f32.mrf.mxu0 }
 0x390   : > { %v9538_v47 = vpop.f32.mrf.mxu1  ;;  %v6321_v24 = vadd.f32 %v9426_v34, %v12786_v45  ;;  %v14830_v45 = vld [vmem:[#allocation91_spill] sm:$0xff] }
 0x391   : > { %7135 = vst [vmem:[%s12956_s26 + $0x58] sm:$0xff] %v7071_v10  ;;  %v7070_v41 = vmul.f32 %v6739_v11, %v14825_v9  ;;  %v6757_v63 = vadd.f32 %v9538_v47, %v6297_v19  ;;  %v6314_v29 = vpop.f32.mrf.mxu0 }
 0x392   : > { %v6750_v20 = vpop.f32.mrf.mxu1  ;;  %v6315_v15 = vadd.f32 %v6314_v29, %v12790_v50  ;;  %v14831_v50 = vld [vmem:[#allocation285_spill] sm:$0xff] }
 0x393   : > { %7134 = vst [vmem:[%s12956_s26 + $0x50] sm:$0xff] %v7070_v41  ;;  %v7073_v1 = vmul.f32 %v6757_v63, %v14826_v31  ;;  %v6751_v2 = vadd.f32 %v6750_v20, %v6291_v39  ;;  %v9429_v17 = vpop.f32.mrf.mxu0 }
 0x394   : > { %v9541_v6 = vpop.f32.mrf.mxu1  ;;  %v6333_v58 = vadd.f32 %v9429_v17, %v12796_v28  ;;  %v14832_v28 = vld [vmem:[#allocation94_spill] sm:$0xff] }
 0x395   : > { %7137 = vst [vmem:[%s12956_s26 + $0x68] sm:$0xff] %v7073_v1  ;;  %v7072_v49 = vmul.f32 %v6751_v2, %v14827_v30  ;;  %v6769_v22 = vadd.f32 %v9541_v6, %v6309_v61  ;;  %v6326_v38 = vpop.f32.mrf.mxu0 }
 0x396   : > { %v6762_v53 = vpop.f32.mrf.mxu1  ;;  %v6327_v39 = vadd.f32 %v6326_v38, %v12800_v36  ;;  %v14833_v36 = vld [vmem:[#allocation97_spill] sm:$0xff] }
 0x397   : > { %7136 = vst [vmem:[%s12956_s26 + $0x60] sm:$0xff] %v7072_v49  ;;  %v7075_v26 = vmul.f32 %v6769_v22, %v14828_v35  ;;  %v6763_v54 = vadd.f32 %v6762_v53, %v6303_v7  ;;  %v9432_v27 = vpop.f32.mrf.mxu0 }
 0x398   : > { %v9544_v60 = vpop.f32.mrf.mxu1  ;;  %v6345_v20 = vadd.f32 %v9432_v27, %v12806_v32  ;;  %v14834_v32 = vld [vmem:[#allocation291_spill] sm:$0xff] }
 0x399   : > { %7139 = vst [vmem:[%s12956_s26 + $0x78] sm:$0xff] %v7075_v26  ;;  %v7074_v37 = vmul.f32 %v6763_v54, %v14829_v18  ;;  %v6781_v42 = vadd.f32 %v9544_v60, %v6321_v24  ;;  %v6338_v4 = vpop.f32.mrf.mxu0 }
 0x39a   : > { %v6774_v19 = vpop.f32.mrf.mxu1  ;;  %v6339_v17 = vadd.f32 %v6338_v4, %v12810_v23  ;;  %v14835_v23 = vld [vmem:[#allocation102_spill] sm:$0xff] }
 0x39b   : > { %7138 = vst [vmem:[%s12956_s26 + $0x70] sm:$0xff] %v7074_v37  ;;  %v7077_v10 = vmul.f32 %v6781_v42, %v14830_v45  ;;  %v6775_v11 = vadd.f32 %v6774_v19, %v6315_v15  ;;  %v9435_v34 = vpop.f32.mrf.mxu0 }
 0x39c   : > { %v9547_v47 = vpop.f32.mrf.mxu1  ;;  %v6357_v22 = vadd.f32 %v9435_v34, %v12816_v52  ;;  %v14836_v52 = vld [vmem:[#allocation108_spill] sm:$0xff] }
 0x39d   : > { %7141 = vst [vmem:[%s12956_s26 + $0x88] sm:$0xff] %v7077_v10  ;;  %v7076_v9 = vmul.f32 %v6775_v11, %v14831_v50  ;;  %v6793_v41 = vadd.f32 %v9547_v47, %v6333_v58  ;;  %v6350_v63 = vpop.f32.mrf.mxu0 }
 0x39e   : > { %v6786_v29 = vpop.f32.mrf.mxu1  ;;  %v6351_v26 = vadd.f32 %v6350_v63, %v12820_v8  ;;  %v14837_v8 = vld [vmem:[#allocation297_spill] sm:$0xff] }
 0x39f   : > { %7140 = vst [vmem:[%s12956_s26 + $0x80] sm:$0xff] %v7076_v9  ;;  %v7079_v61 = vmul.f32 %v6793_v41, %v14832_v28  ;;  %v6787_v31 = vadd.f32 %v6786_v29, %v6327_v39  ;;  %v9438_v1 = vpop.f32.mrf.mxu0 }
 0x3a0   : > { %v9550_v2 = vpop.f32.mrf.mxu1  ;;  %v6369_v18 = vadd.f32 %v9438_v1, %v12826_v14  ;;  %v14838_v14 = vld [vmem:[#allocation110_spill] sm:$0xff] }
 0x3a1   : > { %7143 = vst [vmem:[%s12956_s26 + $0x98] sm:$0xff] %v7079_v61  ;;  %v7078_v6 = vmul.f32 %v6787_v31, %v14833_v36  ;;  %v6805_v7 = vadd.f32 %v9550_v2, %v6345_v20  ;;  %v6362_v30 = vpop.f32.mrf.mxu0 }
 0x3a2   : > { %v6798_v49 = vpop.f32.mrf.mxu1  ;;  %v6363_v58 = vadd.f32 %v6362_v30, %v12830_v62  ;;  %v14839_v62 = vld [vmem:[#allocation306_spill] sm:$0xff] }
 0x3a3   : > { %7142 = vst [vmem:[%s12956_s26 + $0x90] sm:$0xff] %v7078_v6  ;;  %v7081_v38 = vmul.f32 %v6805_v7, %v14834_v32  ;;  %v6799_v53 = vadd.f32 %v6798_v49, %v6339_v17  ;;  %v9441_v24 = vpop.f32.mrf.mxu0 }
 0x3a4   : > { %v9553_v35 = vpop.f32.mrf.mxu1  ;;  %v6381_v47 = vadd.f32 %v9441_v24, %v12835_v46  ;;  %v14840_v46 = vld [vmem:[#allocation116_spill] sm:$0xff] }
 0x3a5   : > { %7145 = vst [vmem:[%s12956_s26 + $0xa8] sm:$0xff] %v7081_v38  ;;  %v7080_v54 = vmul.f32 %v6799_v53, %v14835_v23  ;;  %v6817_v27 = vadd.f32 %v9553_v35, %v6357_v22  ;;  %v6374_v60 = vpop.f32.mrf.mxu0 }
 0x3a6   : > { %v6810_v15 = vpop.f32.mrf.mxu1  ;;  %v6375_v63 = vadd.f32 %v6374_v60, %v12839_v48  ;;  %v14841_v48 = vld [vmem:[#allocation307_spill] sm:$0xff] }
 0x3a7   : > { %7144 = vst [vmem:[%s12956_s26 + $0xa0] sm:$0xff] %v7080_v54  ;;  %v7083_v37 = vmul.f32 %v6817_v27, %v14836_v52  ;;  %v6811_v42 = vadd.f32 %v6810_v15, %v6351_v26  ;;  %v9444_v4 = vpop.f32.mrf.mxu0 }
 0x3a8   : > { %v9556_v19 = vpop.f32.mrf.mxu1  ;;  %v6393_v31 = vadd.f32 %v9444_v4, %v12843_v57  ;;  %v14842_v57 = vld [vmem:[#allocation301_spill] sm:$0xff] }
 0x3a9   : > { %7147 = vst [vmem:[%s12956_s26 + $0xb8] sm:$0xff] %v7083_v37  ;;  %v7082_v45 = vmul.f32 %v6811_v42, %v14837_v8  ;;  %v6829_v10 = vadd.f32 %v9556_v19, %v6369_v18  ;;  %v6386_v11 = vpop.f32.mrf.mxu0 }
 0x3aa   : > { %v6822_v34 = vpop.f32.mrf.mxu1  ;;  %v6387_v6 = vadd.f32 %v6386_v11, %v12847_v55  ;;  %v14843_v55 = vld [vmem:[#allocation121_spill] sm:$0xff] }
 0x3ab   : > { %7146 = vst [vmem:[%s12956_s26 + $0xb0] sm:$0xff] %v7082_v45  ;;  %v7085_v39 = vmul.f32 %v6829_v10, %v14838_v14  ;;  %v6823_v50 = vadd.f32 %v6822_v34, %v6363_v58  ;;  %v9447_v9 = vpop.f32.mrf.mxu0 }
 0x3ac   : > { %v9559_v41 = vpop.f32.mrf.mxu1  ;;  %v6405_v32 = vadd.f32 %v9447_v9, %v12851_v25  ;;  %v14844_v25 = vld [vmem:[#allocation308_spill] sm:$0xff] }
 0x3ad   : > { %7149 = vst [vmem:[%s12956_s26 + $0xc8] sm:$0xff] %v7085_v39  ;;  %v7084_v29 = vmul.f32 %v6823_v50, %v14839_v62  ;;  %v6841_v20 = vadd.f32 %v9559_v41, %v6381_v47  ;;  %v6398_v28 = vpop.f32.mrf.mxu0  ;;  %v14847_v39 = vld [vmem:[#allocation266_spill] sm:$0xff] }
 0x3ae   : > { %v6834_v61 = vpop.f32.mrf.mxu1  ;;  %v6399_v26 = vadd.f32 %v6398_v28, %v12854_v51  ;;  %v14845_v51 = vld [vmem:[#allocation123_spill] sm:$0xff] }
 0x3af   : > { %7148 = vst [vmem:[%s12956_s26 + $0xc0] sm:$0xff] %v7084_v29  ;;  %v7087_v1 = vmul.f32 %v6841_v20, %v14840_v46  ;;  %v6835_v2 = vadd.f32 %v6834_v61, %v6375_v63  ;;  %v9450_v17 = vpop.f32.mrf.mxu0  ;;  %v14849_v29 = vld [vmem:[#allocation224_spill] sm:$0xff] }
 0x3b0   : > { %v9562_v36 = vpop.f32.mrf.mxu1  ;;  %v6417_v15 = vadd.f32 %v9450_v17, %v12857_v56  ;;  %v14846_v56 = vld [vmem:[#allocation309_spill] sm:$0xff]  ;;  %v14852_v17 = vld [vmem:[#allocation310_spill] sm:$0xff] }
 0x3b1   : > { %7151 = vst [vmem:[%s12956_s26 + $0xd8] sm:$0xff] %v7087_v1  ;;  %v7086_v7 = vmul.f32 %v6835_v2, %v14841_v48  ;;  %v6853_v30 = vadd.f32 %v9562_v36, %v6393_v31  ;;  %v6410_v49 = vpop.f32.mrf.mxu0  ;;  %v14851_v1 = vld [vmem:[#allocation268_spill] sm:$0xff] }
 0x3b2   : > { %v6846_v22 = vpop.f32.mrf.mxu1  ;;  %v6411_v4 = vadd.f32 %v6410_v49, %v12860_v3  ;;  %v14848_v3 = vld [vmem:[#allocation304_spill] sm:$0xff] }
 0x3b3   : > { %7150 = vst [vmem:[%s12956_s26 + $0xd0] sm:$0xff] %v7086_v7  ;;  %v7089_v38 = vmul.f32 %v6853_v30, %v14842_v57  ;;  %v6847_v53 = vadd.f32 %v6846_v22, %v6387_v6  ;;  %v9453_v24 = vpop.f32.mrf.mxu0  ;;  %v14853_v30 = vld [vmem:[#allocation269_spill] sm:$0xff] }
 0x3b4   : > { %v9565_v35 = vpop.f32.mrf.mxu1  ;;  %v6429_v10 = vadd.f32 %v9453_v24, %v12863_v21  ;;  %v14850_v21 = vld [vmem:[#allocation126_spill] sm:$0xff]  ;;  %v14854_v22 = vld [vmem:[#allocation129_spill] sm:$0xff] }
 0x3b5   : > { %7153 = vst [vmem:[%s12956_s26 + $0xe8] sm:$0xff] %v7089_v38  ;;  %v7088_v23 = vmul.f32 %v6847_v53, %v14843_v55  ;;  %v6865_v54 = vadd.f32 %v9565_v35, %v6405_v32  ;;  %v6422_v27 = vpop.f32.mrf.mxu0  ;;  %v14855_v24 = vld [vmem:[#allocation270_spill] sm:$0xff] }
 0x3b6   : > { %v6858_v60 = vpop.f32.mrf.mxu1  ;;  %v6423_v50 = vadd.f32 %v6422_v27, %v14847_v39 }
 0x3b7   : > { %7152 = vst [vmem:[%s12956_s26 + $0xe0] sm:$0xff] %v7088_v23  ;;  %v7091_v18 = vmul.f32 %v6865_v54, %v14844_v25  ;;  %v6859_v52 = vadd.f32 %v6858_v60, %v6399_v26  ;;  %v9456_v37 = vpop.f32.mrf.mxu0  ;;  %v14856_v26 = vld [vmem:[#allocation311_spill] sm:$0xff] }
 0x3b8   : > { %v9568_v42 = vpop.f32.mrf.mxu1  ;;  %v6441_v20 = vadd.f32 %v9456_v37, %v14849_v29  ;;  %v14857_v60 = vld [vmem:[#allocation271_spill] sm:$0xff] }
 0x3b9   : > { %7155 = vst [vmem:[%s12956_s26 + $0xf8] sm:$0xff] %v7091_v18  ;;  %v7090_v19 = vmul.f32 %v6859_v52, %v14845_v51  ;;  %v6877_v58 = vadd.f32 %v9568_v42, %v6417_v15  ;;  %v6434_v8 = vpop.f32.mrf.mxu0  ;;  %v14858_v25 = vld [vmem:[#allocation7_spill] sm:$0xff] }
 0x3ba   : > { %v6870_v45 = vpop.f32.mrf.mxu1  ;;  %v6435_v2 = vadd.f32 %v6434_v8, %v14851_v1 }
 0x3bb   : > { %7154 = vst [vmem:[%s12956_s26 + $0xf0] sm:$0xff] %v7090_v19  ;;  %v7093_v11 = vmul.f32 %v6877_v58, %v14846_v56  ;;  %v6871_v34 = vadd.f32 %v6870_v45, %v6411_v4  ;;  %v9459_v47 = vpop.f32.mrf.mxu0  ;;  %v14859_v4 = vld [vmem:[#allocation14_spill] sm:$0xff] }
 0x3bc   : > { %v9571_v14 = vpop.f32.mrf.mxu1  ;;  %v6453_v49 = vadd.f32 %v9459_v47, %v14853_v30  ;;  %v14860_v19 = vld [vmem:[#allocation134_spill] sm:$0xff] }
 0x3bd   : > { %7157 = vst [vmem:[%s12956_s26 + $0x108] sm:$0xff] %v7093_v11  ;;  %v7092_v9 = vmul.f32 %v6871_v34, %v14848_v3  ;;  %v6889_v41 = vadd.f32 %v9571_v14, %v6429_v10  ;;  %v6446_v63 = vpop.f32.mrf.mxu0  ;;  %v14861_v56 = vld [vmem:[#allocation274_spill] sm:$0xff]  ;;  %v14862_v34 = vld [vmem:[#allocation312_spill] sm:$0xff] }
 0x3be   : > { %v6882_v62 = vpop.f32.mrf.mxu1  ;;  %v6447_v35 = vadd.f32 %v6446_v63, %v14855_v24  ;;  %v14863_v3 = vld [vmem:[#allocation16_spill] sm:$0xff]  ;;  %v14870_v24 = vld [vmem:[#allocation25_spill] sm:$0xff] }
 0x3bf   : > { %7156 = vst [vmem:[%s12956_s26 + $0x100] sm:$0xff] %v7092_v9  ;;  %v7095_v28 = vmul.f32 %v6889_v41, %v14850_v21  ;;  %v6883_v61 = vadd.f32 %v6882_v62, %v6423_v50  ;;  %v9462_v31 = vpop.f32.mrf.mxu0  ;;  %v14864_v41 = vld [vmem:[#allocation137_spill] sm:$0xff] }
 0x3c0   : > { %v9574_v46 = vpop.f32.mrf.mxu1  ;;  %v6465_v15 = vadd.f32 %v9462_v31, %v14857_v60  ;;  %v14872_v60 = vld [vmem:[#allocation23_spill] sm:$0xff] }
 0x3c1   : > { %7159 = vst [vmem:[%s12956_s26 + $0x118] sm:$0xff] %v7095_v28  ;;  %v7094_v36 = vmul.f32 %v6883_v61, %v14852_v17  ;;  %v6901_v6 = vadd.f32 %v9574_v46, %v6441_v20  ;;  %v6458_v48 = vpop.f32.mrf.mxu0  ;;  %v14865_v28 = vld [vmem:[#allocation313_spill] sm:$0xff] }
 0x3c2   : > { %v6894_v7 = vpop.f32.mrf.mxu1  ;;  %v6459_v51 = vadd.f32 %v6458_v48, %v14859_v4  ;;  %v14874_v4 = vld [vmem:[#allocation34_spill] sm:$0xff] }
 0x3c3   : > { %7158 = vst [vmem:[%s12956_s26 + $0x110] sm:$0xff] %v7094_v36  ;;  %v7097_v32 = vmul.f32 %v6901_v6, %v14854_v22  ;;  %v6895_v57 = vadd.f32 %v6894_v7, %v6435_v2  ;;  %v9465_v38 = vpop.f32.mrf.mxu0  ;;  %v14866_v2 = vld [vmem:[#allocation21_spill] sm:$0xff]  ;;  %v14867_v36 = vld [vmem:[#allocation142_spill] sm:$0xff] }
 0x3c4   : > { %v9577_v53 = vpop.f32.mrf.mxu1  ;;  %v6477_v11 = vadd.f32 %v9465_v38, %v14861_v56 }
 0x3c5   : > { %7161 = vst [vmem:[%s12956_s26 + $0x128] sm:$0xff] %v7097_v32  ;;  %v7096_v55 = vmul.f32 %v6895_v57, %v14856_v26  ;;  %v6913_v23 = vadd.f32 %v9577_v53, %v6453_v49  ;;  %v6470_v54 = vpop.f32.mrf.mxu0  ;;  %v14868_v49 = vld [vmem:[#allocation276_spill] sm:$0xff] }
 0x3c6   : > { %v6906_v27 = vpop.f32.mrf.mxu1  ;;  %v6471_v9 = vadd.f32 %v6470_v54, %v14863_v3  ;;  %v14871_v26 = vld [vmem:[#allocation148_spill] sm:$0xff] }
 0x3c7   : > { %7160 = vst [vmem:[%s12956_s26 + $0x120] sm:$0xff] %v7096_v55  ;;  %v7099_v18 = vmul.f32 %v6913_v23, %v14858_v25  ;;  %v6907_v52 = vadd.f32 %v6906_v27, %v6447_v35  ;;  %v9468_v37 = vpop.f32.mrf.mxu0  ;;  %v14873_v25 = vld [vmem:[#allocation315_spill] sm:$0xff] }
 0x3c8   : > { %v9580_v42 = vpop.f32.mrf.mxu1  ;;  %v6489_v21 = vadd.f32 %v9468_v37, %v12893_v13  ;;  %v14869_v13 = vld [vmem:[#allocation314_spill] sm:$0xff] }
 0x3c9   : > { %7163 = vst [vmem:[%s12956_s26 + $0x138] sm:$0xff] %v7099_v18  ;;  %v7098_v58 = vmul.f32 %v6907_v52, %v14860_v19  ;;  %v6925_v8 = vadd.f32 %v9580_v42, %v6465_v15  ;;  %v6482_v45 = vpop.f32.mrf.mxu0  ;;  %v14875_v19 = vld [vmem:[#allocation150_spill] sm:$0xff] }
 0x3ca   : > { %v6918_v10 = vpop.f32.mrf.mxu1  ;;  %v6483_v17 = vadd.f32 %v6482_v45, %v14866_v2 }
 0x3cb   : > { %7162 = vst [vmem:[%s12956_s26 + $0x130] sm:$0xff] %v7098_v58  ;;  %v7101_v47 = vmul.f32 %v6925_v8, %v14862_v34  ;;  %v6919_v14 = vadd.f32 %v6918_v10, %v6459_v51  ;;  %v9471_v39 = vpop.f32.mrf.mxu0 }
 0x3cc   : > { %v9583_v50 = vpop.f32.mrf.mxu1  ;;  %v6501_v22 = vadd.f32 %v9471_v39, %v14868_v49 }
 0x3cd   : > { %7165 = vst [vmem:[%s12956_s26 + $0x148] sm:$0xff] %v7101_v47  ;;  %v7100_v63 = vmul.f32 %v6919_v14, %v14864_v41  ;;  %v6937_v62 = vadd.f32 %v9583_v50, %v6477_v11  ;;  %v6494_v29 = vpop.f32.mrf.mxu0  ;;  %v14876_v11 = vld [vmem:[#allocation156_spill] sm:$0xff] }
 0x3ce   : > { %v6930_v20 = vpop.f32.mrf.mxu1  ;;  %v6495_v35 = vadd.f32 %v6494_v29, %v14870_v24  ;;  %v14877_v50 = vld [vmem:[#allocation20_spill] sm:$0xff] }
 0x3cf   : > { %7164 = vst [vmem:[%s12956_s26 + $0x140] sm:$0xff] %v7100_v63  ;;  %v7103_v61 = vmul.f32 %v6937_v62, %v14865_v28  ;;  %v6931_v31 = vadd.f32 %v6930_v20, %v6471_v9  ;;  %v9474_v46 = vpop.f32.mrf.mxu0  ;;  %v14878_v9 = vld [vmem:[#allocation161_spill] sm:$0xff] }
 0x3d0   : > { %v9586_v1 = vpop.f32.mrf.mxu1  ;;  %v6513_v15 = vadd.f32 %v9474_v46, %v14872_v60 }
 0x3d1   : > { %7167 = vst [vmem:[%s12956_s26 + $0x158] sm:$0xff] %v7103_v61  ;;  %v7102_v6 = vmul.f32 %v6931_v31, %v14867_v36  ;;  %v6949_v48 = vadd.f32 %v9586_v1, %v6489_v21  ;;  %v6506_v7 = vpop.f32.mrf.mxu0  ;;  %v14880_v1 = vld [vmem:[#allocation166_spill] sm:$0xff] }
 0x3d2   : > { %v6942_v30 = vpop.f32.mrf.mxu1  ;;  %v6507_v51 = vadd.f32 %v6506_v7, %v14874_v4  ;;  %v14886_v4 = vld [vmem:[#allocation275_spill] sm:$0xff] }
 0x3d3   : > { %7166 = vst [vmem:[%s12956_s26 + $0x150] sm:$0xff] %v7102_v6  ;;  %v7105_v32 = vmul.f32 %v6949_v48, %v14869_v13  ;;  %v6943_v57 = vadd.f32 %v6942_v30, %v6483_v17  ;;  %v9477_v38 = vpop.f32.mrf.mxu0 }
 0x3d4   : > { %v9589_v53 = vpop.f32.mrf.mxu1  ;;  %v6525_v56 = vadd.f32 %v9477_v38, %v12911_v59  ;;  %v14879_v59 = vld [vmem:[#allocation163_spill] sm:$0xff] }
 0x3d5   : > { %7169 = vst [vmem:[%s12956_s26 + $0x168] sm:$0xff] %v7105_v32  ;;  %v7104_v55 = vmul.f32 %v6943_v57, %v14871_v26  ;;  %v6961_v23 = vadd.f32 %v9589_v53, %v6501_v22  ;;  %v6518_v54 = vpop.f32.mrf.mxu0 }
 0x3d6   : > { %v6954_v27 = vpop.f32.mrf.mxu1  ;;  %v6519_v3 = vadd.f32 %v6518_v54, %v14877_v50  ;;  %v14891_v50 = vld [vmem:[#allocation190_spill] sm:$0xff] }
 0x3d7   : > { %7168 = vst [vmem:[%s12956_s26 + $0x160] sm:$0xff] %v7104_v55  ;;  %v7107_v18 = vmul.f32 %v6961_v23, %v14873_v25  ;;  %v6955_v52 = vadd.f32 %v6954_v27, %v6495_v35  ;;  %v9480_v37 = vpop.f32.mrf.mxu0 }
 0x3d8   : > { %v9592_v42 = vpop.f32.mrf.mxu1  ;;  %v6537_v20 = vadd.f32 %v9480_v37, %v12917_v0  ;;  %v14881_v0 = vld [vmem:[#allocation120_spill] sm:$0xff] }
 0x3d9   : > { %7171 = vst [vmem:[%s12956_s26 + $0x178] sm:$0xff] %v7107_v18  ;;  %v7106_v58 = vmul.f32 %v6955_v52, %v14875_v19  ;;  %v6973_v8 = vadd.f32 %v9592_v42, %v6513_v15  ;;  %v6530_v45 = vpop.f32.mrf.mxu0  ;;  %v14887_v19 = vld [vmem:[#allocation188_spill] sm:$0xff] }
 0x3da   : > { %v6966_v10 = vpop.f32.mrf.mxu1  ;;  %v6531_v46 = vadd.f32 %v6530_v45, %v12920_v33  ;;  %v14882_v33 = vld [vmem:[#allocation169_spill] sm:$0xff] }
 0x3db   : > { %7170 = vst [vmem:[%s12956_s26 + $0x170] sm:$0xff] %v7106_v58  ;;  %v7109_v34 = vmul.f32 %v6973_v8, %v14876_v11  ;;  %v6967_v47 = vadd.f32 %v6966_v10, %v6507_v51  ;;  %v9483_v14 = vpop.f32.mrf.mxu0  ;;  %v14888_v10 = vld [vmem:[#allocation37_spill] sm:$0xff]  ;;  %v14889_v11 = vld [vmem:[#allocation139_spill] sm:$0xff] }
 0x3dc   : > { %v9595_v39 = vpop.f32.mrf.mxu1  ;;  %v6549_v48 = vadd.f32 %v9483_v14, %v12923_v5  ;;  %v14883_v5 = vld [vmem:[#allocation174_spill] sm:$0xff] }
 0x3dd   : > { %7173 = vst [vmem:[%s12956_s26 + $0x188] sm:$0xff] %v7109_v34  ;;  %v7108_v41 = vmul.f32 %v6967_v47, %v14878_v9  ;;  %v6985_v63 = vadd.f32 %v9595_v39, %v6525_v56  ;;  %v6542_v62 = vpop.f32.mrf.mxu0  ;;  %v14890_v14 = vld [vmem:[#allocation22_spill] sm:$0xff] }
 0x3de   : > { %v6978_v29 = vpop.f32.mrf.mxu1  ;;  %v6543_v13 = vadd.f32 %v6542_v62, %v12926_v40  ;;  %v14884_v40 = vld [vmem:[#allocation177_spill] sm:$0xff]  ;;  %v14892_v62 = vld [vmem:[#allocation40_spill] sm:$0xff] }
 0x3df   : > { %7172 = vst [vmem:[%s12956_s26 + $0x180] sm:$0xff] %v7108_v41  ;;  %v7111_v21 = vmul.f32 %v6985_v63, %v14879_v59  ;;  %v6979_v28 = vadd.f32 %v6978_v29, %v6519_v3  ;;  %v9486_v61 = vpop.f32.mrf.mxu0 }
 0x3e0   : > { %v9598_v31 = vpop.f32.mrf.mxu1  ;;  %v6561_v24 = vadd.f32 %v9486_v61, %v12929_v44  ;;  %v14885_v44 = vld [vmem:[#allocation182_spill] sm:$0xff] }
 0x3e1   : > { %7175 = vst [vmem:[%s12956_s26 + $0x198] sm:$0xff] %v7111_v21  ;;  %v7110_v2 = vmul.f32 %v6979_v28, %v14880_v1  ;;  %v6997_v17 = vadd.f32 %v9598_v31, %v6537_v20  ;;  %v6554_v36 = vpop.f32.mrf.mxu0  ;;  %v14893_v20 = vld [vmem:[#allocation144_spill] sm:$0xff] }
 0x3e2   : > { %v6990_v6 = vpop.f32.mrf.mxu1  ;;  %v6555_v54 = vadd.f32 %v6554_v36, %v12932_v16  ;;  %v14894_v31 = vld [vmem:[#allocation196_spill] sm:$0xff] }
 0x3e3   : > { %7174 = vst [vmem:[%s12956_s26 + $0x190] sm:$0xff] %v7110_v2  ;;  %v7113_v7 = vmul.f32 %v6997_v17, %v14881_v0  ;;  %v6991_v30 = vadd.f32 %v6990_v6, %v6531_v46  ;;  %v9489_v49 = vpop.f32.mrf.mxu0  ;;  %v14895_v17 = vld [vmem:[#allocation147_spill] sm:$0xff] }
 0x3e4   : > { %v9601_v22 = vpop.f32.mrf.mxu1  ;;  %v6573_v18 = vadd.f32 %v9489_v49, %v12935_v43 }
 0x3e5   : > { %7177 = vst [vmem:[%s12956_s26 + $0x1a8] sm:$0xff] %v7113_v7  ;;  %v7112_v32 = vmul.f32 %v6991_v30, %v14882_v33  ;;  %v7009_v57 = vadd.f32 %v9601_v22, %v6549_v48  ;;  %v6566_v38 = vpop.f32.mrf.mxu0 }
 0x3e6   : > { %v7002_v53 = vpop.f32.mrf.mxu1  ;;  %v6567_v51 = vadd.f32 %v6566_v38, %v14886_v4 }
 0x3e7   : > { %7176 = vst [vmem:[%s12956_s26 + $0x1a0] sm:$0xff] %v7112_v32  ;;  %v7115_v35 = vmul.f32 %v7009_v57, %v14883_v5  ;;  %v7003_v26 = vadd.f32 %v7002_v53, %v6543_v13  ;;  %v9492_v55 = vpop.f32.mrf.mxu0 }
 0x3e8   : > { %v9604_v23 = vpop.f32.mrf.mxu1  ;;  %v6585_v56 = vadd.f32 %v9492_v55, %v14888_v10 }
 0x3e9   : > { %7179 = vst [vmem:[%s12956_s26 + $0x1b8] sm:$0xff] %v7115_v35  ;;  %v7114_v27 = vmul.f32 %v7003_v26, %v14884_v40  ;;  %v7021_v60 = vadd.f32 %v9604_v23, %v6561_v24  ;;  %v6578_v15 = vpop.f32.mrf.mxu0 }
 0x3ea   : > { %v7014_v25 = vpop.f32.mrf.mxu1  ;;  %v6579_v39 = vadd.f32 %v6578_v15, %v14890_v14 }
 0x3eb   : > { %7178 = vst [vmem:[%s12956_s26 + $0x1b0] sm:$0xff] %v7114_v27  ;;  %v7117_v52 = vmul.f32 %v7021_v60, %v14885_v44  ;;  %v7015_v37 = vadd.f32 %v7014_v25, %v6555_v54  ;;  %v9495_v8 = vpop.f32.mrf.mxu0 }
 0x3ec   : > { %v9607_v42 = vpop.f32.mrf.mxu1  ;;  %v6597_v29 = vadd.f32 %v9495_v8, %v14892_v62 }
 0x3ed   : > { %7181 = vst [vmem:[%s12956_s26 + $0x1c8] sm:$0xff] %v7117_v52  ;;  %v7116_v16 = vmul.f32 %v7015_v37, %v14887_v19  ;;  %v7033_v58 = vadd.f32 %v9607_v42, %v6573_v18  ;;  %v6590_v41 = vpop.f32.mrf.mxu0 }
 0x3ee   : > { %v7026_v45 = vpop.f32.mrf.mxu1  ;;  %v6591_v61 = vadd.f32 %v6590_v41, %v12948_v12  ;;  %v14896_v12 = vld [vmem:[#allocation201_spill] sm:$0xff] }
 0x3ef   : > { %7180 = vst [vmem:[%s12956_s26 + $0x1c0] sm:$0xff] %v7116_v16  ;;  %v7119_v43 = vmul.f32 %v7033_v58, %v14889_v11  ;;  %v7027_v34 = vadd.f32 %v7026_v45, %v6567_v51 }
 0x3f0   : > { %v9610_v47 = vpop.f32.mrf.mxu1 }
 0x3f1   : > { %7183 = vst [vmem:[%s12956_s26 + $0x1d8] sm:$0xff] %v7119_v43  ;;  %v7118_v3 = vmul.f32 %v7027_v34, %v14891_v50  ;;  %v7045_v9 = vadd.f32 %v9610_v47, %v6585_v56 }
 0x3f2   : > { %v7038_v63 = vpop.f32.mrf.mxu1 }
 0x3f3   : > { %7182 = vst [vmem:[%s12956_s26 + $0x1d0] sm:$0xff] %v7118_v3  ;;  %v7121_v59 = vmul.f32 %v7045_v9, %v14893_v20  ;;  %v7039_v21 = vadd.f32 %v7038_v63, %v6579_v39 }
 0x3f4   : > { %v9613_v28 = vpop.f32.mrf.mxu1 }
 0x3f5   : > { %7185 = vst [vmem:[%s12956_s26 + $0x1e8] sm:$0xff] %v7121_v59  ;;  %v7120_v46 = vmul.f32 %v7039_v21, %v14894_v31  ;;  %v7057_v1 = vadd.f32 %v9613_v28, %v6597_v29 }
 0x3f6   : > { %v7050_v2 = vpop.f32.mrf.mxu1 }
 0x3f7   : > { %7184 = vst [vmem:[%s12956_s26 + $0x1e0] sm:$0xff] %v7120_v46  ;;  %v7123_v36 = vmul.f32 %v7057_v1, %v14895_v17  ;;  %v7051_v6 = vadd.f32 %v7050_v2, %v6591_v61 }
 0x3f9   : > { %7187 = vst [vmem:[%s12956_s26 + $0x1f8] sm:$0xff] %v7123_v36  ;;  %v7122_v48 = vmul.f32 %v7051_v6, %v14896_v12 }
 0x3fb   : > { %7186 = vst [vmem:[%s12956_s26 + $0x1f0] sm:$0xff] %v7122_v48 }
 0x3fc   : > { %9685 = shalt.err (!%p9682_p5)
}
 0x3fd   : > { %s9686_s9 = scalar_lea.hbm %s13147_s4, 8192  ;;  %s9690_s18 = scalar_lea.hbm %s13204_s3, 16384 }
 0x3fe   : > { %p9687_p6 = scmp.ne.s32.totalorder %s13147_s4, %s9686_s9  ;;  %p9691_p10 = scmp.lt.s32.totalorder %s13147_s4, %s13204_s3 }
 0x3ff   : > { %p9692_p11 = scmp.lt.s32.totalorder %s9690_s18, %s9686_s9 }
 0x400   : > { %p9688_p7 = pnand %p9687_p6, %p9814_p4 }
 0x401   : > { %p9693_p12 = por %p9692_p11, %p9691_p10 }
 0x402   : > { %p9689_p9 = pneg %p9688_p7 }
 0x404   : > { %p9694_p13 = pnand %p9693_p12, %p9689_p9 }
 0x406   : > { %9697 = shalt.err (!%p9694_p13)
}
 0x407   : > { %s9752_s23 = smov 128   ;;  %s9753_s26 = smov 8  }
 0x408   : > { %9614 = dma.vmem_to_hbm [thread:$0]  (%p9814_p4), %s13149_s28, 8192, %s13147_s4, %s13156_s15, %s9752_s23, %s9752_s23, %s9753_s26  }
 0x409 PF: > { %p9620_p0 = scmp.ge.s32.totalorder %s9748_s17, 2  ;;  %s7219_s27 = sand.u32 1, %s9728_s12  }
 0x40a   : > { %s7220_s29 = scalar_lea.sflag [#allocation3], %s7219_s27 }
 0x40b   : > { %p9617_p1 = pnand %p9620_p0, %p9821_p8 }
 0x40d   : > { %p9618_p2 = pneg %p9617_p1 }
 0x40f   : > { %9723 = dma.done.wait (%p9618_p2), %s7220_s29, 8192  }
 0x410   : > { %9725 = vsyncadd (%p9618_p2), %s7220_s29, 4294959104  ;;  %s16_s17 = sadd.s32 1, %s9748_s17   ;;  %s14897_s12 = smov %s9732_s13 }
 0x411   : > { %p13_p3 = scmp.ge.s32.totalorder %s16_s17, 4   ;;  %s14898_s13 = smov %s9736_s14 }
 0x412   : > { %s14899_s14 = smov %s9827_s25  ;;  %s14900_s15 = smov %s9744_s16 }
 0x413   : > { %s14901_s16 = smov %s14903_s20  ;;  %15 = sbr.rel (!%p13_p3) target bundleno = 4 (0x4), region = 67 }
 0x418   :  { %7225 = vsyncpa [#allocation3], 1 }
 0x419   :  { %7227 = vsyncpa [#allocation3 + $0x1], 1 }

</bundles_post_ra>
